<compile_context>
chip_gen: v6e
topology: v6e:2x2x1
jax: 0.10.0
libtpu: 0.0.40
codegen_flags: <defaults>
</compile_context>

<pallas_src>
import jax
import jax.numpy as jnp
from jax import lax
from jax.experimental import pallas as pl
from jax.experimental.pallas import tpu as pltpu

N_INPUT = 5
N_HIDDEN = 128
N_LAYERS = 2
N_OUTPUT = 1


def _lstm_cell(gates, c_prev, hidden):
    """PyTorch gate order: i, f, g, o."""
    i_g = jax.nn.sigmoid(gates[:, 0 * hidden:1 * hidden])
    f_g = jax.nn.sigmoid(gates[:, 1 * hidden:2 * hidden])
    g_g = jnp.tanh(gates[:, 2 * hidden:3 * hidden])
    o_g = jax.nn.sigmoid(gates[:, 3 * hidden:4 * hidden])
    c_new = f_g * c_prev + i_g * g_g
    h_new = o_g * jnp.tanh(c_new)
    return h_new, c_new


def _fused_lstm2_head_kernel(preact1_ref, whh1_ref, w2_ref, b2_ref,
                             wout_ref, bout_ref, out_ref, xh_sc):
    """Two stacked LSTM layers + Linear head, fused in a single kernel.

    preact1_ref: (T, B, 4H) time-major layer-1 pre-activations
                 (x @ W_ih1^T + b_ih1 + b_hh1), computed once outside the loop.
    whh1_ref:    (H, 4H)    layer-1 recurrent weights (transposed).
    w2_ref:      (2H, 4H)   layer-2 stacked [W_ih2^T; W_hh2^T].
    b2_ref:      (1, 4H)    layer-2 combined bias.
    wout_ref:    (H, O), bout_ref: (1, O)   final Linear.
    out_ref:     (T, B, O)  per-step outputs.
    xh_sc:       (B, 2H)    VMEM scratch holding [h1_t | h2_{t-1}] for the fused
                            K=2H layer-2 gate matmul.
    """
    T, B, _ = preact1_ref.shape
    H = whh1_ref.shape[0]

    def step(t, carry):
        h1, c1, h2, c2 = carry

        # ---- layer 1: only the recurrent matmul sits on the critical path ----
        gates1 = preact1_ref[t] + jnp.dot(
            h1, whh1_ref[...], preferred_element_type=jnp.float32)
        h1, c1 = _lstm_cell(gates1, c1, H)

        # ---- layer 2: single K=2H matmul against stacked weights --------------
        # (on v5e this is the same number of 128-deep MXU passes as two separate
        #  matmuls; on v6e/v7x it fills the 256-deep MXU and drops one VALU add)
        xh_sc[:, 0:H] = h1
        xh_sc[:, H:2 * H] = h2
        gates2 = jnp.dot(xh_sc[...], w2_ref[...],
                         preferred_element_type=jnp.float32) + b2_ref[...]
        h2, c2 = _lstm_cell(gates2, c2, H)

        # ---- fused output head -------------------------------------------------
        y = jnp.dot(h2, wout_ref[...],
                    preferred_element_type=jnp.float32) + bout_ref[...]
        out_ref[t] = y.astype(out_ref.dtype)
        return h1, c1, h2, c2

    zeros = jnp.zeros((B, H), jnp.float32)
    lax.fori_loop(0, T, step, (zeros, zeros, zeros, zeros), unroll=True)


def fused_lstm2_head(preact1, w_hh1_t, w2_stacked, b2, w_out_t, b_out):
    """preact1: (T, B, 4H) -> per-step outputs (T, B, O). Single pallas_call."""
    T, B, G = preact1.shape
    H = w_hh1_t.shape[0]
    O = w_out_t.shape[1]
    return pl.pallas_call(
        _fused_lstm2_head_kernel,
        out_shape=jax.ShapeDtypeStruct((T, B, O), jnp.float32),
        in_specs=[
            pl.BlockSpec((T, B, G), lambda: (0, 0, 0)),   # layer-1 pre-activations
            pl.BlockSpec((H, G), lambda: (0, 0)),         # W_hh1^T
            pl.BlockSpec((2 * H, G), lambda: (0, 0)),     # stacked layer-2 weights
            pl.BlockSpec((1, G), lambda: (0, 0)),         # layer-2 bias
            pl.BlockSpec((H, O), lambda: (0, 0)),         # out1 weight^T
            pl.BlockSpec((1, O), lambda: (0, 0)),         # out1 bias
        ],
        out_specs=pl.BlockSpec((T, B, O), lambda: (0, 0, 0)),
        scratch_shapes=[pltpu.VMEM((B, 2 * H), jnp.float32)],
    )(preact1, w_hh1_t, w2_stacked, b2, w_out_t, b_out)


def init_params(key, n_input=N_INPUT, n_hidden=N_HIDDEN, n_output=N_OUTPUT,
                n_layers=N_LAYERS):
    """Deterministic uniform(-1/sqrt(H), 1/sqrt(H)) init, mimicking PyTorch defaults."""
    bound = 1.0 / jnp.sqrt(jnp.float32(n_hidden))
    params = {"lstm": []}
    for layer in range(n_layers):
        d_in = n_input if layer == 0 else n_hidden
        key, k1, k2, k3, k4 = jax.random.split(key, 5)
        w_ih = jax.random.uniform(k1, (4 * n_hidden, d_in), jnp.float32, -bound, bound)
        w_hh = jax.random.uniform(k2, (4 * n_hidden, n_hidden), jnp.float32, -bound, bound)
        b_ih = jax.random.uniform(k3, (4 * n_hidden,), jnp.float32, -bound, bound)
        b_hh = jax.random.uniform(k4, (4 * n_hidden,), jnp.float32, -bound, bound)
        params["lstm"].append({
            "w_ih_t": w_ih.T,                       # (d_in, 4H)
            "w_hh_t": w_hh.T,                       # (H, 4H)
            "bias": (b_ih + b_hh)[None, :],         # (1, 4H)
        })
    key, k5, k6 = jax.random.split(key, 3)
    lin_bound = 1.0 / jnp.sqrt(jnp.float32(n_hidden))
    w_out = jax.random.uniform(k5, (n_output, n_hidden), jnp.float32, -lin_bound, lin_bound)
    b_out = jax.random.uniform(k6, (n_output,), jnp.float32, -lin_bound, lin_bound)
    params["out1"] = {"w_t": w_out.T, "b": b_out[None, :]}   # (H, O), (1, O)
    return params


@jax.jit
def rnn_forward(params, x_btd):
    """x_btd: (B, T, n_input) -> (B, T, n_output)."""
    assert len(params["lstm"]) == 2, "fused kernel is specialized to n_layers=2"
    B, T, D = x_btd.shape
    x = x_btd.astype(jnp.float32)
    l0, l1 = params["lstm"]

    # Hoisted layer-1 input projection: one (T*B, D) @ (D, 4H) matmul for all
    # timesteps (time-major), removing it from the per-step critical path.
    x_tm = jnp.transpose(x, (1, 0, 2)).reshape(T * B, D)          # tiny (T*B, 5)
    preact1 = (x_tm @ l0["w_ih_t"] + l0["bias"]).reshape(T, B, 4 * N_HIDDEN)

    # Layer-2 stacked gate weights [W_ih2^T; W_hh2^T] -> (2H, 4H).
    w2 = jnp.concatenate([l1["w_ih_t"], l1["w_hh_t"]], axis=0)

    out_tbo = fused_lstm2_head(preact1, l0["w_hh_t"], w2, l1["bias"],
                               params["out1"]["w_t"], params["out1"]["b"])
    return jnp.transpose(out_tbo, (1, 0, 2))                      # (B, T, O)


if __name__ == "__main__":
    key = jax.random.PRNGKey(0)
    key_params, key_x = jax.random.split(key)
    params = init_params(key_params)

    B, T = 2, 8
    x = jax.random.normal(key_x, (B, T, N_INPUT), jnp.float32)

    out = rnn_forward(params, x)
    jax.block_until_ready(out)
    assert out.shape == (B, T, N_OUTPUT), out.shape
    assert bool(jnp.all(jnp.isfinite(out)))
    print("KERNEL_OK")
</pallas_src>

<mosaic_0001>
module attributes {stable_mosaic.version = 11 : i64} {
  func.func @_fused_lstm2_head_kernel(%arg0: memref<8x2x512xf32, #tpu.memory_space<vmem>>, %arg1: memref<128x512xf32, #tpu.memory_space<vmem>>, %arg2: memref<256x512xf32, #tpu.memory_space<vmem>>, %arg3: memref<1x512xf32, #tpu.memory_space<vmem>>, %arg4: memref<128x1xf32, #tpu.memory_space<vmem>>, %arg5: memref<1x1xf32, #tpu.memory_space<vmem>>, %arg6: memref<8x2x1xf32, #tpu.memory_space<vmem>>, %arg7: memref<2x256xf32, #tpu.memory_space<vmem>>) attributes {dimension_semantics = [], scalar_prefetch = 0 : i64, scratch_operands = 1 : i64, tpu.core_type = #tpu.core_type<tc>} {
    %cst = arith.constant 0.000000e+00 : f32
    %0 = vector.broadcast %cst : f32 to vector<2x128xf32>
    %c0_i32 = arith.constant 0 : i32
    %1 = arith.index_cast %c0_i32 : i32 to index
    %c0 = arith.constant 0 : index
    %c0_0 = arith.constant 0 : index
    %2 = vector.load %arg0[%1, %c0, %c0_0] : memref<8x2x512xf32, #tpu.memory_space<vmem>>, vector<1x2x512xf32>
    %3 = vector.shape_cast %2 : vector<1x2x512xf32> to vector<2x512xf32>
    %c0_1 = arith.constant 0 : index
    %c0_2 = arith.constant 0 : index
    %4 = vector.load %arg1[%c0_1, %c0_2] : memref<128x512xf32, #tpu.memory_space<vmem>>, vector<128x512xf32>
    %cst_3 = arith.constant dense<0.000000e+00> : vector<2x512xf32>
    %5 = tpu.matmul %0, %4, %cst_3 {dimension_numbers = #tpu.dot_dimension_numbers<[1], [0], [0], [1], [0, 0, 1, 1], [], []>} : vector<2x128xf32>, vector<128x512xf32>, vector<2x512xf32> -> vector<2x512xf32>
    %6 = arith.addf %3, %5 : vector<2x512xf32>
    %7 = vector.extract_strided_slice %6 {offsets = [0, 0], sizes = [2, 128], strides = [1, 1]} : vector<2x512xf32> to vector<2x128xf32>
    %8 = arith.negf %7 : vector<2x128xf32>
    %9 = math.exp %8 : vector<2x128xf32>
    %cst_4 = arith.constant 1.000000e+00 : f32
    %10 = vector.broadcast %cst_4 : f32 to vector<2x128xf32>
    %11 = arith.addf %10, %9 : vector<2x128xf32>
    %12 = arith.divf %10, %11 : vector<2x128xf32>
    %13 = vector.extract_strided_slice %6 {offsets = [0, 128], sizes = [2, 128], strides = [1, 1]} : vector<2x512xf32> to vector<2x128xf32>
    %14 = arith.negf %13 : vector<2x128xf32>
    %15 = math.exp %14 : vector<2x128xf32>
    %cst_5 = arith.constant 1.000000e+00 : f32
    %16 = vector.broadcast %cst_5 : f32 to vector<2x128xf32>
    %17 = arith.addf %16, %15 : vector<2x128xf32>
    %18 = arith.divf %16, %17 : vector<2x128xf32>
    %19 = vector.extract_strided_slice %6 {offsets = [0, 256], sizes = [2, 128], strides = [1, 1]} : vector<2x512xf32> to vector<2x128xf32>
    %20 = math.tanh %19 : vector<2x128xf32>
    %21 = vector.extract_strided_slice %6 {offsets = [0, 384], sizes = [2, 128], strides = [1, 1]} : vector<2x512xf32> to vector<2x128xf32>
    %22 = arith.negf %21 : vector<2x128xf32>
    %23 = math.exp %22 : vector<2x128xf32>
    %cst_6 = arith.constant 1.000000e+00 : f32
    %24 = vector.broadcast %cst_6 : f32 to vector<2x128xf32>
    %25 = arith.addf %24, %23 : vector<2x128xf32>
    %26 = arith.divf %24, %25 : vector<2x128xf32>
    %27 = arith.mulf %18, %0 : vector<2x128xf32>
    %28 = arith.mulf %12, %20 : vector<2x128xf32>
    %29 = arith.addf %27, %28 : vector<2x128xf32>
    %30 = math.tanh %29 : vector<2x128xf32>
    %31 = arith.mulf %26, %30 : vector<2x128xf32>
    %c0_7 = arith.constant 0 : index
    %c0_8 = arith.constant 0 : index
    %32 = vector.load %arg7[%c0_7, %c0_8] : memref<2x256xf32, #tpu.memory_space<vmem>>, vector<2x128xf32>
    tpu.vector_store %arg7[%c0_7, %c0_8], %31 {strides = array<i32>} : memref<2x256xf32, #tpu.memory_space<vmem>>, vector<2x128xf32>,
    %c0_9 = arith.constant 0 : index
    %c128 = arith.constant 128 : index
    %33 = vector.load %arg7[%c0_9, %c128] : memref<2x256xf32, #tpu.memory_space<vmem>>, vector<2x128xf32>
    tpu.vector_store %arg7[%c0_9, %c128], %0 {strides = array<i32>} : memref<2x256xf32, #tpu.memory_space<vmem>>, vector<2x128xf32>,
    %c0_10 = arith.constant 0 : index
    %c0_11 = arith.constant 0 : index
    %34 = vector.load %arg7[%c0_10, %c0_11] : memref<2x256xf32, #tpu.memory_space<vmem>>, vector<2x256xf32>
    %c0_12 = arith.constant 0 : index
    %c0_13 = arith.constant 0 : index
    %35 = vector.load %arg2[%c0_12, %c0_13] : memref<256x512xf32, #tpu.memory_space<vmem>>, vector<256x512xf32>
    %cst_14 = arith.constant dense<0.000000e+00> : vector<2x512xf32>
    %36 = tpu.matmul %34, %35, %cst_14 {dimension_numbers = #tpu.dot_dimension_numbers<[1], [0], [0], [1], [0, 0, 1, 1], [], []>} : vector<2x256xf32>, vector<256x512xf32>, vector<2x512xf32> -> vector<2x512xf32>
    %c0_15 = arith.constant 0 : index
    %c0_16 = arith.constant 0 : index
    %37 = vector.load %arg3[%c0_15, %c0_16] : memref<1x512xf32, #tpu.memory_space<vmem>>, vector<1x512xf32>
    %38 = vector.broadcast %37 : vector<1x512xf32> to vector<2x512xf32>
    %39 = arith.addf %36, %38 : vector<2x512xf32>
    %40 = vector.extract_strided_slice %39 {offsets = [0, 0], sizes = [2, 128], strides = [1, 1]} : vector<2x512xf32> to vector<2x128xf32>
    %41 = arith.negf %40 : vector<2x128xf32>
    %42 = math.exp %41 : vector<2x128xf32>
    %cst_17 = arith.constant 1.000000e+00 : f32
    %43 = vector.broadcast %cst_17 : f32 to vector<2x128xf32>
    %44 = arith.addf %43, %42 : vector<2x128xf32>
    %45 = arith.divf %43, %44 : vector<2x128xf32>
    %46 = vector.extract_strided_slice %39 {offsets = [0, 128], sizes = [2, 128], strides = [1, 1]} : vector<2x512xf32> to vector<2x128xf32>
    %47 = arith.negf %46 : vector<2x128xf32>
    %48 = math.exp %47 : vector<2x128xf32>
    %cst_18 = arith.constant 1.000000e+00 : f32
    %49 = vector.broadcast %cst_18 : f32 to vector<2x128xf32>
    %50 = arith.addf %49, %48 : vector<2x128xf32>
    %51 = arith.divf %49, %50 : vector<2x128xf32>
    %52 = vector.extract_strided_slice %39 {offsets = [0, 256], sizes = [2, 128], strides = [1, 1]} : vector<2x512xf32> to vector<2x128xf32>
    %53 = math.tanh %52 : vector<2x128xf32>
    %54 = vector.extract_strided_slice %39 {offsets = [0, 384], sizes = [2, 128], strides = [1, 1]} : vector<2x512xf32> to vector<2x128xf32>
    %55 = arith.negf %54 : vector<2x128xf32>
    %56 = math.exp %55 : vector<2x128xf32>
    %cst_19 = arith.constant 1.000000e+00 : f32
    %57 = vector.broadcast %cst_19 : f32 to vector<2x128xf32>
    %58 = arith.addf %57, %56 : vector<2x128xf32>
    %59 = arith.divf %57, %58 : vector<2x128xf32>
    %60 = arith.mulf %51, %0 : vector<2x128xf32>
    %61 = arith.mulf %45, %53 : vector<2x128xf32>
    %62 = arith.addf %60, %61 : vector<2x128xf32>
    %63 = math.tanh %62 : vector<2x128xf32>
    %64 = arith.mulf %59, %63 : vector<2x128xf32>
    %c0_20 = arith.constant 0 : index
    %c0_21 = arith.constant 0 : index
    %65 = vector.load %arg4[%c0_20, %c0_21] : memref<128x1xf32, #tpu.memory_space<vmem>>, vector<128x1xf32>
    %cst_22 = arith.constant dense<0.000000e+00> : vector<2x1xf32>
    %66 = tpu.matmul %64, %65, %cst_22 {dimension_numbers = #tpu.dot_dimension_numbers<[1], [0], [0], [1], [0, 0, 1, 1], [], []>} : vector<2x128xf32>, vector<128x1xf32>, vector<2x1xf32> -> vector<2x1xf32>
    %c0_23 = arith.constant 0 : index
    %c0_24 = arith.constant 0 : index
    %67 = vector.load %arg5[%c0_23, %c0_24] : memref<1x1xf32, #tpu.memory_space<vmem>>, vector<1x1xf32>
    %68 = vector.broadcast %67 : vector<1x1xf32> to vector<2x1xf32>
    %69 = arith.addf %66, %68 : vector<2x1xf32>
    %70 = arith.index_cast %c0_i32 : i32 to index
    %c0_25 = arith.constant 0 : index
    %c0_26 = arith.constant 0 : index
    %71 = vector.load %arg6[%70, %c0_25, %c0_26] : memref<8x2x1xf32, #tpu.memory_space<vmem>>, vector<1x2x1xf32>
    %72 = vector.shape_cast %71 : vector<1x2x1xf32> to vector<2x1xf32>
    %73 = vector.shape_cast %69 : vector<2x1xf32> to vector<1x2x1xf32>
    tpu.vector_store %arg6[%70, %c0_25, %c0_26], %73 {strides = array<i32>} : memref<8x2x1xf32, #tpu.memory_space<vmem>>, vector<1x2x1xf32>,
    %c1_i32 = arith.constant 1 : i32
    %74 = arith.index_cast %c1_i32 : i32 to index
    %c0_27 = arith.constant 0 : index
    %c0_28 = arith.constant 0 : index
    %75 = vector.load %arg0[%74, %c0_27, %c0_28] : memref<8x2x512xf32, #tpu.memory_space<vmem>>, vector<1x2x512xf32>
    %76 = vector.shape_cast %75 : vector<1x2x512xf32> to vector<2x512xf32>
    %c0_29 = arith.constant 0 : index
    %c0_30 = arith.constant 0 : index
    %77 = vector.load %arg1[%c0_29, %c0_30] : memref<128x512xf32, #tpu.memory_space<vmem>>, vector<128x512xf32>
    %cst_31 = arith.constant dense<0.000000e+00> : vector<2x512xf32>
    %78 = tpu.matmul %31, %77, %cst_31 {dimension_numbers = #tpu.dot_dimension_numbers<[1], [0], [0], [1], [0, 0, 1, 1], [], []>} : vector<2x128xf32>, vector<128x512xf32>, vector<2x512xf32> -> vector<2x512xf32>
    %79 = arith.addf %76, %78 : vector<2x512xf32>
    %80 = vector.extract_strided_slice %79 {offsets = [0, 0], sizes = [2, 128], strides = [1, 1]} : vector<2x512xf32> to vector<2x128xf32>
    %81 = arith.negf %80 : vector<2x128xf32>
    %82 = math.exp %81 : vector<2x128xf32>
    %cst_32 = arith.constant 1.000000e+00 : f32
    %83 = vector.broadcast %cst_32 : f32 to vector<2x128xf32>
    %84 = arith.addf %83, %82 : vector<2x128xf32>
    %85 = arith.divf %83, %84 : vector<2x128xf32>
    %86 = vector.extract_strided_slice %79 {offsets = [0, 128], sizes = [2, 128], strides = [1, 1]} : vector<2x512xf32> to vector<2x128xf32>
    %87 = arith.negf %86 : vector<2x128xf32>
    %88 = math.exp %87 : vector<2x128xf32>
    %cst_33 = arith.constant 1.000000e+00 : f32
    %89 = vector.broadcast %cst_33 : f32 to vector<2x128xf32>
    %90 = arith.addf %89, %88 : vector<2x128xf32>
    %91 = arith.divf %89, %90 : vector<2x128xf32>
    %92 = vector.extract_strided_slice %79 {offsets = [0, 256], sizes = [2, 128], strides = [1, 1]} : vector<2x512xf32> to vector<2x128xf32>
    %93 = math.tanh %92 : vector<2x128xf32>
    %94 = vector.extract_strided_slice %79 {offsets = [0, 384], sizes = [2, 128], strides = [1, 1]} : vector<2x512xf32> to vector<2x128xf32>
    %95 = arith.negf %94 : vector<2x128xf32>
    %96 = math.exp %95 : vector<2x128xf32>
    %cst_34 = arith.constant 1.000000e+00 : f32
    %97 = vector.broadcast %cst_34 : f32 to vector<2x128xf32>
    %98 = arith.addf %97, %96 : vector<2x128xf32>
    %99 = arith.divf %97, %98 : vector<2x128xf32>
    %100 = arith.mulf %91, %29 : vector<2x128xf32>
    %101 = arith.mulf %85, %93 : vector<2x128xf32>
    %102 = arith.addf %100, %101 : vector<2x128xf32>
    %103 = math.tanh %102 : vector<2x128xf32>
    %104 = arith.mulf %99, %103 : vector<2x128xf32>
    %c0_35 = arith.constant 0 : index
    %c0_36 = arith.constant 0 : index
    %105 = vector.load %arg7[%c0_35, %c0_36] : memref<2x256xf32, #tpu.memory_space<vmem>>, vector<2x128xf32>
    tpu.vector_store %arg7[%c0_35, %c0_36], %104 {strides = array<i32>} : memref<2x256xf32, #tpu.memory_space<vmem>>, vector<2x128xf32>,
    %c0_37 = arith.constant 0 : index
    %c128_38 = arith.constant 128 : index
    %106 = vector.load %arg7[%c0_37, %c128_38] : memref<2x256xf32, #tpu.memory_space<vmem>>, vector<2x128xf32>
    tpu.vector_store %arg7[%c0_37, %c128_38], %64 {strides = array<i32>} : memref<2x256xf32, #tpu.memory_space<vmem>>, vector<2x128xf32>,
    %c0_39 = arith.constant 0 : index
    %c0_40 = arith.constant 0 : index
    %107 = vector.load %arg7[%c0_39, %c0_40] : memref<2x256xf32, #tpu.memory_space<vmem>>, vector<2x256xf32>
    %c0_41 = arith.constant 0 : index
    %c0_42 = arith.constant 0 : index
    %108 = vector.load %arg2[%c0_41, %c0_42] : memref<256x512xf32, #tpu.memory_space<vmem>>, vector<256x512xf32>
    %cst_43 = arith.constant dense<0.000000e+00> : vector<2x512xf32>
    %109 = tpu.matmul %107, %108, %cst_43 {dimension_numbers = #tpu.dot_dimension_numbers<[1], [0], [0], [1], [0, 0, 1, 1], [], []>} : vector<2x256xf32>, vector<256x512xf32>, vector<2x512xf32> -> vector<2x512xf32>
    %c0_44 = arith.constant 0 : index
    %c0_45 = arith.constant 0 : index
    %110 = vector.load %arg3[%c0_44, %c0_45] : memref<1x512xf32, #tpu.memory_space<vmem>>, vector<1x512xf32>
    %111 = vector.broadcast %110 : vector<1x512xf32> to vector<2x512xf32>
    %112 = arith.addf %109, %111 : vector<2x512xf32>
    %113 = vector.extract_strided_slice %112 {offsets = [0, 0], sizes = [2, 128], strides = [1, 1]} : vector<2x512xf32> to vector<2x128xf32>
    %114 = arith.negf %113 : vector<2x128xf32>
    %115 = math.exp %114 : vector<2x128xf32>
    %cst_46 = arith.constant 1.000000e+00 : f32
    %116 = vector.broadcast %cst_46 : f32 to vector<2x128xf32>
    %117 = arith.addf %116, %115 : vector<2x128xf32>
    %118 = arith.divf %116, %117 : vector<2x128xf32>
    %119 = vector.extract_strided_slice %112 {offsets = [0, 128], sizes = [2, 128], strides = [1, 1]} : vector<2x512xf32> to vector<2x128xf32>
    %120 = arith.negf %119 : vector<2x128xf32>
    %121 = math.exp %120 : vector<2x128xf32>
    %cst_47 = arith.constant 1.000000e+00 : f32
    %122 = vector.broadcast %cst_47 : f32 to vector<2x128xf32>
    %123 = arith.addf %122, %121 : vector<2x128xf32>
    %124 = arith.divf %122, %123 : vector<2x128xf32>
    %125 = vector.extract_strided_slice %112 {offsets = [0, 256], sizes = [2, 128], strides = [1, 1]} : vector<2x512xf32> to vector<2x128xf32>
    %126 = math.tanh %125 : vector<2x128xf32>
    %127 = vector.extract_strided_slice %112 {offsets = [0, 384], sizes = [2, 128], strides = [1, 1]} : vector<2x512xf32> to vector<2x128xf32>
    %128 = arith.negf %127 : vector<2x128xf32>
    %129 = math.exp %128 : vector<2x128xf32>
    %cst_48 = arith.constant 1.000000e+00 : f32
    %130 = vector.broadcast %cst_48 : f32 to vector<2x128xf32>
    %131 = arith.addf %130, %129 : vector<2x128xf32>
    %132 = arith.divf %130, %131 : vector<2x128xf32>
    %133 = arith.mulf %124, %62 : vector<2x128xf32>
    %134 = arith.mulf %118, %126 : vector<2x128xf32>
    %135 = arith.addf %133, %134 : vector<2x128xf32>
    %136 = math.tanh %135 : vector<2x128xf32>
    %137 = arith.mulf %132, %136 : vector<2x128xf32>
    %c0_49 = arith.constant 0 : index
    %c0_50 = arith.constant 0 : index
    %138 = vector.load %arg4[%c0_49, %c0_50] : memref<128x1xf32, #tpu.memory_space<vmem>>, vector<128x1xf32>
    %cst_51 = arith.constant dense<0.000000e+00> : vector<2x1xf32>
    %139 = tpu.matmul %137, %138, %cst_51 {dimension_numbers = #tpu.dot_dimension_numbers<[1], [0], [0], [1], [0, 0, 1, 1], [], []>} : vector<2x128xf32>, vector<128x1xf32>, vector<2x1xf32> -> vector<2x1xf32>
    %c0_52 = arith.constant 0 : index
    %c0_53 = arith.constant 0 : index
    %140 = vector.load %arg5[%c0_52, %c0_53] : memref<1x1xf32, #tpu.memory_space<vmem>>, vector<1x1xf32>
    %141 = vector.broadcast %140 : vector<1x1xf32> to vector<2x1xf32>
    %142 = arith.addf %139, %141 : vector<2x1xf32>
    %143 = arith.index_cast %c1_i32 : i32 to index
    %c0_54 = arith.constant 0 : index
    %c0_55 = arith.constant 0 : index
    %144 = vector.load %arg6[%143, %c0_54, %c0_55] : memref<8x2x1xf32, #tpu.memory_space<vmem>>, vector<1x2x1xf32>
    %145 = vector.shape_cast %144 : vector<1x2x1xf32> to vector<2x1xf32>
    %146 = vector.shape_cast %142 : vector<2x1xf32> to vector<1x2x1xf32>
    tpu.vector_store %arg6[%143, %c0_54, %c0_55], %146 {strides = array<i32>} : memref<8x2x1xf32, #tpu.memory_space<vmem>>, vector<1x2x1xf32>,
    %c2_i32 = arith.constant 2 : i32
    %147 = arith.index_cast %c2_i32 : i32 to index
    %c0_56 = arith.constant 0 : index
    %c0_57 = arith.constant 0 : index
    %148 = vector.load %arg0[%147, %c0_56, %c0_57] : memref<8x2x512xf32, #tpu.memory_space<vmem>>, vector<1x2x512xf32>
    %149 = vector.shape_cast %148 : vector<1x2x512xf32> to vector<2x512xf32>
    %c0_58 = arith.constant 0 : index
    %c0_59 = arith.constant 0 : index
    %150 = vector.load %arg1[%c0_58, %c0_59] : memref<128x512xf32, #tpu.memory_space<vmem>>, vector<128x512xf32>
    %cst_60 = arith.constant dense<0.000000e+00> : vector<2x512xf32>
    %151 = tpu.matmul %104, %150, %cst_60 {dimension_numbers = #tpu.dot_dimension_numbers<[1], [0], [0], [1], [0, 0, 1, 1], [], []>} : vector<2x128xf32>, vector<128x512xf32>, vector<2x512xf32> -> vector<2x512xf32>
    %152 = arith.addf %149, %151 : vector<2x512xf32>
    %153 = vector.extract_strided_slice %152 {offsets = [0, 0], sizes = [2, 128], strides = [1, 1]} : vector<2x512xf32> to vector<2x128xf32>
    %154 = arith.negf %153 : vector<2x128xf32>
    %155 = math.exp %154 : vector<2x128xf32>
    %cst_61 = arith.constant 1.000000e+00 : f32
    %156 = vector.broadcast %cst_61 : f32 to vector<2x128xf32>
    %157 = arith.addf %156, %155 : vector<2x128xf32>
    %158 = arith.divf %156, %157 : vector<2x128xf32>
    %159 = vector.extract_strided_slice %152 {offsets = [0, 128], sizes = [2, 128], strides = [1, 1]} : vector<2x512xf32> to vector<2x128xf32>
    %160 = arith.negf %159 : vector<2x128xf32>
    %161 = math.exp %160 : vector<2x128xf32>
    %cst_62 = arith.constant 1.000000e+00 : f32
    %162 = vector.broadcast %cst_62 : f32 to vector<2x128xf32>
    %163 = arith.addf %162, %161 : vector<2x128xf32>
    %164 = arith.divf %162, %163 : vector<2x128xf32>
    %165 = vector.extract_strided_slice %152 {offsets = [0, 256], sizes = [2, 128], strides = [1, 1]} : vector<2x512xf32> to vector<2x128xf32>
    %166 = math.tanh %165 : vector<2x128xf32>
    %167 = vector.extract_strided_slice %152 {offsets = [0, 384], sizes = [2, 128], strides = [1, 1]} : vector<2x512xf32> to vector<2x128xf32>
    %168 = arith.negf %167 : vector<2x128xf32>
    %169 = math.exp %168 : vector<2x128xf32>
    %cst_63 = arith.constant 1.000000e+00 : f32
    %170 = vector.broadcast %cst_63 : f32 to vector<2x128xf32>
    %171 = arith.addf %170, %169 : vector<2x128xf32>
    %172 = arith.divf %170, %171 : vector<2x128xf32>
    %173 = arith.mulf %164, %102 : vector<2x128xf32>
    %174 = arith.mulf %158, %166 : vector<2x128xf32>
    %175 = arith.addf %173, %174 : vector<2x128xf32>
    %176 = math.tanh %175 : vector<2x128xf32>
    %177 = arith.mulf %172, %176 : vector<2x128xf32>
    %c0_64 = arith.constant 0 : index
    %c0_65 = arith.constant 0 : index
    %178 = vector.load %arg7[%c0_64, %c0_65] : memref<2x256xf32, #tpu.memory_space<vmem>>, vector<2x128xf32>
    tpu.vector_store %arg7[%c0_64, %c0_65], %177 {strides = array<i32>} : memref<2x256xf32, #tpu.memory_space<vmem>>, vector<2x128xf32>,
    %c0_66 = arith.constant 0 : index
    %c128_67 = arith.constant 128 : index
    %179 = vector.load %arg7[%c0_66, %c128_67] : memref<2x256xf32, #tpu.memory_space<vmem>>, vector<2x128xf32>
    tpu.vector_store %arg7[%c0_66, %c128_67], %137 {strides = array<i32>} : memref<2x256xf32, #tpu.memory_space<vmem>>, vector<2x128xf32>,
    %c0_68 = arith.constant 0 : index
    %c0_69 = arith.constant 0 : index
    %180 = vector.load %arg7[%c0_68, %c0_69] : memref<2x256xf32, #tpu.memory_space<vmem>>, vector<2x256xf32>
    %c0_70 = arith.constant 0 : index
    %c0_71 = arith.constant 0 : index
    %181 = vector.load %arg2[%c0_70, %c0_71] : memref<256x512xf32, #tpu.memory_space<vmem>>, vector<256x512xf32>
    %cst_72 = arith.constant dense<0.000000e+00> : vector<2x512xf32>
    %182 = tpu.matmul %180, %181, %cst_72 {dimension_numbers = #tpu.dot_dimension_numbers<[1], [0], [0], [1], [0, 0, 1, 1], [], []>} : vector<2x256xf32>, vector<256x512xf32>, vector<2x512xf32> -> vector<2x512xf32>
    %c0_73 = arith.constant 0 : index
    %c0_74 = arith.constant 0 : index
    %183 = vector.load %arg3[%c0_73, %c0_74] : memref<1x512xf32, #tpu.memory_space<vmem>>, vector<1x512xf32>
    %184 = vector.broadcast %183 : vector<1x512xf32> to vector<2x512xf32>
    %185 = arith.addf %182, %184 : vector<2x512xf32>
    %186 = vector.extract_strided_slice %185 {offsets = [0, 0], sizes = [2, 128], strides = [1, 1]} : vector<2x512xf32> to vector<2x128xf32>
    %187 = arith.negf %186 : vector<2x128xf32>
    %188 = math.exp %187 : vector<2x128xf32>
    %cst_75 = arith.constant 1.000000e+00 : f32
    %189 = vector.broadcast %cst_75 : f32 to vector<2x128xf32>
    %190 = arith.addf %189, %188 : vector<2x128xf32>
    %191 = arith.divf %189, %190 : vector<2x128xf32>
    %192 = vector.extract_strided_slice %185 {offsets = [0, 128], sizes = [2, 128], strides = [1, 1]} : vector<2x512xf32> to vector<2x128xf32>
    %193 = arith.negf %192 : vector<2x128xf32>
    %194 = math.exp %193 : vector<2x128xf32>
    %cst_76 = arith.constant 1.000000e+00 : f32
    %195 = vector.broadcast %cst_76 : f32 to vector<2x128xf32>
    %196 = arith.addf %195, %194 : vector<2x128xf32>
    %197 = arith.divf %195, %196 : vector<2x128xf32>
    %198 = vector.extract_strided_slice %185 {offsets = [0, 256], sizes = [2, 128], strides = [1, 1]} : vector<2x512xf32> to vector<2x128xf32>
    %199 = math.tanh %198 : vector<2x128xf32>
    %200 = vector.extract_strided_slice %185 {offsets = [0, 384], sizes = [2, 128], strides = [1, 1]} : vector<2x512xf32> to vector<2x128xf32>
    %201 = arith.negf %200 : vector<2x128xf32>
    %202 = math.exp %201 : vector<2x128xf32>
    %cst_77 = arith.constant 1.000000e+00 : f32
    %203 = vector.broadcast %cst_77 : f32 to vector<2x128xf32>
    %204 = arith.addf %203, %202 : vector<2x128xf32>
    %205 = arith.divf %203, %204 : vector<2x128xf32>
    %206 = arith.mulf %197, %135 : vector<2x128xf32>
    %207 = arith.mulf %191, %199 : vector<2x128xf32>
    %208 = arith.addf %206, %207 : vector<2x128xf32>
    %209 = math.tanh %208 : vector<2x128xf32>
    %210 = arith.mulf %205, %209 : vector<2x128xf32>
    %c0_78 = arith.constant 0 : index
    %c0_79 = arith.constant 0 : index
    %211 = vector.load %arg4[%c0_78, %c0_79] : memref<128x1xf32, #tpu.memory_space<vmem>>, vector<128x1xf32>
    %cst_80 = arith.constant dense<0.000000e+00> : vector<2x1xf32>
    %212 = tpu.matmul %210, %211, %cst_80 {dimension_numbers = #tpu.dot_dimension_numbers<[1], [0], [0], [1], [0, 0, 1, 1], [], []>} : vector<2x128xf32>, vector<128x1xf32>, vector<2x1xf32> -> vector<2x1xf32>
    %c0_81 = arith.constant 0 : index
    %c0_82 = arith.constant 0 : index
    %213 = vector.load %arg5[%c0_81, %c0_82] : memref<1x1xf32, #tpu.memory_space<vmem>>, vector<1x1xf32>
    %214 = vector.broadcast %213 : vector<1x1xf32> to vector<2x1xf32>
    %215 = arith.addf %212, %214 : vector<2x1xf32>
    %216 = arith.index_cast %c2_i32 : i32 to index
    %c0_83 = arith.constant 0 : index
    %c0_84 = arith.constant 0 : index
    %217 = vector.load %arg6[%216, %c0_83, %c0_84] : memref<8x2x1xf32, #tpu.memory_space<vmem>>, vector<1x2x1xf32>
    %218 = vector.shape_cast %217 : vector<1x2x1xf32> to vector<2x1xf32>
    %219 = vector.shape_cast %215 : vector<2x1xf32> to vector<1x2x1xf32>
    tpu.vector_store %arg6[%216, %c0_83, %c0_84], %219 {strides = array<i32>} : memref<8x2x1xf32, #tpu.memory_space<vmem>>, vector<1x2x1xf32>,
    %c3_i32 = arith.constant 3 : i32
    %220 = arith.index_cast %c3_i32 : i32 to index
    %c0_85 = arith.constant 0 : index
    %c0_86 = arith.constant 0 : index
    %221 = vector.load %arg0[%220, %c0_85, %c0_86] : memref<8x2x512xf32, #tpu.memory_space<vmem>>, vector<1x2x512xf32>
    %222 = vector.shape_cast %221 : vector<1x2x512xf32> to vector<2x512xf32>
    %c0_87 = arith.constant 0 : index
    %c0_88 = arith.constant 0 : index
    %223 = vector.load %arg1[%c0_87, %c0_88] : memref<128x512xf32, #tpu.memory_space<vmem>>, vector<128x512xf32>
    %cst_89 = arith.constant dense<0.000000e+00> : vector<2x512xf32>
    %224 = tpu.matmul %177, %223, %cst_89 {dimension_numbers = #tpu.dot_dimension_numbers<[1], [0], [0], [1], [0, 0, 1, 1], [], []>} : vector<2x128xf32>, vector<128x512xf32>, vector<2x512xf32> -> vector<2x512xf32>
    %225 = arith.addf %222, %224 : vector<2x512xf32>
    %226 = vector.extract_strided_slice %225 {offsets = [0, 0], sizes = [2, 128], strides = [1, 1]} : vector<2x512xf32> to vector<2x128xf32>
    %227 = arith.negf %226 : vector<2x128xf32>
    %228 = math.exp %227 : vector<2x128xf32>
    %cst_90 = arith.constant 1.000000e+00 : f32
    %229 = vector.broadcast %cst_90 : f32 to vector<2x128xf32>
    %230 = arith.addf %229, %228 : vector<2x128xf32>
    %231 = arith.divf %229, %230 : vector<2x128xf32>
    %232 = vector.extract_strided_slice %225 {offsets = [0, 128], sizes = [2, 128], strides = [1, 1]} : vector<2x512xf32> to vector<2x128xf32>
    %233 = arith.negf %232 : vector<2x128xf32>
    %234 = math.exp %233 : vector<2x128xf32>
    %cst_91 = arith.constant 1.000000e+00 : f32
    %235 = vector.broadcast %cst_91 : f32 to vector<2x128xf32>
    %236 = arith.addf %235, %234 : vector<2x128xf32>
    %237 = arith.divf %235, %236 : vector<2x128xf32>
    %238 = vector.extract_strided_slice %225 {offsets = [0, 256], sizes = [2, 128], strides = [1, 1]} : vector<2x512xf32> to vector<2x128xf32>
    %239 = math.tanh %238 : vector<2x128xf32>
    %240 = vector.extract_strided_slice %225 {offsets = [0, 384], sizes = [2, 128], strides = [1, 1]} : vector<2x512xf32> to vector<2x128xf32>
    %241 = arith.negf %240 : vector<2x128xf32>
    %242 = math.exp %241 : vector<2x128xf32>
    %cst_92 = arith.constant 1.000000e+00 : f32
    %243 = vector.broadcast %cst_92 : f32 to vector<2x128xf32>
    %244 = arith.addf %243, %242 : vector<2x128xf32>
    %245 = arith.divf %243, %244 : vector<2x128xf32>
    %246 = arith.mulf %237, %175 : vector<2x128xf32>
    %247 = arith.mulf %231, %239 : vector<2x128xf32>
    %248 = arith.addf %246, %247 : vector<2x128xf32>
    %249 = math.tanh %248 : vector<2x128xf32>
    %250 = arith.mulf %245, %249 : vector<2x128xf32>
    %c0_93 = arith.constant 0 : index
    %c0_94 = arith.constant 0 : index
    %251 = vector.load %arg7[%c0_93, %c0_94] : memref<2x256xf32, #tpu.memory_space<vmem>>, vector<2x128xf32>
    tpu.vector_store %arg7[%c0_93, %c0_94], %250 {strides = array<i32>} : memref<2x256xf32, #tpu.memory_space<vmem>>, vector<2x128xf32>,
    %c0_95 = arith.constant 0 : index
    %c128_96 = arith.constant 128 : index
    %252 = vector.load %arg7[%c0_95, %c128_96] : memref<2x256xf32, #tpu.memory_space<vmem>>, vector<2x128xf32>
    tpu.vector_store %arg7[%c0_95, %c128_96], %210 {strides = array<i32>} : memref<2x256xf32, #tpu.memory_space<vmem>>, vector<2x128xf32>,
    %c0_97 = arith.constant 0 : index
    %c0_98 = arith.constant 0 : index
    %253 = vector.load %arg7[%c0_97, %c0_98] : memref<2x256xf32, #tpu.memory_space<vmem>>, vector<2x256xf32>
    %c0_99 = arith.constant 0 : index
    %c0_100 = arith.constant 0 : index
    %254 = vector.load %arg2[%c0_99, %c0_100] : memref<256x512xf32, #tpu.memory_space<vmem>>, vector<256x512xf32>
    %cst_101 = arith.constant dense<0.000000e+00> : vector<2x512xf32>
    %255 = tpu.matmul %253, %254, %cst_101 {dimension_numbers = #tpu.dot_dimension_numbers<[1], [0], [0], [1], [0, 0, 1, 1], [], []>} : vector<2x256xf32>, vector<256x512xf32>, vector<2x512xf32> -> vector<2x512xf32>
    %c0_102 = arith.constant 0 : index
    %c0_103 = arith.constant 0 : index
    %256 = vector.load %arg3[%c0_102, %c0_103] : memref<1x512xf32, #tpu.memory_space<vmem>>, vector<1x512xf32>
    %257 = vector.broadcast %256 : vector<1x512xf32> to vector<2x512xf32>
    %258 = arith.addf %255, %257 : vector<2x512xf32>
    %259 = vector.extract_strided_slice %258 {offsets = [0, 0], sizes = [2, 128], strides = [1, 1]} : vector<2x512xf32> to vector<2x128xf32>
    %260 = arith.negf %259 : vector<2x128xf32>
    %261 = math.exp %260 : vector<2x128xf32>
    %cst_104 = arith.constant 1.000000e+00 : f32
    %262 = vector.broadcast %cst_104 : f32 to vector<2x128xf32>
    %263 = arith.addf %262, %261 : vector<2x128xf32>
    %264 = arith.divf %262, %263 : vector<2x128xf32>
    %265 = vector.extract_strided_slice %258 {offsets = [0, 128], sizes = [2, 128], strides = [1, 1]} : vector<2x512xf32> to vector<2x128xf32>
    %266 = arith.negf %265 : vector<2x128xf32>
    %267 = math.exp %266 : vector<2x128xf32>
    %cst_105 = arith.constant 1.000000e+00 : f32
    %268 = vector.broadcast %cst_105 : f32 to vector<2x128xf32>
    %269 = arith.addf %268, %267 : vector<2x128xf32>
    %270 = arith.divf %268, %269 : vector<2x128xf32>
    %271 = vector.extract_strided_slice %258 {offsets = [0, 256], sizes = [2, 128], strides = [1, 1]} : vector<2x512xf32> to vector<2x128xf32>
    %272 = math.tanh %271 : vector<2x128xf32>
    %273 = vector.extract_strided_slice %258 {offsets = [0, 384], sizes = [2, 128], strides = [1, 1]} : vector<2x512xf32> to vector<2x128xf32>
    %274 = arith.negf %273 : vector<2x128xf32>
    %275 = math.exp %274 : vector<2x128xf32>
    %cst_106 = arith.constant 1.000000e+00 : f32
    %276 = vector.broadcast %cst_106 : f32 to vector<2x128xf32>
    %277 = arith.addf %276, %275 : vector<2x128xf32>
    %278 = arith.divf %276, %277 : vector<2x128xf32>
    %279 = arith.mulf %270, %208 : vector<2x128xf32>
    %280 = arith.mulf %264, %272 : vector<2x128xf32>
    %281 = arith.addf %279, %280 : vector<2x128xf32>
    %282 = math.tanh %281 : vector<2x128xf32>
    %283 = arith.mulf %278, %282 : vector<2x128xf32>
    %c0_107 = arith.constant 0 : index
    %c0_108 = arith.constant 0 : index
    %284 = vector.load %arg4[%c0_107, %c0_108] : memref<128x1xf32, #tpu.memory_space<vmem>>, vector<128x1xf32>
    %cst_109 = arith.constant dense<0.000000e+00> : vector<2x1xf32>
    %285 = tpu.matmul %283, %284, %cst_109 {dimension_numbers = #tpu.dot_dimension_numbers<[1], [0], [0], [1], [0, 0, 1, 1], [], []>} : vector<2x128xf32>, vector<128x1xf32>, vector<2x1xf32> -> vector<2x1xf32>
    %c0_110 = arith.constant 0 : index
    %c0_111 = arith.constant 0 : index
    %286 = vector.load %arg5[%c0_110, %c0_111] : memref<1x1xf32, #tpu.memory_space<vmem>>, vector<1x1xf32>
    %287 = vector.broadcast %286 : vector<1x1xf32> to vector<2x1xf32>
    %288 = arith.addf %285, %287 : vector<2x1xf32>
    %289 = arith.index_cast %c3_i32 : i32 to index
    %c0_112 = arith.constant 0 : index
    %c0_113 = arith.constant 0 : index
    %290 = vector.load %arg6[%289, %c0_112, %c0_113] : memref<8x2x1xf32, #tpu.memory_space<vmem>>, vector<1x2x1xf32>
    %291 = vector.shape_cast %290 : vector<1x2x1xf32> to vector<2x1xf32>
    %292 = vector.shape_cast %288 : vector<2x1xf32> to vector<1x2x1xf32>
    tpu.vector_store %arg6[%289, %c0_112, %c0_113], %292 {strides = array<i32>} : memref<8x2x1xf32, #tpu.memory_space<vmem>>, vector<1x2x1xf32>,
    %c4_i32 = arith.constant 4 : i32
    %293 = arith.index_cast %c4_i32 : i32 to index
    %c0_114 = arith.constant 0 : index
    %c0_115 = arith.constant 0 : index
    %294 = vector.load %arg0[%293, %c0_114, %c0_115] : memref<8x2x512xf32, #tpu.memory_space<vmem>>, vector<1x2x512xf32>
    %295 = vector.shape_cast %294 : vector<1x2x512xf32> to vector<2x512xf32>
    %c0_116 = arith.constant 0 : index
    %c0_117 = arith.constant 0 : index
    %296 = vector.load %arg1[%c0_116, %c0_117] : memref<128x512xf32, #tpu.memory_space<vmem>>, vector<128x512xf32>
    %cst_118 = arith.constant dense<0.000000e+00> : vector<2x512xf32>
    %297 = tpu.matmul %250, %296, %cst_118 {dimension_numbers = #tpu.dot_dimension_numbers<[1], [0], [0], [1], [0, 0, 1, 1], [], []>} : vector<2x128xf32>, vector<128x512xf32>, vector<2x512xf32> -> vector<2x512xf32>
    %298 = arith.addf %295, %297 : vector<2x512xf32>
    %299 = vector.extract_strided_slice %298 {offsets = [0, 0], sizes = [2, 128], strides = [1, 1]} : vector<2x512xf32> to vector<2x128xf32>
    %300 = arith.negf %299 : vector<2x128xf32>
    %301 = math.exp %300 : vector<2x128xf32>
    %cst_119 = arith.constant 1.000000e+00 : f32
    %302 = vector.broadcast %cst_119 : f32 to vector<2x128xf32>
    %303 = arith.addf %302, %301 : vector<2x128xf32>
    %304 = arith.divf %302, %303 : vector<2x128xf32>
    %305 = vector.extract_strided_slice %298 {offsets = [0, 128], sizes = [2, 128], strides = [1, 1]} : vector<2x512xf32> to vector<2x128xf32>
    %306 = arith.negf %305 : vector<2x128xf32>
    %307 = math.exp %306 : vector<2x128xf32>
    %cst_120 = arith.constant 1.000000e+00 : f32
    %308 = vector.broadcast %cst_120 : f32 to vector<2x128xf32>
    %309 = arith.addf %308, %307 : vector<2x128xf32>
    %310 = arith.divf %308, %309 : vector<2x128xf32>
    %311 = vector.extract_strided_slice %298 {offsets = [0, 256], sizes = [2, 128], strides = [1, 1]} : vector<2x512xf32> to vector<2x128xf32>
    %312 = math.tanh %311 : vector<2x128xf32>
    %313 = vector.extract_strided_slice %298 {offsets = [0, 384], sizes = [2, 128], strides = [1, 1]} : vector<2x512xf32> to vector<2x128xf32>
    %314 = arith.negf %313 : vector<2x128xf32>
    %315 = math.exp %314 : vector<2x128xf32>
    %cst_121 = arith.constant 1.000000e+00 : f32
    %316 = vector.broadcast %cst_121 : f32 to vector<2x128xf32>
    %317 = arith.addf %316, %315 : vector<2x128xf32>
    %318 = arith.divf %316, %317 : vector<2x128xf32>
    %319 = arith.mulf %310, %248 : vector<2x128xf32>
    %320 = arith.mulf %304, %312 : vector<2x128xf32>
    %321 = arith.addf %319, %320 : vector<2x128xf32>
    %322 = math.tanh %321 : vector<2x128xf32>
    %323 = arith.mulf %318, %322 : vector<2x128xf32>
    %c0_122 = arith.constant 0 : index
    %c0_123 = arith.constant 0 : index
    %324 = vector.load %arg7[%c0_122, %c0_123] : memref<2x256xf32, #tpu.memory_space<vmem>>, vector<2x128xf32>
    tpu.vector_store %arg7[%c0_122, %c0_123], %323 {strides = array<i32>} : memref<2x256xf32, #tpu.memory_space<vmem>>, vector<2x128xf32>,
    %c0_124 = arith.constant 0 : index
    %c128_125 = arith.constant 128 : index
    %325 = vector.load %arg7[%c0_124, %c128_125] : memref<2x256xf32, #tpu.memory_space<vmem>>, vector<2x128xf32>
    tpu.vector_store %arg7[%c0_124, %c128_125], %283 {strides = array<i32>} : memref<2x256xf32, #tpu.memory_space<vmem>>, vector<2x128xf32>,
    %c0_126 = arith.constant 0 : index
    %c0_127 = arith.constant 0 : index
    %326 = vector.load %arg7[%c0_126, %c0_127] : memref<2x256xf32, #tpu.memory_space<vmem>>, vector<2x256xf32>
    %c0_128 = arith.constant 0 : index
    %c0_129 = arith.constant 0 : index
    %327 = vector.load %arg2[%c0_128, %c0_129] : memref<256x512xf32, #tpu.memory_space<vmem>>, vector<256x512xf32>
    %cst_130 = arith.constant dense<0.000000e+00> : vector<2x512xf32>
    %328 = tpu.matmul %326, %327, %cst_130 {dimension_numbers = #tpu.dot_dimension_numbers<[1], [0], [0], [1], [0, 0, 1, 1], [], []>} : vector<2x256xf32>, vector<256x512xf32>, vector<2x512xf32> -> vector<2x512xf32>
    %c0_131 = arith.constant 0 : index
    %c0_132 = arith.constant 0 : index
    %329 = vector.load %arg3[%c0_131, %c0_132] : memref<1x512xf32, #tpu.memory_space<vmem>>, vector<1x512xf32>
    %330 = vector.broadcast %329 : vector<1x512xf32> to vector<2x512xf32>
    %331 = arith.addf %328, %330 : vector<2x512xf32>
    %332 = vector.extract_strided_slice %331 {offsets = [0, 0], sizes = [2, 128], strides = [1, 1]} : vector<2x512xf32> to vector<2x128xf32>
    %333 = arith.negf %332 : vector<2x128xf32>
    %334 = math.exp %333 : vector<2x128xf32>
    %cst_133 = arith.constant 1.000000e+00 : f32
    %335 = vector.broadcast %cst_133 : f32 to vector<2x128xf32>
    %336 = arith.addf %335, %334 : vector<2x128xf32>
    %337 = arith.divf %335, %336 : vector<2x128xf32>
    %338 = vector.extract_strided_slice %331 {offsets = [0, 128], sizes = [2, 128], strides = [1, 1]} : vector<2x512xf32> to vector<2x128xf32>
    %339 = arith.negf %338 : vector<2x128xf32>
    %340 = math.exp %339 : vector<2x128xf32>
    %cst_134 = arith.constant 1.000000e+00 : f32
    %341 = vector.broadcast %cst_134 : f32 to vector<2x128xf32>
    %342 = arith.addf %341, %340 : vector<2x128xf32>
    %343 = arith.divf %341, %342 : vector<2x128xf32>
    %344 = vector.extract_strided_slice %331 {offsets = [0, 256], sizes = [2, 128], strides = [1, 1]} : vector<2x512xf32> to vector<2x128xf32>
    %345 = math.tanh %344 : vector<2x128xf32>
    %346 = vector.extract_strided_slice %331 {offsets = [0, 384], sizes = [2, 128], strides = [1, 1]} : vector<2x512xf32> to vector<2x128xf32>
    %347 = arith.negf %346 : vector<2x128xf32>
    %348 = math.exp %347 : vector<2x128xf32>
    %cst_135 = arith.constant 1.000000e+00 : f32
    %349 = vector.broadcast %cst_135 : f32 to vector<2x128xf32>
    %350 = arith.addf %349, %348 : vector<2x128xf32>
    %351 = arith.divf %349, %350 : vector<2x128xf32>
    %352 = arith.mulf %343, %281 : vector<2x128xf32>
    %353 = arith.mulf %337, %345 : vector<2x128xf32>
    %354 = arith.addf %352, %353 : vector<2x128xf32>
    %355 = math.tanh %354 : vector<2x128xf32>
    %356 = arith.mulf %351, %355 : vector<2x128xf32>
    %c0_136 = arith.constant 0 : index
    %c0_137 = arith.constant 0 : index
    %357 = vector.load %arg4[%c0_136, %c0_137] : memref<128x1xf32, #tpu.memory_space<vmem>>, vector<128x1xf32>
    %cst_138 = arith.constant dense<0.000000e+00> : vector<2x1xf32>
    %358 = tpu.matmul %356, %357, %cst_138 {dimension_numbers = #tpu.dot_dimension_numbers<[1], [0], [0], [1], [0, 0, 1, 1], [], []>} : vector<2x128xf32>, vector<128x1xf32>, vector<2x1xf32> -> vector<2x1xf32>
    %c0_139 = arith.constant 0 : index
    %c0_140 = arith.constant 0 : index
    %359 = vector.load %arg5[%c0_139, %c0_140] : memref<1x1xf32, #tpu.memory_space<vmem>>, vector<1x1xf32>
    %360 = vector.broadcast %359 : vector<1x1xf32> to vector<2x1xf32>
    %361 = arith.addf %358, %360 : vector<2x1xf32>
    %362 = arith.index_cast %c4_i32 : i32 to index
    %c0_141 = arith.constant 0 : index
    %c0_142 = arith.constant 0 : index
    %363 = vector.load %arg6[%362, %c0_141, %c0_142] : memref<8x2x1xf32, #tpu.memory_space<vmem>>, vector<1x2x1xf32>
    %364 = vector.shape_cast %363 : vector<1x2x1xf32> to vector<2x1xf32>
    %365 = vector.shape_cast %361 : vector<2x1xf32> to vector<1x2x1xf32>
    tpu.vector_store %arg6[%362, %c0_141, %c0_142], %365 {strides = array<i32>} : memref<8x2x1xf32, #tpu.memory_space<vmem>>, vector<1x2x1xf32>,
    %c5_i32 = arith.constant 5 : i32
    %366 = arith.index_cast %c5_i32 : i32 to index
    %c0_143 = arith.constant 0 : index
    %c0_144 = arith.constant 0 : index
    %367 = vector.load %arg0[%366, %c0_143, %c0_144] : memref<8x2x512xf32, #tpu.memory_space<vmem>>, vector<1x2x512xf32>
    %368 = vector.shape_cast %367 : vector<1x2x512xf32> to vector<2x512xf32>
    %c0_145 = arith.constant 0 : index
    %c0_146 = arith.constant 0 : index
    %369 = vector.load %arg1[%c0_145, %c0_146] : memref<128x512xf32, #tpu.memory_space<vmem>>, vector<128x512xf32>
    %cst_147 = arith.constant dense<0.000000e+00> : vector<2x512xf32>
    %370 = tpu.matmul %323, %369, %cst_147 {dimension_numbers = #tpu.dot_dimension_numbers<[1], [0], [0], [1], [0, 0, 1, 1], [], []>} : vector<2x128xf32>, vector<128x512xf32>, vector<2x512xf32> -> vector<2x512xf32>
    %371 = arith.addf %368, %370 : vector<2x512xf32>
    %372 = vector.extract_strided_slice %371 {offsets = [0, 0], sizes = [2, 128], strides = [1, 1]} : vector<2x512xf32> to vector<2x128xf32>
    %373 = arith.negf %372 : vector<2x128xf32>
    %374 = math.exp %373 : vector<2x128xf32>
    %cst_148 = arith.constant 1.000000e+00 : f32
    %375 = vector.broadcast %cst_148 : f32 to vector<2x128xf32>
    %376 = arith.addf %375, %374 : vector<2x128xf32>
    %377 = arith.divf %375, %376 : vector<2x128xf32>
    %378 = vector.extract_strided_slice %371 {offsets = [0, 128], sizes = [2, 128], strides = [1, 1]} : vector<2x512xf32> to vector<2x128xf32>
    %379 = arith.negf %378 : vector<2x128xf32>
    %380 = math.exp %379 : vector<2x128xf32>
    %cst_149 = arith.constant 1.000000e+00 : f32
    %381 = vector.broadcast %cst_149 : f32 to vector<2x128xf32>
    %382 = arith.addf %381, %380 : vector<2x128xf32>
    %383 = arith.divf %381, %382 : vector<2x128xf32>
    %384 = vector.extract_strided_slice %371 {offsets = [0, 256], sizes = [2, 128], strides = [1, 1]} : vector<2x512xf32> to vector<2x128xf32>
    %385 = math.tanh %384 : vector<2x128xf32>
    %386 = vector.extract_strided_slice %371 {offsets = [0, 384], sizes = [2, 128], strides = [1, 1]} : vector<2x512xf32> to vector<2x128xf32>
    %387 = arith.negf %386 : vector<2x128xf32>
    %388 = math.exp %387 : vector<2x128xf32>
    %cst_150 = arith.constant 1.000000e+00 : f32
    %389 = vector.broadcast %cst_150 : f32 to vector<2x128xf32>
    %390 = arith.addf %389, %388 : vector<2x128xf32>
    %391 = arith.divf %389, %390 : vector<2x128xf32>
    %392 = arith.mulf %383, %321 : vector<2x128xf32>
    %393 = arith.mulf %377, %385 : vector<2x128xf32>
    %394 = arith.addf %392, %393 : vector<2x128xf32>
    %395 = math.tanh %394 : vector<2x128xf32>
    %396 = arith.mulf %391, %395 : vector<2x128xf32>
    %c0_151 = arith.constant 0 : index
    %c0_152 = arith.constant 0 : index
    %397 = vector.load %arg7[%c0_151, %c0_152] : memref<2x256xf32, #tpu.memory_space<vmem>>, vector<2x128xf32>
    tpu.vector_store %arg7[%c0_151, %c0_152], %396 {strides = array<i32>} : memref<2x256xf32, #tpu.memory_space<vmem>>, vector<2x128xf32>,
    %c0_153 = arith.constant 0 : index
    %c128_154 = arith.constant 128 : index
    %398 = vector.load %arg7[%c0_153, %c128_154] : memref<2x256xf32, #tpu.memory_space<vmem>>, vector<2x128xf32>
    tpu.vector_store %arg7[%c0_153, %c128_154], %356 {strides = array<i32>} : memref<2x256xf32, #tpu.memory_space<vmem>>, vector<2x128xf32>,
    %c0_155 = arith.constant 0 : index
    %c0_156 = arith.constant 0 : index
    %399 = vector.load %arg7[%c0_155, %c0_156] : memref<2x256xf32, #tpu.memory_space<vmem>>, vector<2x256xf32>
    %c0_157 = arith.constant 0 : index
    %c0_158 = arith.constant 0 : index
    %400 = vector.load %arg2[%c0_157, %c0_158] : memref<256x512xf32, #tpu.memory_space<vmem>>, vector<256x512xf32>
    %cst_159 = arith.constant dense<0.000000e+00> : vector<2x512xf32>
    %401 = tpu.matmul %399, %400, %cst_159 {dimension_numbers = #tpu.dot_dimension_numbers<[1], [0], [0], [1], [0, 0, 1, 1], [], []>} : vector<2x256xf32>, vector<256x512xf32>, vector<2x512xf32> -> vector<2x512xf32>
    %c0_160 = arith.constant 0 : index
    %c0_161 = arith.constant 0 : index
    %402 = vector.load %arg3[%c0_160, %c0_161] : memref<1x512xf32, #tpu.memory_space<vmem>>, vector<1x512xf32>
    %403 = vector.broadcast %402 : vector<1x512xf32> to vector<2x512xf32>
    %404 = arith.addf %401, %403 : vector<2x512xf32>
    %405 = vector.extract_strided_slice %404 {offsets = [0, 0], sizes = [2, 128], strides = [1, 1]} : vector<2x512xf32> to vector<2x128xf32>
    %406 = arith.negf %405 : vector<2x128xf32>
    %407 = math.exp %406 : vector<2x128xf32>
    %cst_162 = arith.constant 1.000000e+00 : f32
    %408 = vector.broadcast %cst_162 : f32 to vector<2x128xf32>
    %409 = arith.addf %408, %407 : vector<2x128xf32>
    %410 = arith.divf %408, %409 : vector<2x128xf32>
    %411 = vector.extract_strided_slice %404 {offsets = [0, 128], sizes = [2, 128], strides = [1, 1]} : vector<2x512xf32> to vector<2x128xf32>
    %412 = arith.negf %411 : vector<2x128xf32>
    %413 = math.exp %412 : vector<2x128xf32>
    %cst_163 = arith.constant 1.000000e+00 : f32
    %414 = vector.broadcast %cst_163 : f32 to vector<2x128xf32>
    %415 = arith.addf %414, %413 : vector<2x128xf32>
    %416 = arith.divf %414, %415 : vector<2x128xf32>
    %417 = vector.extract_strided_slice %404 {offsets = [0, 256], sizes = [2, 128], strides = [1, 1]} : vector<2x512xf32> to vector<2x128xf32>
    %418 = math.tanh %417 : vector<2x128xf32>
    %419 = vector.extract_strided_slice %404 {offsets = [0, 384], sizes = [2, 128], strides = [1, 1]} : vector<2x512xf32> to vector<2x128xf32>
    %420 = arith.negf %419 : vector<2x128xf32>
    %421 = math.exp %420 : vector<2x128xf32>
    %cst_164 = arith.constant 1.000000e+00 : f32
    %422 = vector.broadcast %cst_164 : f32 to vector<2x128xf32>
    %423 = arith.addf %422, %421 : vector<2x128xf32>
    %424 = arith.divf %422, %423 : vector<2x128xf32>
    %425 = arith.mulf %416, %354 : vector<2x128xf32>
    %426 = arith.mulf %410, %418 : vector<2x128xf32>
    %427 = arith.addf %425, %426 : vector<2x128xf32>
    %428 = math.tanh %427 : vector<2x128xf32>
    %429 = arith.mulf %424, %428 : vector<2x128xf32>
    %c0_165 = arith.constant 0 : index
    %c0_166 = arith.constant 0 : index
    %430 = vector.load %arg4[%c0_165, %c0_166] : memref<128x1xf32, #tpu.memory_space<vmem>>, vector<128x1xf32>
    %cst_167 = arith.constant dense<0.000000e+00> : vector<2x1xf32>
    %431 = tpu.matmul %429, %430, %cst_167 {dimension_numbers = #tpu.dot_dimension_numbers<[1], [0], [0], [1], [0, 0, 1, 1], [], []>} : vector<2x128xf32>, vector<128x1xf32>, vector<2x1xf32> -> vector<2x1xf32>
    %c0_168 = arith.constant 0 : index
    %c0_169 = arith.constant 0 : index
    %432 = vector.load %arg5[%c0_168, %c0_169] : memref<1x1xf32, #tpu.memory_space<vmem>>, vector<1x1xf32>
    %433 = vector.broadcast %432 : vector<1x1xf32> to vector<2x1xf32>
    %434 = arith.addf %431, %433 : vector<2x1xf32>
    %435 = arith.index_cast %c5_i32 : i32 to index
    %c0_170 = arith.constant 0 : index
    %c0_171 = arith.constant 0 : index
    %436 = vector.load %arg6[%435, %c0_170, %c0_171] : memref<8x2x1xf32, #tpu.memory_space<vmem>>, vector<1x2x1xf32>
    %437 = vector.shape_cast %436 : vector<1x2x1xf32> to vector<2x1xf32>
    %438 = vector.shape_cast %434 : vector<2x1xf32> to vector<1x2x1xf32>
    tpu.vector_store %arg6[%435, %c0_170, %c0_171], %438 {strides = array<i32>} : memref<8x2x1xf32, #tpu.memory_space<vmem>>, vector<1x2x1xf32>,
    %c6_i32 = arith.constant 6 : i32
    %439 = arith.index_cast %c6_i32 : i32 to index
    %c0_172 = arith.constant 0 : index
    %c0_173 = arith.constant 0 : index
    %440 = vector.load %arg0[%439, %c0_172, %c0_173] : memref<8x2x512xf32, #tpu.memory_space<vmem>>, vector<1x2x512xf32>
    %441 = vector.shape_cast %440 : vector<1x2x512xf32> to vector<2x512xf32>
    %c0_174 = arith.constant 0 : index
    %c0_175 = arith.constant 0 : index
    %442 = vector.load %arg1[%c0_174, %c0_175] : memref<128x512xf32, #tpu.memory_space<vmem>>, vector<128x512xf32>
    %cst_176 = arith.constant dense<0.000000e+00> : vector<2x512xf32>
    %443 = tpu.matmul %396, %442, %cst_176 {dimension_numbers = #tpu.dot_dimension_numbers<[1], [0], [0], [1], [0, 0, 1, 1], [], []>} : vector<2x128xf32>, vector<128x512xf32>, vector<2x512xf32> -> vector<2x512xf32>
    %444 = arith.addf %441, %443 : vector<2x512xf32>
    %445 = vector.extract_strided_slice %444 {offsets = [0, 0], sizes = [2, 128], strides = [1, 1]} : vector<2x512xf32> to vector<2x128xf32>
    %446 = arith.negf %445 : vector<2x128xf32>
    %447 = math.exp %446 : vector<2x128xf32>
    %cst_177 = arith.constant 1.000000e+00 : f32
    %448 = vector.broadcast %cst_177 : f32 to vector<2x128xf32>
    %449 = arith.addf %448, %447 : vector<2x128xf32>
    %450 = arith.divf %448, %449 : vector<2x128xf32>
    %451 = vector.extract_strided_slice %444 {offsets = [0, 128], sizes = [2, 128], strides = [1, 1]} : vector<2x512xf32> to vector<2x128xf32>
    %452 = arith.negf %451 : vector<2x128xf32>
    %453 = math.exp %452 : vector<2x128xf32>
    %cst_178 = arith.constant 1.000000e+00 : f32
    %454 = vector.broadcast %cst_178 : f32 to vector<2x128xf32>
    %455 = arith.addf %454, %453 : vector<2x128xf32>
    %456 = arith.divf %454, %455 : vector<2x128xf32>
    %457 = vector.extract_strided_slice %444 {offsets = [0, 256], sizes = [2, 128], strides = [1, 1]} : vector<2x512xf32> to vector<2x128xf32>
    %458 = math.tanh %457 : vector<2x128xf32>
    %459 = vector.extract_strided_slice %444 {offsets = [0, 384], sizes = [2, 128], strides = [1, 1]} : vector<2x512xf32> to vector<2x128xf32>
    %460 = arith.negf %459 : vector<2x128xf32>
    %461 = math.exp %460 : vector<2x128xf32>
    %cst_179 = arith.constant 1.000000e+00 : f32
    %462 = vector.broadcast %cst_179 : f32 to vector<2x128xf32>
    %463 = arith.addf %462, %461 : vector<2x128xf32>
    %464 = arith.divf %462, %463 : vector<2x128xf32>
    %465 = arith.mulf %456, %394 : vector<2x128xf32>
    %466 = arith.mulf %450, %458 : vector<2x128xf32>
    %467 = arith.addf %465, %466 : vector<2x128xf32>
    %468 = math.tanh %467 : vector<2x128xf32>
    %469 = arith.mulf %464, %468 : vector<2x128xf32>
    %c0_180 = arith.constant 0 : index
    %c0_181 = arith.constant 0 : index
    %470 = vector.load %arg7[%c0_180, %c0_181] : memref<2x256xf32, #tpu.memory_space<vmem>>, vector<2x128xf32>
    tpu.vector_store %arg7[%c0_180, %c0_181], %469 {strides = array<i32>} : memref<2x256xf32, #tpu.memory_space<vmem>>, vector<2x128xf32>,
    %c0_182 = arith.constant 0 : index
    %c128_183 = arith.constant 128 : index
    %471 = vector.load %arg7[%c0_182, %c128_183] : memref<2x256xf32, #tpu.memory_space<vmem>>, vector<2x128xf32>
    tpu.vector_store %arg7[%c0_182, %c128_183], %429 {strides = array<i32>} : memref<2x256xf32, #tpu.memory_space<vmem>>, vector<2x128xf32>,
    %c0_184 = arith.constant 0 : index
    %c0_185 = arith.constant 0 : index
    %472 = vector.load %arg7[%c0_184, %c0_185] : memref<2x256xf32, #tpu.memory_space<vmem>>, vector<2x256xf32>
    %c0_186 = arith.constant 0 : index
    %c0_187 = arith.constant 0 : index
    %473 = vector.load %arg2[%c0_186, %c0_187] : memref<256x512xf32, #tpu.memory_space<vmem>>, vector<256x512xf32>
    %cst_188 = arith.constant dense<0.000000e+00> : vector<2x512xf32>
    %474 = tpu.matmul %472, %473, %cst_188 {dimension_numbers = #tpu.dot_dimension_numbers<[1], [0], [0], [1], [0, 0, 1, 1], [], []>} : vector<2x256xf32>, vector<256x512xf32>, vector<2x512xf32> -> vector<2x512xf32>
    %c0_189 = arith.constant 0 : index
    %c0_190 = arith.constant 0 : index
    %475 = vector.load %arg3[%c0_189, %c0_190] : memref<1x512xf32, #tpu.memory_space<vmem>>, vector<1x512xf32>
    %476 = vector.broadcast %475 : vector<1x512xf32> to vector<2x512xf32>
    %477 = arith.addf %474, %476 : vector<2x512xf32>
    %478 = vector.extract_strided_slice %477 {offsets = [0, 0], sizes = [2, 128], strides = [1, 1]} : vector<2x512xf32> to vector<2x128xf32>
    %479 = arith.negf %478 : vector<2x128xf32>
    %480 = math.exp %479 : vector<2x128xf32>
    %cst_191 = arith.constant 1.000000e+00 : f32
    %481 = vector.broadcast %cst_191 : f32 to vector<2x128xf32>
    %482 = arith.addf %481, %480 : vector<2x128xf32>
    %483 = arith.divf %481, %482 : vector<2x128xf32>
    %484 = vector.extract_strided_slice %477 {offsets = [0, 128], sizes = [2, 128], strides = [1, 1]} : vector<2x512xf32> to vector<2x128xf32>
    %485 = arith.negf %484 : vector<2x128xf32>
    %486 = math.exp %485 : vector<2x128xf32>
    %cst_192 = arith.constant 1.000000e+00 : f32
    %487 = vector.broadcast %cst_192 : f32 to vector<2x128xf32>
    %488 = arith.addf %487, %486 : vector<2x128xf32>
    %489 = arith.divf %487, %488 : vector<2x128xf32>
    %490 = vector.extract_strided_slice %477 {offsets = [0, 256], sizes = [2, 128], strides = [1, 1]} : vector<2x512xf32> to vector<2x128xf32>
    %491 = math.tanh %490 : vector<2x128xf32>
    %492 = vector.extract_strided_slice %477 {offsets = [0, 384], sizes = [2, 128], strides = [1, 1]} : vector<2x512xf32> to vector<2x128xf32>
    %493 = arith.negf %492 : vector<2x128xf32>
    %494 = math.exp %493 : vector<2x128xf32>
    %cst_193 = arith.constant 1.000000e+00 : f32
    %495 = vector.broadcast %cst_193 : f32 to vector<2x128xf32>
    %496 = arith.addf %495, %494 : vector<2x128xf32>
    %497 = arith.divf %495, %496 : vector<2x128xf32>
    %498 = arith.mulf %489, %427 : vector<2x128xf32>
    %499 = arith.mulf %483, %491 : vector<2x128xf32>
    %500 = arith.addf %498, %499 : vector<2x128xf32>
    %501 = math.tanh %500 : vector<2x128xf32>
    %502 = arith.mulf %497, %501 : vector<2x128xf32>
    %c0_194 = arith.constant 0 : index
    %c0_195 = arith.constant 0 : index
    %503 = vector.load %arg4[%c0_194, %c0_195] : memref<128x1xf32, #tpu.memory_space<vmem>>, vector<128x1xf32>
    %cst_196 = arith.constant dense<0.000000e+00> : vector<2x1xf32>
    %504 = tpu.matmul %502, %503, %cst_196 {dimension_numbers = #tpu.dot_dimension_numbers<[1], [0], [0], [1], [0, 0, 1, 1], [], []>} : vector<2x128xf32>, vector<128x1xf32>, vector<2x1xf32> -> vector<2x1xf32>
    %c0_197 = arith.constant 0 : index
    %c0_198 = arith.constant 0 : index
    %505 = vector.load %arg5[%c0_197, %c0_198] : memref<1x1xf32, #tpu.memory_space<vmem>>, vector<1x1xf32>
    %506 = vector.broadcast %505 : vector<1x1xf32> to vector<2x1xf32>
    %507 = arith.addf %504, %506 : vector<2x1xf32>
    %508 = arith.index_cast %c6_i32 : i32 to index
    %c0_199 = arith.constant 0 : index
    %c0_200 = arith.constant 0 : index
    %509 = vector.load %arg6[%508, %c0_199, %c0_200] : memref<8x2x1xf32, #tpu.memory_space<vmem>>, vector<1x2x1xf32>
    %510 = vector.shape_cast %509 : vector<1x2x1xf32> to vector<2x1xf32>
    %511 = vector.shape_cast %507 : vector<2x1xf32> to vector<1x2x1xf32>
    tpu.vector_store %arg6[%508, %c0_199, %c0_200], %511 {strides = array<i32>} : memref<8x2x1xf32, #tpu.memory_space<vmem>>, vector<1x2x1xf32>,
    %c7_i32 = arith.constant 7 : i32
    %512 = arith.index_cast %c7_i32 : i32 to index
    %c0_201 = arith.constant 0 : index
    %c0_202 = arith.constant 0 : index
    %513 = vector.load %arg0[%512, %c0_201, %c0_202] : memref<8x2x512xf32, #tpu.memory_space<vmem>>, vector<1x2x512xf32>
    %514 = vector.shape_cast %513 : vector<1x2x512xf32> to vector<2x512xf32>
    %c0_203 = arith.constant 0 : index
    %c0_204 = arith.constant 0 : index
    %515 = vector.load %arg1[%c0_203, %c0_204] : memref<128x512xf32, #tpu.memory_space<vmem>>, vector<128x512xf32>
    %cst_205 = arith.constant dense<0.000000e+00> : vector<2x512xf32>
    %516 = tpu.matmul %469, %515, %cst_205 {dimension_numbers = #tpu.dot_dimension_numbers<[1], [0], [0], [1], [0, 0, 1, 1], [], []>} : vector<2x128xf32>, vector<128x512xf32>, vector<2x512xf32> -> vector<2x512xf32>
    %517 = arith.addf %514, %516 : vector<2x512xf32>
    %518 = vector.extract_strided_slice %517 {offsets = [0, 0], sizes = [2, 128], strides = [1, 1]} : vector<2x512xf32> to vector<2x128xf32>
    %519 = arith.negf %518 : vector<2x128xf32>
    %520 = math.exp %519 : vector<2x128xf32>
    %cst_206 = arith.constant 1.000000e+00 : f32
    %521 = vector.broadcast %cst_206 : f32 to vector<2x128xf32>
    %522 = arith.addf %521, %520 : vector<2x128xf32>
    %523 = arith.divf %521, %522 : vector<2x128xf32>
    %524 = vector.extract_strided_slice %517 {offsets = [0, 128], sizes = [2, 128], strides = [1, 1]} : vector<2x512xf32> to vector<2x128xf32>
    %525 = arith.negf %524 : vector<2x128xf32>
    %526 = math.exp %525 : vector<2x128xf32>
    %cst_207 = arith.constant 1.000000e+00 : f32
    %527 = vector.broadcast %cst_207 : f32 to vector<2x128xf32>
    %528 = arith.addf %527, %526 : vector<2x128xf32>
    %529 = arith.divf %527, %528 : vector<2x128xf32>
    %530 = vector.extract_strided_slice %517 {offsets = [0, 256], sizes = [2, 128], strides = [1, 1]} : vector<2x512xf32> to vector<2x128xf32>
    %531 = math.tanh %530 : vector<2x128xf32>
    %532 = vector.extract_strided_slice %517 {offsets = [0, 384], sizes = [2, 128], strides = [1, 1]} : vector<2x512xf32> to vector<2x128xf32>
    %533 = arith.negf %532 : vector<2x128xf32>
    %534 = math.exp %533 : vector<2x128xf32>
    %cst_208 = arith.constant 1.000000e+00 : f32
    %535 = vector.broadcast %cst_208 : f32 to vector<2x128xf32>
    %536 = arith.addf %535, %534 : vector<2x128xf32>
    %537 = arith.divf %535, %536 : vector<2x128xf32>
    %538 = arith.mulf %529, %467 : vector<2x128xf32>
    %539 = arith.mulf %523, %531 : vector<2x128xf32>
    %540 = arith.addf %538, %539 : vector<2x128xf32>
    %541 = math.tanh %540 : vector<2x128xf32>
    %542 = arith.mulf %537, %541 : vector<2x128xf32>
    %c0_209 = arith.constant 0 : index
    %c0_210 = arith.constant 0 : index
    %543 = vector.load %arg7[%c0_209, %c0_210] : memref<2x256xf32, #tpu.memory_space<vmem>>, vector<2x128xf32>
    tpu.vector_store %arg7[%c0_209, %c0_210], %542 {strides = array<i32>} : memref<2x256xf32, #tpu.memory_space<vmem>>, vector<2x128xf32>,
    %c0_211 = arith.constant 0 : index
    %c128_212 = arith.constant 128 : index
    %544 = vector.load %arg7[%c0_211, %c128_212] : memref<2x256xf32, #tpu.memory_space<vmem>>, vector<2x128xf32>
    tpu.vector_store %arg7[%c0_211, %c128_212], %502 {strides = array<i32>} : memref<2x256xf32, #tpu.memory_space<vmem>>, vector<2x128xf32>,
    %c0_213 = arith.constant 0 : index
    %c0_214 = arith.constant 0 : index
    %545 = vector.load %arg7[%c0_213, %c0_214] : memref<2x256xf32, #tpu.memory_space<vmem>>, vector<2x256xf32>
    %c0_215 = arith.constant 0 : index
    %c0_216 = arith.constant 0 : index
    %546 = vector.load %arg2[%c0_215, %c0_216] : memref<256x512xf32, #tpu.memory_space<vmem>>, vector<256x512xf32>
    %cst_217 = arith.constant dense<0.000000e+00> : vector<2x512xf32>
    %547 = tpu.matmul %545, %546, %cst_217 {dimension_numbers = #tpu.dot_dimension_numbers<[1], [0], [0], [1], [0, 0, 1, 1], [], []>} : vector<2x256xf32>, vector<256x512xf32>, vector<2x512xf32> -> vector<2x512xf32>
    %c0_218 = arith.constant 0 : index
    %c0_219 = arith.constant 0 : index
    %548 = vector.load %arg3[%c0_218, %c0_219] : memref<1x512xf32, #tpu.memory_space<vmem>>, vector<1x512xf32>
    %549 = vector.broadcast %548 : vector<1x512xf32> to vector<2x512xf32>
    %550 = arith.addf %547, %549 : vector<2x512xf32>
    %551 = vector.extract_strided_slice %550 {offsets = [0, 0], sizes = [2, 128], strides = [1, 1]} : vector<2x512xf32> to vector<2x128xf32>
    %552 = arith.negf %551 : vector<2x128xf32>
    %553 = math.exp %552 : vector<2x128xf32>
    %cst_220 = arith.constant 1.000000e+00 : f32
    %554 = vector.broadcast %cst_220 : f32 to vector<2x128xf32>
    %555 = arith.addf %554, %553 : vector<2x128xf32>
    %556 = arith.divf %554, %555 : vector<2x128xf32>
    %557 = vector.extract_strided_slice %550 {offsets = [0, 128], sizes = [2, 128], strides = [1, 1]} : vector<2x512xf32> to vector<2x128xf32>
    %558 = arith.negf %557 : vector<2x128xf32>
    %559 = math.exp %558 : vector<2x128xf32>
    %cst_221 = arith.constant 1.000000e+00 : f32
    %560 = vector.broadcast %cst_221 : f32 to vector<2x128xf32>
    %561 = arith.addf %560, %559 : vector<2x128xf32>
    %562 = arith.divf %560, %561 : vector<2x128xf32>
    %563 = vector.extract_strided_slice %550 {offsets = [0, 256], sizes = [2, 128], strides = [1, 1]} : vector<2x512xf32> to vector<2x128xf32>
    %564 = math.tanh %563 : vector<2x128xf32>
    %565 = vector.extract_strided_slice %550 {offsets = [0, 384], sizes = [2, 128], strides = [1, 1]} : vector<2x512xf32> to vector<2x128xf32>
    %566 = arith.negf %565 : vector<2x128xf32>
    %567 = math.exp %566 : vector<2x128xf32>
    %cst_222 = arith.constant 1.000000e+00 : f32
    %568 = vector.broadcast %cst_222 : f32 to vector<2x128xf32>
    %569 = arith.addf %568, %567 : vector<2x128xf32>
    %570 = arith.divf %568, %569 : vector<2x128xf32>
    %571 = arith.mulf %562, %500 : vector<2x128xf32>
    %572 = arith.mulf %556, %564 : vector<2x128xf32>
    %573 = arith.addf %571, %572 : vector<2x128xf32>
    %574 = math.tanh %573 : vector<2x128xf32>
    %575 = arith.mulf %570, %574 : vector<2x128xf32>
    %c0_223 = arith.constant 0 : index
    %c0_224 = arith.constant 0 : index
    %576 = vector.load %arg4[%c0_223, %c0_224] : memref<128x1xf32, #tpu.memory_space<vmem>>, vector<128x1xf32>
    %cst_225 = arith.constant dense<0.000000e+00> : vector<2x1xf32>
    %577 = tpu.matmul %575, %576, %cst_225 {dimension_numbers = #tpu.dot_dimension_numbers<[1], [0], [0], [1], [0, 0, 1, 1], [], []>} : vector<2x128xf32>, vector<128x1xf32>, vector<2x1xf32> -> vector<2x1xf32>
    %c0_226 = arith.constant 0 : index
    %c0_227 = arith.constant 0 : index
    %578 = vector.load %arg5[%c0_226, %c0_227] : memref<1x1xf32, #tpu.memory_space<vmem>>, vector<1x1xf32>
    %579 = vector.broadcast %578 : vector<1x1xf32> to vector<2x1xf32>
    %580 = arith.addf %577, %579 : vector<2x1xf32>
    %581 = arith.index_cast %c7_i32 : i32 to index
    %c0_228 = arith.constant 0 : index
    %c0_229 = arith.constant 0 : index
    %582 = vector.load %arg6[%581, %c0_228, %c0_229] : memref<8x2x1xf32, #tpu.memory_space<vmem>>, vector<1x2x1xf32>
    %583 = vector.shape_cast %582 : vector<1x2x1xf32> to vector<2x1xf32>
    %584 = vector.shape_cast %580 : vector<2x1xf32> to vector<1x2x1xf32>
    tpu.vector_store %arg6[%581, %c0_228, %c0_229], %584 {strides = array<i32>} : memref<8x2x1xf32, #tpu.memory_space<vmem>>, vector<1x2x1xf32>,
    %c8_i32 = arith.constant 8 : i32
    return
  }
}

</mosaic_0001>

<bundles_post_ra>
// kernel: rnn_forward.1
= control target key start
LH: loop header
LB: loop body
LE: loop exit
PB: predicated region body
PF: predicated region fallthrough
CT: control target
= control target key end

     0   :  { %v11832_v3 = vmov 0.0   ;;  %vm6279_vm0 = vmmov 0   ;;  %vm709_vm1 = vcmask 1024   ;;  %s11825_s1 = inlined_call_operand.vmem [shape: f32[128,512], index: 1, kind: input, shape index: {}]   ;;  %s11826_s2 = inlined_call_operand.vmem [shape: f32[256,512], index: 2, kind: input, shape index: {}]   ;;  %s11827_s0 = inlined_call_operand.vmem [shape: f32[8,2,512], index: 0, kind: input, shape index: {}]   ;;  %s11828_s4 = inlined_call_operand.vmem [shape: f32[128,1], index: 4, kind: input, shape index: {}]   ;;  %s11829_s5 = inlined_call_operand.<no memory space> [shape: f32[1,1], index: 5, kind: input, shape index: {}]   ;;  %s11830_s3 = inlined_call_operand.vmem [shape: f32[1,512], index: 3, kind: input, shape index: {}]   ;;  %s11831_s6 = inlined_call_operand.vmem [shape: f32[8,2,1], index: 6, kind: output, shape index: {}]  }
   0x1   :  { %v6318_v0 = vld [vmem:[%s11825_s1 + $0x1e8] sm:$0xff]  ;;  %v89_v1 = vld [vmem:[%s11825_s1 + $0x1f8] sm:$0xff]  ;;  %v6326_v2 = vld [vmem:[%s11825_s1 + $0x1e0] sm:$0xff]  ;;  %154 = vmatprep.mubr.f32.mxu0 %v11832_v3  ;;  %287 = vst [vmem:[#allocation2 + $0x2] sm:$0x3] %v11832_v3  ;;  %225 = vmatprep.mubr.f32.mxu1 %v11832_v3 }
   0x2   :  { %90 = vmatprep.subr.mxu0 %v6318_v0  ;;  %161 = vmatprep.subr.mxu1 %v89_v1  ;;  %v88_v4 = vld [vmem:[%s11825_s1 + $0x1f0] sm:$0xff]  ;;  %v6338_v5 = vld [vmem:[%s11825_s1 + $0x1c8] sm:$0xff]  ;;  %v85_v6 = vld [vmem:[%s11825_s1 + $0x1d8] sm:$0xff] }
   0x3   :  { %91 = vmatpush1.msra.mxu0 %v6326_v2  ;;  %162 = vmatpush1.msra.mxu1 %v88_v4  ;;  %v6347_v7 = vld [vmem:[%s11825_s1 + $0x1c0] sm:$0xff]  ;;  %v84_v8 = vld [vmem:[%s11825_s1 + $0x1d0] sm:$0xff]  ;;  %v6355_v9 = vld [vmem:[%s11825_s1 + $0x1a8] sm:$0xff] }
   0x4   :  { %92 = vmatprep.subr.mxu0 %v6338_v5  ;;  %163 = vmatprep.subr.mxu1 %v85_v6  ;;  %v81_v10 = vld [vmem:[%s11825_s1 + $0x1b8] sm:$0xff]  ;;  %v6364_v11 = vld [vmem:[%s11825_s1 + $0x1a0] sm:$0xff]  ;;  %v80_v12 = vld [vmem:[%s11825_s1 + $0x1b0] sm:$0xff] }
   0x5   :  { %93 = vmatpush1.msra.mxu0 %v6347_v7  ;;  %164 = vmatpush1.msra.mxu1 %v84_v8  ;;  %v6373_v13 = vld [vmem:[%s11825_s1 + $0x188] sm:$0xff]  ;;  %v77_v14 = vld [vmem:[%s11825_s1 + $0x198] sm:$0xff]  ;;  %v6382_v15 = vld [vmem:[%s11825_s1 + $0x180] sm:$0xff] }
   0x6   :  { %94 = vmatprep.subr.mxu0 %v6355_v9  ;;  %165 = vmatprep.subr.mxu1 %v81_v10  ;;  %v76_v16 = vld [vmem:[%s11825_s1 + $0x190] sm:$0xff]  ;;  %v6391_v17 = vld [vmem:[%s11825_s1 + $0x168] sm:$0xff]  ;;  %v73_v18 = vld [vmem:[%s11825_s1 + $0x178] sm:$0xff] }
   0x7   :  { %95 = vmatpush1.msra.mxu0 %v6364_v11  ;;  %166 = vmatpush1.msra.mxu1 %v80_v12  ;;  %v6400_v19 = vld [vmem:[%s11825_s1 + $0x160] sm:$0xff]  ;;  %v72_v20 = vld [vmem:[%s11825_s1 + $0x170] sm:$0xff]  ;;  %v6409_v21 = vld [vmem:[%s11825_s1 + $0x148] sm:$0xff] }
   0x8   :  { %96 = vmatprep.subr.mxu0 %v6373_v13  ;;  %167 = vmatprep.subr.mxu1 %v77_v14  ;;  %v69_v22 = vld [vmem:[%s11825_s1 + $0x158] sm:$0xff]  ;;  %v6418_v23 = vld [vmem:[%s11825_s1 + $0x140] sm:$0xff]  ;;  %v68_v24 = vld [vmem:[%s11825_s1 + $0x150] sm:$0xff] }
   0x9   :  { %97 = vmatpush1.msra.mxu0 %v6382_v15  ;;  %168 = vmatpush1.msra.mxu1 %v76_v16  ;;  %v6427_v25 = vld [vmem:[%s11825_s1 + $0x128] sm:$0xff]  ;;  %v65_v26 = vld [vmem:[%s11825_s1 + $0x138] sm:$0xff]  ;;  %v6436_v27 = vld [vmem:[%s11825_s1 + $0x120] sm:$0xff] }
   0xa   :  { %98 = vmatprep.subr.mxu0 %v6391_v17  ;;  %169 = vmatprep.subr.mxu1 %v73_v18  ;;  %v64_v28 = vld [vmem:[%s11825_s1 + $0x130] sm:$0xff]  ;;  %v6445_v29 = vld [vmem:[%s11825_s1 + $0x108] sm:$0xff]  ;;  %v61_v30 = vld [vmem:[%s11825_s1 + $0x118] sm:$0xff] }
   0xb   :  { %99 = vmatpush1.msra.mxu0 %v6400_v19  ;;  %170 = vmatpush1.msra.mxu1 %v72_v20  ;;  %v6454_v31 = vld [vmem:[%s11825_s1 + $0x100] sm:$0xff]  ;;  %v60_v32 = vld [vmem:[%s11825_s1 + $0x110] sm:$0xff]  ;;  %v6463_v33 = vld [vmem:[%s11825_s1 + $0xe8] sm:$0xff] }
   0xc   :  { %100 = vmatprep.subr.mxu0 %v6409_v21  ;;  %171 = vmatprep.subr.mxu1 %v69_v22  ;;  %v57_v34 = vld [vmem:[%s11825_s1 + $0xf8] sm:$0xff]  ;;  %v6472_v35 = vld [vmem:[%s11825_s1 + $0xe0] sm:$0xff]  ;;  %v56_v36 = vld [vmem:[%s11825_s1 + $0xf0] sm:$0xff] }
   0xd   :  { %101 = vmatpush1.msra.mxu0 %v6418_v23  ;;  %172 = vmatpush1.msra.mxu1 %v68_v24  ;;  %v6481_v37 = vld [vmem:[%s11825_s1 + $0xc8] sm:$0xff]  ;;  %v53_v38 = vld [vmem:[%s11825_s1 + $0xd8] sm:$0xff]  ;;  %v6490_v39 = vld [vmem:[%s11825_s1 + $0xc0] sm:$0xff] }
   0xe   :  { %102 = vmatprep.subr.mxu0 %v6427_v25  ;;  %173 = vmatprep.subr.mxu1 %v65_v26  ;;  %v52_v40 = vld [vmem:[%s11825_s1 + $0xd0] sm:$0xff]  ;;  %v6499_v41 = vld [vmem:[%s11825_s1 + $0xa8] sm:$0xff]  ;;  %v49_v42 = vld [vmem:[%s11825_s1 + $0xb8] sm:$0xff] }
   0xf   :  { %103 = vmatpush1.msra.mxu0 %v6436_v27  ;;  %174 = vmatpush1.msra.mxu1 %v64_v28  ;;  %v6508_v43 = vld [vmem:[%s11825_s1 + $0xa0] sm:$0xff]  ;;  %v48_v44 = vld [vmem:[%s11825_s1 + $0xb0] sm:$0xff]  ;;  %v6517_v45 = vld [vmem:[%s11825_s1 + $0x88] sm:$0xff] }
  0x10   :  { %104 = vmatprep.subr.mxu0 %v6445_v29  ;;  %175 = vmatprep.subr.mxu1 %v61_v30  ;;  %v45_v46 = vld [vmem:[%s11825_s1 + $0x98] sm:$0xff]  ;;  %v6526_v47 = vld [vmem:[%s11825_s1 + $0x80] sm:$0xff]  ;;  %v44_v48 = vld [vmem:[%s11825_s1 + $0x90] sm:$0xff] }
  0x11   :  { %105 = vmatpush1.msra.mxu0 %v6454_v31  ;;  %176 = vmatpush1.msra.mxu1 %v60_v32  ;;  %v6535_v49 = vld [vmem:[%s11825_s1 + $0x68] sm:$0xff]  ;;  %v41_v50 = vld [vmem:[%s11825_s1 + $0x78] sm:$0xff]  ;;  %v6544_v51 = vld [vmem:[%s11825_s1 + $0x60] sm:$0xff] }
  0x12   :  { %106 = vmatprep.subr.mxu0 %v6463_v33  ;;  %177 = vmatprep.subr.mxu1 %v57_v34  ;;  %v40_v52 = vld [vmem:[%s11825_s1 + $0x70] sm:$0xff]  ;;  %v6553_v53 = vld [vmem:[%s11825_s1 + $0x48] sm:$0xff]  ;;  %v37_v54 = vld [vmem:[%s11825_s1 + $0x58] sm:$0xff] }
  0x13   :  { %107 = vmatpush1.msra.mxu0 %v6472_v35  ;;  %178 = vmatpush1.msra.mxu1 %v56_v36  ;;  %v6562_v55 = vld [vmem:[%s11825_s1 + $0x40] sm:$0xff]  ;;  %v36_v56 = vld [vmem:[%s11825_s1 + $0x50] sm:$0xff]  ;;  %v6571_v57 = vld [vmem:[%s11825_s1 + $0x28] sm:$0xff] }
  0x14   :  { %108 = vmatprep.subr.mxu0 %v6481_v37  ;;  %179 = vmatprep.subr.mxu1 %v53_v38  ;;  %v33_v58 = vld [vmem:[%s11825_s1 + $0x38] sm:$0xff]  ;;  %v6580_v59 = vld [vmem:[%s11825_s1 + $0x20] sm:$0xff]  ;;  %v32_v60 = vld [vmem:[%s11825_s1 + $0x30] sm:$0xff] }
  0x15   :  { %109 = vmatpush1.msra.mxu0 %v6490_v39  ;;  %180 = vmatpush1.msra.mxu1 %v52_v40  ;;  %v6589_v61 = vld [vmem:[%s11825_s1 + $0x8] sm:$0xff]  ;;  %v29_v62 = vld [vmem:[%s11825_s1 + $0x18] sm:$0xff]  ;;  %v6598_v63 = vld [vmem:[%s11825_s1] sm:$0xff] }
  0x16   :  { %110 = vmatprep.subr.mxu0 %v6499_v41  ;;  %181 = vmatprep.subr.mxu1 %v49_v42  ;;  %v28_v1 = vld [vmem:[%s11825_s1 + $0x10] sm:$0xff]  ;;  %v352_v4 = vld [vmem:[%s11826_s2 + $0x1f8] sm:$0xff]  ;;  %v350_v6 = vld [vmem:[%s11826_s2 + $0x1e8] sm:$0xff] }
  0x17   :  { %111 = vmatpush1.msra.mxu0 %v6508_v43  ;;  %182 = vmatpush1.msra.mxu1 %v48_v44  ;;  %v351_v8 = vld [vmem:[%s11826_s2 + $0x1f0] sm:$0xff]  ;;  %v349_v10 = vld [vmem:[%s11826_s2 + $0x1e0] sm:$0xff]  ;;  %v348_v12 = vld [vmem:[%s11826_s2 + $0x1d8] sm:$0xff] }
  0x18   :  { %112 = vmatprep.subr.mxu0 %v6517_v45  ;;  %183 = vmatprep.subr.mxu1 %v45_v46  ;;  %v346_v14 = vld [vmem:[%s11826_s2 + $0x1c8] sm:$0xff]  ;;  %v347_v16 = vld [vmem:[%s11826_s2 + $0x1d0] sm:$0xff]  ;;  %v345_v18 = vld [vmem:[%s11826_s2 + $0x1c0] sm:$0xff] }
  0x19   :  { %113 = vmatpush1.msra.mxu0 %v6526_v47  ;;  %184 = vmatpush1.msra.mxu1 %v44_v48  ;;  %v344_v20 = vld [vmem:[%s11826_s2 + $0x1b8] sm:$0xff]  ;;  %v342_v22 = vld [vmem:[%s11826_s2 + $0x1a8] sm:$0xff]  ;;  %v343_v24 = vld [vmem:[%s11826_s2 + $0x1b0] sm:$0xff] }
  0x1a   :  { %114 = vmatprep.subr.mxu0 %v6535_v49  ;;  %185 = vmatprep.subr.mxu1 %v41_v50  ;;  %v341_v26 = vld [vmem:[%s11826_s2 + $0x1a0] sm:$0xff]  ;;  %v340_v28 = vld [vmem:[%s11826_s2 + $0x198] sm:$0xff]  ;;  %v338_v30 = vld [vmem:[%s11826_s2 + $0x188] sm:$0xff] }
  0x1b   :  { %115 = vmatpush1.msra.mxu0 %v6544_v51  ;;  %186 = vmatpush1.msra.mxu1 %v40_v52  ;;  %v339_v32 = vld [vmem:[%s11826_s2 + $0x190] sm:$0xff]  ;;  %v337_v34 = vld [vmem:[%s11826_s2 + $0x180] sm:$0xff]  ;;  %v336_v36 = vld [vmem:[%s11826_s2 + $0x178] sm:$0xff] }
  0x1c   :  { %116 = vmatprep.subr.mxu0 %v6553_v53  ;;  %187 = vmatprep.subr.mxu1 %v37_v54  ;;  %v334_v38 = vld [vmem:[%s11826_s2 + $0x168] sm:$0xff]  ;;  %v335_v40 = vld [vmem:[%s11826_s2 + $0x170] sm:$0xff]  ;;  %v333_v42 = vld [vmem:[%s11826_s2 + $0x160] sm:$0xff] }
  0x1d   :  { %117 = vmatpush1.msra.mxu0 %v6562_v55  ;;  %188 = vmatpush1.msra.mxu1 %v36_v56  ;;  %v332_v44 = vld [vmem:[%s11826_s2 + $0x158] sm:$0xff]  ;;  %v330_v46 = vld [vmem:[%s11826_s2 + $0x148] sm:$0xff]  ;;  %v331_v48 = vld [vmem:[%s11826_s2 + $0x150] sm:$0xff] }
  0x1e   :  { %118 = vmatprep.subr.mxu0 %v6571_v57  ;;  %189 = vmatprep.subr.mxu1 %v33_v58  ;;  %v329_v50 = vld [vmem:[%s11826_s2 + $0x140] sm:$0xff]  ;;  %v328_v52 = vld [vmem:[%s11826_s2 + $0x138] sm:$0xff]  ;;  %v326_v54 = vld [vmem:[%s11826_s2 + $0x128] sm:$0xff] }
  0x1f   :  { %119 = vmatpush1.msra.mxu0 %v6580_v59  ;;  %190 = vmatpush1.msra.mxu1 %v32_v60  ;;  %v327_v56 = vld [vmem:[%s11826_s2 + $0x130] sm:$0xff]  ;;  %v325_v58 = vld [vmem:[%s11826_s2 + $0x120] sm:$0xff]  ;;  %v324_v60 = vld [vmem:[%s11826_s2 + $0x118] sm:$0xff] }
  0x20   :  { %120 = vmatprep.subr.mxu0 %v6589_v61  ;;  %191 = vmatprep.subr.mxu1 %v29_v62  ;;  %v322_v62 = vld [vmem:[%s11826_s2 + $0x108] sm:$0xff] }
  0x21   :  { %121 = vmatpush1.msra.mxu0 %v6598_v63  ;;  %192 = vmatpush1.msra.mxu1 %v28_v1  ;;  %v323_v1 = vld [vmem:[%s11826_s2 + $0x110] sm:$0xff] }
  0x22   :  { %155 = vmatmul.mubr.f32.vlgmr.msra.gmra.mxu0 %v11832_v3  ;;  %226 = vmatmul.mubr.f32.vlgmr.msra.gmra.mxu1 %v11832_v3 }
  0x23   :  { %521 = vmatprep.subr.mxu1 %v352_v4  ;;  %450 = vmatprep.subr.mxu0 %v350_v6  ;;  %v321_v4 = vld [vmem:[%s11826_s2 + $0x100] sm:$0xff]  ;;  %v320_v6 = vld [vmem:[%s11826_s2 + $0xf8] sm:$0xff] }
  0x24   :  { %522 = vmatpush1.msra.mxu1 %v351_v8  ;;  %451 = vmatpush1.msra.mxu0 %v349_v10  ;;  %v318_v8 = vld [vmem:[%s11826_s2 + $0xe8] sm:$0xff]  ;;  %v319_v10 = vld [vmem:[%s11826_s2 + $0xf0] sm:$0xff] }
  0x25   :  { %523 = vmatprep.subr.mxu1 %v348_v12  ;;  %452 = vmatprep.subr.mxu0 %v346_v14  ;;  %v317_v12 = vld [vmem:[%s11826_s2 + $0xe0] sm:$0xff]  ;;  %v316_v14 = vld [vmem:[%s11826_s2 + $0xd8] sm:$0xff] }
  0x26   :  { %524 = vmatpush1.msra.mxu1 %v347_v16  ;;  %453 = vmatpush1.msra.mxu0 %v345_v18  ;;  %v314_v16 = vld [vmem:[%s11826_s2 + $0xc8] sm:$0xff]  ;;  %v315_v18 = vld [vmem:[%s11826_s2 + $0xd0] sm:$0xff] }
  0x27   :  { %525 = vmatprep.subr.mxu1 %v344_v20  ;;  %454 = vmatprep.subr.mxu0 %v342_v22  ;;  %v313_v20 = vld [vmem:[%s11826_s2 + $0xc0] sm:$0xff]  ;;  %v312_v22 = vld [vmem:[%s11826_s2 + $0xb8] sm:$0xff] }
  0x28   :  { %526 = vmatpush1.msra.mxu1 %v343_v24  ;;  %455 = vmatpush1.msra.mxu0 %v341_v26  ;;  %v310_v24 = vld [vmem:[%s11826_s2 + $0xa8] sm:$0xff]  ;;  %v311_v26 = vld [vmem:[%s11826_s2 + $0xb0] sm:$0xff] }
  0x29   :  { %527 = vmatprep.subr.mxu1 %v340_v28  ;;  %456 = vmatprep.subr.mxu0 %v338_v30  ;;  %v309_v28 = vld [vmem:[%s11826_s2 + $0xa0] sm:$0xff]  ;;  %v308_v30 = vld [vmem:[%s11826_s2 + $0x98] sm:$0xff] }
  0x2a   :  { %528 = vmatpush1.msra.mxu1 %v339_v32  ;;  %457 = vmatpush1.msra.mxu0 %v337_v34  ;;  %v306_v32 = vld [vmem:[%s11826_s2 + $0x88] sm:$0xff]  ;;  %v307_v34 = vld [vmem:[%s11826_s2 + $0x90] sm:$0xff] }
  0x2b   :  { %529 = vmatprep.subr.mxu1 %v336_v36  ;;  %458 = vmatprep.subr.mxu0 %v334_v38  ;;  %v305_v36 = vld [vmem:[%s11826_s2 + $0x80] sm:$0xff]  ;;  %v304_v38 = vld [vmem:[%s11826_s2 + $0x78] sm:$0xff] }
  0x2c   :  { %530 = vmatpush1.msra.mxu1 %v335_v40  ;;  %459 = vmatpush1.msra.mxu0 %v333_v42  ;;  %v302_v40 = vld [vmem:[%s11826_s2 + $0x68] sm:$0xff]  ;;  %v303_v42 = vld [vmem:[%s11826_s2 + $0x70] sm:$0xff] }
  0x2d   :  { %531 = vmatprep.subr.mxu1 %v332_v44  ;;  %460 = vmatprep.subr.mxu0 %v330_v46  ;;  %v301_v44 = vld [vmem:[%s11826_s2 + $0x60] sm:$0xff]  ;;  %v300_v46 = vld [vmem:[%s11826_s2 + $0x58] sm:$0xff] }
  0x2e   :  { %532 = vmatpush1.msra.mxu1 %v331_v48  ;;  %461 = vmatpush1.msra.mxu0 %v329_v50  ;;  %v298_v48 = vld [vmem:[%s11826_s2 + $0x48] sm:$0xff]  ;;  %v299_v50 = vld [vmem:[%s11826_s2 + $0x50] sm:$0xff] }
  0x2f   :  { %533 = vmatprep.subr.mxu1 %v328_v52  ;;  %462 = vmatprep.subr.mxu0 %v326_v54  ;;  %v297_v52 = vld [vmem:[%s11826_s2 + $0x40] sm:$0xff]  ;;  %v296_v54 = vld [vmem:[%s11826_s2 + $0x38] sm:$0xff] }
  0x30   :  { %534 = vmatpush1.msra.mxu1 %v327_v56  ;;  %463 = vmatpush1.msra.mxu0 %v325_v58  ;;  %v294_v56 = vld [vmem:[%s11826_s2 + $0x28] sm:$0xff]  ;;  %v295_v58 = vld [vmem:[%s11826_s2 + $0x30] sm:$0xff] }
  0x31   :  { %535 = vmatprep.subr.mxu1 %v324_v60  ;;  %464 = vmatprep.subr.mxu0 %v322_v62  ;;  %v293_v60 = vld [vmem:[%s11826_s2 + $0x20] sm:$0xff]  ;;  %v292_v62 = vld [vmem:[%s11826_s2 + $0x18] sm:$0xff] }
  0x32   :  { %536 = vmatpush1.msra.mxu1 %v323_v1  ;;  %465 = vmatpush1.msra.mxu0 %v321_v4  ;;  %v290_v1 = vld [vmem:[%s11826_s2 + $0x8] sm:$0xff]  ;;  %v291_v4 = vld [vmem:[%s11826_s2 + $0x10] sm:$0xff] }
  0x33   :  { %537 = vmatprep.subr.mxu1 %v320_v6  ;;  %466 = vmatprep.subr.mxu0 %v318_v8  ;;  %v289_v6 = vld [vmem:[%s11826_s2] sm:$0xff]  ;;  %v416_v8 = vld [vmem:[%s11826_s2 + $0x3f8] sm:$0xff] }
  0x34   :  { %538 = vmatpush1.msra.mxu1 %v319_v10  ;;  %467 = vmatpush1.msra.mxu0 %v317_v12  ;;  %v414_v10 = vld [vmem:[%s11826_s2 + $0x3e8] sm:$0xff]  ;;  %v415_v12 = vld [vmem:[%s11826_s2 + $0x3f0] sm:$0xff] }
  0x35   :  { %539 = vmatprep.subr.mxu1 %v316_v14  ;;  %468 = vmatprep.subr.mxu0 %v314_v16  ;;  %v413_v14 = vld [vmem:[%s11826_s2 + $0x3e0] sm:$0xff]  ;;  %v412_v16 = vld [vmem:[%s11826_s2 + $0x3d8] sm:$0xff] }
  0x36   :  { %540 = vmatpush1.msra.mxu1 %v315_v18  ;;  %469 = vmatpush1.msra.mxu0 %v313_v20  ;;  %v410_v18 = vld [vmem:[%s11826_s2 + $0x3c8] sm:$0xff]  ;;  %v411_v20 = vld [vmem:[%s11826_s2 + $0x3d0] sm:$0xff] }
  0x37   :  { %541 = vmatprep.subr.mxu1 %v312_v22  ;;  %470 = vmatprep.subr.mxu0 %v310_v24  ;;  %v409_v22 = vld [vmem:[%s11826_s2 + $0x3c0] sm:$0xff]  ;;  %v408_v24 = vld [vmem:[%s11826_s2 + $0x3b8] sm:$0xff] }
  0x38   :  { %542 = vmatpush1.msra.mxu1 %v311_v26  ;;  %471 = vmatpush1.msra.mxu0 %v309_v28  ;;  %v406_v26 = vld [vmem:[%s11826_s2 + $0x3a8] sm:$0xff]  ;;  %v407_v28 = vld [vmem:[%s11826_s2 + $0x3b0] sm:$0xff] }
  0x39   :  { %543 = vmatprep.subr.mxu1 %v308_v30  ;;  %472 = vmatprep.subr.mxu0 %v306_v32  ;;  %v405_v30 = vld [vmem:[%s11826_s2 + $0x3a0] sm:$0xff]  ;;  %v404_v32 = vld [vmem:[%s11826_s2 + $0x398] sm:$0xff] }
  0x3a   :  { %544 = vmatpush1.msra.mxu1 %v307_v34  ;;  %473 = vmatpush1.msra.mxu0 %v305_v36  ;;  %v402_v34 = vld [vmem:[%s11826_s2 + $0x388] sm:$0xff]  ;;  %v403_v36 = vld [vmem:[%s11826_s2 + $0x390] sm:$0xff] }
  0x3b   :  { %545 = vmatprep.subr.mxu1 %v304_v38  ;;  %474 = vmatprep.subr.mxu0 %v302_v40  ;;  %v401_v38 = vld [vmem:[%s11826_s2 + $0x380] sm:$0xff]  ;;  %v400_v40 = vld [vmem:[%s11826_s2 + $0x378] sm:$0xff] }
  0x3c   :  { %546 = vmatpush1.msra.mxu1 %v303_v42  ;;  %475 = vmatpush1.msra.mxu0 %v301_v44  ;;  %v398_v42 = vld [vmem:[%s11826_s2 + $0x368] sm:$0xff]  ;;  %v399_v44 = vld [vmem:[%s11826_s2 + $0x370] sm:$0xff] }
  0x3d   :  { %547 = vmatprep.subr.mxu1 %v300_v46  ;;  %476 = vmatprep.subr.mxu0 %v298_v48  ;;  %v397_v46 = vld [vmem:[%s11826_s2 + $0x360] sm:$0xff]  ;;  %v396_v48 = vld [vmem:[%s11826_s2 + $0x358] sm:$0xff] }
  0x3e   :  { %548 = vmatpush1.msra.mxu1 %v299_v50  ;;  %477 = vmatpush1.msra.mxu0 %v297_v52  ;;  %v394_v50 = vld [vmem:[%s11826_s2 + $0x348] sm:$0xff]  ;;  %v395_v52 = vld [vmem:[%s11826_s2 + $0x350] sm:$0xff] }
  0x3f   :  { %549 = vmatprep.subr.mxu1 %v296_v54  ;;  %478 = vmatprep.subr.mxu0 %v294_v56  ;;  %v393_v54 = vld [vmem:[%s11826_s2 + $0x340] sm:$0xff]  ;;  %v392_v56 = vld [vmem:[%s11826_s2 + $0x338] sm:$0xff] }
  0x40   :  { %550 = vmatpush1.msra.mxu1 %v295_v58  ;;  %479 = vmatpush1.msra.mxu0 %v293_v60  ;;  %v390_v58 = vld [vmem:[%s11826_s2 + $0x328] sm:$0xff]  ;;  %v391_v60 = vld [vmem:[%s11826_s2 + $0x330] sm:$0xff] }
  0x41   :  { %551 = vmatprep.subr.mxu1 %v292_v62  ;;  %480 = vmatprep.subr.mxu0 %v290_v1  ;;  %v389_v62 = vld [vmem:[%s11826_s2 + $0x320] sm:$0xff]  ;;  %v388_v1 = vld [vmem:[%s11826_s2 + $0x318] sm:$0xff] }
  0x42   :  { %552 = vmatpush1.msra.mxu1 %v291_v4  ;;  %481 = vmatpush1.msra.mxu0 %v289_v6  ;;  %v386_v4 = vld [vmem:[%s11826_s2 + $0x308] sm:$0xff]  ;;  %v387_v6 = vld [vmem:[%s11826_s2 + $0x310] sm:$0xff] }
  0x43   :  { %553 = vmatprep.subr.mxu1 %v416_v8  ;;  %482 = vmatprep.subr.mxu0 %v414_v10  ;;  %v385_v8 = vld [vmem:[%s11826_s2 + $0x300] sm:$0xff]  ;;  %v384_v10 = vld [vmem:[%s11826_s2 + $0x2f8] sm:$0xff] }
  0x44   :  { %554 = vmatpush2.msra.mxu1 %v415_v12  ;;  %483 = vmatpush2.msra.mxu0 %v413_v14  ;;  %v382_v12 = vld [vmem:[%s11826_s2 + $0x2e8] sm:$0xff]  ;;  %v383_v14 = vld [vmem:[%s11826_s2 + $0x2f0] sm:$0xff] }
  0x45   :  { %555 = vmatprep.subr.mxu1 %v412_v16  ;;  %484 = vmatprep.subr.mxu0 %v410_v18  ;;  %v381_v16 = vld [vmem:[%s11826_s2 + $0x2e0] sm:$0xff]  ;;  %v380_v18 = vld [vmem:[%s11826_s2 + $0x2d8] sm:$0xff] }
  0x46   :  { %556 = vmatpush2.msra.mxu1 %v411_v20  ;;  %485 = vmatpush2.msra.mxu0 %v409_v22  ;;  %v378_v20 = vld [vmem:[%s11826_s2 + $0x2c8] sm:$0xff]  ;;  %v379_v22 = vld [vmem:[%s11826_s2 + $0x2d0] sm:$0xff] }
  0x47   :  { %557 = vmatprep.subr.mxu1 %v408_v24  ;;  %486 = vmatprep.subr.mxu0 %v406_v26  ;;  %v377_v24 = vld [vmem:[%s11826_s2 + $0x2c0] sm:$0xff]  ;;  %v376_v26 = vld [vmem:[%s11826_s2 + $0x2b8] sm:$0xff] }
  0x48   :  { %558 = vmatpush2.msra.mxu1 %v407_v28  ;;  %487 = vmatpush2.msra.mxu0 %v405_v30  ;;  %v374_v28 = vld [vmem:[%s11826_s2 + $0x2a8] sm:$0xff]  ;;  %v375_v30 = vld [vmem:[%s11826_s2 + $0x2b0] sm:$0xff] }
  0x49   :  { %559 = vmatprep.subr.mxu1 %v404_v32  ;;  %488 = vmatprep.subr.mxu0 %v402_v34  ;;  %v373_v32 = vld [vmem:[%s11826_s2 + $0x2a0] sm:$0xff]  ;;  %v372_v34 = vld [vmem:[%s11826_s2 + $0x298] sm:$0xff] }
  0x4a   :  { %560 = vmatpush2.msra.mxu1 %v403_v36  ;;  %489 = vmatpush2.msra.mxu0 %v401_v38  ;;  %v370_v36 = vld [vmem:[%s11826_s2 + $0x288] sm:$0xff]  ;;  %v371_v38 = vld [vmem:[%s11826_s2 + $0x290] sm:$0xff] }
  0x4b   :  { %561 = vmatprep.subr.mxu1 %v400_v40  ;;  %490 = vmatprep.subr.mxu0 %v398_v42  ;;  %v369_v40 = vld [vmem:[%s11826_s2 + $0x280] sm:$0xff]  ;;  %v368_v42 = vld [vmem:[%s11826_s2 + $0x278] sm:$0xff] }
  0x4c   :  { %562 = vmatpush2.msra.mxu1 %v399_v44  ;;  %491 = vmatpush2.msra.mxu0 %v397_v46  ;;  %v366_v44 = vld [vmem:[%s11826_s2 + $0x268] sm:$0xff]  ;;  %v367_v46 = vld [vmem:[%s11826_s2 + $0x270] sm:$0xff] }
  0x4d   :  { %563 = vmatprep.subr.mxu1 %v396_v48  ;;  %492 = vmatprep.subr.mxu0 %v394_v50  ;;  %v365_v48 = vld [vmem:[%s11826_s2 + $0x260] sm:$0xff]  ;;  %v364_v50 = vld [vmem:[%s11826_s2 + $0x258] sm:$0xff] }
  0x4e   :  { %564 = vmatpush2.msra.mxu1 %v395_v52  ;;  %493 = vmatpush2.msra.mxu0 %v393_v54  ;;  %v362_v52 = vld [vmem:[%s11826_s2 + $0x248] sm:$0xff]  ;;  %v363_v54 = vld [vmem:[%s11826_s2 + $0x250] sm:$0xff] }
  0x4f   :  { %565 = vmatprep.subr.mxu1 %v392_v56  ;;  %494 = vmatprep.subr.mxu0 %v390_v58  ;;  %v361_v56 = vld [vmem:[%s11826_s2 + $0x240] sm:$0xff]  ;;  %v360_v58 = vld [vmem:[%s11826_s2 + $0x238] sm:$0xff] }
  0x50   :  { %566 = vmatpush2.msra.mxu1 %v391_v60  ;;  %495 = vmatpush2.msra.mxu0 %v389_v62  ;;  %v358_v60 = vld [vmem:[%s11826_s2 + $0x228] sm:$0xff]  ;;  %v359_v62 = vld [vmem:[%s11826_s2 + $0x230] sm:$0xff] }
  0x51   :  { %567 = vmatprep.subr.mxu1 %v388_v1  ;;  %496 = vmatprep.subr.mxu0 %v386_v4  ;;  %v357_v1 = vld [vmem:[%s11826_s2 + $0x220] sm:$0xff]  ;;  %v356_v4 = vld [vmem:[%s11826_s2 + $0x218] sm:$0xff] }
  0x52   :  { %568 = vmatpush2.msra.mxu1 %v387_v6  ;;  %497 = vmatpush2.msra.mxu0 %v385_v8  ;;  %v354_v6 = vld [vmem:[%s11826_s2 + $0x208] sm:$0xff]  ;;  %v355_v8 = vld [vmem:[%s11826_s2 + $0x210] sm:$0xff] }
  0x53   :  { %569 = vmatprep.subr.mxu1 %v384_v10  ;;  %498 = vmatprep.subr.mxu0 %v382_v12  ;;  %v353_v10 = vld [vmem:[%s11826_s2 + $0x200] sm:$0xff]  ;;  %v6278_v12 = vmov 1983009808  }
  0x54   :  { %570 = vmatpush2.msra.mxu1 %v383_v14  ;;  %499 = vmatpush2.msra.mxu0 %v381_v16  ;;  %v239_v14 = vunpack.c.l.s4 %v6278_v12  ;;  %v241_v16 = vlaneseq }
  0x55   :  { %571 = vmatprep.subr.mxu1 %v380_v18  ;;  %500 = vmatprep.subr.mxu0 %v378_v20 }
  0x56   :  { %572 = vmatpush2.msra.mxu1 %v379_v22  ;;  %501 = vmatpush2.msra.mxu0 %v377_v24  ;;  %v240_v18 = vunpack.c.0.s8 %v239_v14  ;;  %v6994_v20 = vshrl.u32 %v241_v16, 7 }
  0x57   :  { %573 = vmatprep.subr.mxu1 %v376_v26  ;;  %502 = vmatprep.subr.mxu0 %v374_v28 }
  0x58   :  { %574 = vmatpush2.msra.mxu1 %v375_v30  ;;  %503 = vmatpush2.msra.mxu0 %v373_v32  ;;  %v6997_v26 = vsub.s32 %v240_v18, %v6994_v20 }
  0x59   :  { %575 = vmatprep.subr.mxu1 %v372_v34  ;;  %504 = vmatprep.subr.mxu0 %v370_v36 }
  0x5a   :  { %576 = vmatpush2.msra.mxu1 %v371_v38  ;;  %505 = vmatpush2.msra.mxu0 %v369_v40  ;;  %11864 = vst [vmem:[#allocation4_spill] sm:$0xff] %v6997_v26  ;;  %v25_v38 = vld [vmem:[%s11827_s0] sm:$0xff] }
  0x5b   :  { %577 = vmatprep.subr.mxu1 %v368_v42  ;;  %506 = vmatprep.subr.mxu0 %v366_v44 }
  0x5c   :  { %578 = vmatpush2.msra.mxu1 %v367_v46  ;;  %507 = vmatpush2.msra.mxu0 %v365_v48 }
  0x5d   :  { %579 = vmatprep.subr.mxu1 %v364_v50  ;;  %508 = vmatprep.subr.mxu0 %v362_v52 }
  0x5e   :  { %580 = vmatpush2.msra.mxu1 %v363_v54  ;;  %509 = vmatpush2.msra.mxu0 %v361_v56 }
  0x5f   :  { %581 = vmatprep.subr.mxu1 %v360_v58  ;;  %510 = vmatprep.subr.mxu0 %v358_v60 }
  0x60   :  { %582 = vmatpush2.msra.mxu1 %v359_v62  ;;  %511 = vmatpush2.msra.mxu0 %v357_v1 }
  0x61   :  { %583 = vmatprep.subr.mxu1 %v356_v4  ;;  %512 = vmatprep.subr.mxu0 %v354_v6 }
  0x62   :  { %584 = vmatpush2.msra.mxu1 %v355_v8  ;;  %513 = vmatpush2.msra.mxu0 %v353_v10 }
  0x63   :  { %777 = vmatprep.subr.mxu1 %v6318_v0  ;;  %5738 = vmatprep.subr.mxu0 %v11832_v3 }
  0xe2   :  { %v156_v22 = vpop.f32.mrf.mxu0  ;;  %v227_v24 = vpop.f32.mrf.mxu1 }
  0xe4   :  { %v158_v28 = vpop.f32.mrf.mxu0  ;;  %v229_v30 = vpop.f32.mrf.mxu1 }
  0xe5   :  { %v236_v32 = vcombine.low %v156_v22, %v158_v28  ;;  %v237_v34 = vcombine.low %v227_v24, %v229_v30 }
  0xe7   :  { %v244_v36 = vrot.slane %v236_v32, %v6997_v26  ;;  %v251_v0 = vrot.slane %v237_v34, %v6997_v26 }
  0xe9   :  { %v252_v40 = vcombine.low %v244_v36, %v251_v0  ;;  %v7130_v36 = vsub.s32 2, %v6994_v20 }
  0xeb   :  { %v254_v42 = vadd.f32 %v252_v40, %v25_v38  ;;  %11868 = vst [vmem:[#allocation8_spill] sm:$0xff] %v7130_v36 }
  0xed   :  { %v5524_v44 = vmul.f32 -1.442695, %v254_v42  ;;  %v262_v46 = vrot.slane %v254_v42, 2  ;;  %v273_v50 = vrot.slane %v254_v42, 6  ;;  %v270_v56 = vrot.slane %v254_v42, 4 }
  0xef   :  { %6021 = vpow2.f32 %v5524_v44  ;;  %v5525_v48 = vmul.f32 -1.442695, %v262_v46  ;;  %v5526_v52 = vmul.f32 -1.442695, %v273_v50 }
  0xf1   :  { %6023 = vpow2.f32 %v5525_v48 }
  0xf2   :  { %6025 = vpow2.f32 %v5526_v52 }
  0xfc   :  { %v6022_v54 = vpop.eup %6021 }
  0xfd   :  { %v258_v58 = vadd.f32 1.0, %v6022_v54 }
  0xfe   :  { %v6024_v60 = vpop.eup %6023 }
  0xff   :  { %6027 = vrcp.f32 %v258_v58  ;;  %v267_v62 = vadd.f32 1.0, %v6024_v60  ;;  %v6026_v1 = vpop.eup %6025 }
 0x100   :  { %6029 = vtanh.f32 %v270_v56  ;;  %v278_v10 = vadd.f32 1.0, %v6026_v1 }
 0x101   :  { %6031 = vrcp.f32 %v267_v62 }
 0x102   :  { %6033 = vrcp.f32 %v278_v10  ;;  %v775_v10 = vld [vmem:[%s11825_s1 + $0x1f0] sm:$0xff] }
 0x10c   :  { %v6028_v4 = vpop.eup %6027 }
 0x10d   :  { %v6030_v6 = vpop.eup %6029 }
 0x10e   :  { %v6032_v8 = vpop.eup %6031  ;;  %v282_v14 = vmul.f32 %v6030_v6, %v6028_v4 }
 0x10f   :  { %v281_v12 = vmul.f32 0.0, %v6032_v8  ;;  %v6034_v18 = vpop.eup %6033 }
 0x111   :  { %v7004_v16 = vadd.f32 %v282_v14, %v281_v12  ;;  %v772_v12 = vld [vmem:[%s11825_s1 + $0x1d8] sm:$0xff]  ;;  %v771_v14 = vld [vmem:[%s11825_s1 + $0x1d0] sm:$0xff] }
 0x113   :  { %6035 = vtanh.f32 %v7004_v16 }
 0x120   :  { %v6036_v22 = vpop.eup %6035 }
 0x121   :  { %v7007_v24 = vmul.f32 %v6036_v22, %v6034_v18  ;;  %v768_v18 = vld [vmem:[%s11825_s1 + $0x1b8] sm:$0xff]  ;;  %v767_v22 = vld [vmem:[%s11825_s1 + $0x1b0] sm:$0xff] }
 0x123   :  { %286 = vst [vmem:[#allocation2] sm:$0x3] %v7007_v24 }
 0x12a   :  { %v5527_v28 = vld.sshfl [vmem:[#allocation2] sm:$0x33 pattern:$0x76325410] }
 0x12b   :  { %v447_v30 = vcombine.high %v5527_v28, %v5527_v28 }
 0x12d   :  { %514 = vmatprep.mubr.f32.mxu0 %v447_v30  ;;  %585 = vmatprep.mubr.f32.mxu1 %v447_v30  ;;  %v763_v30 = vld [vmem:[%s11825_s1 + $0x190] sm:$0xff] }
 0x12e   :  { %515 = vmatmul.mubr.f32.vlgmr.msra.gmra.mxu0 %v5527_v28  ;;  %586 = vmatmul.mubr.f32.vlgmr.msra.gmra.mxu1 %v5527_v28  ;;  %v764_v28 = vld [vmem:[%s11825_s1 + $0x198] sm:$0xff] }
 0x12f   :  { %778 = vmatpush1.msra.mxu1 %v6326_v2  ;;  %841 = vmatprep.mubr.f32.mxu1 %v11832_v3  ;;  %v631_v2 = vld [vmem:[%s11828_s4 + $0x78] sm:$0xff] }
 0x130   :  { %779 = vmatprep.subr.mxu1 %v6338_v5  ;;  %5739 = vmatpush3.msra.mxu0 %v631_v2  ;;  %v630_v5 = vld [vmem:[%s11828_s4 + $0x70] sm:$0xff]  ;;  %v760_v2 = vld [vmem:[%s11825_s1 + $0x178] sm:$0xff] }
 0x131   :  { %780 = vmatpush1.msra.mxu1 %v6347_v7  ;;  %5740 = vmatprep.subr.mxu0 %v11832_v3  ;;  %v629_v7 = vld [vmem:[%s11828_s4 + $0x68] sm:$0xff] }
 0x132   :  { %781 = vmatprep.subr.mxu1 %v6355_v9  ;;  %5741 = vmatpush3.msra.mxu0 %v630_v5  ;;  %v628_v9 = vld [vmem:[%s11828_s4 + $0x60] sm:$0xff]  ;;  %v759_v5 = vld [vmem:[%s11825_s1 + $0x170] sm:$0xff] }
 0x133   :  { %782 = vmatpush1.msra.mxu1 %v6364_v11  ;;  %5742 = vmatprep.subr.mxu0 %v11832_v3  ;;  %v627_v11 = vld [vmem:[%s11828_s4 + $0x58] sm:$0xff] }
 0x134   :  { %783 = vmatprep.subr.mxu1 %v6373_v13  ;;  %5743 = vmatpush3.msra.mxu0 %v629_v7  ;;  %v626_v13 = vld [vmem:[%s11828_s4 + $0x50] sm:$0xff]  ;;  %v756_v7 = vld [vmem:[%s11825_s1 + $0x158] sm:$0xff] }
 0x135   :  { %784 = vmatpush1.msra.mxu1 %v6382_v15  ;;  %5744 = vmatprep.subr.mxu0 %v11832_v3  ;;  %v625_v15 = vld [vmem:[%s11828_s4 + $0x48] sm:$0xff] }
 0x136   :  { %785 = vmatprep.subr.mxu1 %v6391_v17  ;;  %5745 = vmatpush3.msra.mxu0 %v628_v9  ;;  %v624_v17 = vld [vmem:[%s11828_s4 + $0x40] sm:$0xff]  ;;  %v755_v9 = vld [vmem:[%s11825_s1 + $0x150] sm:$0xff] }
 0x137   :  { %786 = vmatpush1.msra.mxu1 %v6400_v19  ;;  %5746 = vmatprep.subr.mxu0 %v11832_v3  ;;  %v623_v19 = vld [vmem:[%s11828_s4 + $0x38] sm:$0xff] }
 0x138   :  { %787 = vmatprep.subr.mxu1 %v6409_v21  ;;  %5747 = vmatpush3.msra.mxu0 %v627_v11  ;;  %v622_v21 = vld [vmem:[%s11828_s4 + $0x30] sm:$0xff]  ;;  %v752_v11 = vld [vmem:[%s11825_s1 + $0x138] sm:$0xff] }
 0x139   :  { %788 = vmatpush1.msra.mxu1 %v6418_v23  ;;  %5748 = vmatprep.subr.mxu0 %v11832_v3  ;;  %v621_v23 = vld [vmem:[%s11828_s4 + $0x28] sm:$0xff] }
 0x13a   :  { %789 = vmatprep.subr.mxu1 %v6427_v25  ;;  %5749 = vmatpush3.msra.mxu0 %v626_v13  ;;  %v620_v25 = vld [vmem:[%s11828_s4 + $0x20] sm:$0xff]  ;;  %v751_v13 = vld [vmem:[%s11825_s1 + $0x130] sm:$0xff] }
 0x13b   :  { %790 = vmatpush1.msra.mxu1 %v6436_v27  ;;  %5750 = vmatprep.subr.mxu0 %v11832_v3  ;;  %v619_v27 = vld [vmem:[%s11828_s4 + $0x18] sm:$0xff] }
 0x13c   :  { %791 = vmatprep.subr.mxu1 %v6445_v29  ;;  %5751 = vmatpush3.msra.mxu0 %v625_v15  ;;  %v618_v29 = vld [vmem:[%s11828_s4 + $0x10] sm:$0xff]  ;;  %v748_v15 = vld [vmem:[%s11825_s1 + $0x118] sm:$0xff] }
 0x13d   :  { %792 = vmatpush1.msra.mxu1 %v6454_v31  ;;  %5752 = vmatprep.subr.mxu0 %v11832_v3  ;;  %v617_v31 = vld [vmem:[%s11828_s4 + $0x8] sm:$0xff] }
 0x13e   :  { %793 = vmatprep.subr.mxu1 %v6463_v33  ;;  %5753 = vmatpush3.msra.mxu0 %v624_v17  ;;  %v616_v33 = vld [vmem:[%s11828_s4] sm:$0xff]  ;;  %v747_v17 = vld [vmem:[%s11825_s1 + $0x110] sm:$0xff] }
 0x13f   :  { %794 = vmatpush1.msra.mxu1 %v6472_v35  ;;  %5754 = vmatprep.subr.mxu0 %v11832_v3  ;;  %v776_v35 = vld [vmem:[%s11825_s1 + $0x1f8] sm:$0xff] }
 0x140   :  { %795 = vmatprep.subr.mxu1 %v6481_v37  ;;  %5755 = vmatpush3.msra.mxu0 %v623_v19  ;;  %v11_v37 = vstv %s11829_s5  ;;  %v744_v19 = vld [vmem:[%s11825_s1 + $0xf8] sm:$0xff] }
 0x141   :  { %796 = vmatpush1.msra.mxu1 %v6490_v39  ;;  %5770 = vmatprep.mubr.msk.f32.mxu0 %vm6279_vm0, %v11832_v3  ;;  %12 = vst [vmem:[#allocation3] sm:$0x1] %v11_v37  ;;  %v7115_v39 = vsub.s32 0, %v6994_v20  ;;  %v727_v37 = vld [vmem:[%s11825_s1 + $0x70] sm:$0xff] }
 0x142   :  { %797 = vmatprep.subr.mxu1 %v6499_v41  ;;  %5756 = vmatprep.subr.mxu0 %v11832_v3  ;;  %v417_v41 = vld [vmem:[%s11830_s3] sm:$0xf] }
 0x143   :  { %798 = vmatpush1.msra.mxu1 %v6508_v43  ;;  %5757 = vmatpush3.msra.mxu0 %v622_v21  ;;  %11865 = vst [vmem:[#allocation5_spill] sm:$0xff] %v7115_v39  ;;  %v7121_v43 = vsub.s32 1, %v6994_v20  ;;  %v430_v38 = vrot.slane %v417_v41, %v7130_v36  ;;  %v743_v21 = vld [vmem:[%s11825_s1 + $0xf0] sm:$0xff] }
 0x144   :  { %799 = vmatprep.subr.mxu1 %v6517_v45  ;;  %5758 = vmatprep.subr.mxu0 %v11832_v3  ;;  %v422_v45 = vrot.slane %v417_v41, %v7115_v39 }
 0x145   :  { %800 = vmatpush1.msra.mxu1 %v6526_v47  ;;  %5759 = vmatpush3.msra.mxu0 %v621_v23  ;;  %11866 = vst [vmem:[#allocation6_spill] sm:$0xff] %v7121_v43  ;;  %v426_v47 = vrot.slane %v417_v41, %v7121_v43  ;;  %v740_v23 = vld [vmem:[%s11825_s1 + $0xd8] sm:$0xff] }
 0x146   :  { %801 = vmatprep.subr.mxu1 %v6535_v49  ;;  %5760 = vmatprep.subr.mxu0 %v11832_v3 }
 0x147   :  { %802 = vmatpush1.msra.mxu1 %v6544_v51  ;;  %5761 = vmatpush3.msra.mxu0 %v620_v25  ;;  %v739_v25 = vld [vmem:[%s11825_s1 + $0xd0] sm:$0xff] }
 0x148   :  { %803 = vmatprep.subr.mxu1 %v6553_v53  ;;  %5762 = vmatprep.subr.mxu0 %v11832_v3 }
 0x149   :  { %804 = vmatpush1.msra.mxu1 %v6562_v55  ;;  %5763 = vmatpush3.msra.mxu0 %v619_v27  ;;  %v736_v27 = vld [vmem:[%s11825_s1 + $0xb8] sm:$0xff] }
 0x14a   :  { %805 = vmatprep.subr.mxu1 %v6571_v57  ;;  %5764 = vmatprep.subr.mxu0 %v11832_v3 }
 0x14b   :  { %806 = vmatpush1.msra.mxu1 %v6580_v59  ;;  %5765 = vmatpush3.msra.mxu0 %v618_v29  ;;  %v7126_v59 = vsub.s32 3, %v6994_v20  ;;  %v735_v29 = vld [vmem:[%s11825_s1 + $0xb0] sm:$0xff] }
 0x14c   :  { %807 = vmatprep.subr.mxu1 %v6589_v61  ;;  %5766 = vmatprep.subr.mxu0 %v11832_v3 }
 0x14d   :  { %808 = vmatpush1.msra.mxu1 %v6598_v63  ;;  %5767 = vmatpush3.msra.mxu0 %v617_v31  ;;  %11867 = vst [vmem:[#allocation7_spill] sm:$0xff] %v7126_v59  ;;  %v434_v32 = vrot.slane %v417_v41, %v7126_v59  ;;  %v732_v31 = vld [vmem:[%s11825_s1 + $0x98] sm:$0xff] }
 0x14e   :  { %842 = vmatmul.mubr.f32.vlgmr.msra.gmra.mxu1 %v7007_v24  ;;  %5768 = vmatprep.subr.mxu0 %v11832_v3  ;;  %v724_v41 = vld [vmem:[%s11825_s1 + $0x58] sm:$0xff] }
 0x14f   :  { %5769 = vmatpush3.msra.mxu0 %v616_v33  ;;  %v731_v33 = vld [vmem:[%s11825_s1 + $0x90] sm:$0xff] }
 0x150   :  { %848 = vmatprep.subr.mxu0 %v776_v35  ;;  %v728_v35 = vld [vmem:[%s11825_s1 + $0x78] sm:$0xff] }
 0x1ee   :  { %v516_v49 = vpop.f32.mrf.mxu0  ;;  %v587_v61 = vpop.f32.mrf.mxu1 }
 0x1ef   :  { %v517_v51 = vadd.f32 %v516_v49, %v422_v45  ;;  %v588_v44 = vadd.f32 %v587_v61, %v430_v38  ;;  %v723_v45 = vld [vmem:[%s11825_s1 + $0x50] sm:$0xff]  ;;  %v1031_v38 = vld [vmem:[%s11826_s2 + $0x1b8] sm:$0xff] }
 0x1f0   :  { %v518_v53 = vpop.f32.mrf.mxu0  ;;  %v589_v34 = vpop.f32.mrf.mxu1  ;;  %v719_v49 = vld [vmem:[%s11825_s1 + $0x30] sm:$0xff] }
 0x1f1   :  { %v5528_v55 = vmul.f32 -1.442695, %v517_v51  ;;  %v519_v57 = vadd.f32 %v518_v53, %v426_v47  ;;  %v590_v0 = vadd.f32 %v589_v34, %v434_v32  ;;  %v720_v47 = vld [vmem:[%s11825_s1 + $0x38] sm:$0xff]  ;;  %v715_v53 = vld [vmem:[%s11825_s1 + $0x10] sm:$0xff]  ;;  %v1033_v32 = vld [vmem:[%s11826_s2 + $0x1c8] sm:$0xff] }
 0x1f2   :  { %v716_v51 = vld [vmem:[%s11825_s1 + $0x18] sm:$0xff]  ;;  %v1038_v61 = vld [vmem:[%s11826_s2 + $0x1f0] sm:$0xff] }
 0x1f3   :  { %6037 = vpow2.f32 %v5528_v55  ;;  %v5529_v63 = vmul.f32 -1.442695, %v519_v57  ;;  %v5530_v40 = vmul.f32 -1.442695, %v590_v0  ;;  %v1039_v55 = vld [vmem:[%s11826_s2 + $0x1f8] sm:$0xff]  ;;  %v1037_v57 = vld [vmem:[%s11826_s2 + $0x1e8] sm:$0xff] }
 0x1f4   :  { %1137 = vmatprep.subr.mxu1 %v1037_v57  ;;  %v1034_v34 = vld [vmem:[%s11826_s2 + $0x1d0] sm:$0xff]  ;;  %v1032_v0 = vld [vmem:[%s11826_s2 + $0x1c0] sm:$0xff]  ;;  %v981_v57 = vld [vmem:[%s11826_s2 + $0x28] sm:$0xff] }
 0x1f5   :  { %6039 = vpow2.f32 %v5529_v63  ;;  %v1036_v63 = vld [vmem:[%s11826_s2 + $0x1e0] sm:$0xff] }
 0x1f6   :  { %6041 = vpow2.f32 %v5530_v40  ;;  %1138 = vmatpush1.msra.mxu1 %v1036_v63  ;;  %v1029_v40 = vld [vmem:[%s11826_s2 + $0x1a8] sm:$0xff]  ;;  %v980_v63 = vld [vmem:[%s11826_s2 + $0x20] sm:$0xff] }
 0x1f7   :  { %1139 = vmatprep.subr.mxu1 %v1033_v32  ;;  %v977_v32 = vld [vmem:[%s11826_s2 + $0x8] sm:$0xff] }
 0x1f8   :  { %1140 = vmatpush1.msra.mxu1 %v1032_v0  ;;  %v976_v0 = vld [vmem:[%s11826_s2] sm:$0xff] }
 0x1f9   :  { %1141 = vmatprep.subr.mxu1 %v1029_v40  ;;  %v1101_v40 = vld [vmem:[%s11826_s2 + $0x3e8] sm:$0xff] }
 0x200   :  { %v6038_v42 = vpop.eup %6037 }
 0x201   :  { %v595_v46 = vadd.f32 1.0, %v6038_v42  ;;  %v1030_v42 = vld [vmem:[%s11826_s2 + $0x1b0] sm:$0xff] }
 0x202   :  { %v6040_v48 = vpop.eup %6039 }
 0x203   :  { %6043 = vrcp.f32 %v595_v46  ;;  %v601_v50 = vadd.f32 1.0, %v6040_v48  ;;  %v6042_v52 = vpop.eup %6041  ;;  %v1027_v46 = vld [vmem:[%s11826_s2 + $0x198] sm:$0xff]  ;;  %v1025_v48 = vld [vmem:[%s11826_s2 + $0x188] sm:$0xff] }
 0x204   :  { %6045 = vtanh.f32 %v588_v44  ;;  %v608_v60 = vadd.f32 1.0, %v6042_v52  ;;  %v1028_v44 = vld [vmem:[%s11826_s2 + $0x1a0] sm:$0xff] }
 0x205   :  { %6047 = vrcp.f32 %v601_v50  ;;  %1142 = vmatpush1.msra.mxu1 %v1028_v44  ;;  %v1026_v50 = vld [vmem:[%s11826_s2 + $0x190] sm:$0xff]  ;;  %v1024_v52 = vld [vmem:[%s11826_s2 + $0x180] sm:$0xff] }
 0x206   :  { %6049 = vrcp.f32 %v608_v60  ;;  %1143 = vmatprep.subr.mxu1 %v1025_v48  ;;  %v1020_v60 = vld [vmem:[%s11826_s2 + $0x160] sm:$0xff]  ;;  %v1097_v48 = vld [vmem:[%s11826_s2 + $0x3c8] sm:$0xff] }
 0x207   :  { %1144 = vmatpush1.msra.mxu1 %v1024_v52  ;;  %v1100_v44 = vld [vmem:[%s11826_s2 + $0x3e0] sm:$0xff] }
 0x208   :  { %v1096_v52 = vld [vmem:[%s11826_s2 + $0x3c0] sm:$0xff] }
 0x210   :  { %v6044_v54 = vpop.eup %6043 }
 0x211   :  { %v6046_v56 = vpop.eup %6045 }
 0x212   :  { %v6048_v58 = vpop.eup %6047  ;;  %v612_v62 = vmul.f32 %v6046_v56, %v6044_v54  ;;  %v1023_v54 = vld [vmem:[%s11826_s2 + $0x178] sm:$0xff]  ;;  %v1021_v56 = vld [vmem:[%s11826_s2 + $0x168] sm:$0xff] }
 0x213   :  { %v611_v20 = vmul.f32 0.0, %v6048_v58  ;;  %v6050_v4 = vpop.eup %6049  ;;  %v1022_v58 = vld [vmem:[%s11826_s2 + $0x170] sm:$0xff]  ;;  %1145 = vmatprep.subr.mxu1 %v1021_v56  ;;  %v1093_v56 = vld [vmem:[%s11826_s2 + $0x3a8] sm:$0xff] }
 0x214   :  { %1146 = vmatpush1.msra.mxu1 %v1020_v60  ;;  %v1092_v60 = vld [vmem:[%s11826_s2 + $0x3a0] sm:$0xff] }
 0x215   :  { %v7133_v1 = vadd.f32 %v612_v62, %v611_v20  ;;  %v1019_v20 = vld [vmem:[%s11826_s2 + $0x158] sm:$0xff]  ;;  %v1017_v62 = vld [vmem:[%s11826_s2 + $0x148] sm:$0xff] }
 0x216   :  { %1147 = vmatprep.subr.mxu1 %v1017_v62  ;;  %v1089_v62 = vld [vmem:[%s11826_s2 + $0x388] sm:$0xff] }
 0x217   :  { %6051 = vtanh.f32 %v7133_v1 }
 0x224   :  { %v6052_v6 = vpop.eup %6051 }
 0x225   :  { %v615_v8 = vmul.f32 %v6052_v6, %v6050_v4  ;;  %v1018_v4 = vld [vmem:[%s11826_s2 + $0x150] sm:$0xff]  ;;  %v1016_v6 = vld [vmem:[%s11826_s2 + $0x140] sm:$0xff] }
 0x226   :  { %1148 = vmatpush1.msra.mxu1 %v1016_v6  ;;  %v1088_v6 = vld [vmem:[%s11826_s2 + $0x380] sm:$0xff] }
 0x227   :  { %5771 = vmatmul.mubr.f32.vlgmr.msra.gmra.mxu0 %v615_v8  ;;  %974 = vst [vmem:[#allocation2 + $0x2] sm:$0x3] %v615_v8  ;;  %v1015_v8 = vld [vmem:[%s11826_s2 + $0x138] sm:$0xff] }
 0x228   :  { %849 = vmatpush1.msra.mxu0 %v775_v10  ;;  %912 = vmatprep.mubr.f32.mxu0 %v11832_v3  ;;  %v1013_v10 = vld [vmem:[%s11826_s2 + $0x128] sm:$0xff] }
 0x229   :  { %850 = vmatprep.subr.mxu0 %v772_v12  ;;  %v1014_v12 = vld [vmem:[%s11826_s2 + $0x130] sm:$0xff]  ;;  %1149 = vmatprep.subr.mxu1 %v1013_v10  ;;  %v1085_v10 = vld [vmem:[%s11826_s2 + $0x368] sm:$0xff] }
 0x22a   :  { %851 = vmatpush1.msra.mxu0 %v771_v14  ;;  %v1012_v14 = vld [vmem:[%s11826_s2 + $0x120] sm:$0xff] }
 0x22b   :  { %852 = vmatprep.subr.mxu0 %v768_v18  ;;  %v1011_v18 = vld [vmem:[%s11826_s2 + $0x118] sm:$0xff]  ;;  %1150 = vmatpush1.msra.mxu1 %v1012_v14  ;;  %v1084_v14 = vld [vmem:[%s11826_s2 + $0x360] sm:$0xff] }
 0x22c   :  { %853 = vmatpush1.msra.mxu0 %v767_v22  ;;  %v1009_v22 = vld [vmem:[%s11826_s2 + $0x108] sm:$0xff] }
 0x22d   :  { %854 = vmatprep.subr.mxu0 %v764_v28  ;;  %v1010_v28 = vld [vmem:[%s11826_s2 + $0x110] sm:$0xff]  ;;  %1151 = vmatprep.subr.mxu1 %v1009_v22  ;;  %v1081_v22 = vld [vmem:[%s11826_s2 + $0x348] sm:$0xff] }
 0x22e   :  { %855 = vmatpush1.msra.mxu0 %v763_v30  ;;  %v1008_v30 = vld [vmem:[%s11826_s2 + $0x100] sm:$0xff] }
 0x22f   :  { %856 = vmatprep.subr.mxu0 %v760_v2  ;;  %v1007_v2 = vld [vmem:[%s11826_s2 + $0xf8] sm:$0xff]  ;;  %1152 = vmatpush1.msra.mxu1 %v1008_v30  ;;  %v1080_v30 = vld [vmem:[%s11826_s2 + $0x340] sm:$0xff] }
 0x230   :  { %857 = vmatpush1.msra.mxu0 %v759_v5  ;;  %v1005_v5 = vld [vmem:[%s11826_s2 + $0xe8] sm:$0xff] }
 0x231   :  { %858 = vmatprep.subr.mxu0 %v756_v7  ;;  %v1006_v7 = vld [vmem:[%s11826_s2 + $0xf0] sm:$0xff]  ;;  %1153 = vmatprep.subr.mxu1 %v1005_v5  ;;  %v1077_v5 = vld [vmem:[%s11826_s2 + $0x328] sm:$0xff] }
 0x232   :  { %859 = vmatpush1.msra.mxu0 %v755_v9  ;;  %v1004_v9 = vld [vmem:[%s11826_s2 + $0xe0] sm:$0xff] }
 0x233   :  { %860 = vmatprep.subr.mxu0 %v752_v11  ;;  %v1003_v11 = vld [vmem:[%s11826_s2 + $0xd8] sm:$0xff]  ;;  %1154 = vmatpush1.msra.mxu1 %v1004_v9  ;;  %v1076_v9 = vld [vmem:[%s11826_s2 + $0x320] sm:$0xff] }
 0x234   :  { %861 = vmatpush1.msra.mxu0 %v751_v13  ;;  %v1001_v13 = vld [vmem:[%s11826_s2 + $0xc8] sm:$0xff] }
 0x235   :  { %862 = vmatprep.subr.mxu0 %v748_v15  ;;  %v1002_v15 = vld [vmem:[%s11826_s2 + $0xd0] sm:$0xff]  ;;  %1155 = vmatprep.subr.mxu1 %v1001_v13  ;;  %v1073_v13 = vld [vmem:[%s11826_s2 + $0x308] sm:$0xff] }
 0x236   :  { %863 = vmatpush1.msra.mxu0 %v747_v17  ;;  %v1000_v17 = vld [vmem:[%s11826_s2 + $0xc0] sm:$0xff] }
 0x237   :  { %864 = vmatprep.subr.mxu0 %v744_v19  ;;  %v999_v19 = vld [vmem:[%s11826_s2 + $0xb8] sm:$0xff]  ;;  %1156 = vmatpush1.msra.mxu1 %v1000_v17  ;;  %v1072_v17 = vld [vmem:[%s11826_s2 + $0x300] sm:$0xff] }
 0x238   :  { %865 = vmatpush1.msra.mxu0 %v743_v21  ;;  %v997_v21 = vld [vmem:[%s11826_s2 + $0xa8] sm:$0xff] }
 0x239   :  { %866 = vmatprep.subr.mxu0 %v740_v23  ;;  %v998_v23 = vld [vmem:[%s11826_s2 + $0xb0] sm:$0xff]  ;;  %1157 = vmatprep.subr.mxu1 %v997_v21  ;;  %v1069_v21 = vld [vmem:[%s11826_s2 + $0x2e8] sm:$0xff] }
 0x23a   :  { %867 = vmatpush1.msra.mxu0 %v739_v25  ;;  %v996_v25 = vld [vmem:[%s11826_s2 + $0xa0] sm:$0xff] }
 0x23b   :  { %868 = vmatprep.subr.mxu0 %v736_v27  ;;  %v995_v27 = vld [vmem:[%s11826_s2 + $0x98] sm:$0xff]  ;;  %1158 = vmatpush1.msra.mxu1 %v996_v25  ;;  %v1068_v25 = vld [vmem:[%s11826_s2 + $0x2e0] sm:$0xff] }
 0x23c   :  { %869 = vmatpush1.msra.mxu0 %v735_v29  ;;  %v993_v29 = vld [vmem:[%s11826_s2 + $0x88] sm:$0xff] }
 0x23d   :  { %870 = vmatprep.subr.mxu0 %v732_v31  ;;  %v994_v31 = vld [vmem:[%s11826_s2 + $0x90] sm:$0xff]  ;;  %1159 = vmatprep.subr.mxu1 %v993_v29  ;;  %v1065_v29 = vld [vmem:[%s11826_s2 + $0x2c8] sm:$0xff] }
 0x23e   :  { %871 = vmatpush1.msra.mxu0 %v731_v33  ;;  %v992_v33 = vld [vmem:[%s11826_s2 + $0x80] sm:$0xff] }
 0x23f   :  { %872 = vmatprep.subr.mxu0 %v728_v35  ;;  %v991_v35 = vld [vmem:[%s11826_s2 + $0x78] sm:$0xff]  ;;  %1160 = vmatpush1.msra.mxu1 %v992_v33  ;;  %v1064_v33 = vld [vmem:[%s11826_s2 + $0x2c0] sm:$0xff] }
 0x240   :  { %873 = vmatpush1.msra.mxu0 %v727_v37  ;;  %v989_v37 = vld [vmem:[%s11826_s2 + $0x68] sm:$0xff] }
 0x241   :  { %874 = vmatprep.subr.mxu0 %v724_v41  ;;  %v990_v41 = vld [vmem:[%s11826_s2 + $0x70] sm:$0xff]  ;;  %1161 = vmatprep.subr.mxu1 %v989_v37  ;;  %v1061_v37 = vld [vmem:[%s11826_s2 + $0x2a8] sm:$0xff] }
 0x242   :  { %875 = vmatpush1.msra.mxu0 %v723_v45  ;;  %v988_v45 = vld [vmem:[%s11826_s2 + $0x60] sm:$0xff] }
 0x243   :  { %876 = vmatprep.subr.mxu0 %v720_v47  ;;  %v987_v47 = vld [vmem:[%s11826_s2 + $0x58] sm:$0xff]  ;;  %1162 = vmatpush1.msra.mxu1 %v988_v45  ;;  %v1060_v45 = vld [vmem:[%s11826_s2 + $0x2a0] sm:$0xff] }
 0x244   :  { %877 = vmatpush1.msra.mxu0 %v719_v49  ;;  %v985_v49 = vld [vmem:[%s11826_s2 + $0x48] sm:$0xff] }
 0x245   :  { %878 = vmatprep.subr.mxu0 %v716_v51  ;;  %v986_v51 = vld [vmem:[%s11826_s2 + $0x50] sm:$0xff]  ;;  %1163 = vmatprep.subr.mxu1 %v985_v49  ;;  %v1057_v49 = vld [vmem:[%s11826_s2 + $0x288] sm:$0xff] }
 0x246   :  { %879 = vmatpush1.msra.mxu0 %v715_v53  ;;  %v984_v53 = vld [vmem:[%s11826_s2 + $0x40] sm:$0xff] }
 0x247   :  { %913 = vmatmul.mubr.f32.vlgmr.msra.gmra.mxu0 %v7007_v24  ;;  %1208 = vmatprep.subr.mxu0 %v1039_v55  ;;  %v1035_v24 = vld [vmem:[%s11826_s2 + $0x1d8] sm:$0xff] }
 0x248   :  { %1209 = vmatpush1.msra.mxu0 %v1038_v61  ;;  %v983_v55 = vld [vmem:[%s11826_s2 + $0x38] sm:$0xff]  ;;  %1164 = vmatpush1.msra.mxu1 %v984_v53  ;;  %v982_v61 = vld [vmem:[%s11826_s2 + $0x30] sm:$0xff]  ;;  %v1056_v53 = vld [vmem:[%s11826_s2 + $0x280] sm:$0xff] }
 0x249   :  { %1210 = vmatprep.subr.mxu0 %v1035_v24  ;;  %1165 = vmatprep.subr.mxu1 %v981_v57  ;;  %v979_v24 = vld [vmem:[%s11826_s2 + $0x18] sm:$0xff]  ;;  %v1053_v57 = vld [vmem:[%s11826_s2 + $0x268] sm:$0xff] }
 0x24a   :  { %1211 = vmatpush1.msra.mxu0 %v1034_v34  ;;  %1166 = vmatpush1.msra.mxu1 %v980_v63  ;;  %v978_v34 = vld [vmem:[%s11826_s2 + $0x10] sm:$0xff]  ;;  %v1052_v63 = vld [vmem:[%s11826_s2 + $0x260] sm:$0xff] }
 0x24b   :  { %1212 = vmatprep.subr.mxu0 %v1031_v38  ;;  %1167 = vmatprep.subr.mxu1 %v977_v32  ;;  %v1103_v38 = vld [vmem:[%s11826_s2 + $0x3f8] sm:$0xff]  ;;  %v1049_v32 = vld [vmem:[%s11826_s2 + $0x248] sm:$0xff] }
 0x24c   :  { %1213 = vmatpush1.msra.mxu0 %v1030_v42  ;;  %1168 = vmatpush1.msra.mxu1 %v976_v0  ;;  %v1102_v42 = vld [vmem:[%s11826_s2 + $0x3f0] sm:$0xff]  ;;  %v1048_v0 = vld [vmem:[%s11826_s2 + $0x240] sm:$0xff] }
 0x24d   :  { %1214 = vmatprep.subr.mxu0 %v1027_v46  ;;  %1169 = vmatprep.subr.mxu1 %v1101_v40  ;;  %v1099_v46 = vld [vmem:[%s11826_s2 + $0x3d8] sm:$0xff]  ;;  %v1045_v40 = vld [vmem:[%s11826_s2 + $0x228] sm:$0xff] }
 0x24e   :  { %1215 = vmatpush1.msra.mxu0 %v1026_v50  ;;  %1170 = vmatpush2.msra.mxu1 %v1100_v44  ;;  %v1098_v50 = vld [vmem:[%s11826_s2 + $0x3d0] sm:$0xff]  ;;  %v1044_v44 = vld [vmem:[%s11826_s2 + $0x220] sm:$0xff] }
 0x24f   :  { %1216 = vmatprep.subr.mxu0 %v1023_v54  ;;  %1171 = vmatprep.subr.mxu1 %v1097_v48  ;;  %v1095_v54 = vld [vmem:[%s11826_s2 + $0x3b8] sm:$0xff]  ;;  %v1041_v48 = vld [vmem:[%s11826_s2 + $0x208] sm:$0xff] }
 0x250   :  { %1217 = vmatpush1.msra.mxu0 %v1022_v58  ;;  %1172 = vmatpush2.msra.mxu1 %v1096_v52  ;;  %v1094_v58 = vld [vmem:[%s11826_s2 + $0x3b0] sm:$0xff]  ;;  %v1040_v52 = vld [vmem:[%s11826_s2 + $0x200] sm:$0xff] }
 0x251   :  { %1218 = vmatprep.subr.mxu0 %v1019_v20  ;;  %1173 = vmatprep.subr.mxu1 %v1093_v56  ;;  %v1091_v20 = vld [vmem:[%s11826_s2 + $0x398] sm:$0xff]  ;;  %v5531_v56 = vld [vmem:[#allocation3] ss:$0 sm:$0xff] }
 0x252   :  { %1219 = vmatpush1.msra.mxu0 %v1018_v4  ;;  %1174 = vmatpush2.msra.mxu1 %v1092_v60  ;;  %v1090_v4 = vld [vmem:[%s11826_s2 + $0x390] sm:$0xff] }
 0x253   :  { %1220 = vmatprep.subr.mxu0 %v1015_v8  ;;  %1175 = vmatprep.subr.mxu1 %v1089_v62  ;;  %v1087_v8 = vld [vmem:[%s11826_s2 + $0x378] sm:$0xff]  ;;  %v843_v62 = vpop.f32.mrf.mxu1 }
 0x254   :  { %1221 = vmatpush1.msra.mxu0 %v1014_v12  ;;  %1176 = vmatpush2.msra.mxu1 %v1088_v6  ;;  %v1086_v12 = vld [vmem:[%s11826_s2 + $0x370] sm:$0xff] }
 0x255   :  { %1222 = vmatprep.subr.mxu0 %v1011_v18  ;;  %1177 = vmatprep.subr.mxu1 %v1085_v10  ;;  %v1083_v18 = vld [vmem:[%s11826_s2 + $0x358] sm:$0xff] }
 0x256   :  { %1223 = vmatpush1.msra.mxu0 %v1010_v28  ;;  %1178 = vmatpush2.msra.mxu1 %v1084_v14  ;;  %v1082_v28 = vld [vmem:[%s11826_s2 + $0x350] sm:$0xff] }
 0x257   :  { %1224 = vmatprep.subr.mxu0 %v1007_v2  ;;  %1179 = vmatprep.subr.mxu1 %v1081_v22  ;;  %v1079_v2 = vld [vmem:[%s11826_s2 + $0x338] sm:$0xff]  ;;  %v5532_v22 = vld [vmem:[%s11827_s0 + $0x8] sm:$0xff] }
 0x258   :  { %1225 = vmatpush1.msra.mxu0 %v1006_v7  ;;  %1180 = vmatpush2.msra.mxu1 %v1080_v30  ;;  %v1078_v7 = vld [vmem:[%s11826_s2 + $0x330] sm:$0xff] }
 0x259   :  { %1226 = vmatprep.subr.mxu0 %v1003_v11  ;;  %1181 = vmatprep.subr.mxu1 %v1077_v5  ;;  %v1075_v11 = vld [vmem:[%s11826_s2 + $0x318] sm:$0xff] }
 0x25a   :  { %1227 = vmatpush1.msra.mxu0 %v1002_v15  ;;  %1182 = vmatpush2.msra.mxu1 %v1076_v9  ;;  %v1074_v15 = vld [vmem:[%s11826_s2 + $0x310] sm:$0xff] }
 0x25b   :  { %1228 = vmatprep.subr.mxu0 %v999_v19  ;;  %1183 = vmatprep.subr.mxu1 %v1073_v13  ;;  %v1071_v19 = vld [vmem:[%s11826_s2 + $0x2f8] sm:$0xff] }
 0x25c   :  { %1229 = vmatpush1.msra.mxu0 %v998_v23  ;;  %1184 = vmatpush2.msra.mxu1 %v1072_v17  ;;  %v1070_v23 = vld [vmem:[%s11826_s2 + $0x2f0] sm:$0xff] }
 0x25d   :  { %1230 = vmatprep.subr.mxu0 %v995_v27  ;;  %1185 = vmatprep.subr.mxu1 %v1069_v21  ;;  %v1067_v27 = vld [vmem:[%s11826_s2 + $0x2d8] sm:$0xff] }
 0x25e   :  { %1231 = vmatpush1.msra.mxu0 %v994_v31  ;;  %1186 = vmatpush2.msra.mxu1 %v1068_v25  ;;  %v1066_v31 = vld [vmem:[%s11826_s2 + $0x2d0] sm:$0xff] }
 0x25f   :  { %1232 = vmatprep.subr.mxu0 %v991_v35  ;;  %1187 = vmatprep.subr.mxu1 %v1065_v29  ;;  %v1063_v35 = vld [vmem:[%s11826_s2 + $0x2b8] sm:$0xff] }
 0x260   :  { %1233 = vmatpush1.msra.mxu0 %v990_v41  ;;  %1188 = vmatpush2.msra.mxu1 %v1064_v33  ;;  %v1062_v41 = vld [vmem:[%s11826_s2 + $0x2b0] sm:$0xff] }
 0x261   :  { %1234 = vmatprep.subr.mxu0 %v987_v47  ;;  %1189 = vmatprep.subr.mxu1 %v1061_v37  ;;  %v1059_v47 = vld [vmem:[%s11826_s2 + $0x298] sm:$0xff] }
 0x262   :  { %1235 = vmatpush1.msra.mxu0 %v986_v51  ;;  %1190 = vmatpush2.msra.mxu1 %v1060_v45  ;;  %v1058_v51 = vld [vmem:[%s11826_s2 + $0x290] sm:$0xff] }
 0x263   :  { %1236 = vmatprep.subr.mxu0 %v983_v55  ;;  %v1055_v55 = vld [vmem:[%s11826_s2 + $0x278] sm:$0xff]  ;;  %1191 = vmatprep.subr.mxu1 %v1057_v49 }
 0x264   :  { %1237 = vmatpush1.msra.mxu0 %v982_v61  ;;  %v1054_v61 = vld [vmem:[%s11826_s2 + $0x270] sm:$0xff]  ;;  %1192 = vmatpush2.msra.mxu1 %v1056_v53  ;;  %v1460_v53 = vld [vmem:[%s11825_s1 + $0x1e0] sm:$0xff] }
 0x265   :  { %1238 = vmatprep.subr.mxu0 %v979_v24  ;;  %v1051_v24 = vld [vmem:[%s11826_s2 + $0x258] sm:$0xff]  ;;  %1193 = vmatprep.subr.mxu1 %v1053_v57  ;;  %v1453_v57 = vld [vmem:[%s11825_s1 + $0x1a8] sm:$0xff] }
 0x266   :  { %1239 = vmatpush1.msra.mxu0 %v978_v34  ;;  %v1050_v34 = vld [vmem:[%s11826_s2 + $0x250] sm:$0xff]  ;;  %1194 = vmatpush2.msra.mxu1 %v1052_v63  ;;  %v1449_v63 = vld [vmem:[%s11825_s1 + $0x188] sm:$0xff] }
 0x267   :  { %1240 = vmatprep.subr.mxu0 %v1103_v38  ;;  %v1047_v38 = vld [vmem:[%s11826_s2 + $0x238] sm:$0xff]  ;;  %1195 = vmatprep.subr.mxu1 %v1049_v32  ;;  %v1445_v32 = vld [vmem:[%s11825_s1 + $0x168] sm:$0xff] }
 0x268   :  { %1241 = vmatpush2.msra.mxu0 %v1102_v42  ;;  %v1046_v42 = vld [vmem:[%s11826_s2 + $0x230] sm:$0xff]  ;;  %1196 = vmatpush2.msra.mxu1 %v1048_v0  ;;  %v1441_v0 = vld [vmem:[%s11825_s1 + $0x148] sm:$0xff] }
 0x269   :  { %1242 = vmatprep.subr.mxu0 %v1099_v46  ;;  %v1043_v46 = vld [vmem:[%s11826_s2 + $0x218] sm:$0xff]  ;;  %1197 = vmatprep.subr.mxu1 %v1045_v40  ;;  %v1437_v40 = vld [vmem:[%s11825_s1 + $0x128] sm:$0xff] }
 0x26a   :  { %1243 = vmatpush2.msra.mxu0 %v1098_v50  ;;  %v1042_v50 = vld [vmem:[%s11826_s2 + $0x210] sm:$0xff]  ;;  %1198 = vmatpush2.msra.mxu1 %v1044_v44  ;;  %v1433_v44 = vld [vmem:[%s11825_s1 + $0x108] sm:$0xff] }
 0x26b   :  { %1244 = vmatprep.subr.mxu0 %v1095_v54  ;;  %1199 = vmatprep.subr.mxu1 %v1041_v48  ;;  %v1461_v54 = vld [vmem:[%s11825_s1 + $0x1e8] sm:$0xff] }
 0x26c   :  { %1245 = vmatpush2.msra.mxu0 %v1094_v58  ;;  %1200 = vmatpush2.msra.mxu1 %v1040_v52  ;;  %v1429_v48 = vld [vmem:[%s11825_s1 + $0xe8] sm:$0xff] }
 0x26d   :  { %1246 = vmatprep.subr.mxu0 %v1091_v20  ;;  %5773 = vmatprep.subr.mxu1 %v11832_v3  ;;  %v1425_v52 = vld [vmem:[%s11825_s1 + $0xc8] sm:$0xff] }
 0x26e   :  { %1247 = vmatpush2.msra.mxu0 %v1090_v4  ;;  %v845_v4 = vpop.f32.mrf.mxu1 }
 0x26f   :  { %1248 = vmatprep.subr.mxu0 %v1087_v8  ;;  %v923_v8 = vcombine.low %v843_v62, %v845_v4  ;;  %v1413_v62 = vld [vmem:[%s11825_s1 + $0x68] sm:$0xff]  ;;  %v1412_v4 = vld [vmem:[%s11825_s1 + $0x60] sm:$0xff] }
 0x270   :  { %1249 = vmatpush2.msra.mxu0 %v1086_v12 }
 0x271   :  { %1250 = vmatprep.subr.mxu0 %v1083_v18  ;;  %v931_v14 = vrot.slane %v923_v8, %v6997_v26  ;;  %v1408_v8 = vld [vmem:[%s11825_s1 + $0x40] sm:$0xff] }
 0x272   :  { %1251 = vmatpush2.msra.mxu0 %v1082_v28 }
 0x273   :  { %1252 = vmatprep.subr.mxu0 %v1079_v2 }
 0x274   :  { %1253 = vmatpush2.msra.mxu0 %v1078_v7 }
 0x275   :  { %1254 = vmatprep.subr.mxu0 %v1075_v11 }
 0x276   :  { %1255 = vmatpush2.msra.mxu0 %v1074_v15 }
 0x277   :  { %1256 = vmatprep.subr.mxu0 %v1071_v19 }
 0x278   :  { %1257 = vmatpush2.msra.mxu0 %v1070_v23 }
 0x279   :  { %1258 = vmatprep.subr.mxu0 %v1067_v27 }
 0x27a   :  { %1259 = vmatpush2.msra.mxu0 %v1066_v31 }
 0x27b   :  { %1260 = vmatprep.subr.mxu0 %v1063_v35 }
 0x27c   :  { %1261 = vmatpush2.msra.mxu0 %v1062_v41 }
 0x27d   :  { %1262 = vmatprep.subr.mxu0 %v1059_v47 }
 0x27e   :  { %1263 = vmatpush2.msra.mxu0 %v1058_v51 }
 0x27f   :  { %1264 = vmatprep.subr.mxu0 %v1055_v55  ;;  %v1456_v55 = vld [vmem:[%s11825_s1 + $0x1c0] sm:$0xff] }
 0x280   :  { %1265 = vmatpush2.msra.mxu0 %v1054_v61  ;;  %v1452_v61 = vld [vmem:[%s11825_s1 + $0x1a0] sm:$0xff] }
 0x281   :  { %1266 = vmatprep.subr.mxu0 %v1051_v24  ;;  %v1448_v24 = vld [vmem:[%s11825_s1 + $0x180] sm:$0xff] }
 0x282   :  { %1267 = vmatpush2.msra.mxu0 %v1050_v34  ;;  %v1444_v34 = vld [vmem:[%s11825_s1 + $0x160] sm:$0xff] }
 0x283   :  { %1268 = vmatprep.subr.mxu0 %v1047_v38  ;;  %v1440_v38 = vld [vmem:[%s11825_s1 + $0x140] sm:$0xff] }
 0x284   :  { %1269 = vmatpush2.msra.mxu0 %v1046_v42  ;;  %v1436_v42 = vld [vmem:[%s11825_s1 + $0x120] sm:$0xff] }
 0x285   :  { %1270 = vmatprep.subr.mxu0 %v1043_v46  ;;  %v1432_v46 = vld [vmem:[%s11825_s1 + $0x100] sm:$0xff] }
 0x286   :  { %1271 = vmatpush2.msra.mxu0 %v1042_v50  ;;  %v1428_v50 = vld [vmem:[%s11825_s1 + $0xe0] sm:$0xff] }
 0x287   :  { %1464 = vmatprep.subr.mxu0 %v1461_v54  ;;  %v1424_v54 = vld [vmem:[%s11825_s1 + $0xc0] sm:$0xff] }
 0x2e7   :  { %v705_v58 = vpop.f32.mrf.mxu0 }
 0x2e8   :  { %v706_v60 = vadd.f32 %v5531_v56, %v705_v58  ;;  %v1421_v56 = vld [vmem:[%s11825_s1 + $0xa8] sm:$0xff]  ;;  %v1420_v58 = vld [vmem:[%s11825_s1 + $0xa0] sm:$0xff] }
 0x2e9   :  { %v5772_v20 = vpop.f32.mrf.mxu0 }
 0x2ea   :  { %710 = vst.msk [vmem:[%s11831_s6] sm:$0x3] %vm709_vm1, %v706_v60  ;;  %v1417_v60 = vld [vmem:[%s11825_s1 + $0x88] sm:$0xff]  ;;  %v1416_v20 = vld [vmem:[%s11825_s1 + $0x80] sm:$0xff] }
 0x307   :  { %v914_v6 = vpop.f32.mrf.mxu0 }
 0x309   :  { %v916_v10 = vpop.f32.mrf.mxu0 }
 0x30a   :  { %v924_v12 = vcombine.low %v914_v6, %v916_v10  ;;  %v1409_v6 = vld [vmem:[%s11825_s1 + $0x48] sm:$0xff] }
 0x30b   :  { %v1405_v10 = vld [vmem:[%s11825_s1 + $0x28] sm:$0xff] }
 0x30c   :  { %v938_v18 = vrot.slane %v924_v12, %v6997_v26  ;;  %v1404_v12 = vld [vmem:[%s11825_s1 + $0x20] sm:$0xff] }
 0x30e   :  { %v939_v28 = vcombine.low %v931_v14, %v938_v18  ;;  %v1401_v14 = vld [vmem:[%s11825_s1 + $0x8] sm:$0xff]  ;;  %v1400_v18 = vld [vmem:[%s11825_s1] sm:$0xff] }
 0x310   :  { %v941_v30 = vadd.f32 %v5532_v22, %v939_v28  ;;  %v1318_v22 = vld [vmem:[%s11828_s4 + $0x78] sm:$0xff]  ;;  %v1317_v28 = vld [vmem:[%s11828_s4 + $0x70] sm:$0xff] }
 0x312   :  { %v5533_v2 = vmul.f32 -1.442695, %v941_v30  ;;  %v949_v5 = vrot.slane %v941_v30, 2  ;;  %v960_v9 = vrot.slane %v941_v30, 6  ;;  %v957_v15 = vrot.slane %v941_v30, 4  ;;  %v1316_v30 = vld [vmem:[%s11828_s4 + $0x68] sm:$0xff] }
 0x314   :  { %6053 = vpow2.f32 %v5533_v2  ;;  %v5534_v7 = vmul.f32 -1.442695, %v949_v5  ;;  %v5535_v11 = vmul.f32 -1.442695, %v960_v9  ;;  %v1315_v2 = vld [vmem:[%s11828_s4 + $0x60] sm:$0xff]  ;;  %v1314_v5 = vld [vmem:[%s11828_s4 + $0x58] sm:$0xff] }
 0x315   :  { %v1312_v9 = vld [vmem:[%s11828_s4 + $0x48] sm:$0xff] }
 0x316   :  { %6055 = vpow2.f32 %v5534_v7  ;;  %v1313_v7 = vld [vmem:[%s11828_s4 + $0x50] sm:$0xff] }
 0x317   :  { %6057 = vpow2.f32 %v5535_v11  ;;  %v1311_v11 = vld [vmem:[%s11828_s4 + $0x40] sm:$0xff] }
 0x321   :  { %v6054_v13 = vpop.eup %6053 }
 0x322   :  { %v945_v17 = vadd.f32 1.0, %v6054_v13  ;;  %v1310_v13 = vld [vmem:[%s11828_s4 + $0x38] sm:$0xff] }
 0x323   :  { %v6056_v19 = vpop.eup %6055 }
 0x324   :  { %6059 = vrcp.f32 %v945_v17  ;;  %v954_v21 = vadd.f32 1.0, %v6056_v19  ;;  %v6058_v23 = vpop.eup %6057  ;;  %v1308_v17 = vld [vmem:[%s11828_s4 + $0x28] sm:$0xff]  ;;  %v1307_v19 = vld [vmem:[%s11828_s4 + $0x20] sm:$0xff] }
 0x325   :  { %6061 = vtanh.f32 %v957_v15  ;;  %v965_v31 = vadd.f32 1.0, %v6058_v23  ;;  %v1309_v15 = vld [vmem:[%s11828_s4 + $0x30] sm:$0xff] }
 0x326   :  { %6063 = vrcp.f32 %v954_v21  ;;  %v1306_v21 = vld [vmem:[%s11828_s4 + $0x18] sm:$0xff]  ;;  %v1305_v23 = vld [vmem:[%s11828_s4 + $0x10] sm:$0xff] }
 0x327   :  { %6065 = vrcp.f32 %v965_v31  ;;  %v1104_v31 = vld [vmem:[%s11830_s3] sm:$0xf] }
 0x331   :  { %v6060_v25 = vpop.eup %6059 }
 0x332   :  { %v6062_v27 = vpop.eup %6061 }
 0x333   :  { %v6064_v29 = vpop.eup %6063  ;;  %v969_v35 = vmul.f32 %v6062_v27, %v6060_v25  ;;  %v1304_v25 = vld [vmem:[%s11828_s4 + $0x8] sm:$0xff]  ;;  %v1303_v27 = vld [vmem:[%s11828_s4] sm:$0xff] }
 0x334   :  { %v968_v33 = vmul.f32 %v6064_v29, %v7004_v16  ;;  %v6066_v41 = vpop.eup %6065  ;;  %v1457_v16 = vld [vmem:[%s11825_s1 + $0x1c8] sm:$0xff]  ;;  %v1463_v29 = vld [vmem:[%s11825_s1 + $0x1f8] sm:$0xff] }
 0x336   :  { %v7629_v37 = vadd.f32 %v969_v35, %v968_v33  ;;  %v1109_v33 = vrot.slane %v1104_v31, %v7115_v39  ;;  %v1113_v35 = vrot.slane %v1104_v31, %v7121_v43 }
 0x338   :  { %6067 = vtanh.f32 %v7629_v37 }
 0x345   :  { %v6068_v45 = vpop.eup %6067 }
 0x346   :  { %v7632_v47 = vmul.f32 %v6068_v45, %v6066_v41 }
 0x348   :  { %973 = vst [vmem:[#allocation2] sm:$0x3] %v7632_v47 }
 0x34f   :  { %v5536_v49 = vld.sshfl [vmem:[#allocation2] sm:$0x33 pattern:$0x76325410] }
 0x350   :  { %v1134_v51 = vcombine.high %v5536_v49, %v5536_v49 }
 0x352   :  { %1201 = vmatprep.mubr.f32.mxu1 %v1134_v51  ;;  %1272 = vmatprep.mubr.f32.mxu0 %v1134_v51 }
 0x353   :  { %1202 = vmatmul.mubr.f32.vlgmr.msra.gmra.mxu1 %v5536_v49  ;;  %1273 = vmatmul.mubr.f32.vlgmr.msra.gmra.mxu0 %v5536_v49 }
 0x354   :  { %1465 = vmatpush1.msra.mxu0 %v1460_v53  ;;  %1528 = vmatprep.mubr.f32.mxu0 %v11832_v3 }
 0x355   :  { %1466 = vmatprep.subr.mxu0 %v1457_v16  ;;  %5805 = vmatprep.mubr.msk.f32.mxu1 %vm6279_vm0, %v11832_v3 }
 0x356   :  { %1467 = vmatpush1.msra.mxu0 %v1456_v55  ;;  %5774 = vmatpush3.msra.mxu1 %v1318_v22  ;;  %v1446_v22 = vld [vmem:[%s11825_s1 + $0x170] sm:$0xff] }
 0x357   :  { %1468 = vmatprep.subr.mxu0 %v1453_v57  ;;  %5775 = vmatprep.subr.mxu1 %v11832_v3  ;;  %v1121_v57 = vrot.slane %v1104_v31, %v7126_v59 }
 0x358   :  { %1469 = vmatpush1.msra.mxu0 %v1452_v61  ;;  %5776 = vmatpush3.msra.mxu1 %v1317_v28  ;;  %v1443_v28 = vld [vmem:[%s11825_s1 + $0x158] sm:$0xff] }
 0x359   :  { %1470 = vmatprep.subr.mxu0 %v1449_v63  ;;  %5777 = vmatprep.subr.mxu1 %v11832_v3 }
 0x35a   :  { %1471 = vmatpush1.msra.mxu0 %v1448_v24  ;;  %5778 = vmatpush3.msra.mxu1 %v1316_v30  ;;  %v1117_v24 = vrot.slane %v1104_v31, %v7130_v36  ;;  %v1442_v30 = vld [vmem:[%s11825_s1 + $0x150] sm:$0xff]  ;;  %v1411_v31 = vld [vmem:[%s11825_s1 + $0x58] sm:$0xff] }
 0x35b   :  { %1472 = vmatprep.subr.mxu0 %v1445_v32  ;;  %5779 = vmatprep.subr.mxu1 %v11832_v3 }
 0x35c   :  { %1473 = vmatpush1.msra.mxu0 %v1444_v34  ;;  %5780 = vmatpush3.msra.mxu1 %v1315_v2  ;;  %v1439_v2 = vld [vmem:[%s11825_s1 + $0x138] sm:$0xff] }
 0x35d   :  { %1474 = vmatprep.subr.mxu0 %v1441_v0  ;;  %5781 = vmatprep.subr.mxu1 %v11832_v3 }
 0x35e   :  { %1475 = vmatpush1.msra.mxu0 %v1440_v38  ;;  %5782 = vmatpush3.msra.mxu1 %v1314_v5  ;;  %v1438_v5 = vld [vmem:[%s11825_s1 + $0x130] sm:$0xff] }
 0x35f   :  { %1476 = vmatprep.subr.mxu0 %v1437_v40  ;;  %5783 = vmatprep.subr.mxu1 %v11832_v3 }
 0x360   :  { %1477 = vmatpush1.msra.mxu0 %v1436_v42  ;;  %5784 = vmatpush3.msra.mxu1 %v1313_v7  ;;  %v1435_v7 = vld [vmem:[%s11825_s1 + $0x118] sm:$0xff] }
 0x361   :  { %1478 = vmatprep.subr.mxu0 %v1433_v44  ;;  %5785 = vmatprep.subr.mxu1 %v11832_v3 }
 0x362   :  { %1479 = vmatpush1.msra.mxu0 %v1432_v46  ;;  %5786 = vmatpush3.msra.mxu1 %v1312_v9  ;;  %v1434_v9 = vld [vmem:[%s11825_s1 + $0x110] sm:$0xff] }
 0x363   :  { %1480 = vmatprep.subr.mxu0 %v1429_v48  ;;  %5787 = vmatprep.subr.mxu1 %v11832_v3 }
 0x364   :  { %1481 = vmatpush1.msra.mxu0 %v1428_v50  ;;  %5788 = vmatpush3.msra.mxu1 %v1311_v11  ;;  %v1431_v11 = vld [vmem:[%s11825_s1 + $0xf8] sm:$0xff] }
 0x365   :  { %1482 = vmatprep.subr.mxu0 %v1425_v52  ;;  %5789 = vmatprep.subr.mxu1 %v11832_v3 }
 0x366   :  { %1483 = vmatpush1.msra.mxu0 %v1424_v54  ;;  %5790 = vmatpush3.msra.mxu1 %v1310_v13  ;;  %v1430_v13 = vld [vmem:[%s11825_s1 + $0xf0] sm:$0xff] }
 0x367   :  { %1484 = vmatprep.subr.mxu0 %v1421_v56  ;;  %5791 = vmatprep.subr.mxu1 %v11832_v3 }
 0x368   :  { %1485 = vmatpush1.msra.mxu0 %v1420_v58  ;;  %5792 = vmatpush3.msra.mxu1 %v1309_v15  ;;  %v1427_v15 = vld [vmem:[%s11825_s1 + $0xd8] sm:$0xff] }
 0x369   :  { %1486 = vmatprep.subr.mxu0 %v1417_v60  ;;  %5793 = vmatprep.subr.mxu1 %v11832_v3 }
 0x36a   :  { %1487 = vmatpush1.msra.mxu0 %v1416_v20  ;;  %5794 = vmatpush3.msra.mxu1 %v1308_v17  ;;  %v1426_v17 = vld [vmem:[%s11825_s1 + $0xd0] sm:$0xff] }
 0x36b   :  { %1488 = vmatprep.subr.mxu0 %v1413_v62  ;;  %5795 = vmatprep.subr.mxu1 %v11832_v3 }
 0x36c   :  { %1489 = vmatpush1.msra.mxu0 %v1412_v4  ;;  %5796 = vmatpush3.msra.mxu1 %v1307_v19  ;;  %v1462_v4 = vld [vmem:[%s11825_s1 + $0x1f0] sm:$0xff]  ;;  %v1423_v19 = vld [vmem:[%s11825_s1 + $0xb8] sm:$0xff] }
 0x36d   :  { %1490 = vmatprep.subr.mxu0 %v1409_v6  ;;  %5797 = vmatprep.subr.mxu1 %v11832_v3  ;;  %v1459_v6 = vld [vmem:[%s11825_s1 + $0x1d8] sm:$0xff] }
 0x36e   :  { %1491 = vmatpush1.msra.mxu0 %v1408_v8  ;;  %5798 = vmatpush3.msra.mxu1 %v1306_v21  ;;  %v1455_v8 = vld [vmem:[%s11825_s1 + $0x1b8] sm:$0xff]  ;;  %v1422_v21 = vld [vmem:[%s11825_s1 + $0xb0] sm:$0xff] }
 0x36f   :  { %1492 = vmatprep.subr.mxu0 %v1405_v10  ;;  %5799 = vmatprep.subr.mxu1 %v11832_v3  ;;  %v1454_v10 = vld [vmem:[%s11825_s1 + $0x1b0] sm:$0xff] }
 0x370   :  { %1493 = vmatpush1.msra.mxu0 %v1404_v12  ;;  %5800 = vmatpush3.msra.mxu1 %v1305_v23  ;;  %v1451_v12 = vld [vmem:[%s11825_s1 + $0x198] sm:$0xff] }
 0x371   :  { %1494 = vmatprep.subr.mxu0 %v1401_v14  ;;  %5801 = vmatprep.subr.mxu1 %v11832_v3  ;;  %v1450_v14 = vld [vmem:[%s11825_s1 + $0x190] sm:$0xff]  ;;  %v1419_v23 = vld [vmem:[%s11825_s1 + $0x98] sm:$0xff] }
 0x372   :  { %1495 = vmatpush1.msra.mxu0 %v1400_v18  ;;  %5802 = vmatpush3.msra.mxu1 %v1304_v25  ;;  %v1447_v18 = vld [vmem:[%s11825_s1 + $0x178] sm:$0xff]  ;;  %v1418_v25 = vld [vmem:[%s11825_s1 + $0x90] sm:$0xff] }
 0x373   :  { %1529 = vmatmul.mubr.f32.vlgmr.msra.gmra.mxu0 %v7632_v47  ;;  %5803 = vmatprep.subr.mxu1 %v11832_v3 }
 0x374   :  { %5804 = vmatpush3.msra.mxu1 %v1303_v27  ;;  %v1415_v27 = vld [vmem:[%s11825_s1 + $0x78] sm:$0xff] }
 0x375   :  { %1535 = vmatprep.subr.mxu1 %v1463_v29  ;;  %v1414_v29 = vld [vmem:[%s11825_s1 + $0x70] sm:$0xff] }
 0x413   :  { %v1203_v41 = vpop.f32.mrf.mxu1  ;;  %v1274_v16 = vpop.f32.mrf.mxu0 }
 0x414   :  { %v1204_v45 = vadd.f32 %v1203_v41, %v1109_v33  ;;  %v1275_v0 = vadd.f32 %v1274_v16, %v1117_v24  ;;  %v1410_v33 = vld [vmem:[%s11825_s1 + $0x50] sm:$0xff]  ;;  %v1718_v24 = vld [vmem:[%s11826_s2 + $0x1b8] sm:$0xff] }
 0x415   :  { %v1205_v49 = vpop.f32.mrf.mxu1  ;;  %v1276_v61 = vpop.f32.mrf.mxu0  ;;  %v1406_v41 = vld [vmem:[%s11825_s1 + $0x30] sm:$0xff] }
 0x416   :  { %v5537_v51 = vmul.f32 -1.442695, %v1204_v45  ;;  %v1206_v53 = vadd.f32 %v1205_v49, %v1113_v35  ;;  %v1277_v63 = vadd.f32 %v1276_v61, %v1121_v57  ;;  %v1407_v35 = vld [vmem:[%s11825_s1 + $0x38] sm:$0xff]  ;;  %v1402_v49 = vld [vmem:[%s11825_s1 + $0x10] sm:$0xff]  ;;  %v1720_v57 = vld [vmem:[%s11826_s2 + $0x1c8] sm:$0xff] }
 0x417   :  { %v1403_v45 = vld [vmem:[%s11825_s1 + $0x18] sm:$0xff]  ;;  %v1725_v16 = vld [vmem:[%s11826_s2 + $0x1f0] sm:$0xff] }
 0x418   :  { %6069 = vpow2.f32 %v5537_v51  ;;  %v5538_v55 = vmul.f32 -1.442695, %v1206_v53  ;;  %v5539_v32 = vmul.f32 -1.442695, %v1277_v63  ;;  %v1726_v51 = vld [vmem:[%s11826_s2 + $0x1f8] sm:$0xff]  ;;  %v1724_v53 = vld [vmem:[%s11826_s2 + $0x1e8] sm:$0xff] }
 0x419   :  { %1824 = vmatprep.subr.mxu0 %v1724_v53  ;;  %v1721_v61 = vld [vmem:[%s11826_s2 + $0x1d0] sm:$0xff]  ;;  %v1719_v63 = vld [vmem:[%s11826_s2 + $0x1c0] sm:$0xff]  ;;  %v1668_v53 = vld [vmem:[%s11826_s2 + $0x28] sm:$0xff] }
 0x41a   :  { %6071 = vpow2.f32 %v5538_v55  ;;  %v1723_v55 = vld [vmem:[%s11826_s2 + $0x1e0] sm:$0xff] }
 0x41b   :  { %6073 = vpow2.f32 %v5539_v32  ;;  %1825 = vmatpush1.msra.mxu0 %v1723_v55  ;;  %v1716_v32 = vld [vmem:[%s11826_s2 + $0x1a8] sm:$0xff]  ;;  %v1667_v55 = vld [vmem:[%s11826_s2 + $0x20] sm:$0xff] }
 0x41c   :  { %1826 = vmatprep.subr.mxu0 %v1720_v57  ;;  %v1664_v57 = vld [vmem:[%s11826_s2 + $0x8] sm:$0xff] }
 0x41d   :  { %1827 = vmatpush1.msra.mxu0 %v1719_v63  ;;  %v1663_v63 = vld [vmem:[%s11826_s2] sm:$0xff] }
 0x41e   :  { %1828 = vmatprep.subr.mxu0 %v1716_v32  ;;  %v1788_v32 = vld [vmem:[%s11826_s2 + $0x3e8] sm:$0xff] }
 0x425   :  { %v6070_v34 = vpop.eup %6069 }
 0x426   :  { %v1282_v38 = vadd.f32 1.0, %v6070_v34  ;;  %v1717_v34 = vld [vmem:[%s11826_s2 + $0x1b0] sm:$0xff] }
 0x427   :  { %v6072_v40 = vpop.eup %6071 }
 0x428   :  { %6075 = vrcp.f32 %v1282_v38  ;;  %v1288_v42 = vadd.f32 1.0, %v6072_v40  ;;  %v6074_v44 = vpop.eup %6073  ;;  %v1714_v38 = vld [vmem:[%s11826_s2 + $0x198] sm:$0xff]  ;;  %v1712_v40 = vld [vmem:[%s11826_s2 + $0x188] sm:$0xff] }
 0x429   :  { %6077 = vtanh.f32 %v1275_v0  ;;  %v1295_v52 = vadd.f32 1.0, %v6074_v44  ;;  %v1715_v0 = vld [vmem:[%s11826_s2 + $0x1a0] sm:$0xff] }
 0x42a   :  { %6079 = vrcp.f32 %v1288_v42  ;;  %1829 = vmatpush1.msra.mxu0 %v1715_v0  ;;  %v1713_v42 = vld [vmem:[%s11826_s2 + $0x190] sm:$0xff]  ;;  %v1711_v44 = vld [vmem:[%s11826_s2 + $0x180] sm:$0xff] }
 0x42b   :  { %6081 = vrcp.f32 %v1295_v52  ;;  %1830 = vmatprep.subr.mxu0 %v1712_v40  ;;  %v1707_v52 = vld [vmem:[%s11826_s2 + $0x160] sm:$0xff]  ;;  %v1784_v40 = vld [vmem:[%s11826_s2 + $0x3c8] sm:$0xff] }
 0x42c   :  { %1831 = vmatpush1.msra.mxu0 %v1711_v44  ;;  %v1787_v0 = vld [vmem:[%s11826_s2 + $0x3e0] sm:$0xff] }
 0x42d   :  { %v1783_v44 = vld [vmem:[%s11826_s2 + $0x3c0] sm:$0xff] }
 0x435   :  { %v6076_v46 = vpop.eup %6075 }
 0x436   :  { %v6078_v48 = vpop.eup %6077 }
 0x437   :  { %v6080_v50 = vpop.eup %6079  ;;  %v1299_v54 = vmul.f32 %v6078_v48, %v6076_v46  ;;  %v1710_v46 = vld [vmem:[%s11826_s2 + $0x178] sm:$0xff]  ;;  %v1708_v48 = vld [vmem:[%s11826_s2 + $0x168] sm:$0xff] }
 0x438   :  { %v1298_v56 = vmul.f32 %v6080_v50, %v7133_v1  ;;  %v6082_v60 = vpop.eup %6081  ;;  %v1458_v1 = vld [vmem:[%s11825_s1 + $0x1d0] sm:$0xff]  ;;  %1832 = vmatprep.subr.mxu0 %v1708_v48  ;;  %v1780_v48 = vld [vmem:[%s11826_s2 + $0x3a8] sm:$0xff] }
 0x439   :  { %v1709_v50 = vld [vmem:[%s11826_s2 + $0x170] sm:$0xff]  ;;  %1833 = vmatpush1.msra.mxu0 %v1707_v52  ;;  %v1779_v52 = vld [vmem:[%s11826_s2 + $0x3a0] sm:$0xff] }
 0x43a   :  { %v7806_v58 = vadd.f32 %v1299_v54, %v1298_v56  ;;  %v1706_v54 = vld [vmem:[%s11826_s2 + $0x158] sm:$0xff]  ;;  %v1704_v56 = vld [vmem:[%s11826_s2 + $0x148] sm:$0xff] }
 0x43b   :  { %1834 = vmatprep.subr.mxu0 %v1704_v56  ;;  %v1776_v56 = vld [vmem:[%s11826_s2 + $0x388] sm:$0xff] }
 0x43c   :  { %6083 = vtanh.f32 %v7806_v58 }
 0x449   :  { %v6084_v20 = vpop.eup %6083 }
 0x44a   :  { %v1302_v62 = vmul.f32 %v6084_v20, %v6082_v60  ;;  %v1705_v60 = vld [vmem:[%s11826_s2 + $0x150] sm:$0xff]  ;;  %v1703_v20 = vld [vmem:[%s11826_s2 + $0x140] sm:$0xff] }
 0x44b   :  { %1835 = vmatpush1.msra.mxu0 %v1703_v20  ;;  %v1775_v20 = vld [vmem:[%s11826_s2 + $0x380] sm:$0xff] }
 0x44c   :  { %5806 = vmatmul.mubr.f32.vlgmr.msra.gmra.mxu1 %v1302_v62  ;;  %1661 = vst [vmem:[#allocation2 + $0x2] sm:$0x3] %v1302_v62  ;;  %v1702_v62 = vld [vmem:[%s11826_s2 + $0x138] sm:$0xff] }
 0x44d   :  { %1536 = vmatpush1.msra.mxu1 %v1462_v4  ;;  %1599 = vmatprep.mubr.f32.mxu1 %v11832_v3  ;;  %v1700_v4 = vld [vmem:[%s11826_s2 + $0x128] sm:$0xff] }
 0x44e   :  { %1537 = vmatprep.subr.mxu1 %v1459_v6  ;;  %v1701_v6 = vld [vmem:[%s11826_s2 + $0x130] sm:$0xff]  ;;  %1836 = vmatprep.subr.mxu0 %v1700_v4  ;;  %v1772_v4 = vld [vmem:[%s11826_s2 + $0x368] sm:$0xff] }
 0x44f   :  { %1538 = vmatpush1.msra.mxu1 %v1458_v1  ;;  %v1699_v1 = vld [vmem:[%s11826_s2 + $0x120] sm:$0xff] }
 0x450   :  { %1539 = vmatprep.subr.mxu1 %v1455_v8  ;;  %v1698_v8 = vld [vmem:[%s11826_s2 + $0x118] sm:$0xff]  ;;  %1837 = vmatpush1.msra.mxu0 %v1699_v1  ;;  %v1771_v1 = vld [vmem:[%s11826_s2 + $0x360] sm:$0xff] }
 0x451   :  { %1540 = vmatpush1.msra.mxu1 %v1454_v10  ;;  %v1696_v10 = vld [vmem:[%s11826_s2 + $0x108] sm:$0xff] }
 0x452   :  { %1541 = vmatprep.subr.mxu1 %v1451_v12  ;;  %v1697_v12 = vld [vmem:[%s11826_s2 + $0x110] sm:$0xff]  ;;  %1838 = vmatprep.subr.mxu0 %v1696_v10  ;;  %v1768_v10 = vld [vmem:[%s11826_s2 + $0x348] sm:$0xff] }
 0x453   :  { %1542 = vmatpush1.msra.mxu1 %v1450_v14  ;;  %v1695_v14 = vld [vmem:[%s11826_s2 + $0x100] sm:$0xff] }
 0x454   :  { %1543 = vmatprep.subr.mxu1 %v1447_v18  ;;  %v1694_v18 = vld [vmem:[%s11826_s2 + $0xf8] sm:$0xff]  ;;  %1839 = vmatpush1.msra.mxu0 %v1695_v14  ;;  %v1767_v14 = vld [vmem:[%s11826_s2 + $0x340] sm:$0xff] }
 0x455   :  { %1544 = vmatpush1.msra.mxu1 %v1446_v22  ;;  %v1692_v22 = vld [vmem:[%s11826_s2 + $0xe8] sm:$0xff] }
 0x456   :  { %1545 = vmatprep.subr.mxu1 %v1443_v28  ;;  %v1693_v28 = vld [vmem:[%s11826_s2 + $0xf0] sm:$0xff]  ;;  %1840 = vmatprep.subr.mxu0 %v1692_v22  ;;  %v1764_v22 = vld [vmem:[%s11826_s2 + $0x328] sm:$0xff] }
 0x457   :  { %1546 = vmatpush1.msra.mxu1 %v1442_v30  ;;  %v1691_v30 = vld [vmem:[%s11826_s2 + $0xe0] sm:$0xff] }
 0x458   :  { %1547 = vmatprep.subr.mxu1 %v1439_v2  ;;  %v1690_v2 = vld [vmem:[%s11826_s2 + $0xd8] sm:$0xff]  ;;  %1841 = vmatpush1.msra.mxu0 %v1691_v30  ;;  %v1763_v30 = vld [vmem:[%s11826_s2 + $0x320] sm:$0xff] }
 0x459   :  { %1548 = vmatpush1.msra.mxu1 %v1438_v5  ;;  %v1688_v5 = vld [vmem:[%s11826_s2 + $0xc8] sm:$0xff] }
 0x45a   :  { %1549 = vmatprep.subr.mxu1 %v1435_v7  ;;  %v1689_v7 = vld [vmem:[%s11826_s2 + $0xd0] sm:$0xff]  ;;  %1842 = vmatprep.subr.mxu0 %v1688_v5  ;;  %v1760_v5 = vld [vmem:[%s11826_s2 + $0x308] sm:$0xff] }
 0x45b   :  { %1550 = vmatpush1.msra.mxu1 %v1434_v9  ;;  %v1687_v9 = vld [vmem:[%s11826_s2 + $0xc0] sm:$0xff] }
 0x45c   :  { %1551 = vmatprep.subr.mxu1 %v1431_v11  ;;  %v1686_v11 = vld [vmem:[%s11826_s2 + $0xb8] sm:$0xff]  ;;  %1843 = vmatpush1.msra.mxu0 %v1687_v9  ;;  %v1759_v9 = vld [vmem:[%s11826_s2 + $0x300] sm:$0xff] }
 0x45d   :  { %1552 = vmatpush1.msra.mxu1 %v1430_v13  ;;  %v1684_v13 = vld [vmem:[%s11826_s2 + $0xa8] sm:$0xff] }
 0x45e   :  { %1553 = vmatprep.subr.mxu1 %v1427_v15  ;;  %v1685_v15 = vld [vmem:[%s11826_s2 + $0xb0] sm:$0xff]  ;;  %1844 = vmatprep.subr.mxu0 %v1684_v13  ;;  %v1756_v13 = vld [vmem:[%s11826_s2 + $0x2e8] sm:$0xff] }
 0x45f   :  { %1554 = vmatpush1.msra.mxu1 %v1426_v17  ;;  %v1683_v17 = vld [vmem:[%s11826_s2 + $0xa0] sm:$0xff] }
 0x460   :  { %1555 = vmatprep.subr.mxu1 %v1423_v19  ;;  %v1682_v19 = vld [vmem:[%s11826_s2 + $0x98] sm:$0xff]  ;;  %1845 = vmatpush1.msra.mxu0 %v1683_v17  ;;  %v1755_v17 = vld [vmem:[%s11826_s2 + $0x2e0] sm:$0xff] }
 0x461   :  { %1556 = vmatpush1.msra.mxu1 %v1422_v21  ;;  %v1680_v21 = vld [vmem:[%s11826_s2 + $0x88] sm:$0xff] }
 0x462   :  { %1557 = vmatprep.subr.mxu1 %v1419_v23  ;;  %v1681_v23 = vld [vmem:[%s11826_s2 + $0x90] sm:$0xff]  ;;  %1846 = vmatprep.subr.mxu0 %v1680_v21  ;;  %v1752_v21 = vld [vmem:[%s11826_s2 + $0x2c8] sm:$0xff] }
 0x463   :  { %1558 = vmatpush1.msra.mxu1 %v1418_v25  ;;  %v1679_v25 = vld [vmem:[%s11826_s2 + $0x80] sm:$0xff] }
 0x464   :  { %1559 = vmatprep.subr.mxu1 %v1415_v27  ;;  %v1678_v27 = vld [vmem:[%s11826_s2 + $0x78] sm:$0xff]  ;;  %1847 = vmatpush1.msra.mxu0 %v1679_v25  ;;  %v1751_v25 = vld [vmem:[%s11826_s2 + $0x2c0] sm:$0xff] }
 0x465   :  { %1560 = vmatpush1.msra.mxu1 %v1414_v29  ;;  %v1676_v29 = vld [vmem:[%s11826_s2 + $0x68] sm:$0xff] }
 0x466   :  { %1561 = vmatprep.subr.mxu1 %v1411_v31  ;;  %v1677_v31 = vld [vmem:[%s11826_s2 + $0x70] sm:$0xff]  ;;  %1848 = vmatprep.subr.mxu0 %v1676_v29  ;;  %v1748_v29 = vld [vmem:[%s11826_s2 + $0x2a8] sm:$0xff] }
 0x467   :  { %1562 = vmatpush1.msra.mxu1 %v1410_v33  ;;  %v1675_v33 = vld [vmem:[%s11826_s2 + $0x60] sm:$0xff] }
 0x468   :  { %1563 = vmatprep.subr.mxu1 %v1407_v35  ;;  %v1674_v35 = vld [vmem:[%s11826_s2 + $0x58] sm:$0xff]  ;;  %1849 = vmatpush1.msra.mxu0 %v1675_v33  ;;  %v1747_v33 = vld [vmem:[%s11826_s2 + $0x2a0] sm:$0xff] }
 0x469   :  { %1564 = vmatpush1.msra.mxu1 %v1406_v41  ;;  %v1672_v41 = vld [vmem:[%s11826_s2 + $0x48] sm:$0xff] }
 0x46a   :  { %1565 = vmatprep.subr.mxu1 %v1403_v45  ;;  %v1673_v45 = vld [vmem:[%s11826_s2 + $0x50] sm:$0xff]  ;;  %1850 = vmatprep.subr.mxu0 %v1672_v41  ;;  %v1744_v41 = vld [vmem:[%s11826_s2 + $0x288] sm:$0xff] }
 0x46b   :  { %1566 = vmatpush1.msra.mxu1 %v1402_v49  ;;  %v1671_v49 = vld [vmem:[%s11826_s2 + $0x40] sm:$0xff] }
 0x46c   :  { %1600 = vmatmul.mubr.f32.vlgmr.msra.gmra.mxu1 %v7632_v47  ;;  %1895 = vmatprep.subr.mxu1 %v1726_v51  ;;  %v1722_v47 = vld [vmem:[%s11826_s2 + $0x1d8] sm:$0xff] }
 0x46d   :  { %1896 = vmatpush1.msra.mxu1 %v1725_v16  ;;  %v1670_v51 = vld [vmem:[%s11826_s2 + $0x38] sm:$0xff]  ;;  %1851 = vmatpush1.msra.mxu0 %v1671_v49  ;;  %v1669_v16 = vld [vmem:[%s11826_s2 + $0x30] sm:$0xff]  ;;  %v1743_v49 = vld [vmem:[%s11826_s2 + $0x280] sm:$0xff] }
 0x46e   :  { %1897 = vmatprep.subr.mxu1 %v1722_v47  ;;  %1852 = vmatprep.subr.mxu0 %v1668_v53  ;;  %v1666_v47 = vld [vmem:[%s11826_s2 + $0x18] sm:$0xff]  ;;  %v1740_v53 = vld [vmem:[%s11826_s2 + $0x268] sm:$0xff] }
 0x46f   :  { %1898 = vmatpush1.msra.mxu1 %v1721_v61  ;;  %1853 = vmatpush1.msra.mxu0 %v1667_v55  ;;  %v1665_v61 = vld [vmem:[%s11826_s2 + $0x10] sm:$0xff]  ;;  %v1739_v55 = vld [vmem:[%s11826_s2 + $0x260] sm:$0xff] }
 0x470   :  { %1899 = vmatprep.subr.mxu1 %v1718_v24  ;;  %1854 = vmatprep.subr.mxu0 %v1664_v57  ;;  %v1790_v24 = vld [vmem:[%s11826_s2 + $0x3f8] sm:$0xff]  ;;  %v1736_v57 = vld [vmem:[%s11826_s2 + $0x248] sm:$0xff] }
 0x471   :  { %1900 = vmatpush1.msra.mxu1 %v1717_v34  ;;  %1855 = vmatpush1.msra.mxu0 %v1663_v63  ;;  %v1789_v34 = vld [vmem:[%s11826_s2 + $0x3f0] sm:$0xff]  ;;  %v1735_v63 = vld [vmem:[%s11826_s2 + $0x240] sm:$0xff] }
 0x472   :  { %1901 = vmatprep.subr.mxu1 %v1714_v38  ;;  %1856 = vmatprep.subr.mxu0 %v1788_v32  ;;  %v1786_v38 = vld [vmem:[%s11826_s2 + $0x3d8] sm:$0xff]  ;;  %v1732_v32 = vld [vmem:[%s11826_s2 + $0x228] sm:$0xff] }
 0x473   :  { %1902 = vmatpush1.msra.mxu1 %v1713_v42  ;;  %1857 = vmatpush2.msra.mxu0 %v1787_v0  ;;  %v1785_v42 = vld [vmem:[%s11826_s2 + $0x3d0] sm:$0xff]  ;;  %v1731_v0 = vld [vmem:[%s11826_s2 + $0x220] sm:$0xff] }
 0x474   :  { %1903 = vmatprep.subr.mxu1 %v1710_v46  ;;  %1858 = vmatprep.subr.mxu0 %v1784_v40  ;;  %v1782_v46 = vld [vmem:[%s11826_s2 + $0x3b8] sm:$0xff]  ;;  %v1728_v40 = vld [vmem:[%s11826_s2 + $0x208] sm:$0xff] }
 0x475   :  { %1904 = vmatpush1.msra.mxu1 %v1709_v50  ;;  %1859 = vmatpush2.msra.mxu0 %v1783_v44  ;;  %v1781_v50 = vld [vmem:[%s11826_s2 + $0x3b0] sm:$0xff]  ;;  %v1727_v44 = vld [vmem:[%s11826_s2 + $0x200] sm:$0xff] }
 0x476   :  { %1905 = vmatprep.subr.mxu1 %v1706_v54  ;;  %1860 = vmatprep.subr.mxu0 %v1780_v48  ;;  %v1778_v54 = vld [vmem:[%s11826_s2 + $0x398] sm:$0xff]  ;;  %v5540_v48 = vld [vmem:[#allocation3] ss:$0 sm:$0xff] }
 0x477   :  { %1906 = vmatpush1.msra.mxu1 %v1705_v60  ;;  %1861 = vmatpush2.msra.mxu0 %v1779_v52  ;;  %v1777_v60 = vld [vmem:[%s11826_s2 + $0x390] sm:$0xff] }
 0x478   :  { %1907 = vmatprep.subr.mxu1 %v1702_v62  ;;  %1862 = vmatprep.subr.mxu0 %v1776_v56  ;;  %v1774_v62 = vld [vmem:[%s11826_s2 + $0x378] sm:$0xff]  ;;  %v1530_v56 = vpop.f32.mrf.mxu0 }
 0x479   :  { %1908 = vmatpush1.msra.mxu1 %v1701_v6  ;;  %1863 = vmatpush2.msra.mxu0 %v1775_v20  ;;  %v1773_v6 = vld [vmem:[%s11826_s2 + $0x370] sm:$0xff] }
 0x47a   :  { %1909 = vmatprep.subr.mxu1 %v1698_v8  ;;  %1864 = vmatprep.subr.mxu0 %v1772_v4  ;;  %v1770_v8 = vld [vmem:[%s11826_s2 + $0x358] sm:$0xff] }
 0x47b   :  { %1910 = vmatpush1.msra.mxu1 %v1697_v12  ;;  %1865 = vmatpush2.msra.mxu0 %v1771_v1  ;;  %v1769_v12 = vld [vmem:[%s11826_s2 + $0x350] sm:$0xff] }
 0x47c   :  { %1911 = vmatprep.subr.mxu1 %v1694_v18  ;;  %1866 = vmatprep.subr.mxu0 %v1768_v10  ;;  %v1766_v18 = vld [vmem:[%s11826_s2 + $0x338] sm:$0xff]  ;;  %v5542_v10 = vld [vmem:[%s11827_s0 + $0x10] sm:$0xff] }
 0x47d   :  { %1912 = vmatpush1.msra.mxu1 %v1693_v28  ;;  %1867 = vmatpush2.msra.mxu0 %v1767_v14  ;;  %v1765_v28 = vld [vmem:[%s11826_s2 + $0x330] sm:$0xff] }
 0x47e   :  { %1913 = vmatprep.subr.mxu1 %v1690_v2  ;;  %1868 = vmatprep.subr.mxu0 %v1764_v22  ;;  %v1762_v2 = vld [vmem:[%s11826_s2 + $0x318] sm:$0xff] }
 0x47f   :  { %1914 = vmatpush1.msra.mxu1 %v1689_v7  ;;  %1869 = vmatpush2.msra.mxu0 %v1763_v30  ;;  %v1761_v7 = vld [vmem:[%s11826_s2 + $0x310] sm:$0xff] }
 0x480   :  { %1915 = vmatprep.subr.mxu1 %v1686_v11  ;;  %1870 = vmatprep.subr.mxu0 %v1760_v5  ;;  %v1758_v11 = vld [vmem:[%s11826_s2 + $0x2f8] sm:$0xff] }
 0x481   :  { %1916 = vmatpush1.msra.mxu1 %v1685_v15  ;;  %1871 = vmatpush2.msra.mxu0 %v1759_v9  ;;  %v1757_v15 = vld [vmem:[%s11826_s2 + $0x2f0] sm:$0xff] }
 0x482   :  { %1917 = vmatprep.subr.mxu1 %v1682_v19  ;;  %1872 = vmatprep.subr.mxu0 %v1756_v13  ;;  %v1754_v19 = vld [vmem:[%s11826_s2 + $0x2d8] sm:$0xff] }
 0x483   :  { %1918 = vmatpush1.msra.mxu1 %v1681_v23  ;;  %1873 = vmatpush2.msra.mxu0 %v1755_v17  ;;  %v1753_v23 = vld [vmem:[%s11826_s2 + $0x2d0] sm:$0xff] }
 0x484   :  { %1919 = vmatprep.subr.mxu1 %v1678_v27  ;;  %1874 = vmatprep.subr.mxu0 %v1752_v21  ;;  %v1750_v27 = vld [vmem:[%s11826_s2 + $0x2b8] sm:$0xff] }
 0x485   :  { %1920 = vmatpush1.msra.mxu1 %v1677_v31  ;;  %1875 = vmatpush2.msra.mxu0 %v1751_v25  ;;  %v1749_v31 = vld [vmem:[%s11826_s2 + $0x2b0] sm:$0xff] }
 0x486   :  { %1921 = vmatprep.subr.mxu1 %v1674_v35  ;;  %1876 = vmatprep.subr.mxu0 %v1748_v29  ;;  %v1746_v35 = vld [vmem:[%s11826_s2 + $0x298] sm:$0xff] }
 0x487   :  { %1922 = vmatpush1.msra.mxu1 %v1673_v45  ;;  %1877 = vmatpush2.msra.mxu0 %v1747_v33  ;;  %v1745_v45 = vld [vmem:[%s11826_s2 + $0x290] sm:$0xff] }
 0x488   :  { %1923 = vmatprep.subr.mxu1 %v1670_v51  ;;  %v1742_v51 = vld [vmem:[%s11826_s2 + $0x278] sm:$0xff]  ;;  %1878 = vmatprep.subr.mxu0 %v1744_v41 }
 0x489   :  { %1924 = vmatpush1.msra.mxu1 %v1669_v16  ;;  %v1741_v16 = vld [vmem:[%s11826_s2 + $0x270] sm:$0xff]  ;;  %1879 = vmatpush2.msra.mxu0 %v1743_v49  ;;  %v2147_v49 = vld [vmem:[%s11825_s1 + $0x1e0] sm:$0xff] }
 0x48a   :  { %1925 = vmatprep.subr.mxu1 %v1666_v47  ;;  %v1738_v47 = vld [vmem:[%s11826_s2 + $0x258] sm:$0xff]  ;;  %1880 = vmatprep.subr.mxu0 %v1740_v53  ;;  %v2140_v53 = vld [vmem:[%s11825_s1 + $0x1a8] sm:$0xff] }
 0x48b   :  { %1926 = vmatpush1.msra.mxu1 %v1665_v61  ;;  %v1737_v61 = vld [vmem:[%s11826_s2 + $0x250] sm:$0xff]  ;;  %1881 = vmatpush2.msra.mxu0 %v1739_v55  ;;  %v2136_v55 = vld [vmem:[%s11825_s1 + $0x188] sm:$0xff] }
 0x48c   :  { %1927 = vmatprep.subr.mxu1 %v1790_v24  ;;  %v1734_v24 = vld [vmem:[%s11826_s2 + $0x238] sm:$0xff]  ;;  %1882 = vmatprep.subr.mxu0 %v1736_v57  ;;  %v2132_v57 = vld [vmem:[%s11825_s1 + $0x168] sm:$0xff] }
 0x48d   :  { %1928 = vmatpush2.msra.mxu1 %v1789_v34  ;;  %v1733_v34 = vld [vmem:[%s11826_s2 + $0x230] sm:$0xff]  ;;  %1883 = vmatpush2.msra.mxu0 %v1735_v63  ;;  %v2128_v63 = vld [vmem:[%s11825_s1 + $0x148] sm:$0xff] }
 0x48e   :  { %1929 = vmatprep.subr.mxu1 %v1786_v38  ;;  %v1730_v38 = vld [vmem:[%s11826_s2 + $0x218] sm:$0xff]  ;;  %1884 = vmatprep.subr.mxu0 %v1732_v32  ;;  %v2124_v32 = vld [vmem:[%s11825_s1 + $0x128] sm:$0xff] }
 0x48f   :  { %1930 = vmatpush2.msra.mxu1 %v1785_v42  ;;  %v1729_v42 = vld [vmem:[%s11826_s2 + $0x210] sm:$0xff]  ;;  %1885 = vmatpush2.msra.mxu0 %v1731_v0  ;;  %v2120_v0 = vld [vmem:[%s11825_s1 + $0x108] sm:$0xff] }
 0x490   :  { %1931 = vmatprep.subr.mxu1 %v1782_v46  ;;  %1886 = vmatprep.subr.mxu0 %v1728_v40  ;;  %v2148_v46 = vld [vmem:[%s11825_s1 + $0x1e8] sm:$0xff] }
 0x491   :  { %1932 = vmatpush2.msra.mxu1 %v1781_v50  ;;  %1887 = vmatpush2.msra.mxu0 %v1727_v44  ;;  %v2116_v40 = vld [vmem:[%s11825_s1 + $0xe8] sm:$0xff] }
 0x492   :  { %1933 = vmatprep.subr.mxu1 %v1778_v54  ;;  %5808 = vmatprep.subr.mxu0 %v11832_v3  ;;  %v2112_v44 = vld [vmem:[%s11825_s1 + $0xc8] sm:$0xff] }
 0x493   :  { %1934 = vmatpush2.msra.mxu1 %v1777_v60  ;;  %v1532_v60 = vpop.f32.mrf.mxu0 }
 0x494   :  { %1935 = vmatprep.subr.mxu1 %v1774_v62  ;;  %v1610_v62 = vcombine.low %v1530_v56, %v1532_v60  ;;  %v2100_v56 = vld [vmem:[%s11825_s1 + $0x68] sm:$0xff]  ;;  %v2099_v60 = vld [vmem:[%s11825_s1 + $0x60] sm:$0xff] }
 0x495   :  { %1936 = vmatpush2.msra.mxu1 %v1773_v6 }
 0x496   :  { %1937 = vmatprep.subr.mxu1 %v1770_v8  ;;  %v1618_v1 = vrot.slane %v1610_v62, %v6997_v26  ;;  %v2095_v62 = vld [vmem:[%s11825_s1 + $0x40] sm:$0xff] }
 0x497   :  { %1938 = vmatpush2.msra.mxu1 %v1769_v12 }
 0x498   :  { %1939 = vmatprep.subr.mxu1 %v1766_v18 }
 0x499   :  { %1940 = vmatpush2.msra.mxu1 %v1765_v28 }
 0x49a   :  { %1941 = vmatprep.subr.mxu1 %v1762_v2 }
 0x49b   :  { %1942 = vmatpush2.msra.mxu1 %v1761_v7 }
 0x49c   :  { %1943 = vmatprep.subr.mxu1 %v1758_v11 }
 0x49d   :  { %1944 = vmatpush2.msra.mxu1 %v1757_v15 }
 0x49e   :  { %1945 = vmatprep.subr.mxu1 %v1754_v19 }
 0x49f   :  { %1946 = vmatpush2.msra.mxu1 %v1753_v23 }
 0x4a0   :  { %1947 = vmatprep.subr.mxu1 %v1750_v27 }
 0x4a1   :  { %1948 = vmatpush2.msra.mxu1 %v1749_v31 }
 0x4a2   :  { %1949 = vmatprep.subr.mxu1 %v1746_v35 }
 0x4a3   :  { %1950 = vmatpush2.msra.mxu1 %v1745_v45 }
 0x4a4   :  { %1951 = vmatprep.subr.mxu1 %v1742_v51  ;;  %v2143_v51 = vld [vmem:[%s11825_s1 + $0x1c0] sm:$0xff] }
 0x4a5   :  { %1952 = vmatpush2.msra.mxu1 %v1741_v16  ;;  %v2139_v16 = vld [vmem:[%s11825_s1 + $0x1a0] sm:$0xff] }
 0x4a6   :  { %1953 = vmatprep.subr.mxu1 %v1738_v47  ;;  %v2135_v47 = vld [vmem:[%s11825_s1 + $0x180] sm:$0xff] }
 0x4a7   :  { %1954 = vmatpush2.msra.mxu1 %v1737_v61  ;;  %v2131_v61 = vld [vmem:[%s11825_s1 + $0x160] sm:$0xff] }
 0x4a8   :  { %1955 = vmatprep.subr.mxu1 %v1734_v24  ;;  %v2127_v24 = vld [vmem:[%s11825_s1 + $0x140] sm:$0xff] }
 0x4a9   :  { %1956 = vmatpush2.msra.mxu1 %v1733_v34  ;;  %v2123_v34 = vld [vmem:[%s11825_s1 + $0x120] sm:$0xff] }
 0x4aa   :  { %1957 = vmatprep.subr.mxu1 %v1730_v38  ;;  %v2119_v38 = vld [vmem:[%s11825_s1 + $0x100] sm:$0xff] }
 0x4ab   :  { %1958 = vmatpush2.msra.mxu1 %v1729_v42  ;;  %v2115_v42 = vld [vmem:[%s11825_s1 + $0xe0] sm:$0xff] }
 0x4ac   :  { %2151 = vmatprep.subr.mxu1 %v2148_v46  ;;  %v2111_v46 = vld [vmem:[%s11825_s1 + $0xc0] sm:$0xff] }
 0x50c   :  { %v1392_v50 = vpop.f32.mrf.mxu1 }
 0x50d   :  { %v1393_v52 = vadd.f32 %v5540_v48, %v1392_v50  ;;  %v2108_v48 = vld [vmem:[%s11825_s1 + $0xa8] sm:$0xff]  ;;  %v2107_v50 = vld [vmem:[%s11825_s1 + $0xa0] sm:$0xff] }
 0x50e   :  { %v5807_v54 = vpop.f32.mrf.mxu1 }
 0x50f   :  { %5541 = vst.msk [vmem:[%s11831_s6 + $0x2] sm:$0x3] %vm709_vm1, %v1393_v52  ;;  %v2104_v52 = vld [vmem:[%s11825_s1 + $0x88] sm:$0xff]  ;;  %v2103_v54 = vld [vmem:[%s11825_s1 + $0x80] sm:$0xff] }
 0x52c   :  { %v1601_v20 = vpop.f32.mrf.mxu1 }
 0x52e   :  { %v1603_v4 = vpop.f32.mrf.mxu1 }
 0x52f   :  { %v1611_v6 = vcombine.low %v1601_v20, %v1603_v4  ;;  %v2096_v20 = vld [vmem:[%s11825_s1 + $0x48] sm:$0xff] }
 0x530   :  { %v2092_v4 = vld [vmem:[%s11825_s1 + $0x28] sm:$0xff] }
 0x531   :  { %v1625_v8 = vrot.slane %v1611_v6, %v6997_v26  ;;  %v2091_v6 = vld [vmem:[%s11825_s1 + $0x20] sm:$0xff] }
 0x533   :  { %v1626_v12 = vcombine.low %v1618_v1, %v1625_v8  ;;  %v2088_v1 = vld [vmem:[%s11825_s1 + $0x8] sm:$0xff]  ;;  %v2087_v8 = vld [vmem:[%s11825_s1] sm:$0xff] }
 0x535   :  { %v1628_v14 = vadd.f32 %v5542_v10, %v1626_v12  ;;  %v2005_v10 = vld [vmem:[%s11828_s4 + $0x78] sm:$0xff]  ;;  %v2004_v12 = vld [vmem:[%s11828_s4 + $0x70] sm:$0xff] }
 0x537   :  { %v5543_v18 = vmul.f32 -1.442695, %v1628_v14  ;;  %v1636_v22 = vrot.slane %v1628_v14, 2  ;;  %v1647_v30 = vrot.slane %v1628_v14, 6  ;;  %v1644_v7 = vrot.slane %v1628_v14, 4  ;;  %v2003_v14 = vld [vmem:[%s11828_s4 + $0x68] sm:$0xff] }
 0x539   :  { %6085 = vpow2.f32 %v5543_v18  ;;  %v5544_v28 = vmul.f32 -1.442695, %v1636_v22  ;;  %v5545_v2 = vmul.f32 -1.442695, %v1647_v30  ;;  %v2002_v18 = vld [vmem:[%s11828_s4 + $0x60] sm:$0xff]  ;;  %v2001_v22 = vld [vmem:[%s11828_s4 + $0x58] sm:$0xff] }
 0x53a   :  { %v1999_v30 = vld [vmem:[%s11828_s4 + $0x48] sm:$0xff] }
 0x53b   :  { %6087 = vpow2.f32 %v5544_v28  ;;  %v2000_v28 = vld [vmem:[%s11828_s4 + $0x50] sm:$0xff] }
 0x53c   :  { %6089 = vpow2.f32 %v5545_v2  ;;  %v1998_v2 = vld [vmem:[%s11828_s4 + $0x40] sm:$0xff] }
 0x546   :  { %v6086_v5 = vpop.eup %6085 }
 0x547   :  { %v1632_v9 = vadd.f32 1.0, %v6086_v5  ;;  %v1997_v5 = vld [vmem:[%s11828_s4 + $0x38] sm:$0xff] }
 0x548   :  { %v6088_v11 = vpop.eup %6087 }
 0x549   :  { %6091 = vrcp.f32 %v1632_v9  ;;  %v1641_v13 = vadd.f32 1.0, %v6088_v11  ;;  %v6090_v15 = vpop.eup %6089  ;;  %v1995_v9 = vld [vmem:[%s11828_s4 + $0x28] sm:$0xff]  ;;  %v1994_v11 = vld [vmem:[%s11828_s4 + $0x20] sm:$0xff] }
 0x54a   :  { %6093 = vtanh.f32 %v1644_v7  ;;  %v1652_v23 = vadd.f32 1.0, %v6090_v15  ;;  %v1996_v7 = vld [vmem:[%s11828_s4 + $0x30] sm:$0xff] }
 0x54b   :  { %6095 = vrcp.f32 %v1641_v13  ;;  %v1993_v13 = vld [vmem:[%s11828_s4 + $0x18] sm:$0xff]  ;;  %v1992_v15 = vld [vmem:[%s11828_s4 + $0x10] sm:$0xff] }
 0x54c   :  { %6097 = vrcp.f32 %v1652_v23  ;;  %v1791_v23 = vld [vmem:[%s11830_s3] sm:$0xf] }
 0x556   :  { %v6092_v17 = vpop.eup %6091 }
 0x557   :  { %v6094_v19 = vpop.eup %6093 }
 0x558   :  { %v6096_v21 = vpop.eup %6095  ;;  %v1656_v27 = vmul.f32 %v6094_v19, %v6092_v17  ;;  %v1991_v17 = vld [vmem:[%s11828_s4 + $0x8] sm:$0xff]  ;;  %v1990_v19 = vld [vmem:[%s11828_s4] sm:$0xff] }
 0x559   :  { %v1655_v25 = vmul.f32 %v6096_v21, %v7629_v37  ;;  %v6098_v31 = vpop.eup %6097  ;;  %v2144_v37 = vld [vmem:[%s11825_s1 + $0x1c8] sm:$0xff]  ;;  %v2150_v21 = vld [vmem:[%s11825_s1 + $0x1f8] sm:$0xff] }
 0x55b   :  { %v8302_v29 = vadd.f32 %v1656_v27, %v1655_v25  ;;  %v1796_v25 = vrot.slane %v1791_v23, %v7115_v39  ;;  %v1800_v27 = vrot.slane %v1791_v23, %v7121_v43 }
 0x55d   :  { %6099 = vtanh.f32 %v8302_v29 }
 0x56a   :  { %v6100_v33 = vpop.eup %6099 }
 0x56b   :  { %v8305_v35 = vmul.f32 %v6100_v33, %v6098_v31 }
 0x56d   :  { %1660 = vst [vmem:[#allocation2] sm:$0x3] %v8305_v35 }
 0x574   :  { %v5546_v41 = vld.sshfl [vmem:[#allocation2] sm:$0x33 pattern:$0x76325410] }
 0x575   :  { %v1821_v45 = vcombine.high %v5546_v41, %v5546_v41 }
 0x577   :  { %1888 = vmatprep.mubr.f32.mxu0 %v1821_v45  ;;  %1959 = vmatprep.mubr.f32.mxu1 %v1821_v45 }
 0x578   :  { %1889 = vmatmul.mubr.f32.vlgmr.msra.gmra.mxu0 %v5546_v41  ;;  %1960 = vmatmul.mubr.f32.vlgmr.msra.gmra.mxu1 %v5546_v41 }
 0x579   :  { %2152 = vmatpush1.msra.mxu1 %v2147_v49  ;;  %2215 = vmatprep.mubr.f32.mxu1 %v11832_v3 }
 0x57a   :  { %2153 = vmatprep.subr.mxu1 %v2144_v37  ;;  %5840 = vmatprep.mubr.msk.f32.mxu0 %vm6279_vm0, %v11832_v3 }
 0x57b   :  { %2154 = vmatpush1.msra.mxu1 %v2143_v51  ;;  %5809 = vmatpush3.msra.mxu0 %v2005_v10  ;;  %v2133_v10 = vld [vmem:[%s11825_s1 + $0x170] sm:$0xff] }
 0x57c   :  { %2155 = vmatprep.subr.mxu1 %v2140_v53  ;;  %5810 = vmatprep.subr.mxu0 %v11832_v3  ;;  %v1808_v53 = vrot.slane %v1791_v23, %v7126_v59 }
 0x57d   :  { %2156 = vmatpush1.msra.mxu1 %v2139_v16  ;;  %5811 = vmatpush3.msra.mxu0 %v2004_v12  ;;  %v2130_v12 = vld [vmem:[%s11825_s1 + $0x158] sm:$0xff] }
 0x57e   :  { %2157 = vmatprep.subr.mxu1 %v2136_v55  ;;  %5812 = vmatprep.subr.mxu0 %v11832_v3 }
 0x57f   :  { %2158 = vmatpush1.msra.mxu1 %v2135_v47  ;;  %5813 = vmatpush3.msra.mxu0 %v2003_v14  ;;  %v1804_v47 = vrot.slane %v1791_v23, %v7130_v36  ;;  %v2129_v14 = vld [vmem:[%s11825_s1 + $0x150] sm:$0xff]  ;;  %v2098_v23 = vld [vmem:[%s11825_s1 + $0x58] sm:$0xff] }
 0x580   :  { %2159 = vmatprep.subr.mxu1 %v2132_v57  ;;  %5814 = vmatprep.subr.mxu0 %v11832_v3 }
 0x581   :  { %2160 = vmatpush1.msra.mxu1 %v2131_v61  ;;  %5815 = vmatpush3.msra.mxu0 %v2002_v18  ;;  %v2126_v18 = vld [vmem:[%s11825_s1 + $0x138] sm:$0xff] }
 0x582   :  { %2161 = vmatprep.subr.mxu1 %v2128_v63  ;;  %5816 = vmatprep.subr.mxu0 %v11832_v3 }
 0x583   :  { %2162 = vmatpush1.msra.mxu1 %v2127_v24  ;;  %5817 = vmatpush3.msra.mxu0 %v2001_v22  ;;  %v2125_v22 = vld [vmem:[%s11825_s1 + $0x130] sm:$0xff] }
 0x584   :  { %2163 = vmatprep.subr.mxu1 %v2124_v32  ;;  %5818 = vmatprep.subr.mxu0 %v11832_v3 }
 0x585   :  { %2164 = vmatpush1.msra.mxu1 %v2123_v34  ;;  %5819 = vmatpush3.msra.mxu0 %v2000_v28  ;;  %v2122_v28 = vld [vmem:[%s11825_s1 + $0x118] sm:$0xff] }
 0x586   :  { %2165 = vmatprep.subr.mxu1 %v2120_v0  ;;  %5820 = vmatprep.subr.mxu0 %v11832_v3 }
 0x587   :  { %2166 = vmatpush1.msra.mxu1 %v2119_v38  ;;  %5821 = vmatpush3.msra.mxu0 %v1999_v30  ;;  %v2121_v30 = vld [vmem:[%s11825_s1 + $0x110] sm:$0xff] }
 0x588   :  { %2167 = vmatprep.subr.mxu1 %v2116_v40  ;;  %5822 = vmatprep.subr.mxu0 %v11832_v3 }
 0x589   :  { %2168 = vmatpush1.msra.mxu1 %v2115_v42  ;;  %5823 = vmatpush3.msra.mxu0 %v1998_v2  ;;  %v2118_v2 = vld [vmem:[%s11825_s1 + $0xf8] sm:$0xff] }
 0x58a   :  { %2169 = vmatprep.subr.mxu1 %v2112_v44  ;;  %5824 = vmatprep.subr.mxu0 %v11832_v3 }
 0x58b   :  { %2170 = vmatpush1.msra.mxu1 %v2111_v46  ;;  %5825 = vmatpush3.msra.mxu0 %v1997_v5  ;;  %v2117_v5 = vld [vmem:[%s11825_s1 + $0xf0] sm:$0xff] }
 0x58c   :  { %2171 = vmatprep.subr.mxu1 %v2108_v48  ;;  %5826 = vmatprep.subr.mxu0 %v11832_v3 }
 0x58d   :  { %2172 = vmatpush1.msra.mxu1 %v2107_v50  ;;  %5827 = vmatpush3.msra.mxu0 %v1996_v7  ;;  %v2114_v7 = vld [vmem:[%s11825_s1 + $0xd8] sm:$0xff] }
 0x58e   :  { %2173 = vmatprep.subr.mxu1 %v2104_v52  ;;  %5828 = vmatprep.subr.mxu0 %v11832_v3 }
 0x58f   :  { %2174 = vmatpush1.msra.mxu1 %v2103_v54  ;;  %5829 = vmatpush3.msra.mxu0 %v1995_v9  ;;  %v2113_v9 = vld [vmem:[%s11825_s1 + $0xd0] sm:$0xff] }
 0x590   :  { %2175 = vmatprep.subr.mxu1 %v2100_v56  ;;  %5830 = vmatprep.subr.mxu0 %v11832_v3 }
 0x591   :  { %2176 = vmatpush1.msra.mxu1 %v2099_v60  ;;  %5831 = vmatpush3.msra.mxu0 %v1994_v11  ;;  %v2149_v60 = vld [vmem:[%s11825_s1 + $0x1f0] sm:$0xff]  ;;  %v2110_v11 = vld [vmem:[%s11825_s1 + $0xb8] sm:$0xff] }
 0x592   :  { %2177 = vmatprep.subr.mxu1 %v2096_v20  ;;  %5832 = vmatprep.subr.mxu0 %v11832_v3  ;;  %v2146_v20 = vld [vmem:[%s11825_s1 + $0x1d8] sm:$0xff] }
 0x593   :  { %2178 = vmatpush1.msra.mxu1 %v2095_v62  ;;  %5833 = vmatpush3.msra.mxu0 %v1993_v13  ;;  %v2142_v62 = vld [vmem:[%s11825_s1 + $0x1b8] sm:$0xff]  ;;  %v2109_v13 = vld [vmem:[%s11825_s1 + $0xb0] sm:$0xff] }
 0x594   :  { %2179 = vmatprep.subr.mxu1 %v2092_v4  ;;  %5834 = vmatprep.subr.mxu0 %v11832_v3  ;;  %v2141_v4 = vld [vmem:[%s11825_s1 + $0x1b0] sm:$0xff] }
 0x595   :  { %2180 = vmatpush1.msra.mxu1 %v2091_v6  ;;  %5835 = vmatpush3.msra.mxu0 %v1992_v15  ;;  %v2138_v6 = vld [vmem:[%s11825_s1 + $0x198] sm:$0xff] }
 0x596   :  { %2181 = vmatprep.subr.mxu1 %v2088_v1  ;;  %5836 = vmatprep.subr.mxu0 %v11832_v3  ;;  %v2137_v1 = vld [vmem:[%s11825_s1 + $0x190] sm:$0xff]  ;;  %v2106_v15 = vld [vmem:[%s11825_s1 + $0x98] sm:$0xff] }
 0x597   :  { %2182 = vmatpush1.msra.mxu1 %v2087_v8  ;;  %5837 = vmatpush3.msra.mxu0 %v1991_v17  ;;  %v2134_v8 = vld [vmem:[%s11825_s1 + $0x178] sm:$0xff]  ;;  %v2105_v17 = vld [vmem:[%s11825_s1 + $0x90] sm:$0xff] }
 0x598   :  { %2216 = vmatmul.mubr.f32.vlgmr.msra.gmra.mxu1 %v8305_v35  ;;  %5838 = vmatprep.subr.mxu0 %v11832_v3 }
 0x599   :  { %5839 = vmatpush3.msra.mxu0 %v1990_v19  ;;  %v2102_v19 = vld [vmem:[%s11825_s1 + $0x78] sm:$0xff] }
 0x59a   :  { %2222 = vmatprep.subr.mxu0 %v2150_v21  ;;  %v2101_v21 = vld [vmem:[%s11825_s1 + $0x70] sm:$0xff] }
 0x638   :  { %v1890_v31 = vpop.f32.mrf.mxu0  ;;  %v1961_v37 = vpop.f32.mrf.mxu1 }
 0x639   :  { %v1891_v33 = vadd.f32 %v1890_v31, %v1796_v25  ;;  %v1962_v63 = vadd.f32 %v1961_v37, %v1804_v47  ;;  %v2097_v25 = vld [vmem:[%s11825_s1 + $0x50] sm:$0xff]  ;;  %v2405_v47 = vld [vmem:[%s11826_s2 + $0x1b8] sm:$0xff] }
 0x63a   :  { %v1892_v41 = vpop.f32.mrf.mxu0  ;;  %v1963_v16 = vpop.f32.mrf.mxu1  ;;  %v2093_v31 = vld [vmem:[%s11825_s1 + $0x30] sm:$0xff] }
 0x63b   :  { %v5547_v45 = vmul.f32 -1.442695, %v1891_v33  ;;  %v1893_v49 = vadd.f32 %v1892_v41, %v1800_v27  ;;  %v1964_v55 = vadd.f32 %v1963_v16, %v1808_v53  ;;  %v2094_v27 = vld [vmem:[%s11825_s1 + $0x38] sm:$0xff]  ;;  %v2089_v41 = vld [vmem:[%s11825_s1 + $0x10] sm:$0xff]  ;;  %v2407_v53 = vld [vmem:[%s11826_s2 + $0x1c8] sm:$0xff] }
 0x63c   :  { %v2090_v33 = vld [vmem:[%s11825_s1 + $0x18] sm:$0xff]  ;;  %v2412_v37 = vld [vmem:[%s11826_s2 + $0x1f0] sm:$0xff] }
 0x63d   :  { %6101 = vpow2.f32 %v5547_v45  ;;  %v5548_v51 = vmul.f32 -1.442695, %v1893_v49  ;;  %v5549_v57 = vmul.f32 -1.442695, %v1964_v55  ;;  %v2413_v45 = vld [vmem:[%s11826_s2 + $0x1f8] sm:$0xff]  ;;  %v2411_v49 = vld [vmem:[%s11826_s2 + $0x1e8] sm:$0xff] }
 0x63e   :  { %2511 = vmatprep.subr.mxu1 %v2411_v49  ;;  %v2408_v16 = vld [vmem:[%s11826_s2 + $0x1d0] sm:$0xff]  ;;  %v2406_v55 = vld [vmem:[%s11826_s2 + $0x1c0] sm:$0xff]  ;;  %v2355_v49 = vld [vmem:[%s11826_s2 + $0x28] sm:$0xff] }
 0x63f   :  { %6103 = vpow2.f32 %v5548_v51  ;;  %v2410_v51 = vld [vmem:[%s11826_s2 + $0x1e0] sm:$0xff] }
 0x640   :  { %6105 = vpow2.f32 %v5549_v57  ;;  %2512 = vmatpush1.msra.mxu1 %v2410_v51  ;;  %v2403_v57 = vld [vmem:[%s11826_s2 + $0x1a8] sm:$0xff]  ;;  %v2354_v51 = vld [vmem:[%s11826_s2 + $0x20] sm:$0xff] }
 0x641   :  { %2513 = vmatprep.subr.mxu1 %v2407_v53  ;;  %v2351_v53 = vld [vmem:[%s11826_s2 + $0x8] sm:$0xff] }
 0x642   :  { %2514 = vmatpush1.msra.mxu1 %v2406_v55  ;;  %v2350_v55 = vld [vmem:[%s11826_s2] sm:$0xff] }
 0x643   :  { %2515 = vmatprep.subr.mxu1 %v2403_v57  ;;  %v2475_v57 = vld [vmem:[%s11826_s2 + $0x3e8] sm:$0xff] }
 0x64a   :  { %v6102_v61 = vpop.eup %6101 }
 0x64b   :  { %v1969_v24 = vadd.f32 1.0, %v6102_v61  ;;  %v2404_v61 = vld [vmem:[%s11826_s2 + $0x1b0] sm:$0xff] }
 0x64c   :  { %v6104_v32 = vpop.eup %6103 }
 0x64d   :  { %6107 = vrcp.f32 %v1969_v24  ;;  %v1975_v34 = vadd.f32 1.0, %v6104_v32  ;;  %v6106_v0 = vpop.eup %6105  ;;  %v2401_v24 = vld [vmem:[%s11826_s2 + $0x198] sm:$0xff]  ;;  %v2399_v32 = vld [vmem:[%s11826_s2 + $0x188] sm:$0xff] }
 0x64e   :  { %6109 = vtanh.f32 %v1962_v63  ;;  %v1982_v44 = vadd.f32 1.0, %v6106_v0  ;;  %v2402_v63 = vld [vmem:[%s11826_s2 + $0x1a0] sm:$0xff] }
 0x64f   :  { %6111 = vrcp.f32 %v1975_v34  ;;  %2516 = vmatpush1.msra.mxu1 %v2402_v63  ;;  %v2400_v34 = vld [vmem:[%s11826_s2 + $0x190] sm:$0xff]  ;;  %v2398_v0 = vld [vmem:[%s11826_s2 + $0x180] sm:$0xff] }
 0x650   :  { %6113 = vrcp.f32 %v1982_v44  ;;  %2517 = vmatprep.subr.mxu1 %v2399_v32  ;;  %v2394_v44 = vld [vmem:[%s11826_s2 + $0x160] sm:$0xff]  ;;  %v2471_v32 = vld [vmem:[%s11826_s2 + $0x3c8] sm:$0xff] }
 0x651   :  { %2518 = vmatpush1.msra.mxu1 %v2398_v0  ;;  %v2474_v63 = vld [vmem:[%s11826_s2 + $0x3e0] sm:$0xff] }
 0x652   :  { %v2470_v0 = vld [vmem:[%s11826_s2 + $0x3c0] sm:$0xff] }
 0x65a   :  { %v6108_v38 = vpop.eup %6107 }
 0x65b   :  { %v6110_v40 = vpop.eup %6109 }
 0x65c   :  { %v6112_v42 = vpop.eup %6111  ;;  %v1986_v46 = vmul.f32 %v6110_v40, %v6108_v38  ;;  %v2397_v38 = vld [vmem:[%s11826_s2 + $0x178] sm:$0xff]  ;;  %v2395_v40 = vld [vmem:[%s11826_s2 + $0x168] sm:$0xff] }
 0x65d   :  { %v1985_v48 = vmul.f32 %v6112_v42, %v7806_v58  ;;  %v6114_v52 = vpop.eup %6113  ;;  %v2145_v58 = vld [vmem:[%s11825_s1 + $0x1d0] sm:$0xff]  ;;  %2519 = vmatprep.subr.mxu1 %v2395_v40  ;;  %v2467_v40 = vld [vmem:[%s11826_s2 + $0x3a8] sm:$0xff] }
 0x65e   :  { %v2396_v42 = vld [vmem:[%s11826_s2 + $0x170] sm:$0xff]  ;;  %2520 = vmatpush1.msra.mxu1 %v2394_v44  ;;  %v2466_v44 = vld [vmem:[%s11826_s2 + $0x3a0] sm:$0xff] }
 0x65f   :  { %v8479_v50 = vadd.f32 %v1986_v46, %v1985_v48  ;;  %v2393_v46 = vld [vmem:[%s11826_s2 + $0x158] sm:$0xff]  ;;  %v2391_v48 = vld [vmem:[%s11826_s2 + $0x148] sm:$0xff] }
 0x660   :  { %2521 = vmatprep.subr.mxu1 %v2391_v48  ;;  %v2463_v48 = vld [vmem:[%s11826_s2 + $0x388] sm:$0xff] }
 0x661   :  { %6115 = vtanh.f32 %v8479_v50 }
 0x66e   :  { %v6116_v54 = vpop.eup %6115 }
 0x66f   :  { %v1989_v56 = vmul.f32 %v6116_v54, %v6114_v52  ;;  %v2392_v52 = vld [vmem:[%s11826_s2 + $0x150] sm:$0xff]  ;;  %v2390_v54 = vld [vmem:[%s11826_s2 + $0x140] sm:$0xff] }
 0x670   :  { %2522 = vmatpush1.msra.mxu1 %v2390_v54  ;;  %v2462_v54 = vld [vmem:[%s11826_s2 + $0x380] sm:$0xff] }
 0x671   :  { %5841 = vmatmul.mubr.f32.vlgmr.msra.gmra.mxu0 %v1989_v56  ;;  %2348 = vst [vmem:[#allocation2 + $0x2] sm:$0x3] %v1989_v56  ;;  %v2389_v56 = vld [vmem:[%s11826_s2 + $0x138] sm:$0xff] }
 0x672   :  { %2223 = vmatpush1.msra.mxu0 %v2149_v60  ;;  %2286 = vmatprep.mubr.f32.mxu0 %v11832_v3  ;;  %v2387_v60 = vld [vmem:[%s11826_s2 + $0x128] sm:$0xff] }
 0x673   :  { %2224 = vmatprep.subr.mxu0 %v2146_v20  ;;  %v2388_v20 = vld [vmem:[%s11826_s2 + $0x130] sm:$0xff]  ;;  %2523 = vmatprep.subr.mxu1 %v2387_v60  ;;  %v2459_v60 = vld [vmem:[%s11826_s2 + $0x368] sm:$0xff] }
 0x674   :  { %2225 = vmatpush1.msra.mxu0 %v2145_v58  ;;  %v2386_v58 = vld [vmem:[%s11826_s2 + $0x120] sm:$0xff] }
 0x675   :  { %2226 = vmatprep.subr.mxu0 %v2142_v62  ;;  %v2385_v62 = vld [vmem:[%s11826_s2 + $0x118] sm:$0xff]  ;;  %2524 = vmatpush1.msra.mxu1 %v2386_v58  ;;  %v2458_v58 = vld [vmem:[%s11826_s2 + $0x360] sm:$0xff] }
 0x676   :  { %2227 = vmatpush1.msra.mxu0 %v2141_v4  ;;  %v2383_v4 = vld [vmem:[%s11826_s2 + $0x108] sm:$0xff] }
 0x677   :  { %2228 = vmatprep.subr.mxu0 %v2138_v6  ;;  %v2384_v6 = vld [vmem:[%s11826_s2 + $0x110] sm:$0xff]  ;;  %2525 = vmatprep.subr.mxu1 %v2383_v4  ;;  %v2455_v4 = vld [vmem:[%s11826_s2 + $0x348] sm:$0xff] }
 0x678   :  { %2229 = vmatpush1.msra.mxu0 %v2137_v1  ;;  %v2382_v1 = vld [vmem:[%s11826_s2 + $0x100] sm:$0xff] }
 0x679   :  { %2230 = vmatprep.subr.mxu0 %v2134_v8  ;;  %v2381_v8 = vld [vmem:[%s11826_s2 + $0xf8] sm:$0xff]  ;;  %2526 = vmatpush1.msra.mxu1 %v2382_v1  ;;  %v2454_v1 = vld [vmem:[%s11826_s2 + $0x340] sm:$0xff] }
 0x67a   :  { %2231 = vmatpush1.msra.mxu0 %v2133_v10  ;;  %v2379_v10 = vld [vmem:[%s11826_s2 + $0xe8] sm:$0xff] }
 0x67b   :  { %2232 = vmatprep.subr.mxu0 %v2130_v12  ;;  %v2380_v12 = vld [vmem:[%s11826_s2 + $0xf0] sm:$0xff]  ;;  %2527 = vmatprep.subr.mxu1 %v2379_v10  ;;  %v2451_v10 = vld [vmem:[%s11826_s2 + $0x328] sm:$0xff] }
 0x67c   :  { %2233 = vmatpush1.msra.mxu0 %v2129_v14  ;;  %v2378_v14 = vld [vmem:[%s11826_s2 + $0xe0] sm:$0xff] }
 0x67d   :  { %2234 = vmatprep.subr.mxu0 %v2126_v18  ;;  %v2377_v18 = vld [vmem:[%s11826_s2 + $0xd8] sm:$0xff]  ;;  %2528 = vmatpush1.msra.mxu1 %v2378_v14  ;;  %v2450_v14 = vld [vmem:[%s11826_s2 + $0x320] sm:$0xff] }
 0x67e   :  { %2235 = vmatpush1.msra.mxu0 %v2125_v22  ;;  %v2375_v22 = vld [vmem:[%s11826_s2 + $0xc8] sm:$0xff] }
 0x67f   :  { %2236 = vmatprep.subr.mxu0 %v2122_v28  ;;  %v2376_v28 = vld [vmem:[%s11826_s2 + $0xd0] sm:$0xff]  ;;  %2529 = vmatprep.subr.mxu1 %v2375_v22  ;;  %v2447_v22 = vld [vmem:[%s11826_s2 + $0x308] sm:$0xff] }
 0x680   :  { %2237 = vmatpush1.msra.mxu0 %v2121_v30  ;;  %v2374_v30 = vld [vmem:[%s11826_s2 + $0xc0] sm:$0xff] }
 0x681   :  { %2238 = vmatprep.subr.mxu0 %v2118_v2  ;;  %v2373_v2 = vld [vmem:[%s11826_s2 + $0xb8] sm:$0xff]  ;;  %2530 = vmatpush1.msra.mxu1 %v2374_v30  ;;  %v2446_v30 = vld [vmem:[%s11826_s2 + $0x300] sm:$0xff] }
 0x682   :  { %2239 = vmatpush1.msra.mxu0 %v2117_v5  ;;  %v2371_v5 = vld [vmem:[%s11826_s2 + $0xa8] sm:$0xff] }
 0x683   :  { %2240 = vmatprep.subr.mxu0 %v2114_v7  ;;  %v2372_v7 = vld [vmem:[%s11826_s2 + $0xb0] sm:$0xff]  ;;  %2531 = vmatprep.subr.mxu1 %v2371_v5  ;;  %v2443_v5 = vld [vmem:[%s11826_s2 + $0x2e8] sm:$0xff] }
 0x684   :  { %2241 = vmatpush1.msra.mxu0 %v2113_v9  ;;  %v2370_v9 = vld [vmem:[%s11826_s2 + $0xa0] sm:$0xff] }
 0x685   :  { %2242 = vmatprep.subr.mxu0 %v2110_v11  ;;  %v2369_v11 = vld [vmem:[%s11826_s2 + $0x98] sm:$0xff]  ;;  %2532 = vmatpush1.msra.mxu1 %v2370_v9  ;;  %v2442_v9 = vld [vmem:[%s11826_s2 + $0x2e0] sm:$0xff] }
 0x686   :  { %2243 = vmatpush1.msra.mxu0 %v2109_v13  ;;  %v2367_v13 = vld [vmem:[%s11826_s2 + $0x88] sm:$0xff] }
 0x687   :  { %2244 = vmatprep.subr.mxu0 %v2106_v15  ;;  %v2368_v15 = vld [vmem:[%s11826_s2 + $0x90] sm:$0xff]  ;;  %2533 = vmatprep.subr.mxu1 %v2367_v13  ;;  %v2439_v13 = vld [vmem:[%s11826_s2 + $0x2c8] sm:$0xff] }
 0x688   :  { %2245 = vmatpush1.msra.mxu0 %v2105_v17  ;;  %v2366_v17 = vld [vmem:[%s11826_s2 + $0x80] sm:$0xff] }
 0x689   :  { %2246 = vmatprep.subr.mxu0 %v2102_v19  ;;  %v2365_v19 = vld [vmem:[%s11826_s2 + $0x78] sm:$0xff]  ;;  %2534 = vmatpush1.msra.mxu1 %v2366_v17  ;;  %v2438_v17 = vld [vmem:[%s11826_s2 + $0x2c0] sm:$0xff] }
 0x68a   :  { %2247 = vmatpush1.msra.mxu0 %v2101_v21  ;;  %v2363_v21 = vld [vmem:[%s11826_s2 + $0x68] sm:$0xff] }
 0x68b   :  { %2248 = vmatprep.subr.mxu0 %v2098_v23  ;;  %v2364_v23 = vld [vmem:[%s11826_s2 + $0x70] sm:$0xff]  ;;  %2535 = vmatprep.subr.mxu1 %v2363_v21  ;;  %v2435_v21 = vld [vmem:[%s11826_s2 + $0x2a8] sm:$0xff] }
 0x68c   :  { %2249 = vmatpush1.msra.mxu0 %v2097_v25  ;;  %v2362_v25 = vld [vmem:[%s11826_s2 + $0x60] sm:$0xff] }
 0x68d   :  { %2250 = vmatprep.subr.mxu0 %v2094_v27  ;;  %v2361_v27 = vld [vmem:[%s11826_s2 + $0x58] sm:$0xff]  ;;  %2536 = vmatpush1.msra.mxu1 %v2362_v25  ;;  %v2434_v25 = vld [vmem:[%s11826_s2 + $0x2a0] sm:$0xff] }
 0x68e   :  { %2251 = vmatpush1.msra.mxu0 %v2093_v31  ;;  %v2359_v31 = vld [vmem:[%s11826_s2 + $0x48] sm:$0xff] }
 0x68f   :  { %2252 = vmatprep.subr.mxu0 %v2090_v33  ;;  %v2360_v33 = vld [vmem:[%s11826_s2 + $0x50] sm:$0xff]  ;;  %2537 = vmatprep.subr.mxu1 %v2359_v31  ;;  %v2431_v31 = vld [vmem:[%s11826_s2 + $0x288] sm:$0xff] }
 0x690   :  { %2253 = vmatpush1.msra.mxu0 %v2089_v41  ;;  %v2358_v41 = vld [vmem:[%s11826_s2 + $0x40] sm:$0xff] }
 0x691   :  { %2287 = vmatmul.mubr.f32.vlgmr.msra.gmra.mxu0 %v8305_v35  ;;  %2582 = vmatprep.subr.mxu0 %v2413_v45  ;;  %v2409_v35 = vld [vmem:[%s11826_s2 + $0x1d8] sm:$0xff] }
 0x692   :  { %2583 = vmatpush1.msra.mxu0 %v2412_v37  ;;  %v2357_v45 = vld [vmem:[%s11826_s2 + $0x38] sm:$0xff]  ;;  %2538 = vmatpush1.msra.mxu1 %v2358_v41  ;;  %v2356_v37 = vld [vmem:[%s11826_s2 + $0x30] sm:$0xff]  ;;  %v2430_v41 = vld [vmem:[%s11826_s2 + $0x280] sm:$0xff] }
 0x693   :  { %2584 = vmatprep.subr.mxu0 %v2409_v35  ;;  %2539 = vmatprep.subr.mxu1 %v2355_v49  ;;  %v2353_v35 = vld [vmem:[%s11826_s2 + $0x18] sm:$0xff]  ;;  %v2427_v49 = vld [vmem:[%s11826_s2 + $0x268] sm:$0xff] }
 0x694   :  { %2585 = vmatpush1.msra.mxu0 %v2408_v16  ;;  %2540 = vmatpush1.msra.mxu1 %v2354_v51  ;;  %v2352_v16 = vld [vmem:[%s11826_s2 + $0x10] sm:$0xff]  ;;  %v2426_v51 = vld [vmem:[%s11826_s2 + $0x260] sm:$0xff] }
 0x695   :  { %2586 = vmatprep.subr.mxu0 %v2405_v47  ;;  %2541 = vmatprep.subr.mxu1 %v2351_v53  ;;  %v2477_v47 = vld [vmem:[%s11826_s2 + $0x3f8] sm:$0xff]  ;;  %v2423_v53 = vld [vmem:[%s11826_s2 + $0x248] sm:$0xff] }
 0x696   :  { %2587 = vmatpush1.msra.mxu0 %v2404_v61  ;;  %2542 = vmatpush1.msra.mxu1 %v2350_v55  ;;  %v2476_v61 = vld [vmem:[%s11826_s2 + $0x3f0] sm:$0xff]  ;;  %v2422_v55 = vld [vmem:[%s11826_s2 + $0x240] sm:$0xff] }
 0x697   :  { %2588 = vmatprep.subr.mxu0 %v2401_v24  ;;  %2543 = vmatprep.subr.mxu1 %v2475_v57  ;;  %v2473_v24 = vld [vmem:[%s11826_s2 + $0x3d8] sm:$0xff]  ;;  %v2419_v57 = vld [vmem:[%s11826_s2 + $0x228] sm:$0xff] }
 0x698   :  { %2589 = vmatpush1.msra.mxu0 %v2400_v34  ;;  %2544 = vmatpush2.msra.mxu1 %v2474_v63  ;;  %v2472_v34 = vld [vmem:[%s11826_s2 + $0x3d0] sm:$0xff]  ;;  %v2418_v63 = vld [vmem:[%s11826_s2 + $0x220] sm:$0xff] }
 0x699   :  { %2590 = vmatprep.subr.mxu0 %v2397_v38  ;;  %2545 = vmatprep.subr.mxu1 %v2471_v32  ;;  %v2469_v38 = vld [vmem:[%s11826_s2 + $0x3b8] sm:$0xff]  ;;  %v2415_v32 = vld [vmem:[%s11826_s2 + $0x208] sm:$0xff] }
 0x69a   :  { %2591 = vmatpush1.msra.mxu0 %v2396_v42  ;;  %2546 = vmatpush2.msra.mxu1 %v2470_v0  ;;  %v2468_v42 = vld [vmem:[%s11826_s2 + $0x3b0] sm:$0xff]  ;;  %v2414_v0 = vld [vmem:[%s11826_s2 + $0x200] sm:$0xff] }
 0x69b   :  { %2592 = vmatprep.subr.mxu0 %v2393_v46  ;;  %2547 = vmatprep.subr.mxu1 %v2467_v40  ;;  %v2465_v46 = vld [vmem:[%s11826_s2 + $0x398] sm:$0xff]  ;;  %v5550_v40 = vld [vmem:[#allocation3] ss:$0 sm:$0xff] }
 0x69c   :  { %2593 = vmatpush1.msra.mxu0 %v2392_v52  ;;  %2548 = vmatpush2.msra.mxu1 %v2466_v44  ;;  %v2464_v52 = vld [vmem:[%s11826_s2 + $0x390] sm:$0xff] }
 0x69d   :  { %2594 = vmatprep.subr.mxu0 %v2389_v56  ;;  %2549 = vmatprep.subr.mxu1 %v2463_v48  ;;  %v2461_v56 = vld [vmem:[%s11826_s2 + $0x378] sm:$0xff]  ;;  %v2217_v48 = vpop.f32.mrf.mxu1 }
 0x69e   :  { %2595 = vmatpush1.msra.mxu0 %v2388_v20  ;;  %2550 = vmatpush2.msra.mxu1 %v2462_v54  ;;  %v2460_v20 = vld [vmem:[%s11826_s2 + $0x370] sm:$0xff] }
 0x69f   :  { %2596 = vmatprep.subr.mxu0 %v2385_v62  ;;  %2551 = vmatprep.subr.mxu1 %v2459_v60  ;;  %v2457_v62 = vld [vmem:[%s11826_s2 + $0x358] sm:$0xff] }
 0x6a0   :  { %2597 = vmatpush1.msra.mxu0 %v2384_v6  ;;  %2552 = vmatpush2.msra.mxu1 %v2458_v58  ;;  %v2456_v6 = vld [vmem:[%s11826_s2 + $0x350] sm:$0xff] }
 0x6a1   :  { %2598 = vmatprep.subr.mxu0 %v2381_v8  ;;  %2553 = vmatprep.subr.mxu1 %v2455_v4  ;;  %v2453_v8 = vld [vmem:[%s11826_s2 + $0x338] sm:$0xff] }
 0x6a2   :  { %2599 = vmatpush1.msra.mxu0 %v2380_v12  ;;  %2554 = vmatpush2.msra.mxu1 %v2454_v1  ;;  %v2452_v12 = vld [vmem:[%s11826_s2 + $0x330] sm:$0xff]  ;;  %v5552_v4 = vld [vmem:[%s11827_s0 + $0x18] sm:$0xff] }
 0x6a3   :  { %2600 = vmatprep.subr.mxu0 %v2377_v18  ;;  %2555 = vmatprep.subr.mxu1 %v2451_v10  ;;  %v2449_v18 = vld [vmem:[%s11826_s2 + $0x318] sm:$0xff] }
 0x6a4   :  { %2601 = vmatpush1.msra.mxu0 %v2376_v28  ;;  %2556 = vmatpush2.msra.mxu1 %v2450_v14  ;;  %v2448_v28 = vld [vmem:[%s11826_s2 + $0x310] sm:$0xff] }
 0x6a5   :  { %2602 = vmatprep.subr.mxu0 %v2373_v2  ;;  %2557 = vmatprep.subr.mxu1 %v2447_v22  ;;  %v2445_v2 = vld [vmem:[%s11826_s2 + $0x2f8] sm:$0xff] }
 0x6a6   :  { %2603 = vmatpush1.msra.mxu0 %v2372_v7  ;;  %2558 = vmatpush2.msra.mxu1 %v2446_v30  ;;  %v2444_v7 = vld [vmem:[%s11826_s2 + $0x2f0] sm:$0xff] }
 0x6a7   :  { %2604 = vmatprep.subr.mxu0 %v2369_v11  ;;  %2559 = vmatprep.subr.mxu1 %v2443_v5  ;;  %v2441_v11 = vld [vmem:[%s11826_s2 + $0x2d8] sm:$0xff] }
 0x6a8   :  { %2605 = vmatpush1.msra.mxu0 %v2368_v15  ;;  %2560 = vmatpush2.msra.mxu1 %v2442_v9  ;;  %v2440_v15 = vld [vmem:[%s11826_s2 + $0x2d0] sm:$0xff] }
 0x6a9   :  { %2606 = vmatprep.subr.mxu0 %v2365_v19  ;;  %2561 = vmatprep.subr.mxu1 %v2439_v13  ;;  %v2437_v19 = vld [vmem:[%s11826_s2 + $0x2b8] sm:$0xff] }
 0x6aa   :  { %2607 = vmatpush1.msra.mxu0 %v2364_v23  ;;  %2562 = vmatpush2.msra.mxu1 %v2438_v17  ;;  %v2436_v23 = vld [vmem:[%s11826_s2 + $0x2b0] sm:$0xff] }
 0x6ab   :  { %2608 = vmatprep.subr.mxu0 %v2361_v27  ;;  %2563 = vmatprep.subr.mxu1 %v2435_v21  ;;  %v2433_v27 = vld [vmem:[%s11826_s2 + $0x298] sm:$0xff] }
 0x6ac   :  { %2609 = vmatpush1.msra.mxu0 %v2360_v33  ;;  %2564 = vmatpush2.msra.mxu1 %v2434_v25  ;;  %v2432_v33 = vld [vmem:[%s11826_s2 + $0x290] sm:$0xff] }
 0x6ad   :  { %2610 = vmatprep.subr.mxu0 %v2357_v45  ;;  %v2429_v45 = vld [vmem:[%s11826_s2 + $0x278] sm:$0xff]  ;;  %2565 = vmatprep.subr.mxu1 %v2431_v31 }
 0x6ae   :  { %2611 = vmatpush1.msra.mxu0 %v2356_v37  ;;  %v2428_v37 = vld [vmem:[%s11826_s2 + $0x270] sm:$0xff]  ;;  %2566 = vmatpush2.msra.mxu1 %v2430_v41  ;;  %v2834_v41 = vld [vmem:[%s11825_s1 + $0x1e0] sm:$0xff] }
 0x6af   :  { %2612 = vmatprep.subr.mxu0 %v2353_v35  ;;  %v2425_v35 = vld [vmem:[%s11826_s2 + $0x258] sm:$0xff]  ;;  %2567 = vmatprep.subr.mxu1 %v2427_v49  ;;  %v2827_v49 = vld [vmem:[%s11825_s1 + $0x1a8] sm:$0xff] }
 0x6b0   :  { %2613 = vmatpush1.msra.mxu0 %v2352_v16  ;;  %v2424_v16 = vld [vmem:[%s11826_s2 + $0x250] sm:$0xff]  ;;  %2568 = vmatpush2.msra.mxu1 %v2426_v51  ;;  %v2823_v51 = vld [vmem:[%s11825_s1 + $0x188] sm:$0xff] }
 0x6b1   :  { %2614 = vmatprep.subr.mxu0 %v2477_v47  ;;  %v2421_v47 = vld [vmem:[%s11826_s2 + $0x238] sm:$0xff]  ;;  %2569 = vmatprep.subr.mxu1 %v2423_v53  ;;  %v2819_v53 = vld [vmem:[%s11825_s1 + $0x168] sm:$0xff] }
 0x6b2   :  { %2615 = vmatpush2.msra.mxu0 %v2476_v61  ;;  %v2420_v61 = vld [vmem:[%s11826_s2 + $0x230] sm:$0xff]  ;;  %2570 = vmatpush2.msra.mxu1 %v2422_v55  ;;  %v2815_v55 = vld [vmem:[%s11825_s1 + $0x148] sm:$0xff] }
 0x6b3   :  { %2616 = vmatprep.subr.mxu0 %v2473_v24  ;;  %v2417_v24 = vld [vmem:[%s11826_s2 + $0x218] sm:$0xff]  ;;  %2571 = vmatprep.subr.mxu1 %v2419_v57  ;;  %v2811_v57 = vld [vmem:[%s11825_s1 + $0x128] sm:$0xff] }
 0x6b4   :  { %2617 = vmatpush2.msra.mxu0 %v2472_v34  ;;  %v2416_v34 = vld [vmem:[%s11826_s2 + $0x210] sm:$0xff]  ;;  %2572 = vmatpush2.msra.mxu1 %v2418_v63  ;;  %v2807_v63 = vld [vmem:[%s11825_s1 + $0x108] sm:$0xff] }
 0x6b5   :  { %2618 = vmatprep.subr.mxu0 %v2469_v38  ;;  %2573 = vmatprep.subr.mxu1 %v2415_v32  ;;  %v2835_v38 = vld [vmem:[%s11825_s1 + $0x1e8] sm:$0xff] }
 0x6b6   :  { %2619 = vmatpush2.msra.mxu0 %v2468_v42  ;;  %2574 = vmatpush2.msra.mxu1 %v2414_v0  ;;  %v2803_v32 = vld [vmem:[%s11825_s1 + $0xe8] sm:$0xff] }
 0x6b7   :  { %2620 = vmatprep.subr.mxu0 %v2465_v46  ;;  %5843 = vmatprep.subr.mxu1 %v11832_v3  ;;  %v2799_v0 = vld [vmem:[%s11825_s1 + $0xc8] sm:$0xff] }
 0x6b8   :  { %2621 = vmatpush2.msra.mxu0 %v2464_v52  ;;  %v2219_v52 = vpop.f32.mrf.mxu1 }
 0x6b9   :  { %2622 = vmatprep.subr.mxu0 %v2461_v56  ;;  %v2297_v56 = vcombine.low %v2217_v48, %v2219_v52  ;;  %v2787_v48 = vld [vmem:[%s11825_s1 + $0x68] sm:$0xff]  ;;  %v2786_v52 = vld [vmem:[%s11825_s1 + $0x60] sm:$0xff] }
 0x6ba   :  { %2623 = vmatpush2.msra.mxu0 %v2460_v20 }
 0x6bb   :  { %2624 = vmatprep.subr.mxu0 %v2457_v62  ;;  %v2305_v58 = vrot.slane %v2297_v56, %v6997_v26  ;;  %v2782_v56 = vld [vmem:[%s11825_s1 + $0x40] sm:$0xff] }
 0x6bc   :  { %2625 = vmatpush2.msra.mxu0 %v2456_v6 }
 0x6bd   :  { %2626 = vmatprep.subr.mxu0 %v2453_v8 }
 0x6be   :  { %2627 = vmatpush2.msra.mxu0 %v2452_v12 }
 0x6bf   :  { %2628 = vmatprep.subr.mxu0 %v2449_v18 }
 0x6c0   :  { %2629 = vmatpush2.msra.mxu0 %v2448_v28 }
 0x6c1   :  { %2630 = vmatprep.subr.mxu0 %v2445_v2 }
 0x6c2   :  { %2631 = vmatpush2.msra.mxu0 %v2444_v7 }
 0x6c3   :  { %2632 = vmatprep.subr.mxu0 %v2441_v11 }
 0x6c4   :  { %2633 = vmatpush2.msra.mxu0 %v2440_v15 }
 0x6c5   :  { %2634 = vmatprep.subr.mxu0 %v2437_v19 }
 0x6c6   :  { %2635 = vmatpush2.msra.mxu0 %v2436_v23 }
 0x6c7   :  { %2636 = vmatprep.subr.mxu0 %v2433_v27 }
 0x6c8   :  { %2637 = vmatpush2.msra.mxu0 %v2432_v33 }
 0x6c9   :  { %2638 = vmatprep.subr.mxu0 %v2429_v45  ;;  %v2830_v45 = vld [vmem:[%s11825_s1 + $0x1c0] sm:$0xff] }
 0x6ca   :  { %2639 = vmatpush2.msra.mxu0 %v2428_v37  ;;  %v2826_v37 = vld [vmem:[%s11825_s1 + $0x1a0] sm:$0xff] }
 0x6cb   :  { %2640 = vmatprep.subr.mxu0 %v2425_v35  ;;  %v2822_v35 = vld [vmem:[%s11825_s1 + $0x180] sm:$0xff] }
 0x6cc   :  { %2641 = vmatpush2.msra.mxu0 %v2424_v16  ;;  %v2818_v16 = vld [vmem:[%s11825_s1 + $0x160] sm:$0xff] }
 0x6cd   :  { %2642 = vmatprep.subr.mxu0 %v2421_v47  ;;  %v2814_v47 = vld [vmem:[%s11825_s1 + $0x140] sm:$0xff] }
 0x6ce   :  { %2643 = vmatpush2.msra.mxu0 %v2420_v61  ;;  %v2810_v61 = vld [vmem:[%s11825_s1 + $0x120] sm:$0xff] }
 0x6cf   :  { %2644 = vmatprep.subr.mxu0 %v2417_v24  ;;  %v2806_v24 = vld [vmem:[%s11825_s1 + $0x100] sm:$0xff] }
 0x6d0   :  { %2645 = vmatpush2.msra.mxu0 %v2416_v34  ;;  %v2802_v34 = vld [vmem:[%s11825_s1 + $0xe0] sm:$0xff] }
 0x6d1   :  { %2838 = vmatprep.subr.mxu0 %v2835_v38  ;;  %v2798_v38 = vld [vmem:[%s11825_s1 + $0xc0] sm:$0xff] }
 0x731   :  { %v2079_v42 = vpop.f32.mrf.mxu0 }
 0x732   :  { %v2080_v44 = vadd.f32 %v5550_v40, %v2079_v42  ;;  %v2795_v40 = vld [vmem:[%s11825_s1 + $0xa8] sm:$0xff]  ;;  %v2794_v42 = vld [vmem:[%s11825_s1 + $0xa0] sm:$0xff] }
 0x733   :  { %v5842_v46 = vpop.f32.mrf.mxu0 }
 0x734   :  { %5551 = vst.msk [vmem:[%s11831_s6 + $0x4] sm:$0x3] %vm709_vm1, %v2080_v44  ;;  %v2791_v44 = vld [vmem:[%s11825_s1 + $0x88] sm:$0xff]  ;;  %v2790_v46 = vld [vmem:[%s11825_s1 + $0x80] sm:$0xff] }
 0x751   :  { %v2288_v54 = vpop.f32.mrf.mxu0 }
 0x753   :  { %v2290_v60 = vpop.f32.mrf.mxu0 }
 0x754   :  { %v2298_v20 = vcombine.low %v2288_v54, %v2290_v60  ;;  %v2783_v54 = vld [vmem:[%s11825_s1 + $0x48] sm:$0xff] }
 0x755   :  { %v2779_v60 = vld [vmem:[%s11825_s1 + $0x28] sm:$0xff] }
 0x756   :  { %v2312_v62 = vrot.slane %v2298_v20, %v6997_v26  ;;  %v2778_v20 = vld [vmem:[%s11825_s1 + $0x20] sm:$0xff] }
 0x758   :  { %v2313_v6 = vcombine.low %v2305_v58, %v2312_v62  ;;  %v2775_v58 = vld [vmem:[%s11825_s1 + $0x8] sm:$0xff]  ;;  %v2774_v62 = vld [vmem:[%s11825_s1] sm:$0xff] }
 0x75a   :  { %v2315_v1 = vadd.f32 %v5552_v4, %v2313_v6  ;;  %v2692_v4 = vld [vmem:[%s11828_s4 + $0x78] sm:$0xff]  ;;  %v2691_v6 = vld [vmem:[%s11828_s4 + $0x70] sm:$0xff] }
 0x75c   :  { %v5553_v8 = vmul.f32 -1.442695, %v2315_v1  ;;  %v2323_v10 = vrot.slane %v2315_v1, 2  ;;  %v2334_v14 = vrot.slane %v2315_v1, 6  ;;  %v2331_v28 = vrot.slane %v2315_v1, 4  ;;  %v2690_v1 = vld [vmem:[%s11828_s4 + $0x68] sm:$0xff] }
 0x75e   :  { %6117 = vpow2.f32 %v5553_v8  ;;  %v5554_v12 = vmul.f32 -1.442695, %v2323_v10  ;;  %v5555_v18 = vmul.f32 -1.442695, %v2334_v14  ;;  %v2689_v8 = vld [vmem:[%s11828_s4 + $0x60] sm:$0xff]  ;;  %v2688_v10 = vld [vmem:[%s11828_s4 + $0x58] sm:$0xff] }
 0x75f   :  { %v2686_v14 = vld [vmem:[%s11828_s4 + $0x48] sm:$0xff] }
 0x760   :  { %6119 = vpow2.f32 %v5554_v12  ;;  %v2687_v12 = vld [vmem:[%s11828_s4 + $0x50] sm:$0xff] }
 0x761   :  { %6121 = vpow2.f32 %v5555_v18  ;;  %v2685_v18 = vld [vmem:[%s11828_s4 + $0x40] sm:$0xff] }
 0x76b   :  { %v6118_v22 = vpop.eup %6117 }
 0x76c   :  { %v2319_v30 = vadd.f32 1.0, %v6118_v22  ;;  %v2684_v22 = vld [vmem:[%s11828_s4 + $0x38] sm:$0xff] }
 0x76d   :  { %v6120_v2 = vpop.eup %6119 }
 0x76e   :  { %6123 = vrcp.f32 %v2319_v30  ;;  %v2328_v5 = vadd.f32 1.0, %v6120_v2  ;;  %v6122_v7 = vpop.eup %6121  ;;  %v2682_v30 = vld [vmem:[%s11828_s4 + $0x28] sm:$0xff]  ;;  %v2681_v2 = vld [vmem:[%s11828_s4 + $0x20] sm:$0xff] }
 0x76f   :  { %6125 = vtanh.f32 %v2331_v28  ;;  %v2339_v15 = vadd.f32 1.0, %v6122_v7  ;;  %v2683_v28 = vld [vmem:[%s11828_s4 + $0x30] sm:$0xff] }
 0x770   :  { %6127 = vrcp.f32 %v2328_v5  ;;  %v2680_v5 = vld [vmem:[%s11828_s4 + $0x18] sm:$0xff]  ;;  %v2679_v7 = vld [vmem:[%s11828_s4 + $0x10] sm:$0xff] }
 0x771   :  { %6129 = vrcp.f32 %v2339_v15  ;;  %v2478_v15 = vld [vmem:[%s11830_s3] sm:$0xf] }
 0x77b   :  { %v6124_v9 = vpop.eup %6123 }
 0x77c   :  { %v6126_v11 = vpop.eup %6125 }
 0x77d   :  { %v6128_v13 = vpop.eup %6127  ;;  %v2343_v19 = vmul.f32 %v6126_v11, %v6124_v9  ;;  %v2678_v9 = vld [vmem:[%s11828_s4 + $0x8] sm:$0xff]  ;;  %v2677_v11 = vld [vmem:[%s11828_s4] sm:$0xff] }
 0x77e   :  { %v2342_v17 = vmul.f32 %v6128_v13, %v8302_v29  ;;  %v6130_v23 = vpop.eup %6129  ;;  %v2831_v29 = vld [vmem:[%s11825_s1 + $0x1c8] sm:$0xff]  ;;  %v2837_v13 = vld [vmem:[%s11825_s1 + $0x1f8] sm:$0xff] }
 0x780   :  { %v8975_v21 = vadd.f32 %v2343_v19, %v2342_v17  ;;  %v2483_v17 = vrot.slane %v2478_v15, %v7115_v39  ;;  %v2487_v19 = vrot.slane %v2478_v15, %v7121_v43 }
 0x782   :  { %6131 = vtanh.f32 %v8975_v21 }
 0x78f   :  { %v6132_v25 = vpop.eup %6131 }
 0x790   :  { %v8978_v27 = vmul.f32 %v6132_v25, %v6130_v23 }
 0x792   :  { %2347 = vst [vmem:[#allocation2] sm:$0x3] %v8978_v27 }
 0x799   :  { %v5556_v31 = vld.sshfl [vmem:[#allocation2] sm:$0x33 pattern:$0x76325410] }
 0x79a   :  { %v2508_v33 = vcombine.high %v5556_v31, %v5556_v31 }
 0x79c   :  { %2575 = vmatprep.mubr.f32.mxu1 %v2508_v33  ;;  %2646 = vmatprep.mubr.f32.mxu0 %v2508_v33 }
 0x79d   :  { %2576 = vmatmul.mubr.f32.vlgmr.msra.gmra.mxu1 %v5556_v31  ;;  %2647 = vmatmul.mubr.f32.vlgmr.msra.gmra.mxu0 %v5556_v31 }
 0x79e   :  { %2839 = vmatpush1.msra.mxu0 %v2834_v41  ;;  %2902 = vmatprep.mubr.f32.mxu0 %v11832_v3 }
 0x79f   :  { %2840 = vmatprep.subr.mxu0 %v2831_v29  ;;  %5875 = vmatprep.mubr.msk.f32.mxu1 %vm6279_vm0, %v11832_v3 }
 0x7a0   :  { %2841 = vmatpush1.msra.mxu0 %v2830_v45  ;;  %5844 = vmatpush3.msra.mxu1 %v2692_v4  ;;  %v2820_v4 = vld [vmem:[%s11825_s1 + $0x170] sm:$0xff] }
 0x7a1   :  { %2842 = vmatprep.subr.mxu0 %v2827_v49  ;;  %5845 = vmatprep.subr.mxu1 %v11832_v3  ;;  %v2495_v49 = vrot.slane %v2478_v15, %v7126_v59 }
 0x7a2   :  { %2843 = vmatpush1.msra.mxu0 %v2826_v37  ;;  %5846 = vmatpush3.msra.mxu1 %v2691_v6  ;;  %v2817_v6 = vld [vmem:[%s11825_s1 + $0x158] sm:$0xff] }
 0x7a3   :  { %2844 = vmatprep.subr.mxu0 %v2823_v51  ;;  %5847 = vmatprep.subr.mxu1 %v11832_v3 }
 0x7a4   :  { %2845 = vmatpush1.msra.mxu0 %v2822_v35  ;;  %5848 = vmatpush3.msra.mxu1 %v2690_v1  ;;  %v2491_v35 = vrot.slane %v2478_v15, %v7130_v36  ;;  %v2816_v1 = vld [vmem:[%s11825_s1 + $0x150] sm:$0xff]  ;;  %v2785_v15 = vld [vmem:[%s11825_s1 + $0x58] sm:$0xff] }
 0x7a5   :  { %2846 = vmatprep.subr.mxu0 %v2819_v53  ;;  %5849 = vmatprep.subr.mxu1 %v11832_v3 }
 0x7a6   :  { %2847 = vmatpush1.msra.mxu0 %v2818_v16  ;;  %5850 = vmatpush3.msra.mxu1 %v2689_v8  ;;  %v2813_v8 = vld [vmem:[%s11825_s1 + $0x138] sm:$0xff] }
 0x7a7   :  { %2848 = vmatprep.subr.mxu0 %v2815_v55  ;;  %5851 = vmatprep.subr.mxu1 %v11832_v3 }
 0x7a8   :  { %2849 = vmatpush1.msra.mxu0 %v2814_v47  ;;  %5852 = vmatpush3.msra.mxu1 %v2688_v10  ;;  %v2812_v10 = vld [vmem:[%s11825_s1 + $0x130] sm:$0xff] }
 0x7a9   :  { %2850 = vmatprep.subr.mxu0 %v2811_v57  ;;  %5853 = vmatprep.subr.mxu1 %v11832_v3 }
 0x7aa   :  { %2851 = vmatpush1.msra.mxu0 %v2810_v61  ;;  %5854 = vmatpush3.msra.mxu1 %v2687_v12  ;;  %v2809_v12 = vld [vmem:[%s11825_s1 + $0x118] sm:$0xff] }
 0x7ab   :  { %2852 = vmatprep.subr.mxu0 %v2807_v63  ;;  %5855 = vmatprep.subr.mxu1 %v11832_v3 }
 0x7ac   :  { %2853 = vmatpush1.msra.mxu0 %v2806_v24  ;;  %5856 = vmatpush3.msra.mxu1 %v2686_v14  ;;  %v2808_v14 = vld [vmem:[%s11825_s1 + $0x110] sm:$0xff] }
 0x7ad   :  { %2854 = vmatprep.subr.mxu0 %v2803_v32  ;;  %5857 = vmatprep.subr.mxu1 %v11832_v3 }
 0x7ae   :  { %2855 = vmatpush1.msra.mxu0 %v2802_v34  ;;  %5858 = vmatpush3.msra.mxu1 %v2685_v18  ;;  %v2805_v18 = vld [vmem:[%s11825_s1 + $0xf8] sm:$0xff] }
 0x7af   :  { %2856 = vmatprep.subr.mxu0 %v2799_v0  ;;  %5859 = vmatprep.subr.mxu1 %v11832_v3 }
 0x7b0   :  { %2857 = vmatpush1.msra.mxu0 %v2798_v38  ;;  %5860 = vmatpush3.msra.mxu1 %v2684_v22  ;;  %v2804_v22 = vld [vmem:[%s11825_s1 + $0xf0] sm:$0xff] }
 0x7b1   :  { %2858 = vmatprep.subr.mxu0 %v2795_v40  ;;  %5861 = vmatprep.subr.mxu1 %v11832_v3 }
 0x7b2   :  { %2859 = vmatpush1.msra.mxu0 %v2794_v42  ;;  %5862 = vmatpush3.msra.mxu1 %v2683_v28  ;;  %v2801_v28 = vld [vmem:[%s11825_s1 + $0xd8] sm:$0xff] }
 0x7b3   :  { %2860 = vmatprep.subr.mxu0 %v2791_v44  ;;  %5863 = vmatprep.subr.mxu1 %v11832_v3 }
 0x7b4   :  { %2861 = vmatpush1.msra.mxu0 %v2790_v46  ;;  %5864 = vmatpush3.msra.mxu1 %v2682_v30  ;;  %v2800_v30 = vld [vmem:[%s11825_s1 + $0xd0] sm:$0xff] }
 0x7b5   :  { %2862 = vmatprep.subr.mxu0 %v2787_v48  ;;  %5865 = vmatprep.subr.mxu1 %v11832_v3 }
 0x7b6   :  { %2863 = vmatpush1.msra.mxu0 %v2786_v52  ;;  %5866 = vmatpush3.msra.mxu1 %v2681_v2  ;;  %v2836_v52 = vld [vmem:[%s11825_s1 + $0x1f0] sm:$0xff]  ;;  %v2797_v2 = vld [vmem:[%s11825_s1 + $0xb8] sm:$0xff] }
 0x7b7   :  { %2864 = vmatprep.subr.mxu0 %v2783_v54  ;;  %5867 = vmatprep.subr.mxu1 %v11832_v3  ;;  %v2833_v54 = vld [vmem:[%s11825_s1 + $0x1d8] sm:$0xff] }
 0x7b8   :  { %2865 = vmatpush1.msra.mxu0 %v2782_v56  ;;  %5868 = vmatpush3.msra.mxu1 %v2680_v5  ;;  %v2829_v56 = vld [vmem:[%s11825_s1 + $0x1b8] sm:$0xff]  ;;  %v2796_v5 = vld [vmem:[%s11825_s1 + $0xb0] sm:$0xff] }
 0x7b9   :  { %2866 = vmatprep.subr.mxu0 %v2779_v60  ;;  %5869 = vmatprep.subr.mxu1 %v11832_v3  ;;  %v2828_v60 = vld [vmem:[%s11825_s1 + $0x1b0] sm:$0xff] }
 0x7ba   :  { %2867 = vmatpush1.msra.mxu0 %v2778_v20  ;;  %5870 = vmatpush3.msra.mxu1 %v2679_v7  ;;  %v2825_v20 = vld [vmem:[%s11825_s1 + $0x198] sm:$0xff] }
 0x7bb   :  { %2868 = vmatprep.subr.mxu0 %v2775_v58  ;;  %5871 = vmatprep.subr.mxu1 %v11832_v3  ;;  %v2824_v58 = vld [vmem:[%s11825_s1 + $0x190] sm:$0xff]  ;;  %v2793_v7 = vld [vmem:[%s11825_s1 + $0x98] sm:$0xff] }
 0x7bc   :  { %2869 = vmatpush1.msra.mxu0 %v2774_v62  ;;  %5872 = vmatpush3.msra.mxu1 %v2678_v9  ;;  %v2821_v62 = vld [vmem:[%s11825_s1 + $0x178] sm:$0xff]  ;;  %v2792_v9 = vld [vmem:[%s11825_s1 + $0x90] sm:$0xff] }
 0x7bd   :  { %2903 = vmatmul.mubr.f32.vlgmr.msra.gmra.mxu0 %v8978_v27  ;;  %5873 = vmatprep.subr.mxu1 %v11832_v3 }
 0x7be   :  { %5874 = vmatpush3.msra.mxu1 %v2677_v11  ;;  %v2789_v11 = vld [vmem:[%s11825_s1 + $0x78] sm:$0xff] }
 0x7bf   :  { %2909 = vmatprep.subr.mxu1 %v2837_v13  ;;  %v2788_v13 = vld [vmem:[%s11825_s1 + $0x70] sm:$0xff] }
 0x85d   :  { %v2577_v23 = vpop.f32.mrf.mxu1  ;;  %v2648_v29 = vpop.f32.mrf.mxu0 }
 0x85e   :  { %v2578_v25 = vadd.f32 %v2577_v23, %v2483_v17  ;;  %v2649_v55 = vadd.f32 %v2648_v29, %v2491_v35  ;;  %v2784_v17 = vld [vmem:[%s11825_s1 + $0x50] sm:$0xff]  ;;  %v3092_v35 = vld [vmem:[%s11826_s2 + $0x1b8] sm:$0xff] }
 0x85f   :  { %v2579_v31 = vpop.f32.mrf.mxu1  ;;  %v2650_v37 = vpop.f32.mrf.mxu0  ;;  %v2780_v23 = vld [vmem:[%s11825_s1 + $0x30] sm:$0xff] }
 0x860   :  { %v5557_v33 = vmul.f32 -1.442695, %v2578_v25  ;;  %v2580_v41 = vadd.f32 %v2579_v31, %v2487_v19  ;;  %v2651_v51 = vadd.f32 %v2650_v37, %v2495_v49  ;;  %v2781_v19 = vld [vmem:[%s11825_s1 + $0x38] sm:$0xff]  ;;  %v2776_v31 = vld [vmem:[%s11825_s1 + $0x10] sm:$0xff]  ;;  %v3094_v49 = vld [vmem:[%s11826_s2 + $0x1c8] sm:$0xff] }
 0x861   :  { %v2777_v25 = vld [vmem:[%s11825_s1 + $0x18] sm:$0xff]  ;;  %v3099_v29 = vld [vmem:[%s11826_s2 + $0x1f0] sm:$0xff] }
 0x862   :  { %6133 = vpow2.f32 %v5557_v33  ;;  %v5558_v45 = vmul.f32 -1.442695, %v2580_v41  ;;  %v5559_v53 = vmul.f32 -1.442695, %v2651_v51  ;;  %v3100_v33 = vld [vmem:[%s11826_s2 + $0x1f8] sm:$0xff]  ;;  %v3098_v41 = vld [vmem:[%s11826_s2 + $0x1e8] sm:$0xff] }
 0x863   :  { %3198 = vmatprep.subr.mxu0 %v3098_v41  ;;  %v3095_v37 = vld [vmem:[%s11826_s2 + $0x1d0] sm:$0xff]  ;;  %v3093_v51 = vld [vmem:[%s11826_s2 + $0x1c0] sm:$0xff]  ;;  %v3042_v41 = vld [vmem:[%s11826_s2 + $0x28] sm:$0xff] }
 0x864   :  { %6135 = vpow2.f32 %v5558_v45  ;;  %v3097_v45 = vld [vmem:[%s11826_s2 + $0x1e0] sm:$0xff] }
 0x865   :  { %6137 = vpow2.f32 %v5559_v53  ;;  %3199 = vmatpush1.msra.mxu0 %v3097_v45  ;;  %v3090_v53 = vld [vmem:[%s11826_s2 + $0x1a8] sm:$0xff]  ;;  %v3041_v45 = vld [vmem:[%s11826_s2 + $0x20] sm:$0xff] }
 0x866   :  { %3200 = vmatprep.subr.mxu0 %v3094_v49  ;;  %v3038_v49 = vld [vmem:[%s11826_s2 + $0x8] sm:$0xff] }
 0x867   :  { %3201 = vmatpush1.msra.mxu0 %v3093_v51  ;;  %v3037_v51 = vld [vmem:[%s11826_s2] sm:$0xff] }
 0x868   :  { %3202 = vmatprep.subr.mxu0 %v3090_v53  ;;  %v3162_v53 = vld [vmem:[%s11826_s2 + $0x3e8] sm:$0xff] }
 0x86f   :  { %v6134_v16 = vpop.eup %6133 }
 0x870   :  { %v2656_v47 = vadd.f32 1.0, %v6134_v16  ;;  %v3091_v16 = vld [vmem:[%s11826_s2 + $0x1b0] sm:$0xff] }
 0x871   :  { %v6136_v57 = vpop.eup %6135 }
 0x872   :  { %6139 = vrcp.f32 %v2656_v47  ;;  %v2662_v61 = vadd.f32 1.0, %v6136_v57  ;;  %v6138_v63 = vpop.eup %6137  ;;  %v3088_v47 = vld [vmem:[%s11826_s2 + $0x198] sm:$0xff]  ;;  %v3086_v57 = vld [vmem:[%s11826_s2 + $0x188] sm:$0xff] }
 0x873   :  { %6141 = vtanh.f32 %v2649_v55  ;;  %v2669_v0 = vadd.f32 1.0, %v6138_v63  ;;  %v3089_v55 = vld [vmem:[%s11826_s2 + $0x1a0] sm:$0xff] }
 0x874   :  { %6143 = vrcp.f32 %v2662_v61  ;;  %3203 = vmatpush1.msra.mxu0 %v3089_v55  ;;  %v3087_v61 = vld [vmem:[%s11826_s2 + $0x190] sm:$0xff]  ;;  %v3085_v63 = vld [vmem:[%s11826_s2 + $0x180] sm:$0xff] }
 0x875   :  { %6145 = vrcp.f32 %v2669_v0  ;;  %3204 = vmatprep.subr.mxu0 %v3086_v57  ;;  %v3081_v0 = vld [vmem:[%s11826_s2 + $0x160] sm:$0xff]  ;;  %v3158_v57 = vld [vmem:[%s11826_s2 + $0x3c8] sm:$0xff] }
 0x876   :  { %3205 = vmatpush1.msra.mxu0 %v3085_v63  ;;  %v3161_v55 = vld [vmem:[%s11826_s2 + $0x3e0] sm:$0xff] }
 0x877   :  { %v3157_v63 = vld [vmem:[%s11826_s2 + $0x3c0] sm:$0xff] }
 0x87f   :  { %v6140_v24 = vpop.eup %6139 }
 0x880   :  { %v6142_v32 = vpop.eup %6141 }
 0x881   :  { %v6144_v34 = vpop.eup %6143  ;;  %v2673_v38 = vmul.f32 %v6142_v32, %v6140_v24  ;;  %v3084_v24 = vld [vmem:[%s11826_s2 + $0x178] sm:$0xff]  ;;  %v3082_v32 = vld [vmem:[%s11826_s2 + $0x168] sm:$0xff] }
 0x882   :  { %v2672_v40 = vmul.f32 %v6144_v34, %v8479_v50  ;;  %v6146_v44 = vpop.eup %6145  ;;  %v2832_v50 = vld [vmem:[%s11825_s1 + $0x1d0] sm:$0xff]  ;;  %3206 = vmatprep.subr.mxu0 %v3082_v32  ;;  %v3154_v32 = vld [vmem:[%s11826_s2 + $0x3a8] sm:$0xff] }
 0x883   :  { %v3083_v34 = vld [vmem:[%s11826_s2 + $0x170] sm:$0xff]  ;;  %3207 = vmatpush1.msra.mxu0 %v3081_v0  ;;  %v3153_v0 = vld [vmem:[%s11826_s2 + $0x3a0] sm:$0xff] }
 0x884   :  { %v9152_v42 = vadd.f32 %v2673_v38, %v2672_v40  ;;  %v3080_v38 = vld [vmem:[%s11826_s2 + $0x158] sm:$0xff]  ;;  %v3078_v40 = vld [vmem:[%s11826_s2 + $0x148] sm:$0xff] }
 0x885   :  { %3208 = vmatprep.subr.mxu0 %v3078_v40  ;;  %v3150_v40 = vld [vmem:[%s11826_s2 + $0x388] sm:$0xff] }
 0x886   :  { %6147 = vtanh.f32 %v9152_v42 }
 0x893   :  { %v6148_v46 = vpop.eup %6147 }
 0x894   :  { %v2676_v48 = vmul.f32 %v6148_v46, %v6146_v44  ;;  %v3079_v44 = vld [vmem:[%s11826_s2 + $0x150] sm:$0xff]  ;;  %v3077_v46 = vld [vmem:[%s11826_s2 + $0x140] sm:$0xff] }
 0x895   :  { %3209 = vmatpush1.msra.mxu0 %v3077_v46  ;;  %v3149_v46 = vld [vmem:[%s11826_s2 + $0x380] sm:$0xff] }
 0x896   :  { %5876 = vmatmul.mubr.f32.vlgmr.msra.gmra.mxu1 %v2676_v48  ;;  %3035 = vst [vmem:[#allocation2 + $0x2] sm:$0x3] %v2676_v48  ;;  %v3076_v48 = vld [vmem:[%s11826_s2 + $0x138] sm:$0xff] }
 0x897   :  { %2910 = vmatpush1.msra.mxu1 %v2836_v52  ;;  %2973 = vmatprep.mubr.f32.mxu1 %v11832_v3  ;;  %v3074_v52 = vld [vmem:[%s11826_s2 + $0x128] sm:$0xff] }
 0x898   :  { %2911 = vmatprep.subr.mxu1 %v2833_v54  ;;  %v3075_v54 = vld [vmem:[%s11826_s2 + $0x130] sm:$0xff]  ;;  %3210 = vmatprep.subr.mxu0 %v3074_v52  ;;  %v3146_v52 = vld [vmem:[%s11826_s2 + $0x368] sm:$0xff] }
 0x899   :  { %2912 = vmatpush1.msra.mxu1 %v2832_v50  ;;  %v3073_v50 = vld [vmem:[%s11826_s2 + $0x120] sm:$0xff] }
 0x89a   :  { %2913 = vmatprep.subr.mxu1 %v2829_v56  ;;  %v3072_v56 = vld [vmem:[%s11826_s2 + $0x118] sm:$0xff]  ;;  %3211 = vmatpush1.msra.mxu0 %v3073_v50  ;;  %v3145_v50 = vld [vmem:[%s11826_s2 + $0x360] sm:$0xff] }
 0x89b   :  { %2914 = vmatpush1.msra.mxu1 %v2828_v60  ;;  %v3070_v60 = vld [vmem:[%s11826_s2 + $0x108] sm:$0xff] }
 0x89c   :  { %2915 = vmatprep.subr.mxu1 %v2825_v20  ;;  %v3071_v20 = vld [vmem:[%s11826_s2 + $0x110] sm:$0xff]  ;;  %3212 = vmatprep.subr.mxu0 %v3070_v60  ;;  %v3142_v60 = vld [vmem:[%s11826_s2 + $0x348] sm:$0xff] }
 0x89d   :  { %2916 = vmatpush1.msra.mxu1 %v2824_v58  ;;  %v3069_v58 = vld [vmem:[%s11826_s2 + $0x100] sm:$0xff] }
 0x89e   :  { %2917 = vmatprep.subr.mxu1 %v2821_v62  ;;  %v3068_v62 = vld [vmem:[%s11826_s2 + $0xf8] sm:$0xff]  ;;  %3213 = vmatpush1.msra.mxu0 %v3069_v58  ;;  %v3141_v58 = vld [vmem:[%s11826_s2 + $0x340] sm:$0xff] }
 0x89f   :  { %2918 = vmatpush1.msra.mxu1 %v2820_v4  ;;  %v3066_v4 = vld [vmem:[%s11826_s2 + $0xe8] sm:$0xff] }
 0x8a0   :  { %2919 = vmatprep.subr.mxu1 %v2817_v6  ;;  %v3067_v6 = vld [vmem:[%s11826_s2 + $0xf0] sm:$0xff]  ;;  %3214 = vmatprep.subr.mxu0 %v3066_v4  ;;  %v3138_v4 = vld [vmem:[%s11826_s2 + $0x328] sm:$0xff] }
 0x8a1   :  { %2920 = vmatpush1.msra.mxu1 %v2816_v1  ;;  %v3065_v1 = vld [vmem:[%s11826_s2 + $0xe0] sm:$0xff] }
 0x8a2   :  { %2921 = vmatprep.subr.mxu1 %v2813_v8  ;;  %v3064_v8 = vld [vmem:[%s11826_s2 + $0xd8] sm:$0xff]  ;;  %3215 = vmatpush1.msra.mxu0 %v3065_v1  ;;  %v3137_v1 = vld [vmem:[%s11826_s2 + $0x320] sm:$0xff] }
 0x8a3   :  { %2922 = vmatpush1.msra.mxu1 %v2812_v10  ;;  %v3062_v10 = vld [vmem:[%s11826_s2 + $0xc8] sm:$0xff] }
 0x8a4   :  { %2923 = vmatprep.subr.mxu1 %v2809_v12  ;;  %v3063_v12 = vld [vmem:[%s11826_s2 + $0xd0] sm:$0xff]  ;;  %3216 = vmatprep.subr.mxu0 %v3062_v10  ;;  %v3134_v10 = vld [vmem:[%s11826_s2 + $0x308] sm:$0xff] }
 0x8a5   :  { %2924 = vmatpush1.msra.mxu1 %v2808_v14  ;;  %v3061_v14 = vld [vmem:[%s11826_s2 + $0xc0] sm:$0xff] }
 0x8a6   :  { %2925 = vmatprep.subr.mxu1 %v2805_v18  ;;  %v3060_v18 = vld [vmem:[%s11826_s2 + $0xb8] sm:$0xff]  ;;  %3217 = vmatpush1.msra.mxu0 %v3061_v14  ;;  %v3133_v14 = vld [vmem:[%s11826_s2 + $0x300] sm:$0xff] }
 0x8a7   :  { %2926 = vmatpush1.msra.mxu1 %v2804_v22  ;;  %v3058_v22 = vld [vmem:[%s11826_s2 + $0xa8] sm:$0xff] }
 0x8a8   :  { %2927 = vmatprep.subr.mxu1 %v2801_v28  ;;  %v3059_v28 = vld [vmem:[%s11826_s2 + $0xb0] sm:$0xff]  ;;  %3218 = vmatprep.subr.mxu0 %v3058_v22  ;;  %v3130_v22 = vld [vmem:[%s11826_s2 + $0x2e8] sm:$0xff] }
 0x8a9   :  { %2928 = vmatpush1.msra.mxu1 %v2800_v30  ;;  %v3057_v30 = vld [vmem:[%s11826_s2 + $0xa0] sm:$0xff] }
 0x8aa   :  { %2929 = vmatprep.subr.mxu1 %v2797_v2  ;;  %v3056_v2 = vld [vmem:[%s11826_s2 + $0x98] sm:$0xff]  ;;  %3219 = vmatpush1.msra.mxu0 %v3057_v30  ;;  %v3129_v30 = vld [vmem:[%s11826_s2 + $0x2e0] sm:$0xff] }
 0x8ab   :  { %2930 = vmatpush1.msra.mxu1 %v2796_v5  ;;  %v3054_v5 = vld [vmem:[%s11826_s2 + $0x88] sm:$0xff] }
 0x8ac   :  { %2931 = vmatprep.subr.mxu1 %v2793_v7  ;;  %v3055_v7 = vld [vmem:[%s11826_s2 + $0x90] sm:$0xff]  ;;  %3220 = vmatprep.subr.mxu0 %v3054_v5  ;;  %v3126_v5 = vld [vmem:[%s11826_s2 + $0x2c8] sm:$0xff] }
 0x8ad   :  { %2932 = vmatpush1.msra.mxu1 %v2792_v9  ;;  %v3053_v9 = vld [vmem:[%s11826_s2 + $0x80] sm:$0xff] }
 0x8ae   :  { %2933 = vmatprep.subr.mxu1 %v2789_v11  ;;  %v3052_v11 = vld [vmem:[%s11826_s2 + $0x78] sm:$0xff]  ;;  %3221 = vmatpush1.msra.mxu0 %v3053_v9  ;;  %v3125_v9 = vld [vmem:[%s11826_s2 + $0x2c0] sm:$0xff] }
 0x8af   :  { %2934 = vmatpush1.msra.mxu1 %v2788_v13  ;;  %v3050_v13 = vld [vmem:[%s11826_s2 + $0x68] sm:$0xff] }
 0x8b0   :  { %2935 = vmatprep.subr.mxu1 %v2785_v15  ;;  %v3051_v15 = vld [vmem:[%s11826_s2 + $0x70] sm:$0xff]  ;;  %3222 = vmatprep.subr.mxu0 %v3050_v13  ;;  %v3122_v13 = vld [vmem:[%s11826_s2 + $0x2a8] sm:$0xff] }
 0x8b1   :  { %2936 = vmatpush1.msra.mxu1 %v2784_v17  ;;  %v3049_v17 = vld [vmem:[%s11826_s2 + $0x60] sm:$0xff] }
 0x8b2   :  { %2937 = vmatprep.subr.mxu1 %v2781_v19  ;;  %v3048_v19 = vld [vmem:[%s11826_s2 + $0x58] sm:$0xff]  ;;  %3223 = vmatpush1.msra.mxu0 %v3049_v17  ;;  %v3121_v17 = vld [vmem:[%s11826_s2 + $0x2a0] sm:$0xff] }
 0x8b3   :  { %2938 = vmatpush1.msra.mxu1 %v2780_v23  ;;  %v3046_v23 = vld [vmem:[%s11826_s2 + $0x48] sm:$0xff] }
 0x8b4   :  { %2939 = vmatprep.subr.mxu1 %v2777_v25  ;;  %v3047_v25 = vld [vmem:[%s11826_s2 + $0x50] sm:$0xff]  ;;  %3224 = vmatprep.subr.mxu0 %v3046_v23  ;;  %v3118_v23 = vld [vmem:[%s11826_s2 + $0x288] sm:$0xff] }
 0x8b5   :  { %2940 = vmatpush1.msra.mxu1 %v2776_v31  ;;  %v3045_v31 = vld [vmem:[%s11826_s2 + $0x40] sm:$0xff] }
 0x8b6   :  { %2974 = vmatmul.mubr.f32.vlgmr.msra.gmra.mxu1 %v8978_v27  ;;  %3269 = vmatprep.subr.mxu1 %v3100_v33  ;;  %v3096_v27 = vld [vmem:[%s11826_s2 + $0x1d8] sm:$0xff] }
 0x8b7   :  { %3270 = vmatpush1.msra.mxu1 %v3099_v29  ;;  %v3044_v33 = vld [vmem:[%s11826_s2 + $0x38] sm:$0xff]  ;;  %3225 = vmatpush1.msra.mxu0 %v3045_v31  ;;  %v3043_v29 = vld [vmem:[%s11826_s2 + $0x30] sm:$0xff]  ;;  %v3117_v31 = vld [vmem:[%s11826_s2 + $0x280] sm:$0xff] }
 0x8b8   :  { %3271 = vmatprep.subr.mxu1 %v3096_v27  ;;  %3226 = vmatprep.subr.mxu0 %v3042_v41  ;;  %v3040_v27 = vld [vmem:[%s11826_s2 + $0x18] sm:$0xff]  ;;  %v3114_v41 = vld [vmem:[%s11826_s2 + $0x268] sm:$0xff] }
 0x8b9   :  { %3272 = vmatpush1.msra.mxu1 %v3095_v37  ;;  %3227 = vmatpush1.msra.mxu0 %v3041_v45  ;;  %v3039_v37 = vld [vmem:[%s11826_s2 + $0x10] sm:$0xff]  ;;  %v3113_v45 = vld [vmem:[%s11826_s2 + $0x260] sm:$0xff] }
 0x8ba   :  { %3273 = vmatprep.subr.mxu1 %v3092_v35  ;;  %3228 = vmatprep.subr.mxu0 %v3038_v49  ;;  %v3164_v35 = vld [vmem:[%s11826_s2 + $0x3f8] sm:$0xff]  ;;  %v3110_v49 = vld [vmem:[%s11826_s2 + $0x248] sm:$0xff] }
 0x8bb   :  { %3274 = vmatpush1.msra.mxu1 %v3091_v16  ;;  %3229 = vmatpush1.msra.mxu0 %v3037_v51  ;;  %v3163_v16 = vld [vmem:[%s11826_s2 + $0x3f0] sm:$0xff]  ;;  %v3109_v51 = vld [vmem:[%s11826_s2 + $0x240] sm:$0xff] }
 0x8bc   :  { %3275 = vmatprep.subr.mxu1 %v3088_v47  ;;  %3230 = vmatprep.subr.mxu0 %v3162_v53  ;;  %v3160_v47 = vld [vmem:[%s11826_s2 + $0x3d8] sm:$0xff]  ;;  %v3106_v53 = vld [vmem:[%s11826_s2 + $0x228] sm:$0xff] }
 0x8bd   :  { %3276 = vmatpush1.msra.mxu1 %v3087_v61  ;;  %3231 = vmatpush2.msra.mxu0 %v3161_v55  ;;  %v3159_v61 = vld [vmem:[%s11826_s2 + $0x3d0] sm:$0xff]  ;;  %v3105_v55 = vld [vmem:[%s11826_s2 + $0x220] sm:$0xff] }
 0x8be   :  { %3277 = vmatprep.subr.mxu1 %v3084_v24  ;;  %3232 = vmatprep.subr.mxu0 %v3158_v57  ;;  %v3156_v24 = vld [vmem:[%s11826_s2 + $0x3b8] sm:$0xff]  ;;  %v3102_v57 = vld [vmem:[%s11826_s2 + $0x208] sm:$0xff] }
 0x8bf   :  { %3278 = vmatpush1.msra.mxu1 %v3083_v34  ;;  %3233 = vmatpush2.msra.mxu0 %v3157_v63  ;;  %v3155_v34 = vld [vmem:[%s11826_s2 + $0x3b0] sm:$0xff]  ;;  %v3101_v63 = vld [vmem:[%s11826_s2 + $0x200] sm:$0xff] }
 0x8c0   :  { %3279 = vmatprep.subr.mxu1 %v3080_v38  ;;  %3234 = vmatprep.subr.mxu0 %v3154_v32  ;;  %v3152_v38 = vld [vmem:[%s11826_s2 + $0x398] sm:$0xff]  ;;  %v5560_v32 = vld [vmem:[#allocation3] ss:$0 sm:$0xff] }
 0x8c1   :  { %3280 = vmatpush1.msra.mxu1 %v3079_v44  ;;  %3235 = vmatpush2.msra.mxu0 %v3153_v0  ;;  %v3151_v44 = vld [vmem:[%s11826_s2 + $0x390] sm:$0xff] }
 0x8c2   :  { %3281 = vmatprep.subr.mxu1 %v3076_v48  ;;  %3236 = vmatprep.subr.mxu0 %v3150_v40  ;;  %v3148_v48 = vld [vmem:[%s11826_s2 + $0x378] sm:$0xff]  ;;  %v2904_v40 = vpop.f32.mrf.mxu0 }
 0x8c3   :  { %3282 = vmatpush1.msra.mxu1 %v3075_v54  ;;  %3237 = vmatpush2.msra.mxu0 %v3149_v46  ;;  %v3147_v54 = vld [vmem:[%s11826_s2 + $0x370] sm:$0xff] }
 0x8c4   :  { %3283 = vmatprep.subr.mxu1 %v3072_v56  ;;  %3238 = vmatprep.subr.mxu0 %v3146_v52  ;;  %v3144_v56 = vld [vmem:[%s11826_s2 + $0x358] sm:$0xff] }
 0x8c5   :  { %3284 = vmatpush1.msra.mxu1 %v3071_v20  ;;  %3239 = vmatpush2.msra.mxu0 %v3145_v50  ;;  %v3143_v20 = vld [vmem:[%s11826_s2 + $0x350] sm:$0xff] }
 0x8c6   :  { %3285 = vmatprep.subr.mxu1 %v3068_v62  ;;  %3240 = vmatprep.subr.mxu0 %v3142_v60  ;;  %v3140_v62 = vld [vmem:[%s11826_s2 + $0x338] sm:$0xff]  ;;  %v5562_v60 = vld [vmem:[%s11827_s0 + $0x20] sm:$0xff] }
 0x8c7   :  { %3286 = vmatpush1.msra.mxu1 %v3067_v6  ;;  %3241 = vmatpush2.msra.mxu0 %v3141_v58  ;;  %v3139_v6 = vld [vmem:[%s11826_s2 + $0x330] sm:$0xff] }
 0x8c8   :  { %3287 = vmatprep.subr.mxu1 %v3064_v8  ;;  %3242 = vmatprep.subr.mxu0 %v3138_v4  ;;  %v3136_v8 = vld [vmem:[%s11826_s2 + $0x318] sm:$0xff] }
 0x8c9   :  { %3288 = vmatpush1.msra.mxu1 %v3063_v12  ;;  %3243 = vmatpush2.msra.mxu0 %v3137_v1  ;;  %v3135_v12 = vld [vmem:[%s11826_s2 + $0x310] sm:$0xff] }
 0x8ca   :  { %3289 = vmatprep.subr.mxu1 %v3060_v18  ;;  %3244 = vmatprep.subr.mxu0 %v3134_v10  ;;  %v3132_v18 = vld [vmem:[%s11826_s2 + $0x2f8] sm:$0xff] }
 0x8cb   :  { %3290 = vmatpush1.msra.mxu1 %v3059_v28  ;;  %3245 = vmatpush2.msra.mxu0 %v3133_v14  ;;  %v3131_v28 = vld [vmem:[%s11826_s2 + $0x2f0] sm:$0xff] }
 0x8cc   :  { %3291 = vmatprep.subr.mxu1 %v3056_v2  ;;  %3246 = vmatprep.subr.mxu0 %v3130_v22  ;;  %v3128_v2 = vld [vmem:[%s11826_s2 + $0x2d8] sm:$0xff] }
 0x8cd   :  { %3292 = vmatpush1.msra.mxu1 %v3055_v7  ;;  %3247 = vmatpush2.msra.mxu0 %v3129_v30  ;;  %v3127_v7 = vld [vmem:[%s11826_s2 + $0x2d0] sm:$0xff] }
 0x8ce   :  { %3293 = vmatprep.subr.mxu1 %v3052_v11  ;;  %3248 = vmatprep.subr.mxu0 %v3126_v5  ;;  %v3124_v11 = vld [vmem:[%s11826_s2 + $0x2b8] sm:$0xff] }
 0x8cf   :  { %3294 = vmatpush1.msra.mxu1 %v3051_v15  ;;  %3249 = vmatpush2.msra.mxu0 %v3125_v9  ;;  %v3123_v15 = vld [vmem:[%s11826_s2 + $0x2b0] sm:$0xff] }
 0x8d0   :  { %3295 = vmatprep.subr.mxu1 %v3048_v19  ;;  %3250 = vmatprep.subr.mxu0 %v3122_v13  ;;  %v3120_v19 = vld [vmem:[%s11826_s2 + $0x298] sm:$0xff] }
 0x8d1   :  { %3296 = vmatpush1.msra.mxu1 %v3047_v25  ;;  %3251 = vmatpush2.msra.mxu0 %v3121_v17  ;;  %v3119_v25 = vld [vmem:[%s11826_s2 + $0x290] sm:$0xff] }
 0x8d2   :  { %3297 = vmatprep.subr.mxu1 %v3044_v33  ;;  %v3116_v33 = vld [vmem:[%s11826_s2 + $0x278] sm:$0xff]  ;;  %3252 = vmatprep.subr.mxu0 %v3118_v23 }
 0x8d3   :  { %3298 = vmatpush1.msra.mxu1 %v3043_v29  ;;  %v3115_v29 = vld [vmem:[%s11826_s2 + $0x270] sm:$0xff]  ;;  %3253 = vmatpush2.msra.mxu0 %v3117_v31  ;;  %v3521_v31 = vld [vmem:[%s11825_s1 + $0x1e0] sm:$0xff] }
 0x8d4   :  { %3299 = vmatprep.subr.mxu1 %v3040_v27  ;;  %v3112_v27 = vld [vmem:[%s11826_s2 + $0x258] sm:$0xff]  ;;  %3254 = vmatprep.subr.mxu0 %v3114_v41  ;;  %v3514_v41 = vld [vmem:[%s11825_s1 + $0x1a8] sm:$0xff] }
 0x8d5   :  { %3300 = vmatpush1.msra.mxu1 %v3039_v37  ;;  %v3111_v37 = vld [vmem:[%s11826_s2 + $0x250] sm:$0xff]  ;;  %3255 = vmatpush2.msra.mxu0 %v3113_v45  ;;  %v3510_v45 = vld [vmem:[%s11825_s1 + $0x188] sm:$0xff] }
 0x8d6   :  { %3301 = vmatprep.subr.mxu1 %v3164_v35  ;;  %v3108_v35 = vld [vmem:[%s11826_s2 + $0x238] sm:$0xff]  ;;  %3256 = vmatprep.subr.mxu0 %v3110_v49  ;;  %v3506_v49 = vld [vmem:[%s11825_s1 + $0x168] sm:$0xff] }
 0x8d7   :  { %3302 = vmatpush2.msra.mxu1 %v3163_v16  ;;  %v3107_v16 = vld [vmem:[%s11826_s2 + $0x230] sm:$0xff]  ;;  %3257 = vmatpush2.msra.mxu0 %v3109_v51  ;;  %v3502_v51 = vld [vmem:[%s11825_s1 + $0x148] sm:$0xff] }
 0x8d8   :  { %3303 = vmatprep.subr.mxu1 %v3160_v47  ;;  %v3104_v47 = vld [vmem:[%s11826_s2 + $0x218] sm:$0xff]  ;;  %3258 = vmatprep.subr.mxu0 %v3106_v53  ;;  %v3498_v53 = vld [vmem:[%s11825_s1 + $0x128] sm:$0xff] }
 0x8d9   :  { %3304 = vmatpush2.msra.mxu1 %v3159_v61  ;;  %v3103_v61 = vld [vmem:[%s11826_s2 + $0x210] sm:$0xff]  ;;  %3259 = vmatpush2.msra.mxu0 %v3105_v55  ;;  %v3494_v55 = vld [vmem:[%s11825_s1 + $0x108] sm:$0xff] }
 0x8da   :  { %3305 = vmatprep.subr.mxu1 %v3156_v24  ;;  %3260 = vmatprep.subr.mxu0 %v3102_v57  ;;  %v3522_v24 = vld [vmem:[%s11825_s1 + $0x1e8] sm:$0xff] }
 0x8db   :  { %3306 = vmatpush2.msra.mxu1 %v3155_v34  ;;  %3261 = vmatpush2.msra.mxu0 %v3101_v63  ;;  %v3490_v57 = vld [vmem:[%s11825_s1 + $0xe8] sm:$0xff] }
 0x8dc   :  { %3307 = vmatprep.subr.mxu1 %v3152_v38  ;;  %5878 = vmatprep.subr.mxu0 %v11832_v3  ;;  %v3486_v63 = vld [vmem:[%s11825_s1 + $0xc8] sm:$0xff] }
 0x8dd   :  { %3308 = vmatpush2.msra.mxu1 %v3151_v44  ;;  %v2906_v44 = vpop.f32.mrf.mxu0 }
 0x8de   :  { %3309 = vmatprep.subr.mxu1 %v3148_v48  ;;  %v2984_v48 = vcombine.low %v2904_v40, %v2906_v44  ;;  %v3474_v40 = vld [vmem:[%s11825_s1 + $0x68] sm:$0xff]  ;;  %v3473_v44 = vld [vmem:[%s11825_s1 + $0x60] sm:$0xff] }
 0x8df   :  { %3310 = vmatpush2.msra.mxu1 %v3147_v54 }
 0x8e0   :  { %3311 = vmatprep.subr.mxu1 %v3144_v56  ;;  %v2992_v50 = vrot.slane %v2984_v48, %v6997_v26  ;;  %v3469_v48 = vld [vmem:[%s11825_s1 + $0x40] sm:$0xff] }
 0x8e1   :  { %3312 = vmatpush2.msra.mxu1 %v3143_v20 }
 0x8e2   :  { %3313 = vmatprep.subr.mxu1 %v3140_v62 }
 0x8e3   :  { %3314 = vmatpush2.msra.mxu1 %v3139_v6 }
 0x8e4   :  { %3315 = vmatprep.subr.mxu1 %v3136_v8 }
 0x8e5   :  { %3316 = vmatpush2.msra.mxu1 %v3135_v12 }
 0x8e6   :  { %3317 = vmatprep.subr.mxu1 %v3132_v18 }
 0x8e7   :  { %3318 = vmatpush2.msra.mxu1 %v3131_v28 }
 0x8e8   :  { %3319 = vmatprep.subr.mxu1 %v3128_v2 }
 0x8e9   :  { %3320 = vmatpush2.msra.mxu1 %v3127_v7 }
 0x8ea   :  { %3321 = vmatprep.subr.mxu1 %v3124_v11 }
 0x8eb   :  { %3322 = vmatpush2.msra.mxu1 %v3123_v15 }
 0x8ec   :  { %3323 = vmatprep.subr.mxu1 %v3120_v19 }
 0x8ed   :  { %3324 = vmatpush2.msra.mxu1 %v3119_v25 }
 0x8ee   :  { %3325 = vmatprep.subr.mxu1 %v3116_v33  ;;  %v3517_v33 = vld [vmem:[%s11825_s1 + $0x1c0] sm:$0xff] }
 0x8ef   :  { %3326 = vmatpush2.msra.mxu1 %v3115_v29  ;;  %v3513_v29 = vld [vmem:[%s11825_s1 + $0x1a0] sm:$0xff] }
 0x8f0   :  { %3327 = vmatprep.subr.mxu1 %v3112_v27  ;;  %v3509_v27 = vld [vmem:[%s11825_s1 + $0x180] sm:$0xff] }
 0x8f1   :  { %3328 = vmatpush2.msra.mxu1 %v3111_v37  ;;  %v3505_v37 = vld [vmem:[%s11825_s1 + $0x160] sm:$0xff] }
 0x8f2   :  { %3329 = vmatprep.subr.mxu1 %v3108_v35  ;;  %v3501_v35 = vld [vmem:[%s11825_s1 + $0x140] sm:$0xff] }
 0x8f3   :  { %3330 = vmatpush2.msra.mxu1 %v3107_v16  ;;  %v3497_v16 = vld [vmem:[%s11825_s1 + $0x120] sm:$0xff] }
 0x8f4   :  { %3331 = vmatprep.subr.mxu1 %v3104_v47  ;;  %v3493_v47 = vld [vmem:[%s11825_s1 + $0x100] sm:$0xff] }
 0x8f5   :  { %3332 = vmatpush2.msra.mxu1 %v3103_v61  ;;  %v3489_v61 = vld [vmem:[%s11825_s1 + $0xe0] sm:$0xff] }
 0x8f6   :  { %3525 = vmatprep.subr.mxu1 %v3522_v24  ;;  %v3485_v24 = vld [vmem:[%s11825_s1 + $0xc0] sm:$0xff] }
 0x956   :  { %v2766_v34 = vpop.f32.mrf.mxu1 }
 0x957   :  { %v2767_v0 = vadd.f32 %v5560_v32, %v2766_v34  ;;  %v3482_v32 = vld [vmem:[%s11825_s1 + $0xa8] sm:$0xff]  ;;  %v3481_v34 = vld [vmem:[%s11825_s1 + $0xa0] sm:$0xff] }
 0x958   :  { %v5877_v38 = vpop.f32.mrf.mxu1 }
 0x959   :  { %5561 = vst.msk [vmem:[%s11831_s6 + $0x6] sm:$0x3] %vm709_vm1, %v2767_v0  ;;  %v3478_v0 = vld [vmem:[%s11825_s1 + $0x88] sm:$0xff]  ;;  %v3477_v38 = vld [vmem:[%s11825_s1 + $0x80] sm:$0xff] }
 0x976   :  { %v2975_v46 = vpop.f32.mrf.mxu1 }
 0x978   :  { %v2977_v52 = vpop.f32.mrf.mxu1 }
 0x979   :  { %v2985_v54 = vcombine.low %v2975_v46, %v2977_v52  ;;  %v3470_v46 = vld [vmem:[%s11825_s1 + $0x48] sm:$0xff] }
 0x97a   :  { %v3466_v52 = vld [vmem:[%s11825_s1 + $0x28] sm:$0xff] }
 0x97b   :  { %v2999_v56 = vrot.slane %v2985_v54, %v6997_v26  ;;  %v3465_v54 = vld [vmem:[%s11825_s1 + $0x20] sm:$0xff] }
 0x97d   :  { %v3000_v20 = vcombine.low %v2992_v50, %v2999_v56  ;;  %v3462_v50 = vld [vmem:[%s11825_s1 + $0x8] sm:$0xff]  ;;  %v3461_v56 = vld [vmem:[%s11825_s1] sm:$0xff] }
 0x97f   :  { %v3002_v58 = vadd.f32 %v5562_v60, %v3000_v20  ;;  %v3379_v60 = vld [vmem:[%s11828_s4 + $0x78] sm:$0xff]  ;;  %v3378_v20 = vld [vmem:[%s11828_s4 + $0x70] sm:$0xff] }
 0x981   :  { %v5563_v62 = vmul.f32 -1.442695, %v3002_v58  ;;  %v3010_v4 = vrot.slane %v3002_v58, 2  ;;  %v3021_v1 = vrot.slane %v3002_v58, 6  ;;  %v3018_v12 = vrot.slane %v3002_v58, 4  ;;  %v3377_v58 = vld [vmem:[%s11828_s4 + $0x68] sm:$0xff] }
 0x983   :  { %6149 = vpow2.f32 %v5563_v62  ;;  %v5564_v6 = vmul.f32 -1.442695, %v3010_v4  ;;  %v5565_v8 = vmul.f32 -1.442695, %v3021_v1  ;;  %v3376_v62 = vld [vmem:[%s11828_s4 + $0x60] sm:$0xff]  ;;  %v3375_v4 = vld [vmem:[%s11828_s4 + $0x58] sm:$0xff] }
 0x984   :  { %v3373_v1 = vld [vmem:[%s11828_s4 + $0x48] sm:$0xff] }
 0x985   :  { %6151 = vpow2.f32 %v5564_v6  ;;  %v3374_v6 = vld [vmem:[%s11828_s4 + $0x50] sm:$0xff] }
 0x986   :  { %6153 = vpow2.f32 %v5565_v8  ;;  %v3372_v8 = vld [vmem:[%s11828_s4 + $0x40] sm:$0xff] }
 0x990   :  { %v6150_v10 = vpop.eup %6149 }
 0x991   :  { %v3006_v14 = vadd.f32 1.0, %v6150_v10  ;;  %v3371_v10 = vld [vmem:[%s11828_s4 + $0x38] sm:$0xff] }
 0x992   :  { %v6152_v18 = vpop.eup %6151 }
 0x993   :  { %6155 = vrcp.f32 %v3006_v14  ;;  %v3015_v22 = vadd.f32 1.0, %v6152_v18  ;;  %v6154_v28 = vpop.eup %6153  ;;  %v3369_v14 = vld [vmem:[%s11828_s4 + $0x28] sm:$0xff]  ;;  %v3368_v18 = vld [vmem:[%s11828_s4 + $0x20] sm:$0xff] }
 0x994   :  { %6157 = vtanh.f32 %v3018_v12  ;;  %v3026_v7 = vadd.f32 1.0, %v6154_v28  ;;  %v3370_v12 = vld [vmem:[%s11828_s4 + $0x30] sm:$0xff] }
 0x995   :  { %6159 = vrcp.f32 %v3015_v22  ;;  %v3367_v22 = vld [vmem:[%s11828_s4 + $0x18] sm:$0xff]  ;;  %v3366_v28 = vld [vmem:[%s11828_s4 + $0x10] sm:$0xff] }
 0x996   :  { %6161 = vrcp.f32 %v3026_v7  ;;  %v3165_v7 = vld [vmem:[%s11830_s3] sm:$0xf] }
 0x9a0   :  { %v6156_v30 = vpop.eup %6155 }
 0x9a1   :  { %v6158_v2 = vpop.eup %6157 }
 0x9a2   :  { %v6160_v5 = vpop.eup %6159  ;;  %v3030_v11 = vmul.f32 %v6158_v2, %v6156_v30  ;;  %v3365_v30 = vld [vmem:[%s11828_s4 + $0x8] sm:$0xff]  ;;  %v3364_v2 = vld [vmem:[%s11828_s4] sm:$0xff] }
 0x9a3   :  { %v3029_v9 = vmul.f32 %v6160_v5, %v8975_v21  ;;  %v6162_v15 = vpop.eup %6161  ;;  %v3518_v21 = vld [vmem:[%s11825_s1 + $0x1c8] sm:$0xff]  ;;  %v3524_v5 = vld [vmem:[%s11825_s1 + $0x1f8] sm:$0xff] }
 0x9a5   :  { %v9648_v13 = vadd.f32 %v3030_v11, %v3029_v9  ;;  %v3170_v9 = vrot.slane %v3165_v7, %v7115_v39  ;;  %v3174_v11 = vrot.slane %v3165_v7, %v7121_v43 }
 0x9a7   :  { %6163 = vtanh.f32 %v9648_v13 }
 0x9b4   :  { %v6164_v17 = vpop.eup %6163 }
 0x9b5   :  { %v9651_v19 = vmul.f32 %v6164_v17, %v6162_v15 }
 0x9b7   :  { %3034 = vst [vmem:[#allocation2] sm:$0x3] %v9651_v19 }
 0x9be   :  { %v5566_v23 = vld.sshfl [vmem:[#allocation2] sm:$0x33 pattern:$0x76325410] }
 0x9bf   :  { %v3195_v25 = vcombine.high %v5566_v23, %v5566_v23 }
 0x9c1   :  { %3262 = vmatprep.mubr.f32.mxu0 %v3195_v25  ;;  %3333 = vmatprep.mubr.f32.mxu1 %v3195_v25 }
 0x9c2   :  { %3263 = vmatmul.mubr.f32.vlgmr.msra.gmra.mxu0 %v5566_v23  ;;  %3334 = vmatmul.mubr.f32.vlgmr.msra.gmra.mxu1 %v5566_v23 }
 0x9c3   :  { %3526 = vmatpush1.msra.mxu1 %v3521_v31  ;;  %3589 = vmatprep.mubr.f32.mxu1 %v11832_v3 }
 0x9c4   :  { %3527 = vmatprep.subr.mxu1 %v3518_v21  ;;  %5910 = vmatprep.mubr.msk.f32.mxu0 %vm6279_vm0, %v11832_v3 }
 0x9c5   :  { %3528 = vmatpush1.msra.mxu1 %v3517_v33  ;;  %5879 = vmatpush3.msra.mxu0 %v3379_v60  ;;  %v3507_v60 = vld [vmem:[%s11825_s1 + $0x170] sm:$0xff] }
 0x9c6   :  { %3529 = vmatprep.subr.mxu1 %v3514_v41  ;;  %5880 = vmatprep.subr.mxu0 %v11832_v3  ;;  %v3182_v41 = vrot.slane %v3165_v7, %v7126_v59 }
 0x9c7   :  { %3530 = vmatpush1.msra.mxu1 %v3513_v29  ;;  %5881 = vmatpush3.msra.mxu0 %v3378_v20  ;;  %v3504_v20 = vld [vmem:[%s11825_s1 + $0x158] sm:$0xff] }
 0x9c8   :  { %3531 = vmatprep.subr.mxu1 %v3510_v45  ;;  %5882 = vmatprep.subr.mxu0 %v11832_v3 }
 0x9c9   :  { %3532 = vmatpush1.msra.mxu1 %v3509_v27  ;;  %5883 = vmatpush3.msra.mxu0 %v3377_v58  ;;  %v3178_v27 = vrot.slane %v3165_v7, %v7130_v36  ;;  %v3503_v58 = vld [vmem:[%s11825_s1 + $0x150] sm:$0xff]  ;;  %v3472_v7 = vld [vmem:[%s11825_s1 + $0x58] sm:$0xff] }
 0x9ca   :  { %3533 = vmatprep.subr.mxu1 %v3506_v49  ;;  %5884 = vmatprep.subr.mxu0 %v11832_v3 }
 0x9cb   :  { %3534 = vmatpush1.msra.mxu1 %v3505_v37  ;;  %5885 = vmatpush3.msra.mxu0 %v3376_v62  ;;  %v3500_v62 = vld [vmem:[%s11825_s1 + $0x138] sm:$0xff] }
 0x9cc   :  { %3535 = vmatprep.subr.mxu1 %v3502_v51  ;;  %5886 = vmatprep.subr.mxu0 %v11832_v3 }
 0x9cd   :  { %3536 = vmatpush1.msra.mxu1 %v3501_v35  ;;  %5887 = vmatpush3.msra.mxu0 %v3375_v4  ;;  %v3499_v4 = vld [vmem:[%s11825_s1 + $0x130] sm:$0xff] }
 0x9ce   :  { %3537 = vmatprep.subr.mxu1 %v3498_v53  ;;  %5888 = vmatprep.subr.mxu0 %v11832_v3 }
 0x9cf   :  { %3538 = vmatpush1.msra.mxu1 %v3497_v16  ;;  %5889 = vmatpush3.msra.mxu0 %v3374_v6  ;;  %v3496_v6 = vld [vmem:[%s11825_s1 + $0x118] sm:$0xff] }
 0x9d0   :  { %3539 = vmatprep.subr.mxu1 %v3494_v55  ;;  %5890 = vmatprep.subr.mxu0 %v11832_v3 }
 0x9d1   :  { %3540 = vmatpush1.msra.mxu1 %v3493_v47  ;;  %5891 = vmatpush3.msra.mxu0 %v3373_v1  ;;  %v3495_v1 = vld [vmem:[%s11825_s1 + $0x110] sm:$0xff] }
 0x9d2   :  { %3541 = vmatprep.subr.mxu1 %v3490_v57  ;;  %5892 = vmatprep.subr.mxu0 %v11832_v3 }
 0x9d3   :  { %3542 = vmatpush1.msra.mxu1 %v3489_v61  ;;  %5893 = vmatpush3.msra.mxu0 %v3372_v8  ;;  %v3492_v8 = vld [vmem:[%s11825_s1 + $0xf8] sm:$0xff] }
 0x9d4   :  { %3543 = vmatprep.subr.mxu1 %v3486_v63  ;;  %5894 = vmatprep.subr.mxu0 %v11832_v3 }
 0x9d5   :  { %3544 = vmatpush1.msra.mxu1 %v3485_v24  ;;  %5895 = vmatpush3.msra.mxu0 %v3371_v10  ;;  %v3491_v10 = vld [vmem:[%s11825_s1 + $0xf0] sm:$0xff] }
 0x9d6   :  { %3545 = vmatprep.subr.mxu1 %v3482_v32  ;;  %5896 = vmatprep.subr.mxu0 %v11832_v3 }
 0x9d7   :  { %3546 = vmatpush1.msra.mxu1 %v3481_v34  ;;  %5897 = vmatpush3.msra.mxu0 %v3370_v12  ;;  %v3488_v12 = vld [vmem:[%s11825_s1 + $0xd8] sm:$0xff] }
 0x9d8   :  { %3547 = vmatprep.subr.mxu1 %v3478_v0  ;;  %5898 = vmatprep.subr.mxu0 %v11832_v3 }
 0x9d9   :  { %3548 = vmatpush1.msra.mxu1 %v3477_v38  ;;  %5899 = vmatpush3.msra.mxu0 %v3369_v14  ;;  %v3487_v14 = vld [vmem:[%s11825_s1 + $0xd0] sm:$0xff] }
 0x9da   :  { %3549 = vmatprep.subr.mxu1 %v3474_v40  ;;  %5900 = vmatprep.subr.mxu0 %v11832_v3 }
 0x9db   :  { %3550 = vmatpush1.msra.mxu1 %v3473_v44  ;;  %5901 = vmatpush3.msra.mxu0 %v3368_v18  ;;  %v3523_v44 = vld [vmem:[%s11825_s1 + $0x1f0] sm:$0xff]  ;;  %v3484_v18 = vld [vmem:[%s11825_s1 + $0xb8] sm:$0xff] }
 0x9dc   :  { %3551 = vmatprep.subr.mxu1 %v3470_v46  ;;  %5902 = vmatprep.subr.mxu0 %v11832_v3  ;;  %v3520_v46 = vld [vmem:[%s11825_s1 + $0x1d8] sm:$0xff] }
 0x9dd   :  { %3552 = vmatpush1.msra.mxu1 %v3469_v48  ;;  %5903 = vmatpush3.msra.mxu0 %v3367_v22  ;;  %v3516_v48 = vld [vmem:[%s11825_s1 + $0x1b8] sm:$0xff]  ;;  %v3483_v22 = vld [vmem:[%s11825_s1 + $0xb0] sm:$0xff] }
 0x9de   :  { %3553 = vmatprep.subr.mxu1 %v3466_v52  ;;  %5904 = vmatprep.subr.mxu0 %v11832_v3  ;;  %v3515_v52 = vld [vmem:[%s11825_s1 + $0x1b0] sm:$0xff] }
 0x9df   :  { %3554 = vmatpush1.msra.mxu1 %v3465_v54  ;;  %5905 = vmatpush3.msra.mxu0 %v3366_v28  ;;  %v3512_v54 = vld [vmem:[%s11825_s1 + $0x198] sm:$0xff] }
 0x9e0   :  { %3555 = vmatprep.subr.mxu1 %v3462_v50  ;;  %5906 = vmatprep.subr.mxu0 %v11832_v3  ;;  %v3511_v50 = vld [vmem:[%s11825_s1 + $0x190] sm:$0xff]  ;;  %v3480_v28 = vld [vmem:[%s11825_s1 + $0x98] sm:$0xff] }
 0x9e1   :  { %3556 = vmatpush1.msra.mxu1 %v3461_v56  ;;  %5907 = vmatpush3.msra.mxu0 %v3365_v30  ;;  %v3508_v56 = vld [vmem:[%s11825_s1 + $0x178] sm:$0xff]  ;;  %v3479_v30 = vld [vmem:[%s11825_s1 + $0x90] sm:$0xff] }
 0x9e2   :  { %3590 = vmatmul.mubr.f32.vlgmr.msra.gmra.mxu1 %v9651_v19  ;;  %5908 = vmatprep.subr.mxu0 %v11832_v3 }
 0x9e3   :  { %5909 = vmatpush3.msra.mxu0 %v3364_v2  ;;  %v3476_v2 = vld [vmem:[%s11825_s1 + $0x78] sm:$0xff] }
 0x9e4   :  { %3596 = vmatprep.subr.mxu0 %v3524_v5  ;;  %v3475_v5 = vld [vmem:[%s11825_s1 + $0x70] sm:$0xff] }
 0xa82   :  { %v3264_v15 = vpop.f32.mrf.mxu0  ;;  %v3335_v21 = vpop.f32.mrf.mxu1 }
 0xa83   :  { %v3265_v17 = vadd.f32 %v3264_v15, %v3170_v9  ;;  %v3336_v51 = vadd.f32 %v3335_v21, %v3178_v27  ;;  %v3471_v9 = vld [vmem:[%s11825_s1 + $0x50] sm:$0xff]  ;;  %v3779_v27 = vld [vmem:[%s11826_s2 + $0x1b8] sm:$0xff] }
 0xa84   :  { %v3266_v23 = vpop.f32.mrf.mxu0  ;;  %v3337_v29 = vpop.f32.mrf.mxu1  ;;  %v3467_v15 = vld [vmem:[%s11825_s1 + $0x30] sm:$0xff] }
 0xa85   :  { %v5567_v25 = vmul.f32 -1.442695, %v3265_v17  ;;  %v3267_v31 = vadd.f32 %v3266_v23, %v3174_v11  ;;  %v3338_v45 = vadd.f32 %v3337_v29, %v3182_v41  ;;  %v3468_v11 = vld [vmem:[%s11825_s1 + $0x38] sm:$0xff]  ;;  %v3463_v23 = vld [vmem:[%s11825_s1 + $0x10] sm:$0xff]  ;;  %v3781_v41 = vld [vmem:[%s11826_s2 + $0x1c8] sm:$0xff] }
 0xa86   :  { %v3464_v17 = vld [vmem:[%s11825_s1 + $0x18] sm:$0xff]  ;;  %v3786_v21 = vld [vmem:[%s11826_s2 + $0x1f0] sm:$0xff] }
 0xa87   :  { %6165 = vpow2.f32 %v5567_v25  ;;  %v5568_v33 = vmul.f32 -1.442695, %v3267_v31  ;;  %v5569_v49 = vmul.f32 -1.442695, %v3338_v45  ;;  %v3787_v25 = vld [vmem:[%s11826_s2 + $0x1f8] sm:$0xff]  ;;  %v3785_v31 = vld [vmem:[%s11826_s2 + $0x1e8] sm:$0xff] }
 0xa88   :  { %3885 = vmatprep.subr.mxu1 %v3785_v31  ;;  %v3782_v29 = vld [vmem:[%s11826_s2 + $0x1d0] sm:$0xff]  ;;  %v3780_v45 = vld [vmem:[%s11826_s2 + $0x1c0] sm:$0xff]  ;;  %v3729_v31 = vld [vmem:[%s11826_s2 + $0x28] sm:$0xff] }
 0xa89   :  { %6167 = vpow2.f32 %v5568_v33  ;;  %v3784_v33 = vld [vmem:[%s11826_s2 + $0x1e0] sm:$0xff] }
 0xa8a   :  { %6169 = vpow2.f32 %v5569_v49  ;;  %3886 = vmatpush1.msra.mxu1 %v3784_v33  ;;  %v3777_v49 = vld [vmem:[%s11826_s2 + $0x1a8] sm:$0xff]  ;;  %v3728_v33 = vld [vmem:[%s11826_s2 + $0x20] sm:$0xff] }
 0xa8b   :  { %3887 = vmatprep.subr.mxu1 %v3781_v41  ;;  %v3725_v41 = vld [vmem:[%s11826_s2 + $0x8] sm:$0xff] }
 0xa8c   :  { %3888 = vmatpush1.msra.mxu1 %v3780_v45  ;;  %v3724_v45 = vld [vmem:[%s11826_s2] sm:$0xff] }
 0xa8d   :  { %3889 = vmatprep.subr.mxu1 %v3777_v49  ;;  %v3849_v49 = vld [vmem:[%s11826_s2 + $0x3e8] sm:$0xff] }
 0xa94   :  { %v6166_v37 = vpop.eup %6165 }
 0xa95   :  { %v3343_v35 = vadd.f32 1.0, %v6166_v37  ;;  %v3778_v37 = vld [vmem:[%s11826_s2 + $0x1b0] sm:$0xff] }
 0xa96   :  { %v6168_v53 = vpop.eup %6167 }
 0xa97   :  { %6171 = vrcp.f32 %v3343_v35  ;;  %v3349_v16 = vadd.f32 1.0, %v6168_v53  ;;  %v6170_v55 = vpop.eup %6169  ;;  %v3775_v35 = vld [vmem:[%s11826_s2 + $0x198] sm:$0xff]  ;;  %v3773_v53 = vld [vmem:[%s11826_s2 + $0x188] sm:$0xff] }
 0xa98   :  { %6173 = vtanh.f32 %v3336_v51  ;;  %v3356_v63 = vadd.f32 1.0, %v6170_v55  ;;  %v3776_v51 = vld [vmem:[%s11826_s2 + $0x1a0] sm:$0xff] }
 0xa99   :  { %6175 = vrcp.f32 %v3349_v16  ;;  %3890 = vmatpush1.msra.mxu1 %v3776_v51  ;;  %v3774_v16 = vld [vmem:[%s11826_s2 + $0x190] sm:$0xff]  ;;  %v3772_v55 = vld [vmem:[%s11826_s2 + $0x180] sm:$0xff] }
 0xa9a   :  { %6177 = vrcp.f32 %v3356_v63  ;;  %3891 = vmatprep.subr.mxu1 %v3773_v53  ;;  %v3768_v63 = vld [vmem:[%s11826_s2 + $0x160] sm:$0xff]  ;;  %v3845_v53 = vld [vmem:[%s11826_s2 + $0x3c8] sm:$0xff] }
 0xa9b   :  { %3892 = vmatpush1.msra.mxu1 %v3772_v55  ;;  %v3848_v51 = vld [vmem:[%s11826_s2 + $0x3e0] sm:$0xff] }
 0xa9c   :  { %v3844_v55 = vld [vmem:[%s11826_s2 + $0x3c0] sm:$0xff] }
 0xaa4   :  { %v6172_v47 = vpop.eup %6171 }
 0xaa5   :  { %v6174_v57 = vpop.eup %6173 }
 0xaa6   :  { %v6176_v61 = vpop.eup %6175  ;;  %v3360_v24 = vmul.f32 %v6174_v57, %v6172_v47  ;;  %v3771_v47 = vld [vmem:[%s11826_s2 + $0x178] sm:$0xff]  ;;  %v3769_v57 = vld [vmem:[%s11826_s2 + $0x168] sm:$0xff] }
 0xaa7   :  { %v3359_v32 = vmul.f32 %v6176_v61, %v9152_v42  ;;  %v6178_v0 = vpop.eup %6177  ;;  %v3519_v42 = vld [vmem:[%s11825_s1 + $0x1d0] sm:$0xff]  ;;  %3893 = vmatprep.subr.mxu1 %v3769_v57  ;;  %v3841_v57 = vld [vmem:[%s11826_s2 + $0x3a8] sm:$0xff] }
 0xaa8   :  { %v3770_v61 = vld [vmem:[%s11826_s2 + $0x170] sm:$0xff]  ;;  %3894 = vmatpush1.msra.mxu1 %v3768_v63  ;;  %v3840_v63 = vld [vmem:[%s11826_s2 + $0x3a0] sm:$0xff] }
 0xaa9   :  { %v9825_v34 = vadd.f32 %v3360_v24, %v3359_v32  ;;  %v3767_v24 = vld [vmem:[%s11826_s2 + $0x158] sm:$0xff]  ;;  %v3765_v32 = vld [vmem:[%s11826_s2 + $0x148] sm:$0xff] }
 0xaaa   :  { %3895 = vmatprep.subr.mxu1 %v3765_v32  ;;  %v3837_v32 = vld [vmem:[%s11826_s2 + $0x388] sm:$0xff] }
 0xaab   :  { %6179 = vtanh.f32 %v9825_v34 }
 0xab8   :  { %v6180_v38 = vpop.eup %6179 }
 0xab9   :  { %v3363_v40 = vmul.f32 %v6180_v38, %v6178_v0  ;;  %v3766_v0 = vld [vmem:[%s11826_s2 + $0x150] sm:$0xff]  ;;  %v3764_v38 = vld [vmem:[%s11826_s2 + $0x140] sm:$0xff] }
 0xaba   :  { %3896 = vmatpush1.msra.mxu1 %v3764_v38  ;;  %v3836_v38 = vld [vmem:[%s11826_s2 + $0x380] sm:$0xff] }
 0xabb   :  { %5911 = vmatmul.mubr.f32.vlgmr.msra.gmra.mxu0 %v3363_v40  ;;  %3722 = vst [vmem:[#allocation2 + $0x2] sm:$0x3] %v3363_v40  ;;  %v3763_v40 = vld [vmem:[%s11826_s2 + $0x138] sm:$0xff] }
 0xabc   :  { %3597 = vmatpush1.msra.mxu0 %v3523_v44  ;;  %3660 = vmatprep.mubr.f32.mxu0 %v11832_v3  ;;  %v3761_v44 = vld [vmem:[%s11826_s2 + $0x128] sm:$0xff] }
 0xabd   :  { %3598 = vmatprep.subr.mxu0 %v3520_v46  ;;  %v3762_v46 = vld [vmem:[%s11826_s2 + $0x130] sm:$0xff]  ;;  %3897 = vmatprep.subr.mxu1 %v3761_v44  ;;  %v3833_v44 = vld [vmem:[%s11826_s2 + $0x368] sm:$0xff] }
 0xabe   :  { %3599 = vmatpush1.msra.mxu0 %v3519_v42  ;;  %v3760_v42 = vld [vmem:[%s11826_s2 + $0x120] sm:$0xff] }
 0xabf   :  { %3600 = vmatprep.subr.mxu0 %v3516_v48  ;;  %v3759_v48 = vld [vmem:[%s11826_s2 + $0x118] sm:$0xff]  ;;  %3898 = vmatpush1.msra.mxu1 %v3760_v42  ;;  %v3832_v42 = vld [vmem:[%s11826_s2 + $0x360] sm:$0xff] }
 0xac0   :  { %3601 = vmatpush1.msra.mxu0 %v3515_v52  ;;  %v3757_v52 = vld [vmem:[%s11826_s2 + $0x108] sm:$0xff] }
 0xac1   :  { %3602 = vmatprep.subr.mxu0 %v3512_v54  ;;  %v3758_v54 = vld [vmem:[%s11826_s2 + $0x110] sm:$0xff]  ;;  %3899 = vmatprep.subr.mxu1 %v3757_v52  ;;  %v3829_v52 = vld [vmem:[%s11826_s2 + $0x348] sm:$0xff] }
 0xac2   :  { %3603 = vmatpush1.msra.mxu0 %v3511_v50  ;;  %v3756_v50 = vld [vmem:[%s11826_s2 + $0x100] sm:$0xff] }
 0xac3   :  { %3604 = vmatprep.subr.mxu0 %v3508_v56  ;;  %v3755_v56 = vld [vmem:[%s11826_s2 + $0xf8] sm:$0xff]  ;;  %3900 = vmatpush1.msra.mxu1 %v3756_v50  ;;  %v3828_v50 = vld [vmem:[%s11826_s2 + $0x340] sm:$0xff] }
 0xac4   :  { %3605 = vmatpush1.msra.mxu0 %v3507_v60  ;;  %v3753_v60 = vld [vmem:[%s11826_s2 + $0xe8] sm:$0xff] }
 0xac5   :  { %3606 = vmatprep.subr.mxu0 %v3504_v20  ;;  %v3754_v20 = vld [vmem:[%s11826_s2 + $0xf0] sm:$0xff]  ;;  %3901 = vmatprep.subr.mxu1 %v3753_v60  ;;  %v3825_v60 = vld [vmem:[%s11826_s2 + $0x328] sm:$0xff] }
 0xac6   :  { %3607 = vmatpush1.msra.mxu0 %v3503_v58  ;;  %v3752_v58 = vld [vmem:[%s11826_s2 + $0xe0] sm:$0xff] }
 0xac7   :  { %3608 = vmatprep.subr.mxu0 %v3500_v62  ;;  %v3751_v62 = vld [vmem:[%s11826_s2 + $0xd8] sm:$0xff]  ;;  %3902 = vmatpush1.msra.mxu1 %v3752_v58  ;;  %v3824_v58 = vld [vmem:[%s11826_s2 + $0x320] sm:$0xff] }
 0xac8   :  { %3609 = vmatpush1.msra.mxu0 %v3499_v4  ;;  %v3749_v4 = vld [vmem:[%s11826_s2 + $0xc8] sm:$0xff] }
 0xac9   :  { %3610 = vmatprep.subr.mxu0 %v3496_v6  ;;  %v3750_v6 = vld [vmem:[%s11826_s2 + $0xd0] sm:$0xff]  ;;  %3903 = vmatprep.subr.mxu1 %v3749_v4  ;;  %v3821_v4 = vld [vmem:[%s11826_s2 + $0x308] sm:$0xff] }
 0xaca   :  { %3611 = vmatpush1.msra.mxu0 %v3495_v1  ;;  %v3748_v1 = vld [vmem:[%s11826_s2 + $0xc0] sm:$0xff] }
 0xacb   :  { %3612 = vmatprep.subr.mxu0 %v3492_v8  ;;  %v3747_v8 = vld [vmem:[%s11826_s2 + $0xb8] sm:$0xff]  ;;  %3904 = vmatpush1.msra.mxu1 %v3748_v1  ;;  %v3820_v1 = vld [vmem:[%s11826_s2 + $0x300] sm:$0xff] }
 0xacc   :  { %3613 = vmatpush1.msra.mxu0 %v3491_v10  ;;  %v3745_v10 = vld [vmem:[%s11826_s2 + $0xa8] sm:$0xff] }
 0xacd   :  { %3614 = vmatprep.subr.mxu0 %v3488_v12  ;;  %v3746_v12 = vld [vmem:[%s11826_s2 + $0xb0] sm:$0xff]  ;;  %3905 = vmatprep.subr.mxu1 %v3745_v10  ;;  %v3817_v10 = vld [vmem:[%s11826_s2 + $0x2e8] sm:$0xff] }
 0xace   :  { %3615 = vmatpush1.msra.mxu0 %v3487_v14  ;;  %v3744_v14 = vld [vmem:[%s11826_s2 + $0xa0] sm:$0xff] }
 0xacf   :  { %3616 = vmatprep.subr.mxu0 %v3484_v18  ;;  %v3743_v18 = vld [vmem:[%s11826_s2 + $0x98] sm:$0xff]  ;;  %3906 = vmatpush1.msra.mxu1 %v3744_v14  ;;  %v3816_v14 = vld [vmem:[%s11826_s2 + $0x2e0] sm:$0xff] }
 0xad0   :  { %3617 = vmatpush1.msra.mxu0 %v3483_v22  ;;  %v3741_v22 = vld [vmem:[%s11826_s2 + $0x88] sm:$0xff] }
 0xad1   :  { %3618 = vmatprep.subr.mxu0 %v3480_v28  ;;  %v3742_v28 = vld [vmem:[%s11826_s2 + $0x90] sm:$0xff]  ;;  %3907 = vmatprep.subr.mxu1 %v3741_v22  ;;  %v3813_v22 = vld [vmem:[%s11826_s2 + $0x2c8] sm:$0xff] }
 0xad2   :  { %3619 = vmatpush1.msra.mxu0 %v3479_v30  ;;  %v3740_v30 = vld [vmem:[%s11826_s2 + $0x80] sm:$0xff] }
 0xad3   :  { %3620 = vmatprep.subr.mxu0 %v3476_v2  ;;  %v3739_v2 = vld [vmem:[%s11826_s2 + $0x78] sm:$0xff]  ;;  %3908 = vmatpush1.msra.mxu1 %v3740_v30  ;;  %v3812_v30 = vld [vmem:[%s11826_s2 + $0x2c0] sm:$0xff] }
 0xad4   :  { %3621 = vmatpush1.msra.mxu0 %v3475_v5  ;;  %v3737_v5 = vld [vmem:[%s11826_s2 + $0x68] sm:$0xff] }
 0xad5   :  { %3622 = vmatprep.subr.mxu0 %v3472_v7  ;;  %v3738_v7 = vld [vmem:[%s11826_s2 + $0x70] sm:$0xff]  ;;  %3909 = vmatprep.subr.mxu1 %v3737_v5  ;;  %v3809_v5 = vld [vmem:[%s11826_s2 + $0x2a8] sm:$0xff] }
 0xad6   :  { %3623 = vmatpush1.msra.mxu0 %v3471_v9  ;;  %v3736_v9 = vld [vmem:[%s11826_s2 + $0x60] sm:$0xff] }
 0xad7   :  { %3624 = vmatprep.subr.mxu0 %v3468_v11  ;;  %v3735_v11 = vld [vmem:[%s11826_s2 + $0x58] sm:$0xff]  ;;  %3910 = vmatpush1.msra.mxu1 %v3736_v9  ;;  %v3808_v9 = vld [vmem:[%s11826_s2 + $0x2a0] sm:$0xff] }
 0xad8   :  { %3625 = vmatpush1.msra.mxu0 %v3467_v15  ;;  %v3733_v15 = vld [vmem:[%s11826_s2 + $0x48] sm:$0xff] }
 0xad9   :  { %3626 = vmatprep.subr.mxu0 %v3464_v17  ;;  %v3734_v17 = vld [vmem:[%s11826_s2 + $0x50] sm:$0xff]  ;;  %3911 = vmatprep.subr.mxu1 %v3733_v15  ;;  %v3805_v15 = vld [vmem:[%s11826_s2 + $0x288] sm:$0xff] }
 0xada   :  { %3627 = vmatpush1.msra.mxu0 %v3463_v23  ;;  %v3732_v23 = vld [vmem:[%s11826_s2 + $0x40] sm:$0xff] }
 0xadb   :  { %3661 = vmatmul.mubr.f32.vlgmr.msra.gmra.mxu0 %v9651_v19  ;;  %3956 = vmatprep.subr.mxu0 %v3787_v25  ;;  %v3783_v19 = vld [vmem:[%s11826_s2 + $0x1d8] sm:$0xff] }
 0xadc   :  { %3957 = vmatpush1.msra.mxu0 %v3786_v21  ;;  %v3731_v25 = vld [vmem:[%s11826_s2 + $0x38] sm:$0xff]  ;;  %3912 = vmatpush1.msra.mxu1 %v3732_v23  ;;  %v3730_v21 = vld [vmem:[%s11826_s2 + $0x30] sm:$0xff]  ;;  %v3804_v23 = vld [vmem:[%s11826_s2 + $0x280] sm:$0xff] }
 0xadd   :  { %3958 = vmatprep.subr.mxu0 %v3783_v19  ;;  %3913 = vmatprep.subr.mxu1 %v3729_v31  ;;  %v3727_v19 = vld [vmem:[%s11826_s2 + $0x18] sm:$0xff]  ;;  %v3801_v31 = vld [vmem:[%s11826_s2 + $0x268] sm:$0xff] }
 0xade   :  { %3959 = vmatpush1.msra.mxu0 %v3782_v29  ;;  %3914 = vmatpush1.msra.mxu1 %v3728_v33  ;;  %v3726_v29 = vld [vmem:[%s11826_s2 + $0x10] sm:$0xff]  ;;  %v3800_v33 = vld [vmem:[%s11826_s2 + $0x260] sm:$0xff] }
 0xadf   :  { %3960 = vmatprep.subr.mxu0 %v3779_v27  ;;  %3915 = vmatprep.subr.mxu1 %v3725_v41  ;;  %v3851_v27 = vld [vmem:[%s11826_s2 + $0x3f8] sm:$0xff]  ;;  %v3797_v41 = vld [vmem:[%s11826_s2 + $0x248] sm:$0xff] }
 0xae0   :  { %3961 = vmatpush1.msra.mxu0 %v3778_v37  ;;  %3916 = vmatpush1.msra.mxu1 %v3724_v45  ;;  %v3850_v37 = vld [vmem:[%s11826_s2 + $0x3f0] sm:$0xff]  ;;  %v3796_v45 = vld [vmem:[%s11826_s2 + $0x240] sm:$0xff] }
 0xae1   :  { %3962 = vmatprep.subr.mxu0 %v3775_v35  ;;  %3917 = vmatprep.subr.mxu1 %v3849_v49  ;;  %v3847_v35 = vld [vmem:[%s11826_s2 + $0x3d8] sm:$0xff]  ;;  %v3793_v49 = vld [vmem:[%s11826_s2 + $0x228] sm:$0xff] }
 0xae2   :  { %3963 = vmatpush1.msra.mxu0 %v3774_v16  ;;  %3918 = vmatpush2.msra.mxu1 %v3848_v51  ;;  %v3846_v16 = vld [vmem:[%s11826_s2 + $0x3d0] sm:$0xff]  ;;  %v3792_v51 = vld [vmem:[%s11826_s2 + $0x220] sm:$0xff] }
 0xae3   :  { %3964 = vmatprep.subr.mxu0 %v3771_v47  ;;  %3919 = vmatprep.subr.mxu1 %v3845_v53  ;;  %v3843_v47 = vld [vmem:[%s11826_s2 + $0x3b8] sm:$0xff]  ;;  %v3789_v53 = vld [vmem:[%s11826_s2 + $0x208] sm:$0xff] }
 0xae4   :  { %3965 = vmatpush1.msra.mxu0 %v3770_v61  ;;  %3920 = vmatpush2.msra.mxu1 %v3844_v55  ;;  %v3842_v61 = vld [vmem:[%s11826_s2 + $0x3b0] sm:$0xff]  ;;  %v3788_v55 = vld [vmem:[%s11826_s2 + $0x200] sm:$0xff] }
 0xae5   :  { %3966 = vmatprep.subr.mxu0 %v3767_v24  ;;  %3921 = vmatprep.subr.mxu1 %v3841_v57  ;;  %v3839_v24 = vld [vmem:[%s11826_s2 + $0x398] sm:$0xff]  ;;  %v5570_v57 = vld [vmem:[#allocation3] ss:$0 sm:$0xff] }
 0xae6   :  { %3967 = vmatpush1.msra.mxu0 %v3766_v0  ;;  %3922 = vmatpush2.msra.mxu1 %v3840_v63  ;;  %v3838_v0 = vld [vmem:[%s11826_s2 + $0x390] sm:$0xff] }
 0xae7   :  { %3968 = vmatprep.subr.mxu0 %v3763_v40  ;;  %3923 = vmatprep.subr.mxu1 %v3837_v32  ;;  %v3835_v40 = vld [vmem:[%s11826_s2 + $0x378] sm:$0xff]  ;;  %v3591_v32 = vpop.f32.mrf.mxu1 }
 0xae8   :  { %3969 = vmatpush1.msra.mxu0 %v3762_v46  ;;  %3924 = vmatpush2.msra.mxu1 %v3836_v38  ;;  %v3834_v46 = vld [vmem:[%s11826_s2 + $0x370] sm:$0xff] }
 0xae9   :  { %3970 = vmatprep.subr.mxu0 %v3759_v48  ;;  %3925 = vmatprep.subr.mxu1 %v3833_v44  ;;  %v3831_v48 = vld [vmem:[%s11826_s2 + $0x358] sm:$0xff] }
 0xaea   :  { %3971 = vmatpush1.msra.mxu0 %v3758_v54  ;;  %3926 = vmatpush2.msra.mxu1 %v3832_v42  ;;  %v3830_v54 = vld [vmem:[%s11826_s2 + $0x350] sm:$0xff] }
 0xaeb   :  { %3972 = vmatprep.subr.mxu0 %v3755_v56  ;;  %3927 = vmatprep.subr.mxu1 %v3829_v52  ;;  %v3827_v56 = vld [vmem:[%s11826_s2 + $0x338] sm:$0xff]  ;;  %v5572_v52 = vld [vmem:[%s11827_s0 + $0x28] sm:$0xff] }
 0xaec   :  { %3973 = vmatpush1.msra.mxu0 %v3754_v20  ;;  %3928 = vmatpush2.msra.mxu1 %v3828_v50  ;;  %v3826_v20 = vld [vmem:[%s11826_s2 + $0x330] sm:$0xff] }
 0xaed   :  { %3974 = vmatprep.subr.mxu0 %v3751_v62  ;;  %3929 = vmatprep.subr.mxu1 %v3825_v60  ;;  %v3823_v62 = vld [vmem:[%s11826_s2 + $0x318] sm:$0xff] }
 0xaee   :  { %3975 = vmatpush1.msra.mxu0 %v3750_v6  ;;  %3930 = vmatpush2.msra.mxu1 %v3824_v58  ;;  %v3822_v6 = vld [vmem:[%s11826_s2 + $0x310] sm:$0xff] }
 0xaef   :  { %3976 = vmatprep.subr.mxu0 %v3747_v8  ;;  %3931 = vmatprep.subr.mxu1 %v3821_v4  ;;  %v3819_v8 = vld [vmem:[%s11826_s2 + $0x2f8] sm:$0xff] }
 0xaf0   :  { %3977 = vmatpush1.msra.mxu0 %v3746_v12  ;;  %3932 = vmatpush2.msra.mxu1 %v3820_v1  ;;  %v3818_v12 = vld [vmem:[%s11826_s2 + $0x2f0] sm:$0xff] }
 0xaf1   :  { %3978 = vmatprep.subr.mxu0 %v3743_v18  ;;  %3933 = vmatprep.subr.mxu1 %v3817_v10  ;;  %v3815_v18 = vld [vmem:[%s11826_s2 + $0x2d8] sm:$0xff] }
 0xaf2   :  { %3979 = vmatpush1.msra.mxu0 %v3742_v28  ;;  %3934 = vmatpush2.msra.mxu1 %v3816_v14  ;;  %v3814_v28 = vld [vmem:[%s11826_s2 + $0x2d0] sm:$0xff] }
 0xaf3   :  { %3980 = vmatprep.subr.mxu0 %v3739_v2  ;;  %3935 = vmatprep.subr.mxu1 %v3813_v22  ;;  %v3811_v2 = vld [vmem:[%s11826_s2 + $0x2b8] sm:$0xff] }
 0xaf4   :  { %3981 = vmatpush1.msra.mxu0 %v3738_v7  ;;  %3936 = vmatpush2.msra.mxu1 %v3812_v30  ;;  %v3810_v7 = vld [vmem:[%s11826_s2 + $0x2b0] sm:$0xff] }
 0xaf5   :  { %3982 = vmatprep.subr.mxu0 %v3735_v11  ;;  %3937 = vmatprep.subr.mxu1 %v3809_v5  ;;  %v3807_v11 = vld [vmem:[%s11826_s2 + $0x298] sm:$0xff] }
 0xaf6   :  { %3983 = vmatpush1.msra.mxu0 %v3734_v17  ;;  %3938 = vmatpush2.msra.mxu1 %v3808_v9  ;;  %v3806_v17 = vld [vmem:[%s11826_s2 + $0x290] sm:$0xff] }
 0xaf7   :  { %3984 = vmatprep.subr.mxu0 %v3731_v25  ;;  %v3803_v25 = vld [vmem:[%s11826_s2 + $0x278] sm:$0xff]  ;;  %3939 = vmatprep.subr.mxu1 %v3805_v15 }
 0xaf8   :  { %3985 = vmatpush1.msra.mxu0 %v3730_v21  ;;  %v3802_v21 = vld [vmem:[%s11826_s2 + $0x270] sm:$0xff]  ;;  %3940 = vmatpush2.msra.mxu1 %v3804_v23  ;;  %v4208_v23 = vld [vmem:[%s11825_s1 + $0x1e0] sm:$0xff] }
 0xaf9   :  { %3986 = vmatprep.subr.mxu0 %v3727_v19  ;;  %v3799_v19 = vld [vmem:[%s11826_s2 + $0x258] sm:$0xff]  ;;  %3941 = vmatprep.subr.mxu1 %v3801_v31  ;;  %v4201_v31 = vld [vmem:[%s11825_s1 + $0x1a8] sm:$0xff] }
 0xafa   :  { %3987 = vmatpush1.msra.mxu0 %v3726_v29  ;;  %v3798_v29 = vld [vmem:[%s11826_s2 + $0x250] sm:$0xff]  ;;  %3942 = vmatpush2.msra.mxu1 %v3800_v33  ;;  %v4197_v33 = vld [vmem:[%s11825_s1 + $0x188] sm:$0xff] }
 0xafb   :  { %3988 = vmatprep.subr.mxu0 %v3851_v27  ;;  %v3795_v27 = vld [vmem:[%s11826_s2 + $0x238] sm:$0xff]  ;;  %3943 = vmatprep.subr.mxu1 %v3797_v41  ;;  %v4193_v41 = vld [vmem:[%s11825_s1 + $0x168] sm:$0xff] }
 0xafc   :  { %3989 = vmatpush2.msra.mxu0 %v3850_v37  ;;  %v3794_v37 = vld [vmem:[%s11826_s2 + $0x230] sm:$0xff]  ;;  %3944 = vmatpush2.msra.mxu1 %v3796_v45  ;;  %v4189_v45 = vld [vmem:[%s11825_s1 + $0x148] sm:$0xff] }
 0xafd   :  { %3990 = vmatprep.subr.mxu0 %v3847_v35  ;;  %v3791_v35 = vld [vmem:[%s11826_s2 + $0x218] sm:$0xff]  ;;  %3945 = vmatprep.subr.mxu1 %v3793_v49  ;;  %v4185_v49 = vld [vmem:[%s11825_s1 + $0x128] sm:$0xff] }
 0xafe   :  { %3991 = vmatpush2.msra.mxu0 %v3846_v16  ;;  %v3790_v16 = vld [vmem:[%s11826_s2 + $0x210] sm:$0xff]  ;;  %3946 = vmatpush2.msra.mxu1 %v3792_v51  ;;  %v4181_v51 = vld [vmem:[%s11825_s1 + $0x108] sm:$0xff] }
 0xaff   :  { %3992 = vmatprep.subr.mxu0 %v3843_v47  ;;  %3947 = vmatprep.subr.mxu1 %v3789_v53  ;;  %v4209_v47 = vld [vmem:[%s11825_s1 + $0x1e8] sm:$0xff] }
 0xb00   :  { %3993 = vmatpush2.msra.mxu0 %v3842_v61  ;;  %3948 = vmatpush2.msra.mxu1 %v3788_v55  ;;  %v4177_v53 = vld [vmem:[%s11825_s1 + $0xe8] sm:$0xff] }
 0xb01   :  { %3994 = vmatprep.subr.mxu0 %v3839_v24  ;;  %5913 = vmatprep.subr.mxu1 %v11832_v3  ;;  %v4173_v55 = vld [vmem:[%s11825_s1 + $0xc8] sm:$0xff] }
 0xb02   :  { %3995 = vmatpush2.msra.mxu0 %v3838_v0  ;;  %v3593_v0 = vpop.f32.mrf.mxu1 }
 0xb03   :  { %3996 = vmatprep.subr.mxu0 %v3835_v40  ;;  %v3671_v40 = vcombine.low %v3591_v32, %v3593_v0  ;;  %v4161_v32 = vld [vmem:[%s11825_s1 + $0x68] sm:$0xff]  ;;  %v4160_v0 = vld [vmem:[%s11825_s1 + $0x60] sm:$0xff] }
 0xb04   :  { %3997 = vmatpush2.msra.mxu0 %v3834_v46 }
 0xb05   :  { %3998 = vmatprep.subr.mxu0 %v3831_v48  ;;  %v3679_v42 = vrot.slane %v3671_v40, %v6997_v26  ;;  %v4156_v40 = vld [vmem:[%s11825_s1 + $0x40] sm:$0xff] }
 0xb06   :  { %3999 = vmatpush2.msra.mxu0 %v3830_v54 }
 0xb07   :  { %4000 = vmatprep.subr.mxu0 %v3827_v56 }
 0xb08   :  { %4001 = vmatpush2.msra.mxu0 %v3826_v20 }
 0xb09   :  { %4002 = vmatprep.subr.mxu0 %v3823_v62 }
 0xb0a   :  { %4003 = vmatpush2.msra.mxu0 %v3822_v6 }
 0xb0b   :  { %4004 = vmatprep.subr.mxu0 %v3819_v8 }
 0xb0c   :  { %4005 = vmatpush2.msra.mxu0 %v3818_v12 }
 0xb0d   :  { %4006 = vmatprep.subr.mxu0 %v3815_v18 }
 0xb0e   :  { %4007 = vmatpush2.msra.mxu0 %v3814_v28 }
 0xb0f   :  { %4008 = vmatprep.subr.mxu0 %v3811_v2 }
 0xb10   :  { %4009 = vmatpush2.msra.mxu0 %v3810_v7 }
 0xb11   :  { %4010 = vmatprep.subr.mxu0 %v3807_v11 }
 0xb12   :  { %4011 = vmatpush2.msra.mxu0 %v3806_v17 }
 0xb13   :  { %4012 = vmatprep.subr.mxu0 %v3803_v25  ;;  %v4204_v25 = vld [vmem:[%s11825_s1 + $0x1c0] sm:$0xff] }
 0xb14   :  { %4013 = vmatpush2.msra.mxu0 %v3802_v21  ;;  %v4200_v21 = vld [vmem:[%s11825_s1 + $0x1a0] sm:$0xff] }
 0xb15   :  { %4014 = vmatprep.subr.mxu0 %v3799_v19  ;;  %v4196_v19 = vld [vmem:[%s11825_s1 + $0x180] sm:$0xff] }
 0xb16   :  { %4015 = vmatpush2.msra.mxu0 %v3798_v29  ;;  %v4192_v29 = vld [vmem:[%s11825_s1 + $0x160] sm:$0xff] }
 0xb17   :  { %4016 = vmatprep.subr.mxu0 %v3795_v27  ;;  %v4188_v27 = vld [vmem:[%s11825_s1 + $0x140] sm:$0xff] }
 0xb18   :  { %4017 = vmatpush2.msra.mxu0 %v3794_v37  ;;  %v4184_v37 = vld [vmem:[%s11825_s1 + $0x120] sm:$0xff] }
 0xb19   :  { %4018 = vmatprep.subr.mxu0 %v3791_v35  ;;  %v4180_v35 = vld [vmem:[%s11825_s1 + $0x100] sm:$0xff] }
 0xb1a   :  { %4019 = vmatpush2.msra.mxu0 %v3790_v16  ;;  %v4176_v16 = vld [vmem:[%s11825_s1 + $0xe0] sm:$0xff] }
 0xb1b   :  { %4212 = vmatprep.subr.mxu0 %v4209_v47  ;;  %v4172_v47 = vld [vmem:[%s11825_s1 + $0xc0] sm:$0xff] }
 0xb7b   :  { %v3453_v61 = vpop.f32.mrf.mxu0 }
 0xb7c   :  { %v3454_v63 = vadd.f32 %v5570_v57, %v3453_v61  ;;  %v4169_v57 = vld [vmem:[%s11825_s1 + $0xa8] sm:$0xff]  ;;  %v4168_v61 = vld [vmem:[%s11825_s1 + $0xa0] sm:$0xff] }
 0xb7d   :  { %v5912_v24 = vpop.f32.mrf.mxu0 }
 0xb7e   :  { %5571 = vst.msk [vmem:[%s11831_s6 + $0x8] sm:$0x3] %vm709_vm1, %v3454_v63  ;;  %v4165_v63 = vld [vmem:[%s11825_s1 + $0x88] sm:$0xff]  ;;  %v4164_v24 = vld [vmem:[%s11825_s1 + $0x80] sm:$0xff] }
 0xb9b   :  { %v3662_v38 = vpop.f32.mrf.mxu0 }
 0xb9d   :  { %v3664_v44 = vpop.f32.mrf.mxu0 }
 0xb9e   :  { %v3672_v46 = vcombine.low %v3662_v38, %v3664_v44  ;;  %v4157_v38 = vld [vmem:[%s11825_s1 + $0x48] sm:$0xff] }
 0xb9f   :  { %v4153_v44 = vld [vmem:[%s11825_s1 + $0x28] sm:$0xff] }
 0xba0   :  { %v3686_v48 = vrot.slane %v3672_v46, %v6997_v26  ;;  %v4152_v46 = vld [vmem:[%s11825_s1 + $0x20] sm:$0xff] }
 0xba2   :  { %v3687_v54 = vcombine.low %v3679_v42, %v3686_v48  ;;  %v4149_v42 = vld [vmem:[%s11825_s1 + $0x8] sm:$0xff]  ;;  %v4148_v48 = vld [vmem:[%s11825_s1] sm:$0xff] }
 0xba4   :  { %v3689_v50 = vadd.f32 %v5572_v52, %v3687_v54  ;;  %v4066_v52 = vld [vmem:[%s11828_s4 + $0x78] sm:$0xff]  ;;  %v4065_v54 = vld [vmem:[%s11828_s4 + $0x70] sm:$0xff] }
 0xba6   :  { %v5573_v56 = vmul.f32 -1.442695, %v3689_v50  ;;  %v3697_v60 = vrot.slane %v3689_v50, 2  ;;  %v3708_v58 = vrot.slane %v3689_v50, 6  ;;  %v3705_v6 = vrot.slane %v3689_v50, 4  ;;  %v4064_v50 = vld [vmem:[%s11828_s4 + $0x68] sm:$0xff] }
 0xba8   :  { %6181 = vpow2.f32 %v5573_v56  ;;  %v5574_v20 = vmul.f32 -1.442695, %v3697_v60  ;;  %v5575_v62 = vmul.f32 -1.442695, %v3708_v58  ;;  %v4063_v56 = vld [vmem:[%s11828_s4 + $0x60] sm:$0xff]  ;;  %v4062_v60 = vld [vmem:[%s11828_s4 + $0x58] sm:$0xff] }
 0xba9   :  { %v4060_v58 = vld [vmem:[%s11828_s4 + $0x48] sm:$0xff] }
 0xbaa   :  { %6183 = vpow2.f32 %v5574_v20  ;;  %v4061_v20 = vld [vmem:[%s11828_s4 + $0x50] sm:$0xff] }
 0xbab   :  { %6185 = vpow2.f32 %v5575_v62  ;;  %v4059_v62 = vld [vmem:[%s11828_s4 + $0x40] sm:$0xff] }
 0xbb5   :  { %v6182_v4 = vpop.eup %6181 }
 0xbb6   :  { %v3693_v1 = vadd.f32 1.0, %v6182_v4  ;;  %v4058_v4 = vld [vmem:[%s11828_s4 + $0x38] sm:$0xff] }
 0xbb7   :  { %v6184_v8 = vpop.eup %6183 }
 0xbb8   :  { %6187 = vrcp.f32 %v3693_v1  ;;  %v3702_v10 = vadd.f32 1.0, %v6184_v8  ;;  %v6186_v12 = vpop.eup %6185  ;;  %v4056_v1 = vld [vmem:[%s11828_s4 + $0x28] sm:$0xff]  ;;  %v4055_v8 = vld [vmem:[%s11828_s4 + $0x20] sm:$0xff] }
 0xbb9   :  { %6189 = vtanh.f32 %v3705_v6  ;;  %v3713_v28 = vadd.f32 1.0, %v6186_v12  ;;  %v4057_v6 = vld [vmem:[%s11828_s4 + $0x30] sm:$0xff] }
 0xbba   :  { %6191 = vrcp.f32 %v3702_v10  ;;  %v4054_v10 = vld [vmem:[%s11828_s4 + $0x18] sm:$0xff]  ;;  %v4053_v12 = vld [vmem:[%s11828_s4 + $0x10] sm:$0xff] }
 0xbbb   :  { %6193 = vrcp.f32 %v3713_v28  ;;  %v3852_v28 = vld [vmem:[%s11830_s3] sm:$0xf] }
 0xbc5   :  { %v6188_v14 = vpop.eup %6187 }
 0xbc6   :  { %v6190_v18 = vpop.eup %6189 }
 0xbc7   :  { %v6192_v22 = vpop.eup %6191  ;;  %v3717_v2 = vmul.f32 %v6190_v18, %v6188_v14  ;;  %v4052_v14 = vld [vmem:[%s11828_s4 + $0x8] sm:$0xff]  ;;  %v4051_v18 = vld [vmem:[%s11828_s4] sm:$0xff] }
 0xbc8   :  { %v3716_v30 = vmul.f32 %v6192_v22, %v9648_v13  ;;  %v6194_v7 = vpop.eup %6193  ;;  %v4205_v13 = vld [vmem:[%s11825_s1 + $0x1c8] sm:$0xff]  ;;  %v4211_v22 = vld [vmem:[%s11825_s1 + $0x1f8] sm:$0xff] }
 0xbca   :  { %v10321_v5 = vadd.f32 %v3717_v2, %v3716_v30  ;;  %v3857_v30 = vrot.slane %v3852_v28, %v7115_v39  ;;  %v3861_v2 = vrot.slane %v3852_v28, %v7121_v43  ;;  %v11113_v43 = vld [vmem:[%s11826_s2 + $0x260] sm:$0xff]  ;;  %v11122_v39 = vld [vmem:[%s11826_s2 + $0x248] sm:$0xff] }
 0xbcb   :  { %11882 = vst [vmem:[#allocation22_spill] sm:$0xff] %v11113_v43  ;;  %11883 = vst [vmem:[#allocation23_spill] sm:$0xff] %v11122_v39 }
 0xbcc   :  { %6195 = vtanh.f32 %v10321_v5 }
 0xbd9   :  { %v6196_v9 = vpop.eup %6195 }
 0xbda   :  { %v10324_v11 = vmul.f32 %v6196_v9, %v6194_v7 }
 0xbdc   :  { %3721 = vst [vmem:[#allocation2] sm:$0x3] %v10324_v11 }
 0xbe3   :  { %v5576_v15 = vld.sshfl [vmem:[#allocation2] sm:$0x33 pattern:$0x76325410] }
 0xbe4   :  { %v3882_v17 = vcombine.high %v5576_v15, %v5576_v15 }
 0xbe6   :  { %3949 = vmatprep.mubr.f32.mxu1 %v3882_v17  ;;  %4020 = vmatprep.mubr.f32.mxu0 %v3882_v17 }
 0xbe7   :  { %3950 = vmatmul.mubr.f32.vlgmr.msra.gmra.mxu1 %v5576_v15  ;;  %4021 = vmatmul.mubr.f32.vlgmr.msra.gmra.mxu0 %v5576_v15 }
 0xbe8   :  { %4213 = vmatpush1.msra.mxu0 %v4208_v23  ;;  %4276 = vmatprep.mubr.f32.mxu0 %v11832_v3 }
 0xbe9   :  { %4214 = vmatprep.subr.mxu0 %v4205_v13  ;;  %5945 = vmatprep.mubr.msk.f32.mxu1 %vm6279_vm0, %v11832_v3 }
 0xbea   :  { %4215 = vmatpush1.msra.mxu0 %v4204_v25  ;;  %5914 = vmatpush3.msra.mxu1 %v4066_v52  ;;  %v4194_v52 = vld [vmem:[%s11825_s1 + $0x170] sm:$0xff] }
 0xbeb   :  { %4216 = vmatprep.subr.mxu0 %v4201_v31  ;;  %5915 = vmatprep.subr.mxu1 %v11832_v3  ;;  %v3869_v31 = vrot.slane %v3852_v28, %v7126_v59  ;;  %v4489_v59 = vld [vmem:[%s11826_s2 + $0x270] sm:$0xff] }
 0xbec   :  { %4217 = vmatpush1.msra.mxu0 %v4200_v21  ;;  %5916 = vmatpush3.msra.mxu1 %v4065_v54  ;;  %v4191_v54 = vld [vmem:[%s11825_s1 + $0x158] sm:$0xff] }
 0xbed   :  { %4218 = vmatprep.subr.mxu0 %v4197_v33  ;;  %5917 = vmatprep.subr.mxu1 %v11832_v3 }
 0xbee   :  { %4219 = vmatpush1.msra.mxu0 %v4196_v19  ;;  %5918 = vmatpush3.msra.mxu1 %v4064_v50  ;;  %v3865_v19 = vrot.slane %v3852_v28, %v7130_v36  ;;  %v4190_v50 = vld [vmem:[%s11825_s1 + $0x150] sm:$0xff]  ;;  %v4159_v28 = vld [vmem:[%s11825_s1 + $0x58] sm:$0xff] }
 0xbef   :  { %4220 = vmatprep.subr.mxu0 %v4193_v41  ;;  %5919 = vmatprep.subr.mxu1 %v11832_v3  ;;  %v4490_v36 = vld [vmem:[%s11826_s2 + $0x278] sm:$0xff] }
 0xbf0   :  { %4221 = vmatpush1.msra.mxu0 %v4192_v29  ;;  %5920 = vmatpush3.msra.mxu1 %v4063_v56  ;;  %v4187_v56 = vld [vmem:[%s11825_s1 + $0x138] sm:$0xff] }
 0xbf1   :  { %4222 = vmatprep.subr.mxu0 %v4189_v45  ;;  %5921 = vmatprep.subr.mxu1 %v11832_v3 }
 0xbf2   :  { %4223 = vmatpush1.msra.mxu0 %v4188_v27  ;;  %5922 = vmatpush3.msra.mxu1 %v4062_v60  ;;  %v4186_v60 = vld [vmem:[%s11825_s1 + $0x130] sm:$0xff] }
 0xbf3   :  { %4224 = vmatprep.subr.mxu0 %v4185_v49  ;;  %5923 = vmatprep.subr.mxu1 %v11832_v3 }
 0xbf4   :  { %4225 = vmatpush1.msra.mxu0 %v4184_v37  ;;  %5924 = vmatpush3.msra.mxu1 %v4061_v20  ;;  %v4183_v20 = vld [vmem:[%s11825_s1 + $0x118] sm:$0xff] }
 0xbf5   :  { %4226 = vmatprep.subr.mxu0 %v4181_v51  ;;  %5925 = vmatprep.subr.mxu1 %v11832_v3 }
 0xbf6   :  { %4227 = vmatpush1.msra.mxu0 %v4180_v35  ;;  %5926 = vmatpush3.msra.mxu1 %v4060_v58  ;;  %v4182_v58 = vld [vmem:[%s11825_s1 + $0x110] sm:$0xff] }
 0xbf7   :  { %4228 = vmatprep.subr.mxu0 %v4177_v53  ;;  %5927 = vmatprep.subr.mxu1 %v11832_v3 }
 0xbf8   :  { %4229 = vmatpush1.msra.mxu0 %v4176_v16  ;;  %5928 = vmatpush3.msra.mxu1 %v4059_v62  ;;  %v4179_v62 = vld [vmem:[%s11825_s1 + $0xf8] sm:$0xff] }
 0xbf9   :  { %4230 = vmatprep.subr.mxu0 %v4173_v55  ;;  %5929 = vmatprep.subr.mxu1 %v11832_v3 }
 0xbfa   :  { %4231 = vmatpush1.msra.mxu0 %v4172_v47  ;;  %5930 = vmatpush3.msra.mxu1 %v4058_v4  ;;  %v4178_v4 = vld [vmem:[%s11825_s1 + $0xf0] sm:$0xff] }
 0xbfb   :  { %4232 = vmatprep.subr.mxu0 %v4169_v57  ;;  %5931 = vmatprep.subr.mxu1 %v11832_v3 }
 0xbfc   :  { %4233 = vmatpush1.msra.mxu0 %v4168_v61  ;;  %5932 = vmatpush3.msra.mxu1 %v4057_v6  ;;  %v4175_v6 = vld [vmem:[%s11825_s1 + $0xd8] sm:$0xff] }
 0xbfd   :  { %4234 = vmatprep.subr.mxu0 %v4165_v63  ;;  %5933 = vmatprep.subr.mxu1 %v11832_v3 }
 0xbfe   :  { %4235 = vmatpush1.msra.mxu0 %v4164_v24  ;;  %5934 = vmatpush3.msra.mxu1 %v4056_v1  ;;  %v4174_v1 = vld [vmem:[%s11825_s1 + $0xd0] sm:$0xff] }
 0xbff   :  { %4236 = vmatprep.subr.mxu0 %v4161_v32  ;;  %5935 = vmatprep.subr.mxu1 %v11832_v3 }
 0xc00   :  { %4237 = vmatpush1.msra.mxu0 %v4160_v0  ;;  %5936 = vmatpush3.msra.mxu1 %v4055_v8  ;;  %v4210_v0 = vld [vmem:[%s11825_s1 + $0x1f0] sm:$0xff]  ;;  %v4171_v8 = vld [vmem:[%s11825_s1 + $0xb8] sm:$0xff] }
 0xc01   :  { %4238 = vmatprep.subr.mxu0 %v4157_v38  ;;  %5937 = vmatprep.subr.mxu1 %v11832_v3  ;;  %v4207_v38 = vld [vmem:[%s11825_s1 + $0x1d8] sm:$0xff] }
 0xc02   :  { %4239 = vmatpush1.msra.mxu0 %v4156_v40  ;;  %5938 = vmatpush3.msra.mxu1 %v4054_v10  ;;  %v4203_v40 = vld [vmem:[%s11825_s1 + $0x1b8] sm:$0xff]  ;;  %v4170_v10 = vld [vmem:[%s11825_s1 + $0xb0] sm:$0xff] }
 0xc03   :  { %4240 = vmatprep.subr.mxu0 %v4153_v44  ;;  %5939 = vmatprep.subr.mxu1 %v11832_v3  ;;  %v4202_v44 = vld [vmem:[%s11825_s1 + $0x1b0] sm:$0xff] }
 0xc04   :  { %4241 = vmatpush1.msra.mxu0 %v4152_v46  ;;  %5940 = vmatpush3.msra.mxu1 %v4053_v12  ;;  %v4199_v46 = vld [vmem:[%s11825_s1 + $0x198] sm:$0xff] }
 0xc05   :  { %4242 = vmatprep.subr.mxu0 %v4149_v42  ;;  %5941 = vmatprep.subr.mxu1 %v11832_v3  ;;  %v4198_v42 = vld [vmem:[%s11825_s1 + $0x190] sm:$0xff]  ;;  %v4167_v12 = vld [vmem:[%s11825_s1 + $0x98] sm:$0xff] }
 0xc06   :  { %4243 = vmatpush1.msra.mxu0 %v4148_v48  ;;  %5942 = vmatpush3.msra.mxu1 %v4052_v14  ;;  %v4195_v48 = vld [vmem:[%s11825_s1 + $0x178] sm:$0xff]  ;;  %v4166_v14 = vld [vmem:[%s11825_s1 + $0x90] sm:$0xff] }
 0xc07   :  { %4277 = vmatmul.mubr.f32.vlgmr.msra.gmra.mxu0 %v10324_v11  ;;  %5943 = vmatprep.subr.mxu1 %v11832_v3 }
 0xc08   :  { %5944 = vmatpush3.msra.mxu1 %v4051_v18  ;;  %v4163_v18 = vld [vmem:[%s11825_s1 + $0x78] sm:$0xff] }
 0xc09   :  { %4283 = vmatprep.subr.mxu1 %v4211_v22  ;;  %v4162_v22 = vld [vmem:[%s11825_s1 + $0x70] sm:$0xff] }
 0xca7   :  { %v3951_v7 = vpop.f32.mrf.mxu1  ;;  %v4022_v13 = vpop.f32.mrf.mxu0 }
 0xca8   :  { %v3952_v9 = vadd.f32 %v3951_v7, %v3857_v30  ;;  %v4023_v45 = vadd.f32 %v4022_v13, %v3865_v19  ;;  %v4158_v30 = vld [vmem:[%s11825_s1 + $0x50] sm:$0xff]  ;;  %v4466_v19 = vld [vmem:[%s11826_s2 + $0x1b8] sm:$0xff] }
 0xca9   :  { %v3953_v15 = vpop.f32.mrf.mxu1  ;;  %v4024_v21 = vpop.f32.mrf.mxu0  ;;  %v4154_v7 = vld [vmem:[%s11825_s1 + $0x30] sm:$0xff] }
 0xcaa   :  { %v5577_v17 = vmul.f32 -1.442695, %v3952_v9  ;;  %v3954_v23 = vadd.f32 %v3953_v15, %v3861_v2  ;;  %v4025_v33 = vadd.f32 %v4024_v21, %v3869_v31  ;;  %v4155_v2 = vld [vmem:[%s11825_s1 + $0x38] sm:$0xff]  ;;  %v4150_v15 = vld [vmem:[%s11825_s1 + $0x10] sm:$0xff]  ;;  %v10620_v31 = vld [vmem:[%s11826_s2 + $0x1c8] sm:$0xff] }
 0xcab   :  { %v4151_v9 = vld [vmem:[%s11825_s1 + $0x18] sm:$0xff]  ;;  %v4473_v13 = vld [vmem:[%s11826_s2 + $0x1f0] sm:$0xff] }
 0xcac   :  { %6197 = vpow2.f32 %v5577_v17  ;;  %v5578_v25 = vmul.f32 -1.442695, %v3954_v23  ;;  %v5579_v41 = vmul.f32 -1.442695, %v4025_v33  ;;  %v4474_v17 = vld [vmem:[%s11826_s2 + $0x1f8] sm:$0xff]  ;;  %v10602_v23 = vld [vmem:[%s11826_s2 + $0x1e8] sm:$0xff] }
 0xcad   :  { %4572 = vmatprep.subr.mxu0 %v10602_v23  ;;  %v4469_v21 = vld [vmem:[%s11826_s2 + $0x1d0] sm:$0xff]  ;;  %v10629_v33 = vld [vmem:[%s11826_s2 + $0x1c0] sm:$0xff] }
 0xcae   :  { %6199 = vpow2.f32 %v5578_v25  ;;  %v4470_v25 = vld [vmem:[%s11826_s2 + $0x1d8] sm:$0xff] }
 0xcaf   :  { %6201 = vpow2.f32 %v5579_v41  ;;  %v10638_v41 = vld [vmem:[%s11826_s2 + $0x1a8] sm:$0xff] }
 0xcb9   :  { %v6198_v29 = vpop.eup %6197 }
 0xcba   :  { %v4030_v27 = vadd.f32 1.0, %v6198_v29  ;;  %v4465_v29 = vld [vmem:[%s11826_s2 + $0x1b0] sm:$0xff] }
 0xcbb   :  { %v6200_v49 = vpop.eup %6199 }
 0xcbc   :  { %6203 = vrcp.f32 %v4030_v27  ;;  %v4036_v37 = vadd.f32 1.0, %v6200_v49  ;;  %v6202_v51 = vpop.eup %6201  ;;  %v4462_v27 = vld [vmem:[%s11826_s2 + $0x198] sm:$0xff]  ;;  %v10656_v49 = vld [vmem:[%s11826_s2 + $0x188] sm:$0xff] }
 0xcbd   :  { %6205 = vtanh.f32 %v4023_v45  ;;  %v4043_v55 = vadd.f32 1.0, %v6202_v51  ;;  %v10647_v45 = vld [vmem:[%s11826_s2 + $0x1a0] sm:$0xff] }
 0xcbe   :  { %6207 = vrcp.f32 %v4036_v37  ;;  %v4461_v37 = vld [vmem:[%s11826_s2 + $0x190] sm:$0xff]  ;;  %v10665_v51 = vld [vmem:[%s11826_s2 + $0x180] sm:$0xff] }
 0xcbf   :  { %6209 = vrcp.f32 %v4043_v55  ;;  %v10683_v55 = vld [vmem:[%s11826_s2 + $0x160] sm:$0xff] }
 0xcc9   :  { %v6204_v35 = vpop.eup %6203 }
 0xcca   :  { %v6206_v53 = vpop.eup %6205 }
 0xccb   :  { %v6208_v16 = vpop.eup %6207  ;;  %v4047_v47 = vmul.f32 %v6206_v53, %v6204_v35  ;;  %v4458_v35 = vld [vmem:[%s11826_s2 + $0x178] sm:$0xff]  ;;  %v10674_v53 = vld [vmem:[%s11826_s2 + $0x168] sm:$0xff] }
 0xccc   :  { %v4046_v57 = vmul.f32 %v6208_v16, %v9825_v34  ;;  %v6210_v63 = vpop.eup %6209  ;;  %v4206_v34 = vld [vmem:[%s11825_s1 + $0x1d0] sm:$0xff] }
 0xccd   :  { %v4457_v16 = vld [vmem:[%s11826_s2 + $0x170] sm:$0xff] }
 0xcce   :  { %v10498_v61 = vadd.f32 %v4047_v47, %v4046_v57  ;;  %v4454_v47 = vld [vmem:[%s11826_s2 + $0x158] sm:$0xff]  ;;  %v10692_v57 = vld [vmem:[%s11826_s2 + $0x148] sm:$0xff] }
 0xcd0   :  { %11869 = vst [vmem:[#allocation9_spill] sm:$0xff] %v10498_v61  ;;  %6211 = vtanh.f32 %v10498_v61  ;;  %v11096_v61 = vld [vmem:[%s11826_s2 + $0x280] sm:$0xff] }
 0xcd1   :  { %11880 = vst [vmem:[#allocation20_spill] sm:$0xff] %v11096_v61 }
 0xcdd   :  { %v6212_v24 = vpop.eup %6211 }
 0xcde   :  { %v4050_v32 = vmul.f32 %v6212_v24, %v6210_v63  ;;  %v4453_v63 = vld [vmem:[%s11826_s2 + $0x150] sm:$0xff]  ;;  %v10701_v24 = vld [vmem:[%s11826_s2 + $0x140] sm:$0xff] }
 0xce0   :  { %5946 = vmatmul.mubr.f32.vlgmr.msra.gmra.mxu1 %v4050_v32  ;;  %4409 = vst [vmem:[#allocation2 + $0x2] sm:$0x3] %v4050_v32  ;;  %v4450_v32 = vld [vmem:[%s11826_s2 + $0x138] sm:$0xff] }
 0xce1   :  { %4284 = vmatpush1.msra.mxu1 %v4210_v0  ;;  %4347 = vmatprep.mubr.f32.mxu1 %v11832_v3  ;;  %v10710_v0 = vld [vmem:[%s11826_s2 + $0x128] sm:$0xff] }
 0xce2   :  { %4285 = vmatprep.subr.mxu1 %v4207_v38  ;;  %v4449_v38 = vld [vmem:[%s11826_s2 + $0x130] sm:$0xff]  ;;  %v11087_v3 = vld [vmem:[%s11826_s2 + $0x288] sm:$0xff] }
 0xce3   :  { %4286 = vmatpush1.msra.mxu1 %v4206_v34  ;;  %v10719_v34 = vld [vmem:[%s11826_s2 + $0x120] sm:$0xff]  ;;  %11879 = vst [vmem:[#allocation19_spill] sm:$0xff] %v11087_v3 }
 0xce4   :  { %4287 = vmatprep.subr.mxu1 %v4203_v40  ;;  %v4446_v40 = vld [vmem:[%s11826_s2 + $0x118] sm:$0xff] }
 0xce5   :  { %4288 = vmatpush1.msra.mxu1 %v4202_v44  ;;  %v10728_v44 = vld [vmem:[%s11826_s2 + $0x108] sm:$0xff] }
 0xce6   :  { %4289 = vmatprep.subr.mxu1 %v4199_v46  ;;  %v4445_v46 = vld [vmem:[%s11826_s2 + $0x110] sm:$0xff] }
 0xce7   :  { %4290 = vmatpush1.msra.mxu1 %v4198_v42  ;;  %v10737_v42 = vld [vmem:[%s11826_s2 + $0x100] sm:$0xff] }
 0xce8   :  { %4291 = vmatprep.subr.mxu1 %v4195_v48  ;;  %v4442_v48 = vld [vmem:[%s11826_s2 + $0xf8] sm:$0xff] }
 0xce9   :  { %4292 = vmatpush1.msra.mxu1 %v4194_v52  ;;  %v10746_v52 = vld [vmem:[%s11826_s2 + $0xe8] sm:$0xff] }
 0xcea   :  { %4293 = vmatprep.subr.mxu1 %v4191_v54  ;;  %v4441_v54 = vld [vmem:[%s11826_s2 + $0xf0] sm:$0xff] }
 0xceb   :  { %4294 = vmatpush1.msra.mxu1 %v4190_v50  ;;  %v10755_v50 = vld [vmem:[%s11826_s2 + $0xe0] sm:$0xff] }
 0xcec   :  { %4295 = vmatprep.subr.mxu1 %v4187_v56  ;;  %v4438_v56 = vld [vmem:[%s11826_s2 + $0xd8] sm:$0xff] }
 0xced   :  { %4296 = vmatpush1.msra.mxu1 %v4186_v60  ;;  %v10764_v60 = vld [vmem:[%s11826_s2 + $0xc8] sm:$0xff] }
 0xcee   :  { %4297 = vmatprep.subr.mxu1 %v4183_v20  ;;  %v4437_v20 = vld [vmem:[%s11826_s2 + $0xd0] sm:$0xff] }
 0xcef   :  { %4298 = vmatpush1.msra.mxu1 %v4182_v58  ;;  %v10773_v58 = vld [vmem:[%s11826_s2 + $0xc0] sm:$0xff] }
 0xcf0   :  { %4299 = vmatprep.subr.mxu1 %v4179_v62  ;;  %v4434_v62 = vld [vmem:[%s11826_s2 + $0xb8] sm:$0xff] }
 0xcf1   :  { %4300 = vmatpush1.msra.mxu1 %v4178_v4  ;;  %v10782_v4 = vld [vmem:[%s11826_s2 + $0xa8] sm:$0xff] }
 0xcf2   :  { %4301 = vmatprep.subr.mxu1 %v4175_v6  ;;  %v4433_v6 = vld [vmem:[%s11826_s2 + $0xb0] sm:$0xff] }
 0xcf3   :  { %4302 = vmatpush1.msra.mxu1 %v4174_v1  ;;  %v10791_v1 = vld [vmem:[%s11826_s2 + $0xa0] sm:$0xff] }
 0xcf4   :  { %4303 = vmatprep.subr.mxu1 %v4171_v8  ;;  %v4430_v8 = vld [vmem:[%s11826_s2 + $0x98] sm:$0xff] }
 0xcf5   :  { %4304 = vmatpush1.msra.mxu1 %v4170_v10  ;;  %v10800_v10 = vld [vmem:[%s11826_s2 + $0x88] sm:$0xff] }
 0xcf6   :  { %4305 = vmatprep.subr.mxu1 %v4167_v12  ;;  %v4429_v12 = vld [vmem:[%s11826_s2 + $0x90] sm:$0xff] }
 0xcf7   :  { %4306 = vmatpush1.msra.mxu1 %v4166_v14  ;;  %v10809_v14 = vld [vmem:[%s11826_s2 + $0x80] sm:$0xff] }
 0xcf8   :  { %4307 = vmatprep.subr.mxu1 %v4163_v18  ;;  %v4426_v18 = vld [vmem:[%s11826_s2 + $0x78] sm:$0xff] }
 0xcf9   :  { %4308 = vmatpush1.msra.mxu1 %v4162_v22  ;;  %v10818_v22 = vld [vmem:[%s11826_s2 + $0x68] sm:$0xff] }
 0xcfa   :  { %4309 = vmatprep.subr.mxu1 %v4159_v28  ;;  %v4425_v28 = vld [vmem:[%s11826_s2 + $0x70] sm:$0xff] }
 0xcfb   :  { %4310 = vmatpush1.msra.mxu1 %v4158_v30  ;;  %v10827_v30 = vld [vmem:[%s11826_s2 + $0x60] sm:$0xff] }
 0xcfc   :  { %4311 = vmatprep.subr.mxu1 %v4155_v2  ;;  %v4422_v2 = vld [vmem:[%s11826_s2 + $0x58] sm:$0xff] }
 0xcfd   :  { %4312 = vmatpush1.msra.mxu1 %v4154_v7  ;;  %v10836_v7 = vld [vmem:[%s11826_s2 + $0x48] sm:$0xff] }
 0xcfe   :  { %4313 = vmatprep.subr.mxu1 %v4151_v9  ;;  %v4421_v9 = vld [vmem:[%s11826_s2 + $0x50] sm:$0xff] }
 0xcff   :  { %4314 = vmatpush1.msra.mxu1 %v4150_v15  ;;  %v10845_v15 = vld [vmem:[%s11826_s2 + $0x40] sm:$0xff] }
 0xd00   :  { %4348 = vmatmul.mubr.f32.vlgmr.msra.gmra.mxu1 %v10324_v11  ;;  %4643 = vmatprep.subr.mxu1 %v4474_v17  ;;  %v10611_v11 = vld [vmem:[%s11826_s2 + $0x1e0] sm:$0xff]  ;;  %v4418_v17 = vld [vmem:[%s11826_s2 + $0x38] sm:$0xff] }
 0xd01   :  { %4644 = vmatpush1.msra.mxu1 %v4473_v13  ;;  %4573 = vmatpush1.msra.mxu0 %v10611_v11  ;;  %v10854_v13 = vld [vmem:[%s11826_s2 + $0x28] sm:$0xff] }
 0xd02   :  { %4645 = vmatprep.subr.mxu1 %v4470_v25  ;;  %4574 = vmatprep.subr.mxu0 %v10620_v31  ;;  %v4417_v25 = vld [vmem:[%s11826_s2 + $0x30] sm:$0xff] }
 0xd03   :  { %4646 = vmatpush1.msra.mxu1 %v4469_v21  ;;  %4575 = vmatpush1.msra.mxu0 %v10629_v33  ;;  %v10863_v21 = vld [vmem:[%s11826_s2 + $0x20] sm:$0xff] }
 0xd04   :  { %4647 = vmatprep.subr.mxu1 %v4466_v19  ;;  %4576 = vmatprep.subr.mxu0 %v10638_v41  ;;  %v4414_v19 = vld [vmem:[%s11826_s2 + $0x18] sm:$0xff] }
 0xd05   :  { %4648 = vmatpush1.msra.mxu1 %v4465_v29  ;;  %4577 = vmatpush1.msra.mxu0 %v10647_v45  ;;  %v10872_v29 = vld [vmem:[%s11826_s2 + $0x8] sm:$0xff] }
 0xd06   :  { %4649 = vmatprep.subr.mxu1 %v4462_v27  ;;  %4578 = vmatprep.subr.mxu0 %v10656_v49  ;;  %v4413_v27 = vld [vmem:[%s11826_s2 + $0x10] sm:$0xff] }
 0xd07   :  { %4650 = vmatpush1.msra.mxu1 %v4461_v37  ;;  %4579 = vmatpush1.msra.mxu0 %v10665_v51  ;;  %v10881_v37 = vld [vmem:[%s11826_s2] sm:$0xff] }
 0xd08   :  { %4651 = vmatprep.subr.mxu1 %v4458_v35  ;;  %4580 = vmatprep.subr.mxu0 %v10674_v53  ;;  %v4538_v35 = vld [vmem:[%s11826_s2 + $0x3f8] sm:$0xff] }
 0xd09   :  { %4652 = vmatpush1.msra.mxu1 %v4457_v16  ;;  %4581 = vmatpush1.msra.mxu0 %v10683_v55  ;;  %v10890_v16 = vld [vmem:[%s11826_s2 + $0x3e8] sm:$0xff] }
 0xd0a   :  { %4653 = vmatprep.subr.mxu1 %v4454_v47  ;;  %4582 = vmatprep.subr.mxu0 %v10692_v57  ;;  %v4537_v47 = vld [vmem:[%s11826_s2 + $0x3f0] sm:$0xff] }
 0xd0b   :  { %4654 = vmatpush1.msra.mxu1 %v4453_v63  ;;  %4583 = vmatpush1.msra.mxu0 %v10701_v24  ;;  %v10899_v63 = vld [vmem:[%s11826_s2 + $0x3e0] sm:$0xff] }
 0xd0c   :  { %4655 = vmatprep.subr.mxu1 %v4450_v32  ;;  %4584 = vmatprep.subr.mxu0 %v10710_v0  ;;  %v4534_v32 = vld [vmem:[%s11826_s2 + $0x3d8] sm:$0xff] }
 0xd0d   :  { %4656 = vmatpush1.msra.mxu1 %v4449_v38  ;;  %4585 = vmatpush1.msra.mxu0 %v10719_v34  ;;  %v10908_v38 = vld [vmem:[%s11826_s2 + $0x3c8] sm:$0xff] }
 0xd0e   :  { %4657 = vmatprep.subr.mxu1 %v4446_v40  ;;  %4586 = vmatprep.subr.mxu0 %v10728_v44  ;;  %v4533_v40 = vld [vmem:[%s11826_s2 + $0x3d0] sm:$0xff] }
 0xd0f   :  { %4658 = vmatpush1.msra.mxu1 %v4445_v46  ;;  %4587 = vmatpush1.msra.mxu0 %v10737_v42  ;;  %v10917_v46 = vld [vmem:[%s11826_s2 + $0x3c0] sm:$0xff] }
 0xd10   :  { %4659 = vmatprep.subr.mxu1 %v4442_v48  ;;  %4588 = vmatprep.subr.mxu0 %v10746_v52  ;;  %v4530_v48 = vld [vmem:[%s11826_s2 + $0x3b8] sm:$0xff] }
 0xd11   :  { %4660 = vmatpush1.msra.mxu1 %v4441_v54  ;;  %4589 = vmatpush1.msra.mxu0 %v10755_v50  ;;  %v10926_v54 = vld [vmem:[%s11826_s2 + $0x3a8] sm:$0xff] }
 0xd12   :  { %4661 = vmatprep.subr.mxu1 %v4438_v56  ;;  %4590 = vmatprep.subr.mxu0 %v10764_v60  ;;  %v4529_v56 = vld [vmem:[%s11826_s2 + $0x3b0] sm:$0xff] }
 0xd13   :  { %4662 = vmatpush1.msra.mxu1 %v4437_v20  ;;  %4591 = vmatpush1.msra.mxu0 %v10773_v58  ;;  %v10935_v20 = vld [vmem:[%s11826_s2 + $0x3a0] sm:$0xff] }
 0xd14   :  { %4663 = vmatprep.subr.mxu1 %v4434_v62  ;;  %4592 = vmatprep.subr.mxu0 %v10782_v4  ;;  %v4526_v62 = vld [vmem:[%s11826_s2 + $0x398] sm:$0xff] }
 0xd15   :  { %4664 = vmatpush1.msra.mxu1 %v4433_v6  ;;  %4593 = vmatpush1.msra.mxu0 %v10791_v1  ;;  %v10944_v6 = vld [vmem:[%s11826_s2 + $0x388] sm:$0xff] }
 0xd16   :  { %4665 = vmatprep.subr.mxu1 %v4430_v8  ;;  %4594 = vmatprep.subr.mxu0 %v10800_v10  ;;  %v4525_v8 = vld [vmem:[%s11826_s2 + $0x390] sm:$0xff] }
 0xd17   :  { %4666 = vmatpush1.msra.mxu1 %v4429_v12  ;;  %4595 = vmatpush1.msra.mxu0 %v10809_v14  ;;  %v10953_v12 = vld [vmem:[%s11826_s2 + $0x380] sm:$0xff] }
 0xd18   :  { %4667 = vmatprep.subr.mxu1 %v4426_v18  ;;  %4596 = vmatprep.subr.mxu0 %v10818_v22  ;;  %v4522_v18 = vld [vmem:[%s11826_s2 + $0x378] sm:$0xff] }
 0xd19   :  { %4668 = vmatpush1.msra.mxu1 %v4425_v28  ;;  %4597 = vmatpush1.msra.mxu0 %v10827_v30  ;;  %v10962_v28 = vld [vmem:[%s11826_s2 + $0x368] sm:$0xff] }
 0xd1a   :  { %4669 = vmatprep.subr.mxu1 %v4422_v2  ;;  %4598 = vmatprep.subr.mxu0 %v10836_v7  ;;  %v4521_v2 = vld [vmem:[%s11826_s2 + $0x370] sm:$0xff] }
 0xd1b   :  { %4670 = vmatpush1.msra.mxu1 %v4421_v9  ;;  %4599 = vmatpush1.msra.mxu0 %v10845_v15  ;;  %v10971_v9 = vld [vmem:[%s11826_s2 + $0x360] sm:$0xff] }
 0xd1c   :  { %4671 = vmatprep.subr.mxu1 %v4418_v17  ;;  %4600 = vmatprep.subr.mxu0 %v10854_v13  ;;  %v4518_v17 = vld [vmem:[%s11826_s2 + $0x358] sm:$0xff] }
 0xd1d   :  { %4672 = vmatpush1.msra.mxu1 %v4417_v25  ;;  %4601 = vmatpush1.msra.mxu0 %v10863_v21  ;;  %v10980_v25 = vld [vmem:[%s11826_s2 + $0x348] sm:$0xff] }
 0xd1e   :  { %4673 = vmatprep.subr.mxu1 %v4414_v19  ;;  %4602 = vmatprep.subr.mxu0 %v10872_v29  ;;  %v4517_v19 = vld [vmem:[%s11826_s2 + $0x350] sm:$0xff] }
 0xd1f   :  { %4674 = vmatpush1.msra.mxu1 %v4413_v27  ;;  %4603 = vmatpush1.msra.mxu0 %v10881_v37  ;;  %v10989_v27 = vld [vmem:[%s11826_s2 + $0x340] sm:$0xff] }
 0xd20   :  { %4675 = vmatprep.subr.mxu1 %v4538_v35  ;;  %4604 = vmatprep.subr.mxu0 %v10890_v16  ;;  %v4514_v35 = vld [vmem:[%s11826_s2 + $0x338] sm:$0xff] }
 0xd21   :  { %4676 = vmatpush2.msra.mxu1 %v4537_v47  ;;  %4605 = vmatpush2.msra.mxu0 %v10899_v63  ;;  %v10998_v47 = vld [vmem:[%s11826_s2 + $0x328] sm:$0xff] }
 0xd22   :  { %4677 = vmatprep.subr.mxu1 %v4534_v32  ;;  %4606 = vmatprep.subr.mxu0 %v10908_v38  ;;  %v4513_v32 = vld [vmem:[%s11826_s2 + $0x330] sm:$0xff] }
 0xd23   :  { %4678 = vmatpush2.msra.mxu1 %v4533_v40  ;;  %4607 = vmatpush2.msra.mxu0 %v10917_v46  ;;  %v11007_v40 = vld [vmem:[%s11826_s2 + $0x320] sm:$0xff] }
 0xd24   :  { %4679 = vmatprep.subr.mxu1 %v4530_v48  ;;  %4608 = vmatprep.subr.mxu0 %v10926_v54  ;;  %11870 = vst [vmem:[#allocation10_spill] sm:$0xff] %v11007_v40  ;;  %v4510_v48 = vld [vmem:[%s11826_s2 + $0x318] sm:$0xff] }
 0xd25   :  { %4680 = vmatpush2.msra.mxu1 %v4529_v56  ;;  %4609 = vmatpush2.msra.mxu0 %v10935_v20  ;;  %v11016_v56 = vld [vmem:[%s11826_s2 + $0x308] sm:$0xff] }
 0xd26   :  { %4681 = vmatprep.subr.mxu1 %v4526_v62  ;;  %4610 = vmatprep.subr.mxu0 %v10944_v6  ;;  %11871 = vst [vmem:[#allocation11_spill] sm:$0xff] %v11016_v56  ;;  %v4509_v62 = vld [vmem:[%s11826_s2 + $0x310] sm:$0xff] }
 0xd27   :  { %4682 = vmatpush2.msra.mxu1 %v4525_v8  ;;  %4611 = vmatpush2.msra.mxu0 %v10953_v12  ;;  %v11025_v8 = vld [vmem:[%s11826_s2 + $0x300] sm:$0xff] }
 0xd28   :  { %4683 = vmatprep.subr.mxu1 %v4522_v18  ;;  %4612 = vmatprep.subr.mxu0 %v10962_v28  ;;  %11872 = vst [vmem:[#allocation12_spill] sm:$0xff] %v11025_v8  ;;  %v4506_v18 = vld [vmem:[%s11826_s2 + $0x2f8] sm:$0xff] }
 0xd29   :  { %4684 = vmatpush2.msra.mxu1 %v4521_v2  ;;  %4613 = vmatpush2.msra.mxu0 %v10971_v9  ;;  %v11034_v2 = vld [vmem:[%s11826_s2 + $0x2e8] sm:$0xff] }
 0xd2a   :  { %4685 = vmatprep.subr.mxu1 %v4518_v17  ;;  %4614 = vmatprep.subr.mxu0 %v10980_v25  ;;  %11873 = vst [vmem:[#allocation13_spill] sm:$0xff] %v11034_v2  ;;  %v4505_v17 = vld [vmem:[%s11826_s2 + $0x2f0] sm:$0xff] }
 0xd2b   :  { %4686 = vmatpush2.msra.mxu1 %v4517_v19  ;;  %4615 = vmatpush2.msra.mxu0 %v10989_v27  ;;  %v11043_v19 = vld [vmem:[%s11826_s2 + $0x2e0] sm:$0xff] }
 0xd2c   :  { %4687 = vmatprep.subr.mxu1 %v4514_v35  ;;  %4616 = vmatprep.subr.mxu0 %v10998_v47  ;;  %11874 = vst [vmem:[#allocation14_spill] sm:$0xff] %v11043_v19  ;;  %v4502_v35 = vld [vmem:[%s11826_s2 + $0x2d8] sm:$0xff] }
 0xd2d   :  { %4688 = vmatpush2.msra.mxu1 %v4513_v32  ;;  %4617 = vmatpush2.msra.mxu0 %v11007_v40  ;;  %v11052_v32 = vld [vmem:[%s11826_s2 + $0x2c8] sm:$0xff] }
 0xd2e   :  { %4689 = vmatprep.subr.mxu1 %v4510_v48  ;;  %4618 = vmatprep.subr.mxu0 %v11016_v56  ;;  %11875 = vst [vmem:[#allocation15_spill] sm:$0xff] %v11052_v32  ;;  %v4501_v48 = vld [vmem:[%s11826_s2 + $0x2d0] sm:$0xff] }
 0xd2f   :  { %4690 = vmatpush2.msra.mxu1 %v4509_v62  ;;  %4619 = vmatpush2.msra.mxu0 %v11025_v8  ;;  %v11061_v62 = vld [vmem:[%s11826_s2 + $0x2c0] sm:$0xff] }
 0xd30   :  { %4691 = vmatprep.subr.mxu1 %v4506_v18  ;;  %4620 = vmatprep.subr.mxu0 %v11034_v2  ;;  %11876 = vst [vmem:[#allocation16_spill] sm:$0xff] %v11061_v62  ;;  %v4498_v18 = vld [vmem:[%s11826_s2 + $0x2b8] sm:$0xff] }
 0xd31   :  { %4692 = vmatpush2.msra.mxu1 %v4505_v17  ;;  %4621 = vmatpush2.msra.mxu0 %v11043_v19  ;;  %v11070_v17 = vld [vmem:[%s11826_s2 + $0x2a8] sm:$0xff] }
 0xd32   :  { %4693 = vmatprep.subr.mxu1 %v4502_v35  ;;  %4622 = vmatprep.subr.mxu0 %v11052_v32  ;;  %11877 = vst [vmem:[#allocation17_spill] sm:$0xff] %v11070_v17  ;;  %v4497_v35 = vld [vmem:[%s11826_s2 + $0x2b0] sm:$0xff] }
 0xd33   :  { %4694 = vmatpush2.msra.mxu1 %v4501_v48  ;;  %4623 = vmatpush2.msra.mxu0 %v11061_v62  ;;  %v11079_v48 = vld [vmem:[%s11826_s2 + $0x2a0] sm:$0xff] }
 0xd34   :  { %4695 = vmatprep.subr.mxu1 %v4498_v18  ;;  %4624 = vmatprep.subr.mxu0 %v11070_v17  ;;  %11878 = vst [vmem:[#allocation18_spill] sm:$0xff] %v11079_v48  ;;  %v4494_v18 = vld [vmem:[%s11826_s2 + $0x298] sm:$0xff] }
 0xd35   :  { %4696 = vmatpush2.msra.mxu1 %v4497_v35  ;;  %4625 = vmatpush2.msra.mxu0 %v11079_v48  ;;  %v4493_v35 = vld [vmem:[%s11826_s2 + $0x290] sm:$0xff]  ;;  %v11140_v48 = vld [vmem:[%s11826_s2 + $0x228] sm:$0xff] }
 0xd36   :  { %4697 = vmatprep.subr.mxu1 %v4494_v18  ;;  %4626 = vmatprep.subr.mxu0 %v11087_v3  ;;  %v11105_v18 = vld [vmem:[%s11826_s2 + $0x268] sm:$0xff]  ;;  %v4485_v3 = vld [vmem:[%s11826_s2 + $0x250] sm:$0xff]  ;;  %11885 = vst [vmem:[#allocation25_spill] sm:$0xff] %v11140_v48 }
 0xd37   :  { %4698 = vmatpush2.msra.mxu1 %v4493_v35  ;;  %11881 = vst [vmem:[#allocation21_spill] sm:$0xff] %v11105_v18  ;;  %4627 = vmatpush2.msra.mxu0 %v11096_v61  ;;  %v4486_v35 = vld [vmem:[%s11826_s2 + $0x258] sm:$0xff] }
 0xd38   :  { %4699 = vmatprep.subr.mxu1 %v4490_v36  ;;  %4628 = vmatprep.subr.mxu0 %v11105_v18  ;;  %v11131_v36 = vld [vmem:[%s11826_s2 + $0x240] sm:$0xff]  ;;  %v4482_v61 = vld [vmem:[%s11826_s2 + $0x238] sm:$0xff] }
 0xd39   :  { %4700 = vmatpush2.msra.mxu1 %v4489_v59  ;;  %11884 = vst [vmem:[#allocation24_spill] sm:$0xff] %v11131_v36  ;;  %4629 = vmatpush2.msra.mxu0 %v11113_v43  ;;  %v4481_v59 = vld [vmem:[%s11826_s2 + $0x230] sm:$0xff]  ;;  %v11149_v18 = vld [vmem:[%s11826_s2 + $0x220] sm:$0xff]  ;;  %v11158_v43 = vld [vmem:[%s11826_s2 + $0x208] sm:$0xff] }
 0xd3a   :  { %4701 = vmatprep.subr.mxu1 %v4486_v35  ;;  %4630 = vmatprep.subr.mxu0 %v11122_v39  ;;  %11886 = vst [vmem:[#allocation26_spill] sm:$0xff] %v11149_v18  ;;  %v4478_v35 = vld [vmem:[%s11826_s2 + $0x218] sm:$0xff]  ;;  %11887 = vst [vmem:[#allocation27_spill] sm:$0xff] %v11158_v43  ;;  %v11167_v39 = vld [vmem:[%s11826_s2 + $0x200] sm:$0xff] }
 0xd3b   :  { %4702 = vmatpush2.msra.mxu1 %v4485_v3  ;;  %4631 = vmatpush2.msra.mxu0 %v11131_v36  ;;  %v4477_v3 = vld [vmem:[%s11826_s2 + $0x210] sm:$0xff]  ;;  %11888 = vst [vmem:[#allocation28_spill] sm:$0xff] %v11167_v39 }
 0xd3c   :  { %4703 = vmatprep.subr.mxu1 %v4482_v61  ;;  %4632 = vmatprep.subr.mxu0 %v11140_v48  ;;  %v4896_v61 = vld [vmem:[%s11825_s1 + $0x1e8] sm:$0xff]  ;;  %v11889_v48 = vmov 0.0  }
 0xd3d   :  { %4704 = vmatpush2.msra.mxu1 %v4481_v59  ;;  %4633 = vmatpush2.msra.mxu0 %v11149_v18  ;;  %v5580_v59 = vld [vmem:[#allocation3] ss:$0 sm:$0xff] }
 0xd3e   :  { %4705 = vmatprep.subr.mxu1 %v4478_v35  ;;  %4634 = vmatprep.subr.mxu0 %v11158_v43  ;;  %v4278_v35 = vpop.f32.mrf.mxu0 }
 0xd3f   :  { %4706 = vmatpush2.msra.mxu1 %v4477_v3  ;;  %4635 = vmatpush2.msra.mxu0 %v11167_v39 }
 0xd40   :  { %4899 = vmatprep.subr.mxu1 %v4896_v61  ;;  %5948 = vmatprep.subr.mxu0 %v11889_v48  ;;  %v4280_v3 = vpop.f32.mrf.mxu0 }
 0xd41   :  { %v4358_v18 = vcombine.low %v4278_v35, %v4280_v3 }
 0xd43   :  { %v4366_v39 = vrot.slane %v4358_v18, %v6997_v26 }
 0xda0   :  { %v4140_v36 = vpop.f32.mrf.mxu1 }
 0xda1   :  { %v4141_v17 = vadd.f32 %v5580_v59, %v4140_v36  ;;  %v5582_v36 = vld [vmem:[%s11827_s0 + $0x30] sm:$0xff] }
 0xda2   :  { %v5947_v62 = vpop.f32.mrf.mxu1 }
 0xda3   :  { %5581 = vst.msk [vmem:[%s11831_s6 + $0xa] sm:$0x3] %vm709_vm1, %v4141_v17 }
 0xdc0   :  { %v4349_v43 = vpop.f32.mrf.mxu1 }
 0xdc2   :  { %v4351_v32 = vpop.f32.mrf.mxu1 }
 0xdc3   :  { %v4359_v19 = vcombine.low %v4349_v43, %v4351_v32 }
 0xdc5   :  { %v4373_v61 = vrot.slane %v4359_v19, %v6997_v26 }
 0xdc7   :  { %v4374_v62 = vcombine.low %v4366_v39, %v4373_v61 }
 0xdc9   :  { %v4376_v59 = vadd.f32 %v5582_v36, %v4374_v62 }
 0xdcb   :  { %v5583_v2 = vmul.f32 -1.442695, %v4376_v59  ;;  %v4384_v8 = vrot.slane %v4376_v59, 2  ;;  %v4395_v56 = vrot.slane %v4376_v59, 6  ;;  %v4392_v3 = vrot.slane %v4376_v59, 4 }
 0xdcd   :  { %6213 = vpow2.f32 %v5583_v2  ;;  %v5584_v17 = vmul.f32 -1.442695, %v4384_v8  ;;  %v5585_v40 = vmul.f32 -1.442695, %v4395_v56 }
 0xdcf   :  { %6215 = vpow2.f32 %v5584_v17 }
 0xdd0   :  { %6217 = vpow2.f32 %v5585_v40 }
 0xdda   :  { %v6214_v35 = vpop.eup %6213 }
 0xddb   :  { %v4380_v43 = vadd.f32 1.0, %v6214_v35 }
 0xddc   :  { %v6216_v32 = vpop.eup %6215 }
 0xddd   :  { %6219 = vrcp.f32 %v4380_v43  ;;  %v4389_v19 = vadd.f32 1.0, %v6216_v32  ;;  %v6218_v18 = vpop.eup %6217  ;;  %v4888_v43 = vld [vmem:[%s11825_s1 + $0x1a8] sm:$0xff]  ;;  %v4887_v32 = vld [vmem:[%s11825_s1 + $0x1a0] sm:$0xff] }
 0xdde   :  { %6221 = vtanh.f32 %v4392_v3  ;;  %v4400_v36 = vadd.f32 1.0, %v6218_v18  ;;  %v4895_v3 = vld [vmem:[%s11825_s1 + $0x1e0] sm:$0xff] }
 0xddf   :  { %6223 = vrcp.f32 %v4389_v19  ;;  %v4884_v19 = vld [vmem:[%s11825_s1 + $0x188] sm:$0xff]  ;;  %v4883_v18 = vld [vmem:[%s11825_s1 + $0x180] sm:$0xff] }
 0xde0   :  { %6225 = vrcp.f32 %v4400_v36  ;;  %v4876_v36 = vld [vmem:[%s11825_s1 + $0x148] sm:$0xff] }
 0xdea   :  { %v6220_v26 = vpop.eup %6219 }
 0xdeb   :  { %v6222_v39 = vpop.eup %6221 }
 0xdec   :  { %v6224_v61 = vpop.eup %6223  ;;  %v4404_v8 = vmul.f32 %v6222_v39, %v6220_v26  ;;  %v4892_v26 = vld [vmem:[%s11825_s1 + $0x1c8] sm:$0xff] }
 0xded   :  { %v4403_v2 = vmul.f32 %v6224_v61, %v10321_v5  ;;  %v6226_v56 = vpop.eup %6225  ;;  %v4891_v5 = vld [vmem:[%s11825_s1 + $0x1c0] sm:$0xff]  ;;  %v4880_v39 = vld [vmem:[%s11825_s1 + $0x168] sm:$0xff] }
 0xdee   :  { %v4879_v61 = vld [vmem:[%s11825_s1 + $0x160] sm:$0xff] }
 0xdef   :  { %v11186_v62 = vadd.f32 %v4404_v8, %v4403_v2  ;;  %v4875_v2 = vld [vmem:[%s11825_s1 + $0x140] sm:$0xff]  ;;  %v4872_v8 = vld [vmem:[%s11825_s1 + $0x128] sm:$0xff] }
 0xdf1   :  { %6227 = vtanh.f32 %v11186_v62 }
 0xdfe   :  { %v6228_v59 = vpop.eup %6227 }
 0xdff   :  { %v11189_v40 = vmul.f32 %v6228_v59, %v6226_v56  ;;  %v4871_v56 = vld [vmem:[%s11825_s1 + $0x120] sm:$0xff]  ;;  %v4868_v59 = vld [vmem:[%s11825_s1 + $0x108] sm:$0xff] }
 0xe01   :  { %4408 = vst [vmem:[#allocation2] sm:$0x3] %v11189_v40 }
 0xe08   :  { %v5586_v17 = vld.sshfl [vmem:[#allocation2] sm:$0x33 pattern:$0x76325410] }
 0xe09   :  { %v4569_v35 = vcombine.high %v5586_v17, %v5586_v17 }
 0xe0b   :  { %4636 = vmatprep.mubr.f32.mxu0 %v4569_v35  ;;  %4707 = vmatprep.mubr.f32.mxu1 %v4569_v35  ;;  %v4864_v35 = vld [vmem:[%s11825_s1 + $0xe8] sm:$0xff] }
 0xe0c   :  { %4637 = vmatmul.mubr.f32.vlgmr.msra.gmra.mxu0 %v5586_v17  ;;  %4708 = vmatmul.mubr.f32.vlgmr.msra.gmra.mxu1 %v5586_v17  ;;  %v4867_v17 = vld [vmem:[%s11825_s1 + $0x100] sm:$0xff] }
 0xe0d   :  { %4900 = vmatpush1.msra.mxu1 %v4895_v3  ;;  %4963 = vmatprep.mubr.f32.mxu1 %v11889_v48  ;;  %v4863_v3 = vld [vmem:[%s11825_s1 + $0xe0] sm:$0xff] }
 0xe0e   :  { %4901 = vmatprep.subr.mxu1 %v4892_v26  ;;  %5980 = vmatprep.mubr.msk.f32.mxu0 %vm6279_vm0, %v11889_v48  ;;  %v4860_v26 = vld [vmem:[%s11825_s1 + $0xc8] sm:$0xff] }
 0xe0f   :  { %4902 = vmatpush1.msra.mxu1 %v4891_v5  ;;  %v4859_v5 = vld [vmem:[%s11825_s1 + $0xc0] sm:$0xff] }
 0xe10   :  { %4903 = vmatprep.subr.mxu1 %v4888_v43  ;;  %v4856_v43 = vld [vmem:[%s11825_s1 + $0xa8] sm:$0xff] }
 0xe11   :  { %4904 = vmatpush1.msra.mxu1 %v4887_v32  ;;  %v4855_v32 = vld [vmem:[%s11825_s1 + $0xa0] sm:$0xff] }
 0xe12   :  { %4905 = vmatprep.subr.mxu1 %v4884_v19  ;;  %v4852_v19 = vld [vmem:[%s11825_s1 + $0x88] sm:$0xff] }
 0xe13   :  { %4906 = vmatpush1.msra.mxu1 %v4883_v18  ;;  %v4851_v18 = vld [vmem:[%s11825_s1 + $0x80] sm:$0xff] }
 0xe14   :  { %4907 = vmatprep.subr.mxu1 %v4880_v39  ;;  %v4848_v39 = vld [vmem:[%s11825_s1 + $0x68] sm:$0xff] }
 0xe15   :  { %4908 = vmatpush1.msra.mxu1 %v4879_v61  ;;  %v4847_v61 = vld [vmem:[%s11825_s1 + $0x60] sm:$0xff] }
 0xe16   :  { %4909 = vmatprep.subr.mxu1 %v4876_v36  ;;  %v4844_v36 = vld [vmem:[%s11825_s1 + $0x48] sm:$0xff] }
 0xe17   :  { %4910 = vmatpush1.msra.mxu1 %v4875_v2  ;;  %v4843_v2 = vld [vmem:[%s11825_s1 + $0x40] sm:$0xff] }
 0xe18   :  { %4911 = vmatprep.subr.mxu1 %v4872_v8  ;;  %v4840_v8 = vld [vmem:[%s11825_s1 + $0x28] sm:$0xff] }
 0xe19   :  { %4912 = vmatpush1.msra.mxu1 %v4871_v56  ;;  %v4839_v56 = vld [vmem:[%s11825_s1 + $0x20] sm:$0xff] }
 0xe1a   :  { %4913 = vmatprep.subr.mxu1 %v4868_v59  ;;  %v4836_v59 = vld [vmem:[%s11825_s1 + $0x8] sm:$0xff] }
 0xe1b   :  { %4914 = vmatpush1.msra.mxu1 %v4867_v17  ;;  %v4835_v17 = vld [vmem:[%s11825_s1] sm:$0xff] }
 0xe1c   :  { %4915 = vmatprep.subr.mxu1 %v4864_v35 }
 0xe1d   :  { %4916 = vmatpush1.msra.mxu1 %v4863_v3 }
 0xe1e   :  { %4917 = vmatprep.subr.mxu1 %v4860_v26 }
 0xe1f   :  { %4918 = vmatpush1.msra.mxu1 %v4859_v5  ;;  %v11911_v5 = vld [vmem:[#allocation7_spill] sm:$0xff] }
 0xe20   :  { %4919 = vmatprep.subr.mxu1 %v4856_v43 }
 0xe21   :  { %4920 = vmatpush1.msra.mxu1 %v4855_v32 }
 0xe22   :  { %4921 = vmatprep.subr.mxu1 %v4852_v19 }
 0xe23   :  { %4922 = vmatpush1.msra.mxu1 %v4851_v18  ;;  %v11912_v18 = vld [vmem:[#allocation8_spill] sm:$0xff] }
 0xe24   :  { %4923 = vmatprep.subr.mxu1 %v4848_v39 }
 0xe25   :  { %4924 = vmatpush1.msra.mxu1 %v4847_v61 }
 0xe26   :  { %4925 = vmatprep.subr.mxu1 %v4844_v36 }
 0xe27   :  { %4926 = vmatpush1.msra.mxu1 %v4843_v2 }
 0xe28   :  { %4927 = vmatprep.subr.mxu1 %v4840_v8 }
 0xe29   :  { %4928 = vmatpush1.msra.mxu1 %v4839_v56 }
 0xe2a   :  { %4929 = vmatprep.subr.mxu1 %v4836_v59 }
 0xe2b   :  { %4930 = vmatpush1.msra.mxu1 %v4835_v17 }
 0xe2c   :  { %4964 = vmatmul.mubr.f32.vlgmr.msra.gmra.mxu1 %v11189_v40  ;;  %5259 = vmatprep.subr.mxu1 %v10602_v23  ;;  %v11890_v23 = vld [vmem:[#allocation10_spill] sm:$0xff] }
 0xe2d   :  { %5260 = vmatpush1.msra.mxu1 %v10611_v11  ;;  %v11891_v11 = vld [vmem:[#allocation11_spill] sm:$0xff] }
 0xe2e   :  { %5261 = vmatprep.subr.mxu1 %v10620_v31  ;;  %v11892_v31 = vld [vmem:[#allocation12_spill] sm:$0xff] }
 0xe2f   :  { %5262 = vmatpush1.msra.mxu1 %v10629_v33  ;;  %v11893_v33 = vld [vmem:[#allocation13_spill] sm:$0xff] }
 0xe30   :  { %5263 = vmatprep.subr.mxu1 %v10638_v41  ;;  %v11894_v41 = vld [vmem:[#allocation14_spill] sm:$0xff] }
 0xe31   :  { %5264 = vmatpush1.msra.mxu1 %v10647_v45  ;;  %v11895_v45 = vld [vmem:[#allocation15_spill] sm:$0xff] }
 0xe32   :  { %5265 = vmatprep.subr.mxu1 %v10656_v49  ;;  %v11896_v49 = vld [vmem:[#allocation16_spill] sm:$0xff] }
 0xe33   :  { %5266 = vmatpush1.msra.mxu1 %v10665_v51  ;;  %v11897_v51 = vld [vmem:[#allocation17_spill] sm:$0xff] }
 0xe34   :  { %5267 = vmatprep.subr.mxu1 %v10674_v53  ;;  %v11898_v53 = vld [vmem:[#allocation18_spill] sm:$0xff] }
 0xe35   :  { %5268 = vmatpush1.msra.mxu1 %v10683_v55  ;;  %v11899_v55 = vld [vmem:[#allocation19_spill] sm:$0xff] }
 0xe36   :  { %5269 = vmatprep.subr.mxu1 %v10692_v57  ;;  %v11900_v57 = vld [vmem:[#allocation20_spill] sm:$0xff] }
 0xe37   :  { %5270 = vmatpush1.msra.mxu1 %v10701_v24  ;;  %v11901_v24 = vld [vmem:[#allocation21_spill] sm:$0xff] }
 0xe38   :  { %5271 = vmatprep.subr.mxu1 %v10710_v0  ;;  %v11349_v0 = vld [vmem:[%s11828_s4 + $0x78] sm:$0xff] }
 0xe39   :  { %5272 = vmatpush1.msra.mxu1 %v10719_v34  ;;  %v11902_v34 = vld [vmem:[#allocation22_spill] sm:$0xff]  ;;  %5949 = vmatpush3.msra.mxu0 %v11349_v0 }
 0xe3a   :  { %5273 = vmatprep.subr.mxu1 %v10728_v44  ;;  %v11903_v44 = vld [vmem:[#allocation23_spill] sm:$0xff]  ;;  %5950 = vmatprep.subr.mxu0 %v11889_v48 }
 0xe3b   :  { %5274 = vmatpush1.msra.mxu1 %v10737_v42  ;;  %v11358_v42 = vld [vmem:[%s11828_s4 + $0x70] sm:$0xff] }
 0xe3c   :  { %5275 = vmatprep.subr.mxu1 %v10746_v52  ;;  %v11904_v52 = vld [vmem:[#allocation24_spill] sm:$0xff]  ;;  %5951 = vmatpush3.msra.mxu0 %v11358_v42 }
 0xe3d   :  { %5276 = vmatpush1.msra.mxu1 %v10755_v50  ;;  %v11905_v50 = vld [vmem:[#allocation25_spill] sm:$0xff]  ;;  %5952 = vmatprep.subr.mxu0 %v11889_v48 }
 0xe3e   :  { %5277 = vmatprep.subr.mxu1 %v10764_v60  ;;  %v11367_v60 = vld [vmem:[%s11828_s4 + $0x68] sm:$0xff] }
 0xe3f   :  { %5278 = vmatpush1.msra.mxu1 %v10773_v58  ;;  %v11906_v58 = vld [vmem:[#allocation26_spill] sm:$0xff]  ;;  %5953 = vmatpush3.msra.mxu0 %v11367_v60 }
 0xe40   :  { %5279 = vmatprep.subr.mxu1 %v10782_v4  ;;  %v11907_v4 = vld [vmem:[#allocation27_spill] sm:$0xff]  ;;  %5954 = vmatprep.subr.mxu0 %v11889_v48 }
 0xe41   :  { %5280 = vmatpush1.msra.mxu1 %v10791_v1  ;;  %v11376_v1 = vld [vmem:[%s11828_s4 + $0x60] sm:$0xff] }
 0xe42   :  { %5281 = vmatprep.subr.mxu1 %v10800_v10  ;;  %v11908_v10 = vld [vmem:[#allocation28_spill] sm:$0xff]  ;;  %5955 = vmatpush3.msra.mxu0 %v11376_v1 }
 0xe43   :  { %5282 = vmatpush1.msra.mxu1 %v10809_v14  ;;  %5956 = vmatprep.subr.mxu0 %v11889_v48  ;;  %v11385_v14 = vld [vmem:[%s11828_s4 + $0x58] sm:$0xff] }
 0xe44   :  { %5283 = vmatprep.subr.mxu1 %v10818_v22  ;;  %5957 = vmatpush3.msra.mxu0 %v11385_v14  ;;  %v11392_v22 = vld [vmem:[%s11828_s4 + $0x50] sm:$0xff] }
 0xe45   :  { %5284 = vmatpush1.msra.mxu1 %v10827_v30  ;;  %5958 = vmatprep.subr.mxu0 %v11889_v48  ;;  %v11399_v30 = vld [vmem:[%s11828_s4 + $0x48] sm:$0xff] }
 0xe46   :  { %5285 = vmatprep.subr.mxu1 %v10836_v7  ;;  %5959 = vmatpush3.msra.mxu0 %v11392_v22  ;;  %v11406_v7 = vld [vmem:[%s11828_s4 + $0x40] sm:$0xff] }
 0xe47   :  { %5286 = vmatpush1.msra.mxu1 %v10845_v15  ;;  %5960 = vmatprep.subr.mxu0 %v11889_v48  ;;  %v11411_v15 = vld [vmem:[%s11828_s4 + $0x38] sm:$0xff] }
 0xe48   :  { %5287 = vmatprep.subr.mxu1 %v10854_v13  ;;  %5961 = vmatpush3.msra.mxu0 %v11399_v30  ;;  %v11418_v13 = vld [vmem:[%s11828_s4 + $0x30] sm:$0xff] }
 0xe49   :  { %5288 = vmatpush1.msra.mxu1 %v10863_v21  ;;  %5962 = vmatprep.subr.mxu0 %v11889_v48  ;;  %v11425_v21 = vld [vmem:[%s11828_s4 + $0x28] sm:$0xff] }
 0xe4a   :  { %5289 = vmatprep.subr.mxu1 %v10872_v29  ;;  %5963 = vmatpush3.msra.mxu0 %v11406_v7  ;;  %v11432_v29 = vld [vmem:[%s11828_s4 + $0x20] sm:$0xff] }
 0xe4b   :  { %5290 = vmatpush1.msra.mxu1 %v10881_v37  ;;  %5964 = vmatprep.subr.mxu0 %v11889_v48  ;;  %v11439_v37 = vld [vmem:[%s11828_s4 + $0x18] sm:$0xff] }
 0xe4c   :  { %5291 = vmatprep.subr.mxu1 %v10890_v16  ;;  %5965 = vmatpush3.msra.mxu0 %v11411_v15  ;;  %v11446_v16 = vld [vmem:[%s11828_s4 + $0x10] sm:$0xff] }
 0xe4d   :  { %5292 = vmatpush2.msra.mxu1 %v10899_v63  ;;  %5966 = vmatprep.subr.mxu0 %v11889_v48  ;;  %v11453_v63 = vld [vmem:[%s11828_s4 + $0x8] sm:$0xff] }
 0xe4e   :  { %5293 = vmatprep.subr.mxu1 %v10908_v38  ;;  %5967 = vmatpush3.msra.mxu0 %v11418_v13  ;;  %v11460_v38 = vld [vmem:[%s11828_s4] sm:$0xff] }
 0xe4f   :  { %5294 = vmatpush2.msra.mxu1 %v10917_v46  ;;  %5968 = vmatprep.subr.mxu0 %v11889_v48  ;;  %v4898_v46 = vld [vmem:[%s11825_s1 + $0x1f8] sm:$0xff] }
 0xe50   :  { %5295 = vmatprep.subr.mxu1 %v10926_v54  ;;  %5969 = vmatpush3.msra.mxu0 %v11425_v21  ;;  %v4539_v54 = vld [vmem:[%s11830_s3] sm:$0xf] }
 0xe51   :  { %5296 = vmatpush2.msra.mxu1 %v10935_v20  ;;  %5970 = vmatprep.subr.mxu0 %v11889_v48  ;;  %v11909_v20 = vld [vmem:[#allocation5_spill] sm:$0xff]  ;;  %v4556_v43 = vrot.slane %v4539_v54, %v11911_v5  ;;  %v4552_v39 = vrot.slane %v4539_v54, %v11912_v18 }
 0xe52   :  { %5297 = vmatprep.subr.mxu1 %v10944_v6  ;;  %5971 = vmatpush3.msra.mxu0 %v11432_v29  ;;  %v4544_v6 = vrot.slane %v4539_v54, %v11909_v20 }
 0xe53   :  { %5298 = vmatpush2.msra.mxu1 %v10953_v12  ;;  %5972 = vmatprep.subr.mxu0 %v11889_v48  ;;  %v11910_v12 = vld [vmem:[#allocation6_spill] sm:$0xff] }
 0xe54   :  { %5299 = vmatprep.subr.mxu1 %v10962_v28  ;;  %5973 = vmatpush3.msra.mxu0 %v11439_v37  ;;  %v4548_v28 = vrot.slane %v4539_v54, %v11910_v12  ;;  %v4878_v54 = vld [vmem:[%s11825_s1 + $0x158] sm:$0xff] }
 0xe55   :  { %5300 = vmatpush2.msra.mxu1 %v10971_v9  ;;  %5974 = vmatprep.subr.mxu0 %v11889_v48 }
 0xe56   :  { %5301 = vmatprep.subr.mxu1 %v10980_v25  ;;  %5975 = vmatpush3.msra.mxu0 %v11446_v16 }
 0xe57   :  { %5302 = vmatpush2.msra.mxu1 %v10989_v27  ;;  %5976 = vmatprep.subr.mxu0 %v11889_v48 }
 0xe58   :  { %5303 = vmatprep.subr.mxu1 %v10998_v47  ;;  %5977 = vmatpush3.msra.mxu0 %v11453_v63 }
 0xe59   :  { %5304 = vmatpush2.msra.mxu1 %v11890_v23  ;;  %5978 = vmatprep.subr.mxu0 %v11889_v48 }
 0xe5a   :  { %5305 = vmatprep.subr.mxu1 %v11891_v11  ;;  %5979 = vmatpush3.msra.mxu0 %v11460_v38 }
 0xe5b   :  { %5306 = vmatpush2.msra.mxu1 %v11892_v31  ;;  %4970 = vmatprep.subr.mxu0 %v4898_v46  ;;  %v4881_v46 = vld [vmem:[%s11825_s1 + $0x170] sm:$0xff] }
 0xe5c   :  { %5307 = vmatprep.subr.mxu1 %v11893_v33 }
 0xe5d   :  { %5308 = vmatpush2.msra.mxu1 %v11894_v41 }
 0xe5e   :  { %5309 = vmatprep.subr.mxu1 %v11895_v45  ;;  %v11913_v45 = vld [vmem:[#allocation9_spill] sm:$0xff] }
 0xe5f   :  { %5310 = vmatpush2.msra.mxu1 %v11896_v49 }
 0xe60   :  { %5311 = vmatprep.subr.mxu1 %v11897_v51 }
 0xe61   :  { %5312 = vmatpush2.msra.mxu1 %v11898_v53 }
 0xe62   :  { %5313 = vmatprep.subr.mxu1 %v11899_v55 }
 0xe63   :  { %5314 = vmatpush2.msra.mxu1 %v11900_v57 }
 0xe64   :  { %5315 = vmatprep.subr.mxu1 %v11901_v24  ;;  %v4897_v24 = vld [vmem:[%s11825_s1 + $0x1f0] sm:$0xff] }
 0xe65   :  { %5316 = vmatpush2.msra.mxu1 %v11902_v34  ;;  %v4894_v34 = vld [vmem:[%s11825_s1 + $0x1d8] sm:$0xff] }
 0xe66   :  { %5317 = vmatprep.subr.mxu1 %v11903_v44  ;;  %v4893_v44 = vld [vmem:[%s11825_s1 + $0x1d0] sm:$0xff] }
 0xe67   :  { %5318 = vmatpush2.msra.mxu1 %v11904_v52  ;;  %v4890_v52 = vld [vmem:[%s11825_s1 + $0x1b8] sm:$0xff] }
 0xe68   :  { %5319 = vmatprep.subr.mxu1 %v11905_v50  ;;  %v4889_v50 = vld [vmem:[%s11825_s1 + $0x1b0] sm:$0xff] }
 0xe69   :  { %5320 = vmatpush2.msra.mxu1 %v11906_v58  ;;  %v4886_v58 = vld [vmem:[%s11825_s1 + $0x198] sm:$0xff] }
 0xe6a   :  { %5321 = vmatprep.subr.mxu1 %v11907_v4  ;;  %v4885_v4 = vld [vmem:[%s11825_s1 + $0x190] sm:$0xff] }
 0xe6b   :  { %5322 = vmatpush2.msra.mxu1 %v11908_v10  ;;  %v4882_v10 = vld [vmem:[%s11825_s1 + $0x178] sm:$0xff] }
 0xe6c   :  { %5983 = vmatprep.subr.mxu1 %v11889_v48 }
 0xecc   :  { %v4638_v9 = vpop.f32.mrf.mxu0  ;;  %v4709_v3 = vpop.f32.mrf.mxu1 }
 0xecd   :  { %v4639_v25 = vadd.f32 %v4638_v9, %v4544_v6  ;;  %v4710_v2 = vadd.f32 %v4709_v3, %v4552_v39  ;;  %v4877_v6 = vld [vmem:[%s11825_s1 + $0x150] sm:$0xff]  ;;  %v4862_v3 = vld [vmem:[%s11825_s1 + $0xd8] sm:$0xff] }
 0xece   :  { %v4640_v27 = vpop.f32.mrf.mxu0  ;;  %v4711_v32 = vpop.f32.mrf.mxu1  ;;  %v4873_v9 = vld [vmem:[%s11825_s1 + $0x130] sm:$0xff] }
 0xecf   :  { %v5587_v47 = vmul.f32 -1.442695, %v4639_v25  ;;  %v4641_v35 = vadd.f32 %v4640_v27, %v4548_v28  ;;  %v4712_v19 = vadd.f32 %v4711_v32, %v4556_v43  ;;  %v4874_v28 = vld [vmem:[%s11825_s1 + $0x138] sm:$0xff]  ;;  %v4869_v27 = vld [vmem:[%s11825_s1 + $0x110] sm:$0xff] }
 0xed0   :  { %v4870_v25 = vld [vmem:[%s11825_s1 + $0x118] sm:$0xff]  ;;  %v4857_v32 = vld [vmem:[%s11825_s1 + $0xb0] sm:$0xff] }
 0xed1   :  { %6229 = vpow2.f32 %v5587_v47  ;;  %v5588_v26 = vmul.f32 -1.442695, %v4641_v35  ;;  %v5589_v61 = vmul.f32 -1.442695, %v4712_v19  ;;  %v4866_v47 = vld [vmem:[%s11825_s1 + $0xf8] sm:$0xff]  ;;  %v4865_v35 = vld [vmem:[%s11825_s1 + $0xf0] sm:$0xff] }
 0xed2   :  { %v4858_v43 = vld [vmem:[%s11825_s1 + $0xb8] sm:$0xff]  ;;  %v4853_v39 = vld [vmem:[%s11825_s1 + $0x90] sm:$0xff] }
 0xed3   :  { %6231 = vpow2.f32 %v5588_v26  ;;  %v4861_v26 = vld [vmem:[%s11825_s1 + $0xd0] sm:$0xff]  ;;  %v4854_v19 = vld [vmem:[%s11825_s1 + $0x98] sm:$0xff] }
 0xed4   :  { %6233 = vpow2.f32 %v5589_v61  ;;  %v4850_v61 = vld [vmem:[%s11825_s1 + $0x78] sm:$0xff] }
 0xede   :  { %v6230_v36 = vpop.eup %6229 }
 0xedf   :  { %v4717_v8 = vadd.f32 1.0, %v6230_v36  ;;  %v4849_v36 = vld [vmem:[%s11825_s1 + $0x70] sm:$0xff] }
 0xee0   :  { %v6232_v56 = vpop.eup %6231 }
 0xee1   :  { %6235 = vrcp.f32 %v4717_v8  ;;  %v4723_v59 = vadd.f32 1.0, %v6232_v56  ;;  %v6234_v17 = vpop.eup %6233  ;;  %v4845_v8 = vld [vmem:[%s11825_s1 + $0x50] sm:$0xff]  ;;  %v4842_v56 = vld [vmem:[%s11825_s1 + $0x38] sm:$0xff] }
 0xee2   :  { %6237 = vtanh.f32 %v4710_v2  ;;  %v4730_v33 = vadd.f32 1.0, %v6234_v17  ;;  %v4846_v2 = vld [vmem:[%s11825_s1 + $0x58] sm:$0xff] }
 0xee3   :  { %6239 = vrcp.f32 %v4723_v59  ;;  %v4841_v59 = vld [vmem:[%s11825_s1 + $0x30] sm:$0xff]  ;;  %v4838_v17 = vld [vmem:[%s11825_s1 + $0x18] sm:$0xff] }
 0xee4   :  { %6241 = vrcp.f32 %v4730_v33  ;;  %v5157_v33 = vld [vmem:[%s11826_s2 + $0x1d8] sm:$0xff] }
 0xeee   :  { %v6236_v23 = vpop.eup %6235 }
 0xeef   :  { %v6238_v11 = vpop.eup %6237 }
 0xef0   :  { %v6240_v31 = vpop.eup %6239  ;;  %v4734_v41 = vmul.f32 %v6238_v11, %v6236_v23  ;;  %v4837_v23 = vld [vmem:[%s11825_s1 + $0x10] sm:$0xff]  ;;  %v5161_v11 = vld [vmem:[%s11826_s2 + $0x1f8] sm:$0xff] }
 0xef1   :  { %v4733_v49 = vmul.f32 %v6240_v31, %v11913_v45  ;;  %v6242_v53 = vpop.eup %6241  ;;  %v5160_v31 = vld [vmem:[%s11826_s2 + $0x1f0] sm:$0xff] }
 0xef2   :  { %v5152_v45 = vld [vmem:[%s11826_s2 + $0x1b0] sm:$0xff] }
 0xef3   :  { %v11476_v51 = vadd.f32 %v4734_v41, %v4733_v49  ;;  %v5156_v41 = vld [vmem:[%s11826_s2 + $0x1d0] sm:$0xff]  ;;  %v5149_v49 = vld [vmem:[%s11826_s2 + $0x198] sm:$0xff] }
 0xef5   :  { %6243 = vtanh.f32 %v11476_v51 }
 0xf02   :  { %v6244_v55 = vpop.eup %6243 }
 0xf03   :  { %v4737_v57 = vmul.f32 %v6244_v55, %v6242_v53  ;;  %v5148_v53 = vld [vmem:[%s11826_s2 + $0x190] sm:$0xff]  ;;  %v5145_v55 = vld [vmem:[%s11826_s2 + $0x178] sm:$0xff] }
 0xf05   :  { %5981 = vmatmul.mubr.f32.vlgmr.msra.gmra.mxu0 %v4737_v57  ;;  %5096 = vst [vmem:[#allocation2 + $0x2] sm:$0x3] %v4737_v57  ;;  %v5144_v57 = vld [vmem:[%s11826_s2 + $0x170] sm:$0xff] }
 0xf06   :  { %4971 = vmatpush1.msra.mxu0 %v4897_v24  ;;  %5034 = vmatprep.mubr.f32.mxu0 %v11889_v48  ;;  %v5141_v24 = vld [vmem:[%s11826_s2 + $0x158] sm:$0xff] }
 0xf07   :  { %4972 = vmatprep.subr.mxu0 %v4894_v34  ;;  %v5140_v34 = vld [vmem:[%s11826_s2 + $0x150] sm:$0xff] }
 0xf08   :  { %4973 = vmatpush1.msra.mxu0 %v4893_v44  ;;  %v5137_v44 = vld [vmem:[%s11826_s2 + $0x138] sm:$0xff] }
 0xf09   :  { %4974 = vmatprep.subr.mxu0 %v4890_v52  ;;  %v5136_v52 = vld [vmem:[%s11826_s2 + $0x130] sm:$0xff] }
 0xf0a   :  { %4975 = vmatpush1.msra.mxu0 %v4889_v50  ;;  %v5133_v50 = vld [vmem:[%s11826_s2 + $0x118] sm:$0xff] }
 0xf0b   :  { %4976 = vmatprep.subr.mxu0 %v4886_v58  ;;  %v5132_v58 = vld [vmem:[%s11826_s2 + $0x110] sm:$0xff] }
 0xf0c   :  { %4977 = vmatpush1.msra.mxu0 %v4885_v4  ;;  %v5129_v4 = vld [vmem:[%s11826_s2 + $0xf8] sm:$0xff] }
 0xf0d   :  { %4978 = vmatprep.subr.mxu0 %v4882_v10  ;;  %v5128_v10 = vld [vmem:[%s11826_s2 + $0xf0] sm:$0xff] }
 0xf0e   :  { %4979 = vmatpush1.msra.mxu0 %v4881_v46  ;;  %v5125_v46 = vld [vmem:[%s11826_s2 + $0xd8] sm:$0xff] }
 0xf0f   :  { %4980 = vmatprep.subr.mxu0 %v4878_v54  ;;  %v5124_v54 = vld [vmem:[%s11826_s2 + $0xd0] sm:$0xff] }
 0xf10   :  { %4981 = vmatpush1.msra.mxu0 %v4877_v6  ;;  %v5121_v6 = vld [vmem:[%s11826_s2 + $0xb8] sm:$0xff] }
 0xf11   :  { %4982 = vmatprep.subr.mxu0 %v4874_v28  ;;  %v5120_v28 = vld [vmem:[%s11826_s2 + $0xb0] sm:$0xff] }
 0xf12   :  { %4983 = vmatpush1.msra.mxu0 %v4873_v9  ;;  %v5117_v9 = vld [vmem:[%s11826_s2 + $0x98] sm:$0xff] }
 0xf13   :  { %4984 = vmatprep.subr.mxu0 %v4870_v25  ;;  %v5116_v25 = vld [vmem:[%s11826_s2 + $0x90] sm:$0xff] }
 0xf14   :  { %4985 = vmatpush1.msra.mxu0 %v4869_v27  ;;  %v5113_v27 = vld [vmem:[%s11826_s2 + $0x78] sm:$0xff] }
 0xf15   :  { %4986 = vmatprep.subr.mxu0 %v4866_v47  ;;  %v5112_v47 = vld [vmem:[%s11826_s2 + $0x70] sm:$0xff] }
 0xf16   :  { %4987 = vmatpush1.msra.mxu0 %v4865_v35  ;;  %v5109_v35 = vld [vmem:[%s11826_s2 + $0x58] sm:$0xff] }
 0xf17   :  { %4988 = vmatprep.subr.mxu0 %v4862_v3  ;;  %v5108_v3 = vld [vmem:[%s11826_s2 + $0x50] sm:$0xff] }
 0xf18   :  { %4989 = vmatpush1.msra.mxu0 %v4861_v26  ;;  %v5105_v26 = vld [vmem:[%s11826_s2 + $0x38] sm:$0xff] }
 0xf19   :  { %4990 = vmatprep.subr.mxu0 %v4858_v43  ;;  %v5104_v43 = vld [vmem:[%s11826_s2 + $0x30] sm:$0xff] }
 0xf1a   :  { %4991 = vmatpush1.msra.mxu0 %v4857_v32  ;;  %v5101_v32 = vld [vmem:[%s11826_s2 + $0x18] sm:$0xff] }
 0xf1b   :  { %4992 = vmatprep.subr.mxu0 %v4854_v19  ;;  %v5100_v19 = vld [vmem:[%s11826_s2 + $0x10] sm:$0xff] }
 0xf1c   :  { %4993 = vmatpush1.msra.mxu0 %v4853_v39  ;;  %v5225_v39 = vld [vmem:[%s11826_s2 + $0x3f8] sm:$0xff] }
 0xf1d   :  { %4994 = vmatprep.subr.mxu0 %v4850_v61  ;;  %v5224_v61 = vld [vmem:[%s11826_s2 + $0x3f0] sm:$0xff] }
 0xf1e   :  { %4995 = vmatpush1.msra.mxu0 %v4849_v36  ;;  %v5221_v36 = vld [vmem:[%s11826_s2 + $0x3d8] sm:$0xff] }
 0xf1f   :  { %4996 = vmatprep.subr.mxu0 %v4846_v2  ;;  %v5220_v2 = vld [vmem:[%s11826_s2 + $0x3d0] sm:$0xff] }
 0xf20   :  { %4997 = vmatpush1.msra.mxu0 %v4845_v8  ;;  %v5217_v8 = vld [vmem:[%s11826_s2 + $0x3b8] sm:$0xff] }
 0xf21   :  { %4998 = vmatprep.subr.mxu0 %v4842_v56  ;;  %v5216_v56 = vld [vmem:[%s11826_s2 + $0x3b0] sm:$0xff] }
 0xf22   :  { %4999 = vmatpush1.msra.mxu0 %v4841_v59  ;;  %v5213_v59 = vld [vmem:[%s11826_s2 + $0x398] sm:$0xff] }
 0xf23   :  { %5000 = vmatprep.subr.mxu0 %v4838_v17  ;;  %v5212_v17 = vld [vmem:[%s11826_s2 + $0x390] sm:$0xff] }
 0xf24   :  { %5001 = vmatpush1.msra.mxu0 %v4837_v23  ;;  %v5209_v23 = vld [vmem:[%s11826_s2 + $0x378] sm:$0xff] }
 0xf25   :  { %5035 = vmatmul.mubr.f32.vlgmr.msra.gmra.mxu0 %v11189_v40  ;;  %5330 = vmatprep.subr.mxu0 %v5161_v11  ;;  %v5153_v40 = vld [vmem:[%s11826_s2 + $0x1b8] sm:$0xff]  ;;  %v5208_v11 = vld [vmem:[%s11826_s2 + $0x370] sm:$0xff] }
 0xf26   :  { %5331 = vmatpush1.msra.mxu0 %v5160_v31  ;;  %v5205_v31 = vld [vmem:[%s11826_s2 + $0x358] sm:$0xff] }
 0xf27   :  { %5332 = vmatprep.subr.mxu0 %v5157_v33  ;;  %v5204_v33 = vld [vmem:[%s11826_s2 + $0x350] sm:$0xff] }
 0xf28   :  { %5333 = vmatpush1.msra.mxu0 %v5156_v41  ;;  %v5201_v41 = vld [vmem:[%s11826_s2 + $0x338] sm:$0xff] }
 0xf29   :  { %5334 = vmatprep.subr.mxu0 %v5153_v40  ;;  %v5200_v40 = vld [vmem:[%s11826_s2 + $0x330] sm:$0xff] }
 0xf2a   :  { %5335 = vmatpush1.msra.mxu0 %v5152_v45  ;;  %v5197_v45 = vld [vmem:[%s11826_s2 + $0x318] sm:$0xff] }
 0xf2b   :  { %5336 = vmatprep.subr.mxu0 %v5149_v49  ;;  %v5196_v49 = vld [vmem:[%s11826_s2 + $0x310] sm:$0xff] }
 0xf2c   :  { %5337 = vmatpush1.msra.mxu0 %v5148_v53  ;;  %v5193_v53 = vld [vmem:[%s11826_s2 + $0x2f8] sm:$0xff] }
 0xf2d   :  { %5338 = vmatprep.subr.mxu0 %v5145_v55  ;;  %v5192_v55 = vld [vmem:[%s11826_s2 + $0x2f0] sm:$0xff] }
 0xf2e   :  { %5339 = vmatpush1.msra.mxu0 %v5144_v57  ;;  %v5189_v57 = vld [vmem:[%s11826_s2 + $0x2d8] sm:$0xff] }
 0xf2f   :  { %5340 = vmatprep.subr.mxu0 %v5141_v24  ;;  %v5188_v24 = vld [vmem:[%s11826_s2 + $0x2d0] sm:$0xff] }
 0xf30   :  { %5341 = vmatpush1.msra.mxu0 %v5140_v34  ;;  %v5185_v34 = vld [vmem:[%s11826_s2 + $0x2b8] sm:$0xff] }
 0xf31   :  { %5342 = vmatprep.subr.mxu0 %v5137_v44  ;;  %v5184_v44 = vld [vmem:[%s11826_s2 + $0x2b0] sm:$0xff] }
 0xf32   :  { %5343 = vmatpush1.msra.mxu0 %v5136_v52  ;;  %v5181_v52 = vld [vmem:[%s11826_s2 + $0x298] sm:$0xff] }
 0xf33   :  { %5344 = vmatprep.subr.mxu0 %v5133_v50  ;;  %v5180_v50 = vld [vmem:[%s11826_s2 + $0x290] sm:$0xff] }
 0xf34   :  { %5345 = vmatpush1.msra.mxu0 %v5132_v58  ;;  %v5177_v58 = vld [vmem:[%s11826_s2 + $0x278] sm:$0xff] }
 0xf35   :  { %5346 = vmatprep.subr.mxu0 %v5129_v4  ;;  %v5176_v4 = vld [vmem:[%s11826_s2 + $0x270] sm:$0xff] }
 0xf36   :  { %5347 = vmatpush1.msra.mxu0 %v5128_v10  ;;  %v5173_v10 = vld [vmem:[%s11826_s2 + $0x258] sm:$0xff] }
 0xf37   :  { %5348 = vmatprep.subr.mxu0 %v5125_v46  ;;  %v5172_v46 = vld [vmem:[%s11826_s2 + $0x250] sm:$0xff] }
 0xf38   :  { %5349 = vmatpush1.msra.mxu0 %v5124_v54  ;;  %v5169_v54 = vld [vmem:[%s11826_s2 + $0x238] sm:$0xff] }
 0xf39   :  { %5350 = vmatprep.subr.mxu0 %v5121_v6  ;;  %v5168_v6 = vld [vmem:[%s11826_s2 + $0x230] sm:$0xff] }
 0xf3a   :  { %5351 = vmatpush1.msra.mxu0 %v5120_v28  ;;  %v5165_v28 = vld [vmem:[%s11826_s2 + $0x218] sm:$0xff] }
 0xf3b   :  { %5352 = vmatprep.subr.mxu0 %v5117_v9  ;;  %v5164_v9 = vld [vmem:[%s11826_s2 + $0x210] sm:$0xff] }
 0xf3c   :  { %5353 = vmatpush1.msra.mxu0 %v5116_v25  ;;  %v11766_v25 = vld [vmem:[#allocation3] ss:$0 sm:$0xff] }
 0xf3d   :  { %5354 = vmatprep.subr.mxu0 %v5113_v27 }
 0xf3e   :  { %5355 = vmatpush1.msra.mxu0 %v5112_v47 }
 0xf3f   :  { %5356 = vmatprep.subr.mxu0 %v5109_v35 }
 0xf40   :  { %5357 = vmatpush1.msra.mxu0 %v5108_v3  ;;  %v4965_v3 = vpop.f32.mrf.mxu1 }
 0xf41   :  { %5358 = vmatprep.subr.mxu0 %v5105_v26 }
 0xf42   :  { %5359 = vmatpush1.msra.mxu0 %v5104_v43  ;;  %v4967_v26 = vpop.f32.mrf.mxu1 }
 0xf43   :  { %5360 = vmatprep.subr.mxu0 %v5101_v32  ;;  %v5045_v32 = vcombine.low %v4965_v3, %v4967_v26 }
 0xf44   :  { %5361 = vmatpush1.msra.mxu0 %v5100_v19 }
 0xf45   :  { %5362 = vmatprep.subr.mxu0 %v5225_v39 }
 0xf46   :  { %5363 = vmatpush2.msra.mxu0 %v5224_v61  ;;  %v11914_v61 = vld [vmem:[#allocation4_spill] sm:$0xff] }
 0xf47   :  { %5364 = vmatprep.subr.mxu0 %v5221_v36  ;;  %v5053_v36 = vrot.slane %v5045_v32, %v11914_v61 }
 0xf48   :  { %5365 = vmatpush2.msra.mxu0 %v5220_v2 }
 0xf49   :  { %5366 = vmatprep.subr.mxu0 %v5217_v8  ;;  %v5592_v8 = vld [vmem:[%s11827_s0 + $0x38] sm:$0xff] }
 0xf4a   :  { %5367 = vmatpush2.msra.mxu0 %v5216_v56 }
 0xf4b   :  { %5368 = vmatprep.subr.mxu0 %v5213_v59 }
 0xf4c   :  { %5369 = vmatpush2.msra.mxu0 %v5212_v17 }
 0xf4d   :  { %5370 = vmatprep.subr.mxu0 %v5209_v23 }
 0xf4e   :  { %5371 = vmatpush2.msra.mxu0 %v5208_v11 }
 0xf4f   :  { %5372 = vmatprep.subr.mxu0 %v5205_v31 }
 0xf50   :  { %5373 = vmatpush2.msra.mxu0 %v5204_v33 }
 0xf51   :  { %5374 = vmatprep.subr.mxu0 %v5201_v41 }
 0xf52   :  { %5375 = vmatpush2.msra.mxu0 %v5200_v40 }
 0xf53   :  { %5376 = vmatprep.subr.mxu0 %v5197_v45 }
 0xf54   :  { %5377 = vmatpush2.msra.mxu0 %v5196_v49 }
 0xf55   :  { %5378 = vmatprep.subr.mxu0 %v5193_v53 }
 0xf56   :  { %5379 = vmatpush2.msra.mxu0 %v5192_v55 }
 0xf57   :  { %5380 = vmatprep.subr.mxu0 %v5189_v57 }
 0xf58   :  { %5381 = vmatpush2.msra.mxu0 %v5188_v24 }
 0xf59   :  { %5382 = vmatprep.subr.mxu0 %v5185_v34 }
 0xf5a   :  { %5383 = vmatpush2.msra.mxu0 %v5184_v44 }
 0xf5b   :  { %5384 = vmatprep.subr.mxu0 %v5181_v52 }
 0xf5c   :  { %5385 = vmatpush2.msra.mxu0 %v5180_v50 }
 0xf5d   :  { %5386 = vmatprep.subr.mxu0 %v5177_v58 }
 0xf5e   :  { %5387 = vmatpush2.msra.mxu0 %v5176_v4 }
 0xf5f   :  { %5388 = vmatprep.subr.mxu0 %v5173_v10 }
 0xf60   :  { %5389 = vmatpush2.msra.mxu0 %v5172_v46 }
 0xf61   :  { %5390 = vmatprep.subr.mxu0 %v5169_v54 }
 0xf62   :  { %5391 = vmatpush2.msra.mxu0 %v5168_v6 }
 0xf63   :  { %5392 = vmatprep.subr.mxu0 %v5165_v28 }
 0xf64   :  { %5393 = vmatpush2.msra.mxu0 %v5164_v9 }
 0xfc5   :  { %v4827_v27 = vpop.f32.mrf.mxu0 }
 0xfc6   :  { %v4828_v47 = vadd.f32 %v11766_v25, %v4827_v27 }
 0xfc7   :  { %v5982_v35 = vpop.f32.mrf.mxu0 }
 0xfc8   :  { %5591 = vst.msk [vmem:[%s11831_s6 + $0xc] sm:$0x3] %vm709_vm1, %v4828_v47 }
 0xfe5   :  { %v5036_v43 = vpop.f32.mrf.mxu0 }
 0xfe7   :  { %v5038_v19 = vpop.f32.mrf.mxu0 }
 0xfe8   :  { %v5046_v39 = vcombine.low %v5036_v43, %v5038_v19 }
 0xfea   :  { %v5060_v2 = vrot.slane %v5046_v39, %v11914_v61 }
 0xfec   :  { %v5061_v56 = vcombine.low %v5053_v36, %v5060_v2 }
 0xfee   :  { %v5063_v59 = vadd.f32 %v5592_v8, %v5061_v56 }
 0xff0   :  { %v5593_v17 = vmul.f32 -1.442695, %v5063_v59  ;;  %v5071_v23 = vrot.slane %v5063_v59, 2  ;;  %v5082_v31 = vrot.slane %v5063_v59, 6  ;;  %v5079_v40 = vrot.slane %v5063_v59, 4 }
 0xff2   :  { %6245 = vpow2.f32 %v5593_v17  ;;  %v5594_v11 = vmul.f32 -1.442695, %v5071_v23  ;;  %v5595_v33 = vmul.f32 -1.442695, %v5082_v31 }
 0xff4   :  { %6247 = vpow2.f32 %v5594_v11 }
 0xff5   :  { %6249 = vpow2.f32 %v5595_v33 }
 0xfff   :  { %v6246_v41 = vpop.eup %6245 }
0x1000   :  { %v5067_v45 = vadd.f32 1.0, %v6246_v41 }
0x1001   :  { %v6248_v49 = vpop.eup %6247 }
0x1002   :  { %6251 = vrcp.f32 %v5067_v45  ;;  %v5076_v53 = vadd.f32 1.0, %v6248_v49  ;;  %v6250_v55 = vpop.eup %6249 }
0x1003   :  { %6253 = vtanh.f32 %v5079_v40  ;;  %v5087_v44 = vadd.f32 1.0, %v6250_v55 }
0x1004   :  { %6255 = vrcp.f32 %v5076_v53 }
0x1005   :  { %6257 = vrcp.f32 %v5087_v44 }
0x100f   :  { %v6252_v57 = vpop.eup %6251 }
0x1010   :  { %v6254_v24 = vpop.eup %6253 }
0x1011   :  { %v6256_v34 = vpop.eup %6255  ;;  %v5091_v50 = vmul.f32 %v6254_v24, %v6252_v57 }
0x1012   :  { %v5090_v52 = vmul.f32 %v6256_v34, %v11186_v62  ;;  %v6258_v4 = vpop.eup %6257  ;;  %v5226_v62 = vld [vmem:[%s11830_s3] sm:$0xf] }
0x1014   :  { %v5092_v58 = vadd.f32 %v5091_v50, %v5090_v52 }
0x1016   :  { %6259 = vtanh.f32 %v5092_v58 }
0x1023   :  { %v6260_v10 = vpop.eup %6259 }
0x1024   :  { %v5094_v46 = vmul.f32 %v6260_v10, %v6258_v4 }
0x1026   :  { %5095 = vst [vmem:[#allocation2] sm:$0x3] %v5094_v46 }
0x102d   :  { %v5596_v54 = vld.sshfl [vmem:[#allocation2] sm:$0x33 pattern:$0x76325410] }
0x102e   :  { %v5256_v6 = vcombine.high %v5596_v54, %v5596_v54 }
0x1030   :  { %5323 = vmatprep.mubr.f32.mxu1 %v5256_v6  ;;  %5394 = vmatprep.mubr.f32.mxu0 %v5256_v6 }
0x1031   :  { %5324 = vmatmul.mubr.f32.vlgmr.msra.gmra.mxu1 %v5596_v54  ;;  %5395 = vmatmul.mubr.f32.vlgmr.msra.gmra.mxu0 %v5596_v54 }
0x1032   :  { %5984 = vmatpush3.msra.mxu1 %v11349_v0  ;;  %6015 = vmatprep.mubr.msk.f32.mxu1 %vm6279_vm0, %v11889_v48  ;;  %v5231_v0 = vrot.slane %v5226_v62, %v11909_v20 }
0x1033   :  { %5985 = vmatprep.subr.mxu1 %v11889_v48 }
0x1034   :  { %5986 = vmatpush3.msra.mxu1 %v11358_v42  ;;  %v5235_v42 = vrot.slane %v5226_v62, %v11910_v12 }
0x1035   :  { %5987 = vmatprep.subr.mxu1 %v11889_v48 }
0x1036   :  { %5988 = vmatpush3.msra.mxu1 %v11367_v60 }
0x1037   :  { %5989 = vmatprep.subr.mxu1 %v11889_v48 }
0x1038   :  { %5990 = vmatpush3.msra.mxu1 %v11376_v1 }
0x1039   :  { %5991 = vmatprep.subr.mxu1 %v11889_v48 }
0x103a   :  { %5992 = vmatpush3.msra.mxu1 %v11385_v14 }
0x103b   :  { %5993 = vmatprep.subr.mxu1 %v11889_v48 }
0x103c   :  { %5994 = vmatpush3.msra.mxu1 %v11392_v22 }
0x103d   :  { %5995 = vmatprep.subr.mxu1 %v11889_v48 }
0x103e   :  { %5996 = vmatpush3.msra.mxu1 %v11399_v30 }
0x103f   :  { %5997 = vmatprep.subr.mxu1 %v11889_v48 }
0x1040   :  { %5998 = vmatpush3.msra.mxu1 %v11406_v7 }
0x1041   :  { %5999 = vmatprep.subr.mxu1 %v11889_v48 }
0x1042   :  { %6000 = vmatpush3.msra.mxu1 %v11411_v15 }
0x1043   :  { %6001 = vmatprep.subr.mxu1 %v11889_v48 }
0x1044   :  { %6002 = vmatpush3.msra.mxu1 %v11418_v13 }
0x1045   :  { %6003 = vmatprep.subr.mxu1 %v11889_v48 }
0x1046   :  { %6004 = vmatpush3.msra.mxu1 %v11425_v21 }
0x1047   :  { %6005 = vmatprep.subr.mxu1 %v11889_v48 }
0x1048   :  { %6006 = vmatpush3.msra.mxu1 %v11432_v29  ;;  %v5239_v29 = vrot.slane %v5226_v62, %v11912_v18 }
0x1049   :  { %6007 = vmatprep.subr.mxu1 %v11889_v48 }
0x104a   :  { %6008 = vmatpush3.msra.mxu1 %v11439_v37 }
0x104b   :  { %6009 = vmatprep.subr.mxu1 %v11889_v48 }
0x104c   :  { %6010 = vmatpush3.msra.mxu1 %v11446_v16 }
0x104d   :  { %6011 = vmatprep.subr.mxu1 %v11889_v48 }
0x104e   :  { %6012 = vmatpush3.msra.mxu1 %v11453_v63 }
0x104f   :  { %6013 = vmatprep.subr.mxu1 %v11889_v48  ;;  %v5243_v48 = vrot.slane %v5226_v62, %v11911_v5 }
0x1050   :  { %6014 = vmatpush3.msra.mxu1 %v11460_v38 }
0x10f1   :  { %v5325_v60 = vpop.f32.mrf.mxu1  ;;  %v5396_v7 = vpop.f32.mrf.mxu0 }
0x10f2   :  { %v5326_v1 = vadd.f32 %v5325_v60, %v5231_v0  ;;  %v5397_v63 = vadd.f32 %v5396_v7, %v5239_v29 }
0x10f3   :  { %v5327_v14 = vpop.f32.mrf.mxu1  ;;  %v5398_v13 = vpop.f32.mrf.mxu0 }
0x10f4   :  { %v5597_v22 = vmul.f32 -1.442695, %v5326_v1  ;;  %v5328_v30 = vadd.f32 %v5327_v14, %v5235_v42  ;;  %v5399_v21 = vadd.f32 %v5398_v13, %v5243_v48 }
0x10f6   :  { %6261 = vpow2.f32 %v5597_v22  ;;  %v5598_v15 = vmul.f32 -1.442695, %v5328_v30  ;;  %v5599_v37 = vmul.f32 -1.442695, %v5399_v21 }
0x10f8   :  { %6263 = vpow2.f32 %v5598_v15 }
0x10f9   :  { %6265 = vpow2.f32 %v5599_v37 }
0x1103   :  { %v6262_v16 = vpop.eup %6261 }
0x1104   :  { %v5404_v38 = vadd.f32 1.0, %v6262_v16 }
0x1105   :  { %v6264_v20 = vpop.eup %6263 }
0x1106   :  { %6267 = vrcp.f32 %v5404_v38  ;;  %v5410_v12 = vadd.f32 1.0, %v6264_v20  ;;  %v6266_v28 = vpop.eup %6265 }
0x1107   :  { %6269 = vtanh.f32 %v5397_v63  ;;  %v5417_v35 = vadd.f32 1.0, %v6266_v28 }
0x1108   :  { %6271 = vrcp.f32 %v5410_v12 }
0x1109   :  { %6273 = vrcp.f32 %v5417_v35 }
0x1113   :  { %v6268_v9 = vpop.eup %6267 }
0x1114   :  { %v6270_v27 = vpop.eup %6269 }
0x1115   :  { %v6272_v47 = vpop.eup %6271  ;;  %v5421_v5 = vmul.f32 %v6270_v27, %v6268_v9 }
0x1116   :  { %v5420_v3 = vmul.f32 %v6272_v47, %v11476_v51  ;;  %v6274_v18 = vpop.eup %6273 }
0x1118   :  { %v5422_v26 = vadd.f32 %v5421_v5, %v5420_v3 }
0x111a   :  { %6275 = vtanh.f32 %v5422_v26 }
0x1127   :  { %v6276_v43 = vpop.eup %6275 }
0x1128   :  { %v5424_v32 = vmul.f32 %v6276_v43, %v6274_v18 }
0x112a   :  { %6016 = vmatmul.mubr.f32.vlgmr.msra.gmra.mxu1 %v5424_v32 }
0x11ea   :  { %v5514_v19 = vpop.f32.mrf.mxu1 }
0x11eb   :  { %v5515_v39 = vadd.f32 %v11766_v25, %v5514_v19 }
0x11ec   :  { %v6017_v61 = vpop.f32.mrf.mxu1 }
0x11ed   :  { %5601 = vst.msk [vmem:[%s11831_s6 + $0xe] sm:$0x3] %vm709_vm1, %v5515_v39 }

</bundles_post_ra>
